<compile_context>
chip_gen: v5e
topology: v5e:2x2
jax: 0.10.0
libtpu: 0.0.40
codegen_flags: <defaults>
</compile_context>

<pallas_src>
import numpy as np
import jax
import jax.numpy as jnp
from jax.experimental import pallas as pl
from jax.experimental.pallas import tpu as pltpu

LEAKY_SLOPE = 0.1
GN_EPS = 1e-5


# ----------------------------- config / params (mirrors __init__) ------------

def build_config(input_channels=4, latent_dim=32, image_size=16,
                 num_conv_layers_encoder=2, norm_groups=8):
    base = [max(16, 2 * input_channels), max(32, 4 * input_channels),
            max(64, 8 * input_channels), max(128, 16 * input_channels)]
    conv_ch_enc = [min(c, 256) for c in base][:num_conv_layers_encoder]
    kernels = [7, 5, 5, 3][:num_conv_layers_encoder]
    pads = [1] * num_conv_layers_encoder
    strides = [2] * num_conv_layers_encoder

    def gn_groups(ch):
        return min(norm_groups, ch) if ch >= norm_groups else 1

    enc, curr_ch, dim = [], input_channels, image_size
    for k, p, s, ch_out in zip(kernels, pads, strides, conv_ch_enc):
        hin = dim
        dim = (dim + 2 * p - k) // s + 1
        enc.append(dict(cin=curr_ch, cout=ch_out, k=k, s=s, p=p,
                        hin=hin, hout=dim, groups=gn_groups(ch_out)))
        curr_ch = ch_out
    final_ch, final_dim = curr_ch, dim
    flat = final_ch * final_dim * final_dim

    rev_ch = conv_ch_enc[::-1]
    target_chs = rev_ch[1:] + [input_channels]
    dec_k, dec_s, dec_p = kernels[::-1], strides[::-1], pads[::-1]
    tmp, dec, curr = final_dim, [], final_ch
    for i, ch_out in enumerate(target_chs):
        k, s, p = dec_k[i], dec_s[i], dec_p[i]
        tgt = (tmp - 1) * s - 2 * p + k
        op = int((tmp * s - tmp + k - 2 * p) % s)
        hin = tmp
        tmp = tgt + op
        dec.append(dict(cin=curr, cout=ch_out, k=k, s=s, p=p, op=op,
                        hin=hin, hout=tmp, groups=gn_groups(ch_out),
                        has_norm=(i < len(target_chs) - 1)))
        curr = ch_out
    return dict(enc=enc, dec=dec, flat=flat, final_ch=final_ch, final_dim=final_dim,
                latent_dim=latent_dim, input_channels=input_channels,
                image_size=image_size)


def _init_linear(key, fan_in, fan_out):
    kw, kb = jax.random.split(key)
    w = jax.random.normal(kw, (fan_in, fan_out), jnp.float32) / jnp.sqrt(float(fan_in))
    b = 0.01 * jax.random.normal(kb, (fan_out,), jnp.float32)
    return dict(w=w, b=b)


def init_params(key, cfg):
    keys = iter(jax.random.split(key, 16))
    params = dict(enc=[], dec=[])
    for spec in cfg['enc']:
        kk = jax.random.split(next(keys), 4)
        fan_in = spec['cin'] * spec['k'] * spec['k']
        params['enc'].append(dict(
            w=jax.random.normal(kk[0], (spec['cout'], spec['cin'], spec['k'],
                                        spec['k']), jnp.float32) / jnp.sqrt(float(fan_in)),
            b=0.01 * jax.random.normal(kk[1], (spec['cout'],), jnp.float32),
            gamma=1.0 + 0.05 * jax.random.normal(kk[2], (spec['cout'],), jnp.float32),
            beta=0.05 * jax.random.normal(kk[3], (spec['cout'],), jnp.float32)))
    params['fc_mu'] = _init_linear(next(keys), cfg['flat'], cfg['latent_dim'])
    params['fc_logvar'] = _init_linear(next(keys), cfg['flat'], cfg['latent_dim'])
    params['fc_to_conv'] = _init_linear(next(keys), cfg['latent_dim'], cfg['flat'])
    for spec in cfg['dec']:
        kk = jax.random.split(next(keys), 4)
        fan_in = spec['cin'] * spec['k'] * spec['k']
        d = dict(
            w=jax.random.normal(kk[0], (spec['cin'], spec['cout'], spec['k'],
                                        spec['k']), jnp.float32) / jnp.sqrt(float(fan_in)),
            b=0.01 * jax.random.normal(kk[1], (spec['cout'],), jnp.float32))
        if spec['has_norm']:
            d['gamma'] = 1.0 + 0.05 * jax.random.normal(kk[2], (spec['cout'],), jnp.float32)
            d['beta'] = 0.05 * jax.random.normal(kk[3], (spec['cout'],), jnp.float32)
        params['dec'].append(d)
    return params


# ------------------- init-time constant construction (runs once) -------------

def _conv_as_matrix(w, hin, stride, pad):
    """Dense operator M s.t. NHWC_flat(out) = NHWC_flat(in) @ M for Conv2d(w)."""
    w = np.asarray(w, np.float32)                       # (cout, cin, k, k)
    cout, cin, k, _ = w.shape
    hout = (hin + 2 * pad - k) // stride + 1
    M = np.zeros((hin * hin * cin, hout * hout * cout), np.float32)
    wkk = np.transpose(w, (2, 3, 1, 0))                 # (k, k, cin, cout)
    for oh in range(hout):
        for ow in range(hout):
            col = (oh * hout + ow) * cout
            for ki in range(k):
                hi = oh * stride - pad + ki
                if hi < 0 or hi >= hin:
                    continue
                for kj in range(k):
                    wi = ow * stride - pad + kj
                    if wi < 0 or wi >= hin:
                        continue
                    row = (hi * hin + wi) * cin
                    M[row:row + cin, col:col + cout] += wkk[ki, kj]
    return M, hout


def _convT_as_matrix(w, hin, stride, pad, out_pad):
    """ConvTranspose2d as a dense operator via the direct scatter (col2im) relation:
    out[ho,wo,co] += x[hi,wi,ci]*w[ci,co,ki,kj] with ho=hi*s-p+ki, wo=wi*s-p+kj."""
    w = np.asarray(w, np.float32)                       # (cin, cout, k, k)
    cin, cout, k, _ = w.shape
    hout = (hin - 1) * stride - 2 * pad + k + out_pad
    M = np.zeros((hin * hin * cin, hout * hout * cout), np.float32)
    for hi in range(hin):
        for wi in range(hin):
            row = (hi * hin + wi) * cin
            for ki in range(k):
                ho = hi * stride - pad + ki
                if ho < 0 or ho >= hout:
                    continue
                for kj in range(k):
                    wo = wi * stride - pad + kj
                    if wo < 0 or wo >= hout:
                        continue
                    col = (ho * hout + wo) * cout
                    M[row:row + cin, col:col + cout] += w[:, :, ki, kj]
    return M, hout


def _group_consts(P, C, G):
    assert C % G == 0, "GroupNorm requires C divisible by the group count"
    per = C // G
    one_hot = (np.arange(C)[:, None] // per == np.arange(G)[None, :]).astype(np.float32)
    gg = np.tile(one_hot, (P, 1))                       # (P*C, G)  gather
    gs = np.ascontiguousarray(gg.T)                     # (G, P*C)  scatter back
    return gg, gs, float(P * per)


def _cols(v, P):                                        # per-channel -> flat columns
    return np.tile(np.asarray(v, np.float32), P)        # index = p*C + c


def prepare_consts(params, cfg):
    assert not cfg['dec'][-1]['has_norm'] and all(s['has_norm'] for s in cfg['dec'][:-1])
    consts = dict(enc=[], dec_gn=[])
    for spec, p_ in zip(cfg['enc'], params['enc']):
        M, hout = _conv_as_matrix(p_['w'], spec['hin'], spec['s'], spec['p'])
        assert hout == spec['hout']
        P = hout * hout
        pgb = np.stack([_cols(p_['b'], P), _cols(p_['gamma'], P), _cols(p_['beta'], P)])
        gg, gs, cnt = _group_consts(P, spec['cout'], spec['groups'])
        consts['enc'].append(dict(M=jnp.asarray(M), pgb=jnp.asarray(pgb),
                                  gg=jnp.asarray(gg), gs=jnp.asarray(gs), cnt=cnt))
    # NHWC-flat index -> NCHW-flat index permutation at the conv <-> FC boundary.
    C, D = cfg['final_ch'], cfg['final_dim']
    hh, ww, cc = np.meshgrid(np.arange(D), np.arange(D), np.arange(C), indexing='ij')
    perm = ((cc * D + hh) * D + ww).reshape(-1)
    wmu = np.asarray(params['fc_mu']['w'], np.float32)[perm]
    wlv = np.asarray(params['fc_logvar']['w'], np.float32)[perm]
    consts['wml'] = jnp.asarray(np.concatenate([wmu, wlv], axis=1))        # (flat, 2L)
    consts['bml'] = jnp.asarray(np.concatenate(
        [np.asarray(params['fc_mu']['b'], np.float32),
         np.asarray(params['fc_logvar']['b'], np.float32)])[None, :])
    consts['wfc'] = jnp.asarray(np.asarray(params['fc_to_conv']['w'], np.float32)[:, perm])
    consts['bfc'] = jnp.asarray(np.asarray(params['fc_to_conv']['b'], np.float32)[perm][None, :])
    for spec, p_ in zip(cfg['dec'], params['dec']):
        M, hout = _convT_as_matrix(p_['w'], spec['hin'], spec['s'], spec['p'], spec['op'])
        assert hout == spec['hout']
        P = hout * hout
        if spec['has_norm']:
            pgb = np.stack([_cols(p_['b'], P), _cols(p_['gamma'], P), _cols(p_['beta'], P)])
            gg, gs, cnt = _group_consts(P, spec['cout'], spec['groups'])
            consts['dec_gn'].append(dict(M=jnp.asarray(M), pgb=jnp.asarray(pgb),
                                         gg=jnp.asarray(gg), gs=jnp.asarray(gs), cnt=cnt))
        else:
            consts['m_last'] = jnp.asarray(M)
            consts['b_last'] = jnp.asarray(_cols(p_['b'], P)[None, :])
    return consts


# ----------------------------- fused forward ----------------------------------

def make_forward(cfg, consts, batch_splits=1):
    L = cfg['latent_dim']
    n_enc = len(consts['enc'])
    n_dec_gn = len(consts['dec_gn'])
    enc_cnts = [l['cnt'] for l in consts['enc']]
    dec_cnts = [l['cnt'] for l in consts['dec_gn']]
    Fin = cfg['enc'][0]['hin'] ** 2 * cfg['input_channels']
    Hout = cfg['dec'][-1]['hout']
    Cout = cfg['dec'][-1]['cout']
    Fout = Hout * Hout * Cout
    splits = batch_splits

    def kernel(*refs):
        it = iter(refs)
        x_ref, eps_ref = next(it), next(it)
        enc_refs = [[next(it) for _ in range(4)] for _ in range(n_enc)]
        wml_ref, bml_ref = next(it), next(it)
        wfc_ref, bfc_ref = next(it), next(it)
        dec_refs = [[next(it) for _ in range(4)] for _ in range(n_dec_gn)]
        mlast_ref, blast_ref = next(it), next(it)
        recon_ref, lat_ref = next(it), next(it)

        def conv_gn(h, m_ref, pgb_ref, gg_ref, gs_ref, cnt):
            # conv(-transpose) as one matmul + bias, LeakyReLU(0.1),
            # GroupNorm with centered two-pass variance.
            y = jnp.dot(h, m_ref[...], preferred_element_type=jnp.float32)
            y = y + pgb_ref[0:1, :]
            y = jnp.where(y >= 0.0, y, LEAKY_SLOPE * y)
            gg, gs = gg_ref[...], gs_ref[...]
            inv = 1.0 / cnt
            mean = jnp.dot(jnp.dot(y, gg, preferred_element_type=jnp.float32) * inv,
                           gs, preferred_element_type=jnp.float32)
            d = y - mean
            var = jnp.dot(jnp.dot(d * d, gg, preferred_element_type=jnp.float32) * inv,
                          gs, preferred_element_type=jnp.float32)
            y = d * jax.lax.rsqrt(var + GN_EPS)
            return y * pgb_ref[1:2, :] + pgb_ref[2:3, :]

        # ----- encoder (activations stay NHWC-flat, batch folded into rows) -----
        h = x_ref[0]                                               # (Bs, Fin)
        for r, cnt in zip(enc_refs, enc_cnts):
            h = conv_gn(h, r[0], r[1], r[2], r[3], cnt)
        # ----- fc_mu / fc_logvar fused + reparameterize -----
        ml = jnp.dot(h, wml_ref[...], preferred_element_type=jnp.float32) + bml_ref[...]
        mu, lv = ml[:, :L], ml[:, L:2 * L]
        z = mu + eps_ref[0] * jnp.exp(0.5 * lv)
        lat_ref[0, 0] = mu
        lat_ref[0, 1] = lv
        lat_ref[0, 2] = z
        # ----- decoder -----
        h = jnp.dot(z, wfc_ref[...], preferred_element_type=jnp.float32) + bfc_ref[...]
        for r, cnt in zip(dec_refs, dec_cnts):
            h = conv_gn(h, r[0], r[1], r[2], r[3], cnt)
        y = jnp.dot(h, mlast_ref[...], preferred_element_type=jnp.float32) + blast_ref[...]
        recon_ref[0] = jnp.tanh(y)                                 # lane-dense (Bs, Fout)

    weight_args = []
    for layer in consts['enc']:
        weight_args += [layer['M'], layer['pgb'], layer['gg'], layer['gs']]
    weight_args += [consts['wml'], consts['bml'], consts['wfc'], consts['bfc']]
    for layer in consts['dec_gn']:
        weight_args += [layer['M'], layer['pgb'], layer['gg'], layer['gs']]
    weight_args += [consts['m_last'], consts['b_last']]
    weight_specs = [pl.BlockSpec(w.shape, lambda i, nd=w.ndim: (0,) * nd)
                    for w in weight_args]

    def forward(x, eps):
        B = x.shape[0]
        assert B % splits == 0
        Bs = B // splits
        x_flat = x.transpose(0, 2, 3, 1).reshape(splits, Bs, Fin)   # NCHW->NHWC-flat
        eps3 = eps.reshape(splits, Bs, L)
        in_specs = ([pl.BlockSpec((1, Bs, Fin), lambda i: (i, 0, 0)),
                     pl.BlockSpec((1, Bs, L), lambda i: (i, 0, 0))] + weight_specs)
        out_specs = (pl.BlockSpec((1, Bs, Fout), lambda i: (i, 0, 0)),
                     pl.BlockSpec((1, 3, Bs, L), lambda i: (i, 0, 0, 0)))
        out_shape = (jax.ShapeDtypeStruct((splits, Bs, Fout), jnp.float32),
                     jax.ShapeDtypeStruct((splits, 3, Bs, L), jnp.float32))
        recon_flat, lat = pl.pallas_call(
            kernel,
            out_shape=out_shape,
            grid=(splits,),
            in_specs=in_specs,
            out_specs=out_specs,
            compiler_params=pltpu.CompilerParams(
                dimension_semantics=("parallel",),
                vmem_limit_bytes=48 * 1024 * 1024),
        )(x_flat, eps3, *weight_args)
        recon = recon_flat.reshape(B, Hout, Hout, Cout).transpose(0, 3, 1, 2)  # -> NCHW
        mu = lat[:, 0].reshape(B, L)
        logvar = lat[:, 1].reshape(B, L)
        z = lat[:, 2].reshape(B, L)
        # TODO(synk): PyTorch falls back to F.interpolate(bilinear, align_corners=False)
        # when recon/x spatial shapes differ; they match exactly for this configuration.
        return recon, mu, logvar, z

    return forward


# ----------------------------- main --------------------------------------------

if __name__ == "__main__":
    cfg = build_config(input_channels=4, latent_dim=32, image_size=16,
                       num_conv_layers_encoder=2, norm_groups=8)
    key = jax.random.PRNGKey(0)
    kp, kx, ke = jax.random.split(key, 3)
    params = init_params(kp, cfg)
    consts = prepare_consts(params, cfg)

    # batch_splits=1 -> single fused grid point (best on v5e/v6e: one TensorCore).
    # On v7x (2 TCs/chip) use batch_splits=2 so the "parallel" axis spans both cores.
    forward = jax.jit(make_forward(cfg, consts, batch_splits=1))

    x = jax.random.normal(kx, (2, cfg['input_channels'], cfg['image_size'],
                               cfg['image_size']), jnp.float32)
    eps = jax.random.normal(ke, (2, cfg['latent_dim']), jnp.float32)

    recon, mu, logvar, z = forward(x, eps)
    jax.block_until_ready((recon, mu, logvar, z))

    assert recon.shape == x.shape, (recon.shape, x.shape)
    assert mu.shape == (2, cfg['latent_dim'])
    assert logvar.shape == (2, cfg['latent_dim'])
    assert z.shape == (2, cfg['latent_dim'])
    assert bool(jnp.all(jnp.isfinite(recon))) and bool(jnp.all(jnp.isfinite(z)))
    print("KERNEL_OK")
</pallas_src>

<mosaic_0001>
module attributes {stable_mosaic.version = 11 : i64} {
  func.func @kernel(%arg0: i32, %arg1: memref<1x2x1024xf32, #tpu.memory_space<vmem>>, %arg2: memref<1x2x32xf32, #tpu.memory_space<vmem>>, %arg3: memref<1024x576xf32, #tpu.memory_space<vmem>>, %arg4: memref<3x576xf32, #tpu.memory_space<vmem>>, %arg5: memref<576x8xf32, #tpu.memory_space<vmem>>, %arg6: memref<8x576xf32, #tpu.memory_space<vmem>>, %arg7: memref<576x128xf32, #tpu.memory_space<vmem>>, %arg8: memref<3x128xf32, #tpu.memory_space<vmem>>, %arg9: memref<128x8xf32, #tpu.memory_space<vmem>>, %arg10: memref<8x128xf32, #tpu.memory_space<vmem>>, %arg11: memref<128x64xf32, #tpu.memory_space<vmem>>, %arg12: memref<1x64xf32, #tpu.memory_space<vmem>>, %arg13: memref<32x128xf32, #tpu.memory_space<vmem>>, %arg14: memref<1x128xf32, #tpu.memory_space<vmem>>, %arg15: memref<128x576xf32, #tpu.memory_space<vmem>>, %arg16: memref<3x576xf32, #tpu.memory_space<vmem>>, %arg17: memref<576x8xf32, #tpu.memory_space<vmem>>, %arg18: memref<8x576xf32, #tpu.memory_space<vmem>>, %arg19: memref<576x1024xf32, #tpu.memory_space<vmem>>, %arg20: memref<1x1024xf32, #tpu.memory_space<vmem>>, %arg21: memref<1x2x1024xf32, #tpu.memory_space<vmem>>, %arg22: memref<1x3x2x32xf32, #tpu.memory_space<vmem>>) attributes {dimension_semantics = [#tpu.dimension_semantics<parallel>], iteration_bounds = array<i64: 1>, scalar_prefetch = 0 : i64, scratch_operands = 0 : i64, tpu.core_type = #tpu.core_type<tc>, window_params = [{transform_indices = @transform_0, window_bounds = array<i64: 1, 2, 1024>}, {transform_indices = @transform_1, window_bounds = array<i64: 1, 2, 32>}, {pipeline_mode = #tpu.pipeline_mode<synchronous>, transform_indices = @transform_2, window_bounds = array<i64: 1024, 576>}, {pipeline_mode = #tpu.pipeline_mode<synchronous>, transform_indices = @transform_3, window_bounds = array<i64: 3, 576>}, {pipeline_mode = #tpu.pipeline_mode<synchronous>, transform_indices = @transform_4, window_bounds = array<i64: 576, 8>}, {pipeline_mode = #tpu.pipeline_mode<synchronous>, transform_indices = @transform_5, window_bounds = array<i64: 8, 576>}, {pipeline_mode = #tpu.pipeline_mode<synchronous>, transform_indices = @transform_6, window_bounds = array<i64: 576, 128>}, {pipeline_mode = #tpu.pipeline_mode<synchronous>, transform_indices = @transform_7, window_bounds = array<i64: 3, 128>}, {pipeline_mode = #tpu.pipeline_mode<synchronous>, transform_indices = @transform_8, window_bounds = array<i64: 128, 8>}, {pipeline_mode = #tpu.pipeline_mode<synchronous>, transform_indices = @transform_9, window_bounds = array<i64: 8, 128>}, {pipeline_mode = #tpu.pipeline_mode<synchronous>, transform_indices = @transform_10, window_bounds = array<i64: 128, 64>}, {pipeline_mode = #tpu.pipeline_mode<synchronous>, transform_indices = @transform_11, window_bounds = array<i64: 1, 64>}, {pipeline_mode = #tpu.pipeline_mode<synchronous>, transform_indices = @transform_12, window_bounds = array<i64: 32, 128>}, {pipeline_mode = #tpu.pipeline_mode<synchronous>, transform_indices = @transform_13, window_bounds = array<i64: 1, 128>}, {pipeline_mode = #tpu.pipeline_mode<synchronous>, transform_indices = @transform_14, window_bounds = array<i64: 128, 576>}, {pipeline_mode = #tpu.pipeline_mode<synchronous>, transform_indices = @transform_15, window_bounds = array<i64: 3, 576>}, {pipeline_mode = #tpu.pipeline_mode<synchronous>, transform_indices = @transform_16, window_bounds = array<i64: 576, 8>}, {pipeline_mode = #tpu.pipeline_mode<synchronous>, transform_indices = @transform_17, window_bounds = array<i64: 8, 576>}, {pipeline_mode = #tpu.pipeline_mode<synchronous>, transform_indices = @transform_18, window_bounds = array<i64: 576, 1024>}, {pipeline_mode = #tpu.pipeline_mode<synchronous>, transform_indices = @transform_19, window_bounds = array<i64: 1, 1024>}, {transform_indices = @transform_20, window_bounds = array<i64: 1, 2, 1024>}, {transform_indices = @transform_21, window_bounds = array<i64: 1, 3, 2, 32>}]} {
    %c0 = arith.constant 0 : index
    %c0_0 = arith.constant 0 : index
    %c0_1 = arith.constant 0 : index
    %0 = vector.load %arg1[%c0, %c0_0, %c0_1] : memref<1x2x1024xf32, #tpu.memory_space<vmem>>, vector<1x2x1024xf32>
    %1 = vector.shape_cast %0 : vector<1x2x1024xf32> to vector<2x1024xf32>
    %c0_2 = arith.constant 0 : index
    %c0_3 = arith.constant 0 : index
    %2 = vector.load %arg3[%c0_2, %c0_3] : memref<1024x576xf32, #tpu.memory_space<vmem>>, vector<1024x576xf32>
    %cst = arith.constant dense<0.000000e+00> : vector<2x576xf32>
    %3 = tpu.matmul %1, %2, %cst {dimension_numbers = #tpu.dot_dimension_numbers<[1], [0], [0], [1], [0, 0, 1, 1], [], []>} : vector<2x1024xf32>, vector<1024x576xf32>, vector<2x576xf32> -> vector<2x576xf32>
    %c0_4 = arith.constant 0 : index
    %c0_5 = arith.constant 0 : index
    %4 = vector.load %arg4[%c0_4, %c0_5] : memref<3x576xf32, #tpu.memory_space<vmem>>, vector<1x576xf32>
    %5 = vector.broadcast %4 : vector<1x576xf32> to vector<2x576xf32>
    %6 = arith.addf %3, %5 : vector<2x576xf32>
    %cst_6 = arith.constant 0.000000e+00 : f32
    %7 = vector.broadcast %cst_6 : f32 to vector<2x576xf32>
    %8 = arith.cmpf oge, %6, %7 : vector<2x576xf32>
    %cst_7 = arith.constant 1.000000e-01 : f32
    %9 = vector.broadcast %cst_7 : f32 to vector<2x576xf32>
    %10 = arith.mulf %9, %6 : vector<2x576xf32>
    %11 = arith.select %8, %6, %10 : vector<2x576xi1>, vector<2x576xf32>
    %c0_8 = arith.constant 0 : index
    %c0_9 = arith.constant 0 : index
    %12 = vector.load %arg5[%c0_8, %c0_9] : memref<576x8xf32, #tpu.memory_space<vmem>>, vector<576x8xf32>
    %c0_10 = arith.constant 0 : index
    %c0_11 = arith.constant 0 : index
    %13 = vector.load %arg6[%c0_10, %c0_11] : memref<8x576xf32, #tpu.memory_space<vmem>>, vector<8x576xf32>
    %cst_12 = arith.constant dense<0.000000e+00> : vector<2x8xf32>
    %14 = tpu.matmul %11, %12, %cst_12 {dimension_numbers = #tpu.dot_dimension_numbers<[1], [0], [0], [1], [0, 0, 1, 1], [], []>} : vector<2x576xf32>, vector<576x8xf32>, vector<2x8xf32> -> vector<2x8xf32>
    %cst_13 = arith.constant 0.013888889 : f32
    %15 = vector.broadcast %cst_13 : f32 to vector<2x8xf32>
    %16 = arith.mulf %14, %15 : vector<2x8xf32>
    %cst_14 = arith.constant dense<0.000000e+00> : vector<2x576xf32>
    %17 = tpu.matmul %16, %13, %cst_14 {dimension_numbers = #tpu.dot_dimension_numbers<[1], [0], [0], [1], [0, 0, 1, 1], [], []>} : vector<2x8xf32>, vector<8x576xf32>, vector<2x576xf32> -> vector<2x576xf32>
    %18 = arith.subf %11, %17 : vector<2x576xf32>
    %19 = arith.mulf %18, %18 : vector<2x576xf32>
    %cst_15 = arith.constant dense<0.000000e+00> : vector<2x8xf32>
    %20 = tpu.matmul %19, %12, %cst_15 {dimension_numbers = #tpu.dot_dimension_numbers<[1], [0], [0], [1], [0, 0, 1, 1], [], []>} : vector<2x576xf32>, vector<576x8xf32>, vector<2x8xf32> -> vector<2x8xf32>
    %cst_16 = arith.constant 0.013888889 : f32
    %21 = vector.broadcast %cst_16 : f32 to vector<2x8xf32>
    %22 = arith.mulf %20, %21 : vector<2x8xf32>
    %cst_17 = arith.constant dense<0.000000e+00> : vector<2x576xf32>
    %23 = tpu.matmul %22, %13, %cst_17 {dimension_numbers = #tpu.dot_dimension_numbers<[1], [0], [0], [1], [0, 0, 1, 1], [], []>} : vector<2x8xf32>, vector<8x576xf32>, vector<2x576xf32> -> vector<2x576xf32>
    %cst_18 = arith.constant 9.99999974E-6 : f32
    %24 = vector.broadcast %cst_18 : f32 to vector<2x576xf32>
    %25 = arith.addf %23, %24 : vector<2x576xf32>
    %26 = math.rsqrt %25 : vector<2x576xf32>
    %27 = arith.mulf %18, %26 : vector<2x576xf32>
    %c1 = arith.constant 1 : index
    %c0_19 = arith.constant 0 : index
    %28 = vector.load %arg4[%c1, %c0_19] : memref<3x576xf32, #tpu.memory_space<vmem>>, vector<1x576xf32>
    %29 = vector.broadcast %28 : vector<1x576xf32> to vector<2x576xf32>
    %30 = arith.mulf %27, %29 : vector<2x576xf32>
    %c2 = arith.constant 2 : index
    %c0_20 = arith.constant 0 : index
    %31 = vector.load %arg4[%c2, %c0_20] : memref<3x576xf32, #tpu.memory_space<vmem>>, vector<1x576xf32>
    %32 = vector.broadcast %31 : vector<1x576xf32> to vector<2x576xf32>
    %33 = arith.addf %30, %32 : vector<2x576xf32>
    %c0_21 = arith.constant 0 : index
    %c0_22 = arith.constant 0 : index
    %34 = vector.load %arg7[%c0_21, %c0_22] : memref<576x128xf32, #tpu.memory_space<vmem>>, vector<576x128xf32>
    %cst_23 = arith.constant dense<0.000000e+00> : vector<2x128xf32>
    %35 = tpu.matmul %33, %34, %cst_23 {dimension_numbers = #tpu.dot_dimension_numbers<[1], [0], [0], [1], [0, 0, 1, 1], [], []>} : vector<2x576xf32>, vector<576x128xf32>, vector<2x128xf32> -> vector<2x128xf32>
    %c0_24 = arith.constant 0 : index
    %c0_25 = arith.constant 0 : index
    %36 = vector.load %arg8[%c0_24, %c0_25] : memref<3x128xf32, #tpu.memory_space<vmem>>, vector<1x128xf32>
    %37 = vector.broadcast %36 : vector<1x128xf32> to vector<2x128xf32>
    %38 = arith.addf %35, %37 : vector<2x128xf32>
    %cst_26 = arith.constant 0.000000e+00 : f32
    %39 = vector.broadcast %cst_26 : f32 to vector<2x128xf32>
    %40 = arith.cmpf oge, %38, %39 : vector<2x128xf32>
    %cst_27 = arith.constant 1.000000e-01 : f32
    %41 = vector.broadcast %cst_27 : f32 to vector<2x128xf32>
    %42 = arith.mulf %41, %38 : vector<2x128xf32>
    %43 = arith.select %40, %38, %42 : vector<2x128xi1>, vector<2x128xf32>
    %c0_28 = arith.constant 0 : index
    %c0_29 = arith.constant 0 : index
    %44 = vector.load %arg9[%c0_28, %c0_29] : memref<128x8xf32, #tpu.memory_space<vmem>>, vector<128x8xf32>
    %c0_30 = arith.constant 0 : index
    %c0_31 = arith.constant 0 : index
    %45 = vector.load %arg10[%c0_30, %c0_31] : memref<8x128xf32, #tpu.memory_space<vmem>>, vector<8x128xf32>
    %cst_32 = arith.constant dense<0.000000e+00> : vector<2x8xf32>
    %46 = tpu.matmul %43, %44, %cst_32 {dimension_numbers = #tpu.dot_dimension_numbers<[1], [0], [0], [1], [0, 0, 1, 1], [], []>} : vector<2x128xf32>, vector<128x8xf32>, vector<2x8xf32> -> vector<2x8xf32>
    %cst_33 = arith.constant 6.250000e-02 : f32
    %47 = vector.broadcast %cst_33 : f32 to vector<2x8xf32>
    %48 = arith.mulf %46, %47 : vector<2x8xf32>
    %cst_34 = arith.constant dense<0.000000e+00> : vector<2x128xf32>
    %49 = tpu.matmul %48, %45, %cst_34 {dimension_numbers = #tpu.dot_dimension_numbers<[1], [0], [0], [1], [0, 0, 1, 1], [], []>} : vector<2x8xf32>, vector<8x128xf32>, vector<2x128xf32> -> vector<2x128xf32>
    %50 = arith.subf %43, %49 : vector<2x128xf32>
    %51 = arith.mulf %50, %50 : vector<2x128xf32>
    %cst_35 = arith.constant dense<0.000000e+00> : vector<2x8xf32>
    %52 = tpu.matmul %51, %44, %cst_35 {dimension_numbers = #tpu.dot_dimension_numbers<[1], [0], [0], [1], [0, 0, 1, 1], [], []>} : vector<2x128xf32>, vector<128x8xf32>, vector<2x8xf32> -> vector<2x8xf32>
    %cst_36 = arith.constant 6.250000e-02 : f32
    %53 = vector.broadcast %cst_36 : f32 to vector<2x8xf32>
    %54 = arith.mulf %52, %53 : vector<2x8xf32>
    %cst_37 = arith.constant dense<0.000000e+00> : vector<2x128xf32>
    %55 = tpu.matmul %54, %45, %cst_37 {dimension_numbers = #tpu.dot_dimension_numbers<[1], [0], [0], [1], [0, 0, 1, 1], [], []>} : vector<2x8xf32>, vector<8x128xf32>, vector<2x128xf32> -> vector<2x128xf32>
    %cst_38 = arith.constant 9.99999974E-6 : f32
    %56 = vector.broadcast %cst_38 : f32 to vector<2x128xf32>
    %57 = arith.addf %55, %56 : vector<2x128xf32>
    %58 = math.rsqrt %57 : vector<2x128xf32>
    %59 = arith.mulf %50, %58 : vector<2x128xf32>
    %c1_39 = arith.constant 1 : index
    %c0_40 = arith.constant 0 : index
    %60 = vector.load %arg8[%c1_39, %c0_40] : memref<3x128xf32, #tpu.memory_space<vmem>>, vector<1x128xf32>
    %61 = vector.broadcast %60 : vector<1x128xf32> to vector<2x128xf32>
    %62 = arith.mulf %59, %61 : vector<2x128xf32>
    %c2_41 = arith.constant 2 : index
    %c0_42 = arith.constant 0 : index
    %63 = vector.load %arg8[%c2_41, %c0_42] : memref<3x128xf32, #tpu.memory_space<vmem>>, vector<1x128xf32>
    %64 = vector.broadcast %63 : vector<1x128xf32> to vector<2x128xf32>
    %65 = arith.addf %62, %64 : vector<2x128xf32>
    %c0_43 = arith.constant 0 : index
    %c0_44 = arith.constant 0 : index
    %66 = vector.load %arg11[%c0_43, %c0_44] : memref<128x64xf32, #tpu.memory_space<vmem>>, vector<128x64xf32>
    %cst_45 = arith.constant dense<0.000000e+00> : vector<2x64xf32>
    %67 = tpu.matmul %65, %66, %cst_45 {dimension_numbers = #tpu.dot_dimension_numbers<[1], [0], [0], [1], [0, 0, 1, 1], [], []>} : vector<2x128xf32>, vector<128x64xf32>, vector<2x64xf32> -> vector<2x64xf32>
    %c0_46 = arith.constant 0 : index
    %c0_47 = arith.constant 0 : index
    %68 = vector.load %arg12[%c0_46, %c0_47] : memref<1x64xf32, #tpu.memory_space<vmem>>, vector<1x64xf32>
    %69 = vector.broadcast %68 : vector<1x64xf32> to vector<2x64xf32>
    %70 = arith.addf %67, %69 : vector<2x64xf32>
    %71 = vector.extract_strided_slice %70 {offsets = [0, 0], sizes = [2, 32], strides = [1, 1]} : vector<2x64xf32> to vector<2x32xf32>
    %72 = vector.extract_strided_slice %70 {offsets = [0, 32], sizes = [2, 32], strides = [1, 1]} : vector<2x64xf32> to vector<2x32xf32>
    %c0_48 = arith.constant 0 : index
    %c0_49 = arith.constant 0 : index
    %c0_50 = arith.constant 0 : index
    %73 = vector.load %arg2[%c0_48, %c0_49, %c0_50] : memref<1x2x32xf32, #tpu.memory_space<vmem>>, vector<1x2x32xf32>
    %74 = vector.shape_cast %73 : vector<1x2x32xf32> to vector<2x32xf32>
    %cst_51 = arith.constant 5.000000e-01 : f32
    %75 = vector.broadcast %cst_51 : f32 to vector<2x32xf32>
    %76 = arith.mulf %75, %72 : vector<2x32xf32>
    %77 = math.exp %76 : vector<2x32xf32>
    %78 = arith.mulf %74, %77 : vector<2x32xf32>
    %79 = arith.addf %71, %78 : vector<2x32xf32>
    %c0_52 = arith.constant 0 : index
    %c0_53 = arith.constant 0 : index
    %c0_54 = arith.constant 0 : index
    %c0_55 = arith.constant 0 : index
    %80 = vector.load %arg22[%c0_52, %c0_53, %c0_54, %c0_55] : memref<1x3x2x32xf32, #tpu.memory_space<vmem>>, vector<1x1x2x32xf32>
    %81 = vector.shape_cast %80 : vector<1x1x2x32xf32> to vector<2x32xf32>
    %82 = vector.shape_cast %71 : vector<2x32xf32> to vector<1x1x2x32xf32>
    tpu.vector_store %arg22[%c0_52, %c0_53, %c0_54, %c0_55], %82 {strides = array<i32>} : memref<1x3x2x32xf32, #tpu.memory_space<vmem>>, vector<1x1x2x32xf32>,
    %c0_56 = arith.constant 0 : index
    %c1_57 = arith.constant 1 : index
    %c0_58 = arith.constant 0 : index
    %c0_59 = arith.constant 0 : index
    %83 = vector.load %arg22[%c0_56, %c1_57, %c0_58, %c0_59] : memref<1x3x2x32xf32, #tpu.memory_space<vmem>>, vector<1x1x2x32xf32>
    %84 = vector.shape_cast %83 : vector<1x1x2x32xf32> to vector<2x32xf32>
    %85 = vector.shape_cast %72 : vector<2x32xf32> to vector<1x1x2x32xf32>
    tpu.vector_store %arg22[%c0_56, %c1_57, %c0_58, %c0_59], %85 {strides = array<i32>} : memref<1x3x2x32xf32, #tpu.memory_space<vmem>>, vector<1x1x2x32xf32>,
    %c0_60 = arith.constant 0 : index
    %c2_61 = arith.constant 2 : index
    %c0_62 = arith.constant 0 : index
    %c0_63 = arith.constant 0 : index
    %86 = vector.load %arg22[%c0_60, %c2_61, %c0_62, %c0_63] : memref<1x3x2x32xf32, #tpu.memory_space<vmem>>, vector<1x1x2x32xf32>
    %87 = vector.shape_cast %86 : vector<1x1x2x32xf32> to vector<2x32xf32>
    %88 = vector.shape_cast %79 : vector<2x32xf32> to vector<1x1x2x32xf32>
    tpu.vector_store %arg22[%c0_60, %c2_61, %c0_62, %c0_63], %88 {strides = array<i32>} : memref<1x3x2x32xf32, #tpu.memory_space<vmem>>, vector<1x1x2x32xf32>,
    %c0_64 = arith.constant 0 : index
    %c0_65 = arith.constant 0 : index
    %89 = vector.load %arg13[%c0_64, %c0_65] : memref<32x128xf32, #tpu.memory_space<vmem>>, vector<32x128xf32>
    %cst_66 = arith.constant dense<0.000000e+00> : vector<2x128xf32>
    %90 = tpu.matmul %79, %89, %cst_66 {dimension_numbers = #tpu.dot_dimension_numbers<[1], [0], [0], [1], [0, 0, 1, 1], [], []>} : vector<2x32xf32>, vector<32x128xf32>, vector<2x128xf32> -> vector<2x128xf32>
    %c0_67 = arith.constant 0 : index
    %c0_68 = arith.constant 0 : index
    %91 = vector.load %arg14[%c0_67, %c0_68] : memref<1x128xf32, #tpu.memory_space<vmem>>, vector<1x128xf32>
    %92 = vector.broadcast %91 : vector<1x128xf32> to vector<2x128xf32>
    %93 = arith.addf %90, %92 : vector<2x128xf32>
    %c0_69 = arith.constant 0 : index
    %c0_70 = arith.constant 0 : index
    %94 = vector.load %arg15[%c0_69, %c0_70] : memref<128x576xf32, #tpu.memory_space<vmem>>, vector<128x576xf32>
    %cst_71 = arith.constant dense<0.000000e+00> : vector<2x576xf32>
    %95 = tpu.matmul %93, %94, %cst_71 {dimension_numbers = #tpu.dot_dimension_numbers<[1], [0], [0], [1], [0, 0, 1, 1], [], []>} : vector<2x128xf32>, vector<128x576xf32>, vector<2x576xf32> -> vector<2x576xf32>
    %c0_72 = arith.constant 0 : index
    %c0_73 = arith.constant 0 : index
    %96 = vector.load %arg16[%c0_72, %c0_73] : memref<3x576xf32, #tpu.memory_space<vmem>>, vector<1x576xf32>
    %97 = vector.broadcast %96 : vector<1x576xf32> to vector<2x576xf32>
    %98 = arith.addf %95, %97 : vector<2x576xf32>
    %cst_74 = arith.constant 0.000000e+00 : f32
    %99 = vector.broadcast %cst_74 : f32 to vector<2x576xf32>
    %100 = arith.cmpf oge, %98, %99 : vector<2x576xf32>
    %cst_75 = arith.constant 1.000000e-01 : f32
    %101 = vector.broadcast %cst_75 : f32 to vector<2x576xf32>
    %102 = arith.mulf %101, %98 : vector<2x576xf32>
    %103 = arith.select %100, %98, %102 : vector<2x576xi1>, vector<2x576xf32>
    %c0_76 = arith.constant 0 : index
    %c0_77 = arith.constant 0 : index
    %104 = vector.load %arg17[%c0_76, %c0_77] : memref<576x8xf32, #tpu.memory_space<vmem>>, vector<576x8xf32>
    %c0_78 = arith.constant 0 : index
    %c0_79 = arith.constant 0 : index
    %105 = vector.load %arg18[%c0_78, %c0_79] : memref<8x576xf32, #tpu.memory_space<vmem>>, vector<8x576xf32>
    %cst_80 = arith.constant dense<0.000000e+00> : vector<2x8xf32>
    %106 = tpu.matmul %103, %104, %cst_80 {dimension_numbers = #tpu.dot_dimension_numbers<[1], [0], [0], [1], [0, 0, 1, 1], [], []>} : vector<2x576xf32>, vector<576x8xf32>, vector<2x8xf32> -> vector<2x8xf32>
    %cst_81 = arith.constant 0.013888889 : f32
    %107 = vector.broadcast %cst_81 : f32 to vector<2x8xf32>
    %108 = arith.mulf %106, %107 : vector<2x8xf32>
    %cst_82 = arith.constant dense<0.000000e+00> : vector<2x576xf32>
    %109 = tpu.matmul %108, %105, %cst_82 {dimension_numbers = #tpu.dot_dimension_numbers<[1], [0], [0], [1], [0, 0, 1, 1], [], []>} : vector<2x8xf32>, vector<8x576xf32>, vector<2x576xf32> -> vector<2x576xf32>
    %110 = arith.subf %103, %109 : vector<2x576xf32>
    %111 = arith.mulf %110, %110 : vector<2x576xf32>
    %cst_83 = arith.constant dense<0.000000e+00> : vector<2x8xf32>
    %112 = tpu.matmul %111, %104, %cst_83 {dimension_numbers = #tpu.dot_dimension_numbers<[1], [0], [0], [1], [0, 0, 1, 1], [], []>} : vector<2x576xf32>, vector<576x8xf32>, vector<2x8xf32> -> vector<2x8xf32>
    %cst_84 = arith.constant 0.013888889 : f32
    %113 = vector.broadcast %cst_84 : f32 to vector<2x8xf32>
    %114 = arith.mulf %112, %113 : vector<2x8xf32>
    %cst_85 = arith.constant dense<0.000000e+00> : vector<2x576xf32>
    %115 = tpu.matmul %114, %105, %cst_85 {dimension_numbers = #tpu.dot_dimension_numbers<[1], [0], [0], [1], [0, 0, 1, 1], [], []>} : vector<2x8xf32>, vector<8x576xf32>, vector<2x576xf32> -> vector<2x576xf32>
    %cst_86 = arith.constant 9.99999974E-6 : f32
    %116 = vector.broadcast %cst_86 : f32 to vector<2x576xf32>
    %117 = arith.addf %115, %116 : vector<2x576xf32>
    %118 = math.rsqrt %117 : vector<2x576xf32>
    %119 = arith.mulf %110, %118 : vector<2x576xf32>
    %c1_87 = arith.constant 1 : index
    %c0_88 = arith.constant 0 : index
    %120 = vector.load %arg16[%c1_87, %c0_88] : memref<3x576xf32, #tpu.memory_space<vmem>>, vector<1x576xf32>
    %121 = vector.broadcast %120 : vector<1x576xf32> to vector<2x576xf32>
    %122 = arith.mulf %119, %121 : vector<2x576xf32>
    %c2_89 = arith.constant 2 : index
    %c0_90 = arith.constant 0 : index
    %123 = vector.load %arg16[%c2_89, %c0_90] : memref<3x576xf32, #tpu.memory_space<vmem>>, vector<1x576xf32>
    %124 = vector.broadcast %123 : vector<1x576xf32> to vector<2x576xf32>
    %125 = arith.addf %122, %124 : vector<2x576xf32>
    %c0_91 = arith.constant 0 : index
    %c0_92 = arith.constant 0 : index
    %126 = vector.load %arg19[%c0_91, %c0_92] : memref<576x1024xf32, #tpu.memory_space<vmem>>, vector<576x1024xf32>
    %cst_93 = arith.constant dense<0.000000e+00> : vector<2x1024xf32>
    %127 = tpu.matmul %125, %126, %cst_93 {dimension_numbers = #tpu.dot_dimension_numbers<[1], [0], [0], [1], [0, 0, 1, 1], [], []>} : vector<2x576xf32>, vector<576x1024xf32>, vector<2x1024xf32> -> vector<2x1024xf32>
    %c0_94 = arith.constant 0 : index
    %c0_95 = arith.constant 0 : index
    %128 = vector.load %arg20[%c0_94, %c0_95] : memref<1x1024xf32, #tpu.memory_space<vmem>>, vector<1x1024xf32>
    %129 = vector.broadcast %128 : vector<1x1024xf32> to vector<2x1024xf32>
    %130 = arith.addf %127, %129 : vector<2x1024xf32>
    %131 = math.tanh %130 : vector<2x1024xf32>
    %c0_96 = arith.constant 0 : index
    %c0_97 = arith.constant 0 : index
    %c0_98 = arith.constant 0 : index
    %132 = vector.load %arg21[%c0_96, %c0_97, %c0_98] : memref<1x2x1024xf32, #tpu.memory_space<vmem>>, vector<1x2x1024xf32>
    %133 = vector.shape_cast %132 : vector<1x2x1024xf32> to vector<2x1024xf32>
    %134 = vector.shape_cast %131 : vector<2x1024xf32> to vector<1x2x1024xf32>
    tpu.vector_store %arg21[%c0_96, %c0_97, %c0_98], %134 {strides = array<i32>} : memref<1x2x1024xf32, #tpu.memory_space<vmem>>, vector<1x2x1024xf32>,
    return
  }
  func.func @transform_0(%arg0: i32) -> (i32, i32, i32) {
    %c0_i32 = arith.constant 0 : i32
    %c0_i32_0 = arith.constant 0 : i32
    %c0_i32_1 = arith.constant 0 : i32
    return %arg0, %c0_i32, %c0_i32_0 : i32, i32, i32
  }
  func.func @transform_1(%arg0: i32) -> (i32, i32, i32) {
    %c0_i32 = arith.constant 0 : i32
    %c0_i32_0 = arith.constant 0 : i32
    %c0_i32_1 = arith.constant 0 : i32
    return %arg0, %c0_i32, %c0_i32_0 : i32, i32, i32
  }
  func.func @transform_2(%arg0: i32) -> (i32, i32) {
    %c0_i32 = arith.constant 0 : i32
    %c0_i32_0 = arith.constant 0 : i32
    %c0_i32_1 = arith.constant 0 : i32
    return %c0_i32, %c0_i32_0 : i32, i32
  }
  func.func @transform_3(%arg0: i32) -> (i32, i32) {
    %c0_i32 = arith.constant 0 : i32
    %c0_i32_0 = arith.constant 0 : i32
    %c0_i32_1 = arith.constant 0 : i32
    return %c0_i32, %c0_i32_0 : i32, i32
  }
  func.func @transform_4(%arg0: i32) -> (i32, i32) {
    %c0_i32 = arith.constant 0 : i32
    %c0_i32_0 = arith.constant 0 : i32
    %c0_i32_1 = arith.constant 0 : i32
    return %c0_i32, %c0_i32_0 : i32, i32
  }
  func.func @transform_5(%arg0: i32) -> (i32, i32) {
    %c0_i32 = arith.constant 0 : i32
    %c0_i32_0 = arith.constant 0 : i32
    %c0_i32_1 = arith.constant 0 : i32
    return %c0_i32, %c0_i32_0 : i32, i32
  }
  func.func @transform_6(%arg0: i32) -> (i32, i32) {
    %c0_i32 = arith.constant 0 : i32
    %c0_i32_0 = arith.constant 0 : i32
    %c0_i32_1 = arith.constant 0 : i32
    return %c0_i32, %c0_i32_0 : i32, i32
  }
  func.func @transform_7(%arg0: i32) -> (i32, i32) {
    %c0_i32 = arith.constant 0 : i32
    %c0_i32_0 = arith.constant 0 : i32
    %c0_i32_1 = arith.constant 0 : i32
    return %c0_i32, %c0_i32_0 : i32, i32
  }
  func.func @transform_8(%arg0: i32) -> (i32, i32) {
    %c0_i32 = arith.constant 0 : i32
    %c0_i32_0 = arith.constant 0 : i32
    %c0_i32_1 = arith.constant 0 : i32
    return %c0_i32, %c0_i32_0 : i32, i32
  }
  func.func @transform_9(%arg0: i32) -> (i32, i32) {
    %c0_i32 = arith.constant 0 : i32
    %c0_i32_0 = arith.constant 0 : i32
    %c0_i32_1 = arith.constant 0 : i32
    return %c0_i32, %c0_i32_0 : i32, i32
  }
  func.func @transform_10(%arg0: i32) -> (i32, i32) {
    %c0_i32 = arith.constant 0 : i32
    %c0_i32_0 = arith.constant 0 : i32
    %c0_i32_1 = arith.constant 0 : i32
    return %c0_i32, %c0_i32_0 : i32, i32
  }
  func.func @transform_11(%arg0: i32) -> (i32, i32) {
    %c0_i32 = arith.constant 0 : i32
    %c0_i32_0 = arith.constant 0 : i32
    %c0_i32_1 = arith.constant 0 : i32
    return %c0_i32, %c0_i32_0 : i32, i32
  }
  func.func @transform_12(%arg0: i32) -> (i32, i32) {
    %c0_i32 = arith.constant 0 : i32
    %c0_i32_0 = arith.constant 0 : i32
    %c0_i32_1 = arith.constant 0 : i32
    return %c0_i32, %c0_i32_0 : i32, i32
  }
  func.func @transform_13(%arg0: i32) -> (i32, i32) {
    %c0_i32 = arith.constant 0 : i32
    %c0_i32_0 = arith.constant 0 : i32
    %c0_i32_1 = arith.constant 0 : i32
    return %c0_i32, %c0_i32_0 : i32, i32
  }
  func.func @transform_14(%arg0: i32) -> (i32, i32) {
    %c0_i32 = arith.constant 0 : i32
    %c0_i32_0 = arith.constant 0 : i32
    %c0_i32_1 = arith.constant 0 : i32
    return %c0_i32, %c0_i32_0 : i32, i32
  }
  func.func @transform_15(%arg0: i32) -> (i32, i32) {
    %c0_i32 = arith.constant 0 : i32
    %c0_i32_0 = arith.constant 0 : i32
    %c0_i32_1 = arith.constant 0 : i32
    return %c0_i32, %c0_i32_0 : i32, i32
  }
  func.func @transform_16(%arg0: i32) -> (i32, i32) {
    %c0_i32 = arith.constant 0 : i32
    %c0_i32_0 = arith.constant 0 : i32
    %c0_i32_1 = arith.constant 0 : i32
    return %c0_i32, %c0_i32_0 : i32, i32
  }
  func.func @transform_17(%arg0: i32) -> (i32, i32) {
    %c0_i32 = arith.constant 0 : i32
    %c0_i32_0 = arith.constant 0 : i32
    %c0_i32_1 = arith.constant 0 : i32
    return %c0_i32, %c0_i32_0 : i32, i32
  }
  func.func @transform_18(%arg0: i32) -> (i32, i32) {
    %c0_i32 = arith.constant 0 : i32
    %c0_i32_0 = arith.constant 0 : i32
    %c0_i32_1 = arith.constant 0 : i32
    return %c0_i32, %c0_i32_0 : i32, i32
  }
  func.func @transform_19(%arg0: i32) -> (i32, i32) {
    %c0_i32 = arith.constant 0 : i32
    %c0_i32_0 = arith.constant 0 : i32
    %c0_i32_1 = arith.constant 0 : i32
    return %c0_i32, %c0_i32_0 : i32, i32
  }
  func.func @transform_20(%arg0: i32) -> (i32, i32, i32) {
    %c0_i32 = arith.constant 0 : i32
    %c0_i32_0 = arith.constant 0 : i32
    %c0_i32_1 = arith.constant 0 : i32
    return %arg0, %c0_i32, %c0_i32_0 : i32, i32, i32
  }
  func.func @transform_21(%arg0: i32) -> (i32, i32, i32, i32) {
    %c0_i32 = arith.constant 0 : i32
    %c0_i32_0 = arith.constant 0 : i32
    %c0_i32_1 = arith.constant 0 : i32
    %c0_i32_2 = arith.constant 0 : i32
    return %arg0, %c0_i32, %c0_i32_0, %c0_i32_1 : i32, i32, i32, i32
  }
}

</mosaic_0001>

<bundles_post_ra>
// kernel: forward.1
= control target key start
LH: loop header
LB: loop body
LE: loop exit
PB: predicated region body
PF: predicated region fallthrough
CT: control target
= control target key end

     0   :  { %s6952_s0 = inlined_call_operand.vmem [shape: f32[1,2,1024], index: 0, kind: input, shape index: {}]   ;;  %s6953_s1 = inlined_call_operand.hbm [shape: f32[1,2,32], index: 1, kind: input, shape index: {}]   ;;  %s6954_s2 = inlined_call_operand.hbm [shape: f32[1024,576], index: 2, kind: input, shape index: {}]   ;;  %s6955_s3 = inlined_call_operand.hbm [shape: f32[3,576], index: 3, kind: input, shape index: {}]   ;;  %s6956_s4 = inlined_call_operand.hbm [shape: f32[576,8], index: 4, kind: input, shape index: {}, may-alias: {4,16}]   ;;  %s6957_s5 = inlined_call_operand.hbm [shape: f32[8,576], index: 5, kind: input, shape index: {}, may-alias: {5,17}]   ;;  %s6958_s6 = inlined_call_operand.hbm [shape: f32[576,128], index: 6, kind: input, shape index: {}]   ;;  %s6959_s7 = inlined_call_operand.hbm [shape: f32[3,128], index: 7, kind: input, shape index: {}]   ;;  %s6960_s8 = inlined_call_operand.hbm [shape: f32[128,8], index: 8, kind: input, shape index: {}]   ;;  %s6961_s9 = inlined_call_operand.hbm [shape: f32[8,128], index: 9, kind: input, shape index: {}]   ;;  %s6962_s10 = inlined_call_operand.hbm [shape: f32[128,64], index: 10, kind: input, shape index: {}]   ;;  %s6963_s11 = inlined_call_operand.hbm [shape: f32[1,64], index: 11, kind: input, shape index: {}]   ;;  %s6964_s12 = inlined_call_operand.hbm [shape: f32[32,128], index: 12, kind: input, shape index: {}]   ;;  %s6965_s13 = inlined_call_operand.hbm [shape: f32[1,128], index: 13, kind: input, shape index: {}]   ;;  %s6966_s14 = inlined_call_operand.hbm [shape: f32[128,576], index: 14, kind: input, shape index: {}]   ;;  %s6967_s15 = inlined_call_operand.hbm [shape: f32[3,576], index: 15, kind: input, shape index: {}]   ;;  %s6968_s16 = inlined_call_operand.hbm [shape: f32[576,8], index: 16, kind: input, shape index: {}, may-alias: {4,16}]   ;;  %s6969_s17 = inlined_call_operand.hbm [shape: f32[8,576], index: 17, kind: input, shape index: {}, may-alias: {5,17}]   ;;  %s6970_s18 = inlined_call_operand.hbm [shape: f32[576,1024], index: 18, kind: input, shape index: {}]   ;;  %s6971_s19 = inlined_call_operand.hbm [shape: f32[1,1024], index: 19, kind: input, shape index: {}]   ;;  %s6972_s20 = inlined_call_operand.vmem [shape: f32[1,2,1024], index: 20, kind: output, shape index: {0}]   ;;  %s6973_s21 = inlined_call_operand.vmem [shape: f32[1,3,2,32], index: 21, kind: output, shape index: {1}]  }
   0x1   :  { %7012 = sst [smem:[#allocation64_spill]] %s6952_s0 }
   0x2   :  { %7013 = sst [smem:[#allocation65_spill]] %s6953_s1 }
   0x3   :  { %7014 = sst [smem:[#allocation66_spill]] %s6954_s2 }
   0x4   :  { %7015 = sst [smem:[#allocation67_spill]] %s6955_s3 }
   0x5   :  { %7016 = sst [smem:[#allocation68_spill]] %s6956_s4 }
   0x6   :  { %7017 = sst [smem:[#allocation69_spill]] %s6957_s5 }
   0x7   :  { %27 = vsyncpa [#allocation3], 0 }
   0x8   :  { %28 = vsyncpa [#allocation5], 0 }
   0x9   :  { %29 = vsyncpa [#allocation8], 0 }
   0xa   :  { %30 = vsyncpa [#allocation11], 0 }
   0xb   :  { %31 = vsyncpa [#allocation14], 0 }
   0xc   :  { %32 = vsyncpa [#allocation17], 0 }
   0xd   :  { %33 = vsyncpa [#allocation20], 0 }
   0xe   :  { %34 = vsyncpa [#allocation23], 0 }
   0xf   :  { %35 = vsyncpa [#allocation26], 0  ;;  %s7018_s26 = sld [smem:[#allocation66_spill]] }
  0x15   :  { %s54_s27 = sshll.u32 %s7018_s26, 4  ;;  %s55_s27 = int_to_ptr.hbm [resolvable:$true] %s54_s27 }
  0x16   :  { %36 = vsyncpa [#allocation29], 0  ;;  %s5672_s3 = smov [#allocation4]   ;;  %s7019_s4 = sld [smem:[#allocation68_spill]] }
  0x17   :  { %s56_s28 = sshll.u32 %s5672_s3, 4  ;;  %s6975_s5 = smov 640   ;;  %s57_s28 = int_to_ptr.vmem [resolvable:$true] %s56_s28 }
  0x18   :  { %s5674_s22 = smov 40   ;;  %s5675_s23 = smov [#allocation7]  }
  0x19   :  { %62 = dma.hbm_to_vmem [thread:$0]  %s55_s27, 81920, %s57_s28, [#allocation5], %s6975_s5, %s6975_s5, %s5674_s22  }
  0x1a   :  { %s80_s1 = sshll.u32 %s5675_s23, 4  ;;  %s5676_s24 = smov 128   ;;  %s81_s1 = int_to_ptr.vmem [resolvable:$true] %s80_s1 }
  0x1b   :  { %s5677_s2 = smov 8   ;;  %s102_s3 = sshll.u32 %s6958_s6, 4  ;;  %s103_s3 = int_to_ptr.hbm [resolvable:$true] %s102_s3 }
  0x1c   :  { %s78_s30 = sshll.u32 %s7019_s4, 4  ;;  %s5678_s29 = smov [#allocation10]   ;;  %s79_s30 = int_to_ptr.hbm [resolvable:$true] %s78_s30 }
  0x1d   :  { %86 = dma.hbm_to_vmem [thread:$0]  %s79_s30, 9216, %s81_s1, [#allocation8], %s5676_s24, %s5676_s24, %s5677_s2  }
  0x1e   :  { %s104_s0 = sshll.u32 %s5678_s29, 4  ;;  %s126_s28 = sshll.u32 %s6960_s8, 4  ;;  %s105_s0 = int_to_ptr.vmem [resolvable:$true] %s104_s0  ;;  %s127_s28 = int_to_ptr.hbm [resolvable:$true] %s126_s28 }
  0x1f   :  { %110 = dma.hbm_to_vmem [thread:$0]  %s103_s3, 9216, %s105_s0, [#allocation11], %s5676_s24, %s5676_s24, %s5677_s2  }
  0x20   :  { %s5679_s23 = smov [#allocation13]   ;;  %s150_s25 = sshll.u32 %s6962_s10, 4  ;;  %s151_s25 = int_to_ptr.hbm [resolvable:$true] %s150_s25 }
  0x21   :  { %s128_s5 = sshll.u32 %s5679_s23, 4  ;;  %s174_s8 = sshll.u32 %s6964_s12, 4  ;;  %s129_s5 = int_to_ptr.vmem [resolvable:$true] %s128_s5  ;;  %s175_s8 = int_to_ptr.hbm [resolvable:$true] %s174_s8 }
  0x22   :  { %134 = dma.hbm_to_vmem [thread:$0]  %s127_s28, 2048, %s129_s5, [#allocation14], %s5676_s24, %s5676_s24, %s5677_s2  }
  0x23   :  { %s5680_s29 = smov [#allocation16]   ;;  %s5681_s3 = smov [#allocation19]  }
  0x24   :  { %s152_s4 = sshll.u32 %s5680_s29, 4  ;;  %s176_s10 = sshll.u32 %s5681_s3, 4  ;;  %s153_s4 = int_to_ptr.vmem [resolvable:$true] %s152_s4  ;;  %s177_s10 = int_to_ptr.vmem [resolvable:$true] %s176_s10 }
  0x25   :  { %158 = dma.hbm_to_vmem [thread:$0]  %s151_s25, 2048, %s153_s4, [#allocation17], %s5676_s24, %s5676_s24, %s5677_s2  }
  0x26   :  { %s198_s23 = sshll.u32 %s6966_s14, 4  ;;  %s222_s28 = sshll.u32 %s6968_s16, 4  ;;  %s199_s23 = int_to_ptr.hbm [resolvable:$true] %s198_s23  ;;  %s223_s28 = int_to_ptr.hbm [resolvable:$true] %s222_s28 }
  0x27   :  { %182 = dma.hbm_to_vmem [thread:$0]  %s175_s8, 512, %s177_s10, [#allocation20], %s5676_s24, %s5676_s24, %s5677_s2  }
  0x28   :  { %s5682_s30 = smov [#allocation22]   ;;  %s7020_s25 = smov 640  }
  0x29   :  { %s200_s1 = sshll.u32 %s5682_s30, 4  ;;  %s5683_s6 = smov [#allocation25]   ;;  %s201_s1 = int_to_ptr.vmem [resolvable:$true] %s200_s1 }
  0x2a   :  { %206 = dma.hbm_to_vmem [thread:$0]  %s199_s23, 10240, %s201_s1, [#allocation23], %s7020_s25, %s7020_s25, %s5674_s22  }
  0x2b   :  { %s224_s14 = sshll.u32 %s5683_s6, 4  ;;  %s246_s4 = sshll.u32 %s6970_s18, 4  ;;  %s225_s14 = int_to_ptr.vmem [resolvable:$true] %s224_s14  ;;  %s247_s4 = int_to_ptr.hbm [resolvable:$true] %s246_s4 }
  0x2c   :  { %230 = dma.hbm_to_vmem [thread:$0]  %s223_s28, 9216, %s225_s14, [#allocation26], %s5676_s24, %s5676_s24, %s5677_s2  }
  0x2d   :  { %s5684_s16 = smov [#allocation28]   ;;  %s7021_s0 = sld [smem:[#allocation65_spill]] }
  0x2e   :  { %s248_s8 = sshll.u32 %s5684_s16, 4  ;;  %s5685_s22 = smov 1024   ;;  %s249_s8 = int_to_ptr.vmem [resolvable:$true] %s248_s8 }
  0x2f   :  { %s5686_s23 = smov 64   ;;  %s5687_s12 = smov [#allocation2]  }
  0x30   :  { %254 = dma.hbm_to_vmem [thread:$0]  %s247_s4, 73728, %s249_s8, [#allocation29], %s5685_s22, %s5685_s22, %s5686_s23  }
  0x31   :  { %s46_s5 = sshll.u32 %s5687_s12, 4  ;;  %s7022_s1 = sld [smem:[#allocation67_spill]]  ;;  %s47_s5 = int_to_ptr.vmem [resolvable:$true] %s46_s5 }
  0x32   :  { %s7023_s28 = sld [smem:[#allocation69_spill]]  ;;  %s5688_s14 = smov [#allocation6]  }
  0x33   :  { %s44_s27 = sshll.u32 %s7021_s0, 4  ;;  %s70_s26 = sshll.u32 %s5688_s14, 4  ;;  %s45_s27 = int_to_ptr.hbm [resolvable:$true] %s44_s27  ;;  %s71_s26 = int_to_ptr.vmem [resolvable:$true] %s70_s26 }
  0x34   :  { %49 = dma.hbm_to_vmem [thread:$0]  %s45_s27, 32, %s47_s5, [#allocation3]  }
  0x35   :  { %s5689_s29 = smov [#allocation9]   ;;  %s116_s3 = sshll.u32 %s6959_s7, 4  ;;  %s117_s3 = int_to_ptr.hbm [resolvable:$true] %s116_s3 }
  0x36   :  { %s94_s4 = sshll.u32 %s5689_s29, 4  ;;  %s140_s27 = sshll.u32 %s6961_s9, 4  ;;  %s95_s4 = int_to_ptr.vmem [resolvable:$true] %s94_s4  ;;  %s141_s27 = int_to_ptr.hbm [resolvable:$true] %s140_s27 }
  0x37   :  { %s68_s25 = sshll.u32 %s7022_s1, 4  ;;  %s5690_s22 = smov [#allocation12]   ;;  %s69_s25 = int_to_ptr.hbm [resolvable:$true] %s68_s25 }
  0x38   :  { %s92_s6 = sshll.u32 %s7023_s28, 4  ;;  %s118_s23 = sshll.u32 %s5690_s22, 4  ;;  %s93_s6 = int_to_ptr.hbm [resolvable:$true] %s92_s6  ;;  %s119_s23 = int_to_ptr.vmem [resolvable:$true] %s118_s23 }
  0x39   :  { %73 = dma.hbm_to_vmem [thread:$0]  %s69_s25, 320, %s71_s26, [#allocation5]  }
  0x3a   :  { %97 = dma.hbm_to_vmem [thread:$0]  %s93_s6, 640, %s95_s4, [#allocation8]  }
  0x3b   :  { %121 = dma.hbm_to_vmem [thread:$0]  %s117_s3, 64, %s119_s23, [#allocation11]  }
  0x3c   :  { %s5691_s12 = smov [#allocation15]   ;;  %s164_s1 = sshll.u32 %s6963_s11, 4  ;;  %s165_s1 = int_to_ptr.hbm [resolvable:$true] %s164_s1 }
  0x3d   :  { %s142_s5 = sshll.u32 %s5691_s12, 4  ;;  %s188_s24 = sshll.u32 %s6965_s13, 4  ;;  %s143_s5 = int_to_ptr.vmem [resolvable:$true] %s142_s5  ;;  %s189_s24 = int_to_ptr.hbm [resolvable:$true] %s188_s24 }
  0x3e   :  { %145 = dma.hbm_to_vmem [thread:$0]  %s141_s27, 128, %s143_s5, [#allocation14]  }
  0x3f   :  { %s5692_s2 = smov [#allocation18]   ;;  %s5693_s28 = smov [#allocation21]  }
  0x40   :  { %s166_s9 = sshll.u32 %s5692_s2, 4  ;;  %s190_s6 = sshll.u32 %s5693_s28, 4  ;;  %s167_s9 = int_to_ptr.vmem [resolvable:$true] %s166_s9  ;;  %s191_s6 = int_to_ptr.vmem [resolvable:$true] %s190_s6 }
  0x41   :  { %169 = dma.hbm_to_vmem [thread:$0]  %s165_s1, 16, %s167_s9, [#allocation17]  }
  0x42   :  { %s212_s29 = sshll.u32 %s6967_s15, 4  ;;  %s236_s16 = sshll.u32 %s6969_s17, 4  ;;  %s213_s29 = int_to_ptr.hbm [resolvable:$true] %s212_s29  ;;  %s237_s16 = int_to_ptr.hbm [resolvable:$true] %s236_s16 }
  0x43   :  { %193 = dma.hbm_to_vmem [thread:$0]  %s189_s24, 16, %s191_s6, [#allocation20]  }
  0x44   :  { %s5694_s8 = smov [#allocation24]   ;;  %s5695_s3 = smov [#allocation27]  }
  0x45   :  { %s214_s13 = sshll.u32 %s5694_s8, 4  ;;  %s238_s10 = sshll.u32 %s5695_s3, 4  ;;  %s215_s13 = int_to_ptr.vmem [resolvable:$true] %s214_s13  ;;  %s239_s10 = int_to_ptr.vmem [resolvable:$true] %s238_s10 }
  0x46   :  { %217 = dma.hbm_to_vmem [thread:$0]  %s213_s29, 320, %s215_s13, [#allocation23]  }
  0x47   :  { %s260_s22 = sshll.u32 %s6971_s19, 4  ;;  %s5696_s15 = smov [#allocation30]   ;;  %s261_s22 = int_to_ptr.hbm [resolvable:$true] %s260_s22 }
  0x48   :  { %241 = dma.hbm_to_vmem [thread:$0]  %s237_s16, 640, %s239_s10, [#allocation26]  }
  0x49   :  { %s262_s23 = sshll.u32 %s5696_s15, 4  ;;  %s263_s23 = int_to_ptr.vmem [resolvable:$true] %s262_s23 }
  0x4a   :  { %265 = dma.hbm_to_vmem [thread:$0]  %s261_s22, 128, %s263_s23, [#allocation29]  }
  0x4b   :  { %5652 = dma.done.wait [#allocation3], 32  }
  0x4c   :  { %5653 = vsyncadd [#allocation3], 4294967264 }
  0x4d   :  { %5654 = dma.done.wait [#allocation5], 82240  }
  0x4e   :  { %5655 = vsyncadd [#allocation5], 4294885056 }
  0x4f   :  { %5656 = dma.done.wait [#allocation8], 9856  }
  0x50   :  { %5657 = vsyncadd [#allocation8], 4294957440 }
  0x51   :  { %5658 = dma.done.wait [#allocation11], 9280  }
  0x52   :  { %5659 = vsyncadd [#allocation11], 4294958016 }
  0x53   :  { %5660 = dma.done.wait [#allocation14], 2176  }
  0x54   :  { %5661 = vsyncadd [#allocation14], 4294965120 }
  0x55   :  { %5662 = dma.done.wait [#allocation17], 2064  }
  0x56   :  { %5663 = vsyncadd [#allocation17], 4294965232 }
  0x57   :  { %5664 = dma.done.wait [#allocation20], 528  }
  0x58   :  { %5665 = vsyncadd [#allocation20], 4294966768 }
  0x59   :  { %5666 = dma.done.wait [#allocation23], 10560  }
  0x5a   :  { %5667 = vsyncadd [#allocation23], 4294956736 }
  0x5b   :  { %5668 = dma.done.wait [#allocation26], 9856  }
  0x5c   :  { %5669 = vsyncadd [#allocation26], 4294957440 }
  0x5d   :  { %5670 = dma.done.wait [#allocation29], 73856  }
  0x5e   :  { %5671 = vsyncadd [#allocation29], 4294893440  ;;  %v419_v0 = vld [vmem:[#allocation4 + $0x258] sm:$0xff]  ;;  %v414_v3 = vld [vmem:[#allocation4 + $0x230] sm:$0xff]  ;;  %s7024_s12 = sld [smem:[#allocation64_spill]]  ;;  %vm1909_vm5 = vcmask 523264  }
  0x5f   :  { %v499_v1 = vld [vmem:[#allocation4 + $0x4d8] sm:$0xff]  ;;  %1017 = vmatpush.msra.mxu0 %v419_v0  ;;  %v494_v4 = vld [vmem:[#allocation4 + $0x4b0] sm:$0xff]  ;;  %v409_v7 = vld [vmem:[#allocation4 + $0x208] sm:$0xff]  ;;  %vm2014_vm6 = vcmask 64512   ;;  %s5697_s7 = smov 96  }
  0x60   :  { %v579_v2 = vld [vmem:[#allocation4 + $0x758] sm:$0xff]  ;;  %1037 = vmatpush.msra.mxu1 %v499_v1  ;;  %v574_v5 = vld [vmem:[#allocation4 + $0x730] sm:$0xff]  ;;  %v489_v8 = vld [vmem:[#allocation4 + $0x488] sm:$0xff] }
  0x61   :  { %1057 = vmatpush.msra.mxu2 %v579_v2  ;;  %v659_v6 = vld [vmem:[#allocation4 + $0x9d8] sm:$0xff]  ;;  %1018 = vmatpush.msra.mxu0 %v414_v3  ;;  %v569_v9 = vld [vmem:[#allocation4 + $0x708] sm:$0xff]  ;;  %v654_v10 = vld [vmem:[#allocation4 + $0x9b0] sm:$0xff] }
  0x62   :  { %1038 = vmatpush.msra.mxu1 %v494_v4  ;;  %1077 = vmatpush.msra.mxu3 %v659_v6  ;;  %v404_v11 = vld [vmem:[#allocation4 + $0x1e0] sm:$0xff]  ;;  %v649_v14 = vld [vmem:[#allocation4 + $0x988] sm:$0xff]  ;;  %v399_v15 = vld [vmem:[#allocation4 + $0x1b8] sm:$0xff] }
  0x63   :  { %1058 = vmatpush.msra.mxu2 %v574_v5  ;;  %v484_v12 = vld [vmem:[#allocation4 + $0x460] sm:$0xff]  ;;  %1019 = vmatpush.msra.mxu0 %v409_v7  ;;  %v479_v16 = vld [vmem:[#allocation4 + $0x438] sm:$0xff]  ;;  %v394_v19 = vld [vmem:[#allocation4 + $0x190] sm:$0xff] }
  0x64   :  { %1039 = vmatpush.msra.mxu1 %v489_v8  ;;  %v564_v13 = vld [vmem:[#allocation4 + $0x6e0] sm:$0xff]  ;;  %1078 = vmatpush.msra.mxu3 %v654_v10  ;;  %v559_v17 = vld [vmem:[#allocation4 + $0x6b8] sm:$0xff]  ;;  %v474_v20 = vld [vmem:[#allocation4 + $0x410] sm:$0xff] }
  0x65   :  { %1059 = vmatpush.msra.mxu2 %v569_v9  ;;  %1020 = vmatpush.msra.mxu0 %v404_v11  ;;  %v644_v18 = vld [vmem:[#allocation4 + $0x960] sm:$0xff]  ;;  %v554_v21 = vld [vmem:[#allocation4 + $0x690] sm:$0xff]  ;;  %v639_v22 = vld [vmem:[#allocation4 + $0x938] sm:$0xff] }
  0x66   :  { %1040 = vmatpush.msra.mxu1 %v484_v12  ;;  %1079 = vmatpush.msra.mxu3 %v649_v14  ;;  %v389_v23 = vld [vmem:[#allocation4 + $0x168] sm:$0xff]  ;;  %v634_v26 = vld [vmem:[#allocation4 + $0x910] sm:$0xff]  ;;  %v384_v27 = vld [vmem:[#allocation4 + $0x140] sm:$0xff] }
  0x67   :  { %1060 = vmatpush.msra.mxu2 %v564_v13  ;;  %1021 = vmatpush.msra.mxu0 %v399_v15  ;;  %v469_v24 = vld [vmem:[#allocation4 + $0x3e8] sm:$0xff]  ;;  %v464_v28 = vld [vmem:[#allocation4 + $0x3c0] sm:$0xff]  ;;  %v379_v31 = vld [vmem:[#allocation4 + $0x118] sm:$0xff] }
  0x68   :  { %1041 = vmatpush.msra.mxu1 %v479_v16  ;;  %1080 = vmatpush.msra.mxu3 %v644_v18  ;;  %v549_v25 = vld [vmem:[#allocation4 + $0x668] sm:$0xff]  ;;  %v544_v29 = vld [vmem:[#allocation4 + $0x640] sm:$0xff]  ;;  %v459_v32 = vld [vmem:[#allocation4 + $0x398] sm:$0xff] }
  0x69   :  { %1061 = vmatpush.msra.mxu2 %v559_v17  ;;  %1022 = vmatpush.msra.mxu0 %v394_v19  ;;  %v629_v30 = vld [vmem:[#allocation4 + $0x8e8] sm:$0xff]  ;;  %v539_v33 = vld [vmem:[#allocation4 + $0x618] sm:$0xff]  ;;  %v624_v34 = vld [vmem:[#allocation4 + $0x8c0] sm:$0xff] }
  0x6a   :  { %1042 = vmatpush.msra.mxu1 %v474_v20  ;;  %1081 = vmatpush.msra.mxu3 %v639_v22  ;;  %v374_v35 = vld [vmem:[#allocation4 + $0xf0] sm:$0xff]  ;;  %v619_v38 = vld [vmem:[#allocation4 + $0x898] sm:$0xff]  ;;  %v369_v39 = vld [vmem:[#allocation4 + $0xc8] sm:$0xff] }
  0x6b   :  { %1062 = vmatpush.msra.mxu2 %v554_v21  ;;  %1023 = vmatpush.msra.mxu0 %v389_v23  ;;  %v454_v36 = vld [vmem:[#allocation4 + $0x370] sm:$0xff]  ;;  %v449_v40 = vld [vmem:[#allocation4 + $0x348] sm:$0xff]  ;;  %v364_v43 = vld [vmem:[#allocation4 + $0xa0] sm:$0xff] }
  0x6c   :  { %1043 = vmatpush.msra.mxu1 %v469_v24  ;;  %1082 = vmatpush.msra.mxu3 %v634_v26  ;;  %v534_v37 = vld [vmem:[#allocation4 + $0x5f0] sm:$0xff]  ;;  %v529_v41 = vld [vmem:[#allocation4 + $0x5c8] sm:$0xff]  ;;  %v444_v44 = vld [vmem:[#allocation4 + $0x320] sm:$0xff] }
  0x6d   :  { %1063 = vmatpush.msra.mxu2 %v549_v25  ;;  %1024 = vmatpush.msra.mxu0 %v384_v27  ;;  %v614_v42 = vld [vmem:[#allocation4 + $0x870] sm:$0xff]  ;;  %v524_v45 = vld [vmem:[#allocation4 + $0x5a0] sm:$0xff]  ;;  %v609_v46 = vld [vmem:[#allocation4 + $0x848] sm:$0xff] }
  0x6e   :  { %1044 = vmatpush.msra.mxu1 %v464_v28  ;;  %1083 = vmatpush.msra.mxu3 %v629_v30  ;;  %v359_v47 = vld [vmem:[#allocation4 + $0x78] sm:$0xff]  ;;  %v604_v50 = vld [vmem:[#allocation4 + $0x820] sm:$0xff]  ;;  %v354_v51 = vld [vmem:[#allocation4 + $0x50] sm:$0xff] }
  0x6f   :  { %1064 = vmatpush.msra.mxu2 %v544_v29  ;;  %1025 = vmatpush.msra.mxu0 %v379_v31  ;;  %v439_v48 = vld [vmem:[#allocation4 + $0x2f8] sm:$0xff]  ;;  %v434_v52 = vld [vmem:[#allocation4 + $0x2d0] sm:$0xff]  ;;  %v349_v55 = vld [vmem:[#allocation4 + $0x28] sm:$0xff] }
  0x70   :  { %1045 = vmatpush.msra.mxu1 %v459_v32  ;;  %1084 = vmatpush.msra.mxu3 %v624_v34  ;;  %v519_v49 = vld [vmem:[#allocation4 + $0x578] sm:$0xff]  ;;  %v514_v53 = vld [vmem:[#allocation4 + $0x550] sm:$0xff]  ;;  %v429_v56 = vld [vmem:[#allocation4 + $0x2a8] sm:$0xff] }
  0x71   :  { %1065 = vmatpush.msra.mxu2 %v539_v33  ;;  %1026 = vmatpush.msra.mxu0 %v374_v35  ;;  %v599_v54 = vld [vmem:[#allocation4 + $0x7f8] sm:$0xff]  ;;  %v509_v57 = vld [vmem:[#allocation4 + $0x528] sm:$0xff]  ;;  %v594_v58 = vld [vmem:[#allocation4 + $0x7d0] sm:$0xff] }
  0x72   :  { %1046 = vmatpush.msra.mxu1 %v454_v36  ;;  %1085 = vmatpush.msra.mxu3 %v619_v38  ;;  %v344_v59 = vld [vmem:[#allocation4] sm:$0xff]  ;;  %v589_v62 = vld [vmem:[#allocation4 + $0x7a8] sm:$0xff]  ;;  %v739_v63 = vld [vmem:[#allocation4 + $0xc58] sm:$0xff] }
  0x73   :  { %1066 = vmatpush.msra.mxu2 %v534_v37  ;;  %1027 = vmatpush.msra.mxu0 %v369_v39  ;;  %v424_v60 = vld [vmem:[#allocation4 + $0x280] sm:$0xff]  ;;  %v819_v0 = vld [vmem:[#allocation4 + $0xed8] sm:$0xff]  ;;  %v734_v3 = vld [vmem:[#allocation4 + $0xc30] sm:$0xff] }
  0x74   :  { %1047 = vmatpush.msra.mxu1 %v449_v40  ;;  %1086 = vmatpush.msra.mxu3 %v614_v42  ;;  %v504_v61 = vld [vmem:[#allocation4 + $0x500] sm:$0xff]  ;;  %v899_v1 = vld [vmem:[#allocation4 + $0x1158] sm:$0xff]  ;;  %v814_v4 = vld [vmem:[#allocation4 + $0xeb0] sm:$0xff] }
  0x75   :  { %1067 = vmatpush.msra.mxu2 %v529_v41  ;;  %1028 = vmatpush.msra.mxu0 %v364_v43  ;;  %v584_v2 = vld [vmem:[#allocation4 + $0x780] sm:$0xff]  ;;  %v894_v5 = vld [vmem:[#allocation4 + $0x1130] sm:$0xff]  ;;  %v979_v6 = vld [vmem:[#allocation4 + $0x13d8] sm:$0xff] }
  0x76   :  { %1048 = vmatpush.msra.mxu1 %v444_v44  ;;  %1087 = vmatpush.msra.mxu3 %v609_v46  ;;  %v729_v7 = vld [vmem:[#allocation4 + $0xc08] sm:$0xff]  ;;  %v974_v10 = vld [vmem:[#allocation4 + $0x13b0] sm:$0xff]  ;;  %v724_v11 = vld [vmem:[#allocation4 + $0xbe0] sm:$0xff] }
  0x77   :  { %1068 = vmatpush.msra.mxu2 %v524_v45  ;;  %1029 = vmatpush.msra.mxu0 %v359_v47  ;;  %v809_v8 = vld [vmem:[#allocation4 + $0xe88] sm:$0xff]  ;;  %v804_v12 = vld [vmem:[#allocation4 + $0xe60] sm:$0xff]  ;;  %v719_v15 = vld [vmem:[#allocation4 + $0xbb8] sm:$0xff] }
  0x78   :  { %1049 = vmatpush.msra.mxu1 %v439_v48  ;;  %1088 = vmatpush.msra.mxu3 %v604_v50  ;;  %v889_v9 = vld [vmem:[#allocation4 + $0x1108] sm:$0xff]  ;;  %v884_v13 = vld [vmem:[#allocation4 + $0x10e0] sm:$0xff]  ;;  %v799_v16 = vld [vmem:[#allocation4 + $0xe38] sm:$0xff] }
  0x79   :  { %1069 = vmatpush.msra.mxu2 %v519_v49  ;;  %1030 = vmatpush.msra.mxu0 %v354_v51  ;;  %v969_v14 = vld [vmem:[#allocation4 + $0x1388] sm:$0xff]  ;;  %v879_v17 = vld [vmem:[#allocation4 + $0x10b8] sm:$0xff]  ;;  %v964_v18 = vld [vmem:[#allocation4 + $0x1360] sm:$0xff] }
  0x7a   :  { %1050 = vmatpush.msra.mxu1 %v434_v52  ;;  %1089 = vmatpush.msra.mxu3 %v599_v54  ;;  %v714_v19 = vld [vmem:[#allocation4 + $0xb90] sm:$0xff]  ;;  %v959_v22 = vld [vmem:[#allocation4 + $0x1338] sm:$0xff]  ;;  %v709_v24 = vld [vmem:[#allocation4 + $0xb68] sm:$0xff] }
  0x7b   :  { %1070 = vmatpush.msra.mxu2 %v514_v53  ;;  %1031 = vmatpush.msra.mxu0 %v349_v55  ;;  %v794_v20 = vld [vmem:[#allocation4 + $0xe10] sm:$0xff]  ;;  %v789_v25 = vld [vmem:[#allocation4 + $0xde8] sm:$0xff]  ;;  %v704_v28 = vld [vmem:[#allocation4 + $0xb40] sm:$0xff] }
  0x7c   :  { %1051 = vmatpush.msra.mxu1 %v429_v56  ;;  %1090 = vmatpush.msra.mxu3 %v594_v58  ;;  %v874_v21 = vld [vmem:[#allocation4 + $0x1090] sm:$0xff]  ;;  %v869_v26 = vld [vmem:[#allocation4 + $0x1068] sm:$0xff]  ;;  %v784_v29 = vld [vmem:[#allocation4 + $0xdc0] sm:$0xff] }
  0x7d   :  { %1071 = vmatpush.msra.mxu2 %v509_v57  ;;  %1032 = vmatpush.msra.mxu0 %v344_v59  ;;  %v342_v23 = vld [vmem:[%s7024_s12] sm:$0xff]  ;;  %v864_v30 = vld [vmem:[#allocation4 + $0x1040] sm:$0xff]  ;;  %v949_v31 = vld [vmem:[#allocation4 + $0x12e8] sm:$0xff] }
  0x7e   :  { %1052 = vmatpush.msra.mxu1 %v424_v60  ;;  %1091 = vmatpush.msra.mxu3 %v589_v62  ;;  %998 = vst [vmem:[#allocation1] ss:$4 sm:$0xff] %v342_v23  ;;  %v954_v27 = vld [vmem:[#allocation4 + $0x1310] sm:$0xff]  ;;  %v699_v32 = vld [vmem:[#allocation4 + $0xb18] sm:$0xff]  ;;  %v944_v36 = vld [vmem:[#allocation4 + $0x12c0] sm:$0xff] }
  0x7f   :  { %1072 = vmatpush.msra.mxu2 %v504_v61  ;;  %1097 = vmatpush.msrb.mxu0 %v739_v63  ;;  %v779_v33 = vld [vmem:[#allocation4 + $0xd98] sm:$0xff]  ;;  %v694_v37 = vld [vmem:[#allocation4 + $0xaf0] sm:$0xff]  ;;  %v689_v41 = vld [vmem:[#allocation4 + $0xac8] sm:$0xff] }
  0x80   :  { %1117 = vmatpush.msrb.mxu1 %v819_v0  ;;  %1092 = vmatpush.msra.mxu3 %v584_v2  ;;  %v343_v34 = vld [vmem:[%s7024_s12 + $0x8] sm:$0xff]  ;;  %v774_v38 = vld [vmem:[#allocation4 + $0xd70] sm:$0xff]  ;;  %v769_v42 = vld [vmem:[#allocation4 + $0xd48] sm:$0xff] }
  0x81   :  { %1137 = vmatpush.msrb.mxu2 %v899_v1  ;;  %1098 = vmatpush.msrb.mxu0 %v734_v3  ;;  %v859_v35 = vld [vmem:[#allocation4 + $0x1018] sm:$0xff]  ;;  %1000 = vst [vmem:[#allocation1 + $0x20] ss:$4 sm:$0xff] %v343_v34  ;;  %v854_v39 = vld [vmem:[#allocation4 + $0xff0] sm:$0xff]  ;;  %v849_v43 = vld [vmem:[#allocation4 + $0xfc8] sm:$0xff] }
  0x82   :  { %1118 = vmatpush.msrb.mxu1 %v814_v4  ;;  %1157 = vmatpush.msrb.mxu3 %v979_v6  ;;  %v939_v40 = vld [vmem:[#allocation4 + $0x1298] sm:$0xff]  ;;  %v934_v44 = vld [vmem:[#allocation4 + $0x1270] sm:$0xff]  ;;  %v684_v45 = vld [vmem:[#allocation4 + $0xaa0] sm:$0xff] }
  0x83   :  { %1138 = vmatpush.msrb.mxu2 %v894_v5  ;;  %1099 = vmatpush.msrb.mxu0 %v729_v7  ;;  %v764_v46 = vld [vmem:[#allocation4 + $0xd20] sm:$0xff]  ;;  %v929_v48 = vld [vmem:[#allocation4 + $0x1248] sm:$0xff]  ;;  %v679_v49 = vld [vmem:[#allocation4 + $0xa78] sm:$0xff] }
  0x84   :  { %1119 = vmatpush.msrb.mxu1 %v809_v8  ;;  %1158 = vmatpush.msrb.mxu3 %v974_v10  ;;  %v844_v47 = vld [vmem:[#allocation4 + $0xfa0] sm:$0xff]  ;;  %v759_v50 = vld [vmem:[#allocation4 + $0xcf8] sm:$0xff]  ;;  %v674_v53 = vld [vmem:[#allocation4 + $0xa50] sm:$0xff] }
  0x85   :  { %1139 = vmatpush.msrb.mxu2 %v889_v9  ;;  %1100 = vmatpush.msrb.mxu0 %v724_v11  ;;  %v839_v51 = vld [vmem:[#allocation4 + $0xf78] sm:$0xff]  ;;  %v924_v52 = vld [vmem:[#allocation4 + $0x1220] sm:$0xff]  ;;  %v754_v54 = vld [vmem:[#allocation4 + $0xcd0] sm:$0xff] }
  0x86   :  { %1120 = vmatpush.msrb.mxu1 %v804_v12  ;;  %1159 = vmatpush.msrb.mxu3 %v969_v14  ;;  %v834_v55 = vld [vmem:[#allocation4 + $0xf50] sm:$0xff]  ;;  %v919_v56 = vld [vmem:[#allocation4 + $0x11f8] sm:$0xff]  ;;  %v669_v57 = vld [vmem:[#allocation4 + $0xa28] sm:$0xff] }
  0x87   :  { %1140 = vmatpush.msrb.mxu2 %v884_v13  ;;  %1101 = vmatpush.msrb.mxu0 %v719_v15  ;;  %v749_v58 = vld [vmem:[#allocation4 + $0xca8] sm:$0xff]  ;;  %v914_v60 = vld [vmem:[#allocation4 + $0x11d0] sm:$0xff]  ;;  %v664_v62 = vld [vmem:[#allocation4 + $0xa00] sm:$0xff] }
  0x88   :  { %1121 = vmatpush.msrb.mxu1 %v799_v16  ;;  %1160 = vmatpush.msrb.mxu3 %v964_v18  ;;  %v829_v59 = vld [vmem:[#allocation4 + $0xf28] sm:$0xff]  ;;  %v744_v63 = vld [vmem:[#allocation4 + $0xc80] sm:$0xff]  ;;  %v5897_v2 = vld.sshfl [vmem:[#allocation1] sm:$0xff pattern:$0x73625140] }
  0x89   :  { %1141 = vmatpush.msrb.mxu2 %v879_v17  ;;  %1102 = vmatpush.msrb.mxu0 %v714_v19  ;;  %v5895_v61 = vld.sshfl [vmem:[#allocation1 + $0x10] sm:$0xff pattern:$0x73625140]  ;;  %v5900_v3 = vld.sshfl [vmem:[#allocation1 + $0x8] sm:$0xff pattern:$0x73625140] }
  0x8a   :  { %1122 = vmatpush.msrb.mxu1 %v794_v20  ;;  %1161 = vmatpush.msrb.mxu3 %v959_v22  ;;  %v824_v0 = vld [vmem:[#allocation4 + $0xf00] sm:$0xff]  ;;  %v909_v1 = vld [vmem:[#allocation4 + $0x11a8] sm:$0xff]  ;;  %v415_v9 = vld [vmem:[#allocation4 + $0x238] sm:$0xff] }
  0x8b   :  { %1142 = vmatpush.msrb.mxu2 %v874_v21  ;;  %1103 = vmatpush.msrb.mxu0 %v709_v24  ;;  %v5902_v4 = vld.sshfl [vmem:[#allocation1 + $0x18] sm:$0xff pattern:$0x73625140]  ;;  %v420_v5 = vld [vmem:[#allocation4 + $0x260] sm:$0xff]  ;;  %v495_v10 = vld [vmem:[#allocation4 + $0x4b8] sm:$0xff] }
  0x8c   :  { %1123 = vmatpush.msrb.mxu1 %v789_v25  ;;  %1162 = vmatpush.msrb.mxu3 %v954_v27  ;;  %v500_v6 = vld [vmem:[#allocation4 + $0x4e0] sm:$0xff]  ;;  %v575_v11 = vld [vmem:[#allocation4 + $0x738] sm:$0xff]  ;;  %v410_v13 = vld [vmem:[#allocation4 + $0x210] sm:$0xff] }
  0x8d   :  { %1143 = vmatpush.msrb.mxu2 %v869_v26  ;;  %1104 = vmatpush.msrb.mxu0 %v704_v28  ;;  %v580_v7 = vld [vmem:[#allocation4 + $0x760] sm:$0xff]  ;;  %v490_v14 = vld [vmem:[#allocation4 + $0x490] sm:$0xff]  ;;  %v655_v16 = vld [vmem:[#allocation4 + $0x9b8] sm:$0xff] }
  0x8e   :  { %1124 = vmatpush.msrb.mxu1 %v784_v29  ;;  %1163 = vmatpush.msrb.mxu3 %v949_v31  ;;  %v904_v8 = vld [vmem:[#allocation4 + $0x1180] sm:$0xff]  ;;  %v570_v15 = vld [vmem:[#allocation4 + $0x710] sm:$0xff]  ;;  %v405_v18 = vld [vmem:[#allocation4 + $0x1e8] sm:$0xff] }
  0x8f   :  { %1144 = vmatpush.msrb.mxu2 %v864_v30  ;;  %1105 = vmatpush.msrb.mxu0 %v699_v32  ;;  %v660_v12 = vld [vmem:[#allocation4 + $0x9e0] sm:$0xff]  ;;  %v485_v19 = vld [vmem:[#allocation4 + $0x468] sm:$0xff]  ;;  %v5909_v21 = vld.sshfl [vmem:[#allocation1 + $0x20] sm:$0xff pattern:$0x73625140] }
  0x90   :  { %1125 = vmatpush.msrb.mxu1 %v779_v33  ;;  %1164 = vmatpush.msrb.mxu3 %v944_v36  ;;  %v5907_v17 = vld.sshfl [vmem:[#allocation1 + $0x30] sm:$0xff pattern:$0x73625140]  ;;  %v650_v22 = vld [vmem:[#allocation4 + $0x990] sm:$0xff]  ;;  %v395_v29 = vld [vmem:[#allocation4 + $0x198] sm:$0xff] }
  0x91   :  { %1145 = vmatpush.msrb.mxu2 %v859_v35  ;;  %1106 = vmatpush.msrb.mxu0 %v694_v37  ;;  %v565_v20 = vld [vmem:[#allocation4 + $0x6e8] sm:$0xff]  ;;  %v400_v24 = vld [vmem:[#allocation4 + $0x1c0] sm:$0xff]  ;;  %v475_v30 = vld [vmem:[#allocation4 + $0x418] sm:$0xff] }
  0x92   :  { %1126 = vmatpush.msrb.mxu1 %v774_v38  ;;  %1165 = vmatpush.msrb.mxu3 %v939_v40  ;;  %v5912_v23 = vld.sshfl [vmem:[#allocation1 + $0x38] sm:$0xff pattern:$0x73625140]  ;;  %v480_v25 = vld [vmem:[#allocation4 + $0x440] sm:$0xff]  ;;  %v555_v31 = vld [vmem:[#allocation4 + $0x698] sm:$0xff] }
  0x93   :  { %1146 = vmatpush.msrb.mxu2 %v854_v39  ;;  %1107 = vmatpush.msrb.mxu0 %v689_v41  ;;  %v560_v26 = vld [vmem:[#allocation4 + $0x6c0] sm:$0xff]  ;;  %v645_v27 = vld [vmem:[#allocation4 + $0x968] sm:$0xff]  ;;  %v390_v33 = vld [vmem:[#allocation4 + $0x170] sm:$0xff] }
  0x94   :  { %1127 = vmatpush.msrb.mxu1 %v769_v42  ;;  %1166 = vmatpush.msrb.mxu3 %v934_v44  ;;  %v5915_v28 = vld.sshfl [vmem:[#allocation1 + $0x28] sm:$0xff pattern:$0x73625140]  ;;  %v470_v34 = vld [vmem:[#allocation4 + $0x3f0] sm:$0xff]  ;;  %v385_v37 = vld [vmem:[#allocation4 + $0x148] sm:$0xff] }
  0x95   :  { %1147 = vmatpush.msrb.mxu2 %v849_v43  ;;  %1108 = vmatpush.msrb.mxu0 %v684_v45  ;;  %v640_v32 = vld [vmem:[#allocation4 + $0x940] sm:$0xff]  ;;  %v550_v35 = vld [vmem:[#allocation4 + $0x670] sm:$0xff]  ;;  %v635_v36 = vld [vmem:[#allocation4 + $0x918] sm:$0xff] }
  0x96   :  { %1128 = vmatpush.msrb.mxu1 %v764_v46  ;;  %1167 = vmatpush.msrb.mxu3 %v929_v48  ;;  %v465_v38 = vld [vmem:[#allocation4 + $0x3c8] sm:$0xff]  ;;  %v630_v40 = vld [vmem:[#allocation4 + $0x8f0] sm:$0xff]  ;;  %v380_v41 = vld [vmem:[#allocation4 + $0x120] sm:$0xff] }
  0x97   :  { %1148 = vmatpush.msrb.mxu2 %v844_v47  ;;  %1109 = vmatpush.msrb.mxu0 %v679_v49  ;;  %v545_v39 = vld [vmem:[#allocation4 + $0x648] sm:$0xff]  ;;  %v460_v42 = vld [vmem:[#allocation4 + $0x3a0] sm:$0xff]  ;;  %v375_v45 = vld [vmem:[#allocation4 + $0xf8] sm:$0xff] }
  0x98   :  { %1129 = vmatpush.msrb.mxu1 %v759_v50  ;;  %1168 = vmatpush.msrb.mxu3 %v924_v52  ;;  %v540_v43 = vld [vmem:[#allocation4 + $0x620] sm:$0xff]  ;;  %v625_v44 = vld [vmem:[#allocation4 + $0x8c8] sm:$0xff]  ;;  %v455_v46 = vld [vmem:[#allocation4 + $0x378] sm:$0xff] }
  0x99   :  { %1149 = vmatpush.msrb.mxu2 %v839_v51  ;;  %1110 = vmatpush.msrb.mxu0 %v674_v53  ;;  %v535_v47 = vld [vmem:[#allocation4 + $0x5f8] sm:$0xff]  ;;  %v620_v48 = vld [vmem:[#allocation4 + $0x8a0] sm:$0xff]  ;;  %v370_v49 = vld [vmem:[#allocation4 + $0xd0] sm:$0xff] }
  0x9a   :  { %1130 = vmatpush.msrb.mxu1 %v754_v54  ;;  %1169 = vmatpush.msrb.mxu3 %v919_v56  ;;  %v450_v50 = vld [vmem:[#allocation4 + $0x350] sm:$0xff]  ;;  %v615_v52 = vld [vmem:[#allocation4 + $0x878] sm:$0xff]  ;;  %v365_v53 = vld [vmem:[#allocation4 + $0xa8] sm:$0xff] }
  0x9b   :  { %1150 = vmatpush.msrb.mxu2 %v834_v55  ;;  %1111 = vmatpush.msrb.mxu0 %v669_v57  ;;  %v530_v51 = vld [vmem:[#allocation4 + $0x5d0] sm:$0xff]  ;;  %v445_v54 = vld [vmem:[#allocation4 + $0x328] sm:$0xff]  ;;  %v360_v57 = vld [vmem:[#allocation4 + $0x80] sm:$0xff] }
  0x9c   :  { %1131 = vmatpush.msrb.mxu1 %v749_v58  ;;  %1170 = vmatpush.msrb.mxu3 %v914_v60  ;;  %v525_v55 = vld [vmem:[#allocation4 + $0x5a8] sm:$0xff]  ;;  %v610_v56 = vld [vmem:[#allocation4 + $0x850] sm:$0xff]  ;;  %v440_v58 = vld [vmem:[#allocation4 + $0x300] sm:$0xff] }
  0x9d   :  { %1151 = vmatpush.msrb.mxu2 %v829_v59  ;;  %1112 = vmatpush.msrb.mxu0 %v664_v62  ;;  %v520_v59 = vld [vmem:[#allocation4 + $0x580] sm:$0xff]  ;;  %v605_v60 = vld [vmem:[#allocation4 + $0x828] sm:$0xff]  ;;  %v355_v62 = vld [vmem:[#allocation4 + $0x58] sm:$0xff] }
  0x9e   :  { %1073 = vmatmul.f32.vlgmr.msra.gmra.mxu2 %v5895_v61  ;;  %1132 = vmatpush.msrb.mxu1 %v744_v63  ;;  %v435_v63 = vld [vmem:[#allocation4 + $0x2d8] sm:$0xff] }
  0x9f   :  { %1152 = vmatpush.msrb.mxu2 %v824_v0  ;;  %1171 = vmatpush.msrb.mxu3 %v909_v1  ;;  %v515_v0 = vld [vmem:[#allocation4 + $0x558] sm:$0xff]  ;;  %v600_v1 = vld [vmem:[#allocation4 + $0x800] sm:$0xff] }
  0xa0   :  { %1033 = vmatmul.f32.vlgmr.msra.gmra.mxu0 %v5897_v2  ;;  %1053 = vmatmul.f32.vlgmr.msra.gmra.mxu1 %v5900_v3 }
  0xa1   :  { %1093 = vmatmul.f32.vlgmr.msra.gmra.mxu3 %v5902_v4  ;;  %1177 = vmatpush.msra.mxu0 %v420_v5  ;;  %v350_v5 = vld [vmem:[#allocation4 + $0x30] sm:$0xff] }
  0xa2   :  { %1197 = vmatpush.msra.mxu1 %v500_v6  ;;  %1217 = vmatpush.msra.mxu2 %v580_v7  ;;  %v430_v6 = vld [vmem:[#allocation4 + $0x2b0] sm:$0xff] }
  0xa3   :  { %1172 = vmatpush.msrb.mxu3 %v904_v8  ;;  %1178 = vmatpush.msra.mxu0 %v415_v9  ;;  %v510_v7 = vld [vmem:[#allocation4 + $0x530] sm:$0xff]  ;;  %v595_v8 = vld [vmem:[#allocation4 + $0x7d8] sm:$0xff]  ;;  %v345_v9 = vld [vmem:[#allocation4 + $0x8] sm:$0xff] }
  0xa4   :  { %1198 = vmatpush.msra.mxu1 %v495_v10  ;;  %1218 = vmatpush.msra.mxu2 %v575_v11  ;;  %v425_v10 = vld [vmem:[#allocation4 + $0x288] sm:$0xff] }
  0xa5   :  { %1237 = vmatpush.msra.mxu3 %v660_v12  ;;  %1179 = vmatpush.msra.mxu0 %v410_v13  ;;  %v505_v11 = vld [vmem:[#allocation4 + $0x508] sm:$0xff]  ;;  %v590_v12 = vld [vmem:[#allocation4 + $0x7b0] sm:$0xff]  ;;  %v740_v13 = vld [vmem:[#allocation4 + $0xc60] sm:$0xff] }
  0xa6   :  { %1199 = vmatpush.msra.mxu1 %v490_v14  ;;  %1219 = vmatpush.msra.mxu2 %v570_v15  ;;  %v820_v14 = vld [vmem:[#allocation4 + $0xee0] sm:$0xff] }
  0xa7   :  { %1238 = vmatpush.msra.mxu3 %v655_v16  ;;  %1153 = vmatmul.f32.vlgmr.msrb.gmra.mxu2 %v5907_v17  ;;  %v900_v15 = vld [vmem:[#allocation4 + $0x1160] sm:$0xff]  ;;  %v585_v16 = vld [vmem:[#allocation4 + $0x788] sm:$0xff] }
  0xa8   :  { %1180 = vmatpush.msra.mxu0 %v405_v18  ;;  %1200 = vmatpush.msra.mxu1 %v485_v19  ;;  %v735_v18 = vld [vmem:[#allocation4 + $0xc38] sm:$0xff] }
  0xa9   :  { %1220 = vmatpush.msra.mxu2 %v565_v20  ;;  %1239 = vmatpush.msra.mxu3 %v650_v22  ;;  %v815_v19 = vld [vmem:[#allocation4 + $0xeb8] sm:$0xff]  ;;  %v980_v22 = vld [vmem:[#allocation4 + $0x13e0] sm:$0xff] }
  0xaa   :  { %1113 = vmatmul.f32.vlgmr.msrb.gmra.mxu0 %v5909_v21  ;;  %1173 = vmatmul.f32.vlgmr.msrb.gmra.mxu3 %v5912_v23  ;;  %v895_v20 = vld [vmem:[#allocation4 + $0x1138] sm:$0xff] }
  0xab   :  { %1181 = vmatpush.msra.mxu0 %v400_v24  ;;  %1201 = vmatpush.msra.mxu1 %v480_v25  ;;  %v730_v24 = vld [vmem:[#allocation4 + $0xc10] sm:$0xff] }
  0xac   :  { %1221 = vmatpush.msra.mxu2 %v560_v26  ;;  %1240 = vmatpush.msra.mxu3 %v645_v27  ;;  %v810_v25 = vld [vmem:[#allocation4 + $0xe90] sm:$0xff]  ;;  %v975_v27 = vld [vmem:[#allocation4 + $0x13b8] sm:$0xff] }
  0xad   :  { %1133 = vmatmul.f32.vlgmr.msrb.gmra.mxu1 %v5915_v28  ;;  %1182 = vmatpush.msra.mxu0 %v395_v29  ;;  %v890_v26 = vld [vmem:[#allocation4 + $0x1110] sm:$0xff]  ;;  %v725_v29 = vld [vmem:[#allocation4 + $0xbe8] sm:$0xff] }
  0xae   :  { %1202 = vmatpush.msra.mxu1 %v475_v30  ;;  %1222 = vmatpush.msra.mxu2 %v555_v31  ;;  %v805_v30 = vld [vmem:[#allocation4 + $0xe68] sm:$0xff] }
  0xaf   :  { %1241 = vmatpush.msra.mxu3 %v640_v32  ;;  %1183 = vmatpush.msra.mxu0 %v390_v33  ;;  %v885_v31 = vld [vmem:[#allocation4 + $0x10e8] sm:$0xff]  ;;  %v970_v32 = vld [vmem:[#allocation4 + $0x1390] sm:$0xff]  ;;  %v720_v33 = vld [vmem:[#allocation4 + $0xbc0] sm:$0xff] }
  0xb0   :  { %1203 = vmatpush.msra.mxu1 %v470_v34  ;;  %1223 = vmatpush.msra.mxu2 %v550_v35  ;;  %v800_v34 = vld [vmem:[#allocation4 + $0xe40] sm:$0xff] }
  0xb1   :  { %1242 = vmatpush.msra.mxu3 %v635_v36  ;;  %1184 = vmatpush.msra.mxu0 %v385_v37  ;;  %v880_v35 = vld [vmem:[#allocation4 + $0x10c0] sm:$0xff]  ;;  %v965_v36 = vld [vmem:[#allocation4 + $0x1368] sm:$0xff]  ;;  %v715_v37 = vld [vmem:[#allocation4 + $0xb98] sm:$0xff] }
  0xb2   :  { %1204 = vmatpush.msra.mxu1 %v465_v38  ;;  %1224 = vmatpush.msra.mxu2 %v545_v39  ;;  %v795_v38 = vld [vmem:[#allocation4 + $0xe18] sm:$0xff] }
  0xb3   :  { %1243 = vmatpush.msra.mxu3 %v630_v40  ;;  %1185 = vmatpush.msra.mxu0 %v380_v41  ;;  %v875_v39 = vld [vmem:[#allocation4 + $0x1098] sm:$0xff]  ;;  %v960_v40 = vld [vmem:[#allocation4 + $0x1340] sm:$0xff]  ;;  %v710_v41 = vld [vmem:[#allocation4 + $0xb70] sm:$0xff] }
  0xb4   :  { %1205 = vmatpush.msra.mxu1 %v460_v42  ;;  %1225 = vmatpush.msra.mxu2 %v540_v43  ;;  %v790_v42 = vld [vmem:[#allocation4 + $0xdf0] sm:$0xff] }
  0xb5   :  { %1244 = vmatpush.msra.mxu3 %v625_v44  ;;  %1186 = vmatpush.msra.mxu0 %v375_v45  ;;  %v870_v43 = vld [vmem:[#allocation4 + $0x1070] sm:$0xff]  ;;  %v955_v44 = vld [vmem:[#allocation4 + $0x1318] sm:$0xff]  ;;  %v705_v45 = vld [vmem:[#allocation4 + $0xb48] sm:$0xff] }
  0xb6   :  { %1206 = vmatpush.msra.mxu1 %v455_v46  ;;  %1226 = vmatpush.msra.mxu2 %v535_v47  ;;  %v785_v46 = vld [vmem:[#allocation4 + $0xdc8] sm:$0xff] }
  0xb7   :  { %1245 = vmatpush.msra.mxu3 %v620_v48  ;;  %1187 = vmatpush.msra.mxu0 %v370_v49  ;;  %v865_v47 = vld [vmem:[#allocation4 + $0x1048] sm:$0xff]  ;;  %v950_v48 = vld [vmem:[#allocation4 + $0x12f0] sm:$0xff]  ;;  %v700_v49 = vld [vmem:[#allocation4 + $0xb20] sm:$0xff] }
  0xb8   :  { %1207 = vmatpush.msra.mxu1 %v450_v50  ;;  %1227 = vmatpush.msra.mxu2 %v530_v51  ;;  %v780_v50 = vld [vmem:[#allocation4 + $0xda0] sm:$0xff] }
  0xb9   :  { %1246 = vmatpush.msra.mxu3 %v615_v52  ;;  %1188 = vmatpush.msra.mxu0 %v365_v53  ;;  %v860_v51 = vld [vmem:[#allocation4 + $0x1020] sm:$0xff]  ;;  %v945_v52 = vld [vmem:[#allocation4 + $0x12c8] sm:$0xff]  ;;  %v695_v53 = vld [vmem:[#allocation4 + $0xaf8] sm:$0xff] }
  0xba   :  { %1208 = vmatpush.msra.mxu1 %v445_v54  ;;  %1228 = vmatpush.msra.mxu2 %v525_v55  ;;  %v775_v54 = vld [vmem:[#allocation4 + $0xd78] sm:$0xff] }
  0xbb   :  { %1247 = vmatpush.msra.mxu3 %v610_v56  ;;  %1189 = vmatpush.msra.mxu0 %v360_v57  ;;  %v855_v55 = vld [vmem:[#allocation4 + $0xff8] sm:$0xff]  ;;  %v940_v56 = vld [vmem:[#allocation4 + $0x12a0] sm:$0xff]  ;;  %v690_v57 = vld [vmem:[#allocation4 + $0xad0] sm:$0xff] }
  0xbc   :  { %1209 = vmatpush.msra.mxu1 %v440_v58  ;;  %1229 = vmatpush.msra.mxu2 %v520_v59  ;;  %v770_v58 = vld [vmem:[#allocation4 + $0xd50] sm:$0xff] }
  0xbd   :  { %1248 = vmatpush.msra.mxu3 %v605_v60  ;;  %1190 = vmatpush.msra.mxu0 %v355_v62  ;;  %v850_v59 = vld [vmem:[#allocation4 + $0xfd0] sm:$0xff]  ;;  %v935_v60 = vld [vmem:[#allocation4 + $0x1278] sm:$0xff]  ;;  %v685_v62 = vld [vmem:[#allocation4 + $0xaa8] sm:$0xff] }
  0xbe   :  { %1210 = vmatpush.msra.mxu1 %v435_v63  ;;  %1230 = vmatpush.msra.mxu2 %v515_v0  ;;  %v765_v63 = vld [vmem:[#allocation4 + $0xd28] sm:$0xff] }
  0xbf   :  { %1249 = vmatpush.msra.mxu3 %v600_v1  ;;  %1191 = vmatpush.msra.mxu0 %v350_v5  ;;  %v845_v0 = vld [vmem:[#allocation4 + $0xfa8] sm:$0xff]  ;;  %v930_v1 = vld [vmem:[#allocation4 + $0x1250] sm:$0xff]  ;;  %v680_v5 = vld [vmem:[#allocation4 + $0xa80] sm:$0xff] }
  0xc0   :  { %1211 = vmatpush.msra.mxu1 %v430_v6  ;;  %1231 = vmatpush.msra.mxu2 %v510_v7  ;;  %v760_v6 = vld [vmem:[#allocation4 + $0xd00] sm:$0xff] }
  0xc1   :  { %1250 = vmatpush.msra.mxu3 %v595_v8  ;;  %1192 = vmatpush.msra.mxu0 %v345_v9  ;;  %v840_v7 = vld [vmem:[#allocation4 + $0xf80] sm:$0xff]  ;;  %v925_v8 = vld [vmem:[#allocation4 + $0x1228] sm:$0xff]  ;;  %v675_v9 = vld [vmem:[#allocation4 + $0xa58] sm:$0xff] }
  0xc2   :  { %1212 = vmatpush.msra.mxu1 %v425_v10  ;;  %1232 = vmatpush.msra.mxu2 %v505_v11  ;;  %v755_v10 = vld [vmem:[#allocation4 + $0xcd8] sm:$0xff] }
  0xc3   :  { %1251 = vmatpush.msra.mxu3 %v590_v12  ;;  %1257 = vmatpush.msrb.mxu0 %v740_v13  ;;  %v835_v11 = vld [vmem:[#allocation4 + $0xf58] sm:$0xff]  ;;  %v920_v12 = vld [vmem:[#allocation4 + $0x1200] sm:$0xff]  ;;  %v670_v13 = vld [vmem:[#allocation4 + $0xa30] sm:$0xff] }
  0xc4   :  { %1277 = vmatpush.msrb.mxu1 %v820_v14  ;;  %1297 = vmatpush.msrb.mxu2 %v900_v15  ;;  %v750_v14 = vld [vmem:[#allocation4 + $0xcb0] sm:$0xff] }
  0xc5   :  { %1252 = vmatpush.msra.mxu3 %v585_v16  ;;  %1258 = vmatpush.msrb.mxu0 %v735_v18  ;;  %v830_v15 = vld [vmem:[#allocation4 + $0xf30] sm:$0xff]  ;;  %v915_v16 = vld [vmem:[#allocation4 + $0x11d8] sm:$0xff]  ;;  %v665_v18 = vld [vmem:[#allocation4 + $0xa08] sm:$0xff] }
  0xc6   :  { %1278 = vmatpush.msrb.mxu1 %v815_v19  ;;  %1298 = vmatpush.msrb.mxu2 %v895_v20  ;;  %v745_v19 = vld [vmem:[#allocation4 + $0xc88] sm:$0xff] }
  0xc7   :  { %1317 = vmatpush.msrb.mxu3 %v980_v22  ;;  %1259 = vmatpush.msrb.mxu0 %v730_v24  ;;  %v825_v20 = vld [vmem:[#allocation4 + $0xf08] sm:$0xff]  ;;  %v910_v22 = vld [vmem:[#allocation4 + $0x11b0] sm:$0xff] }
  0xc8   :  { %1279 = vmatpush.msrb.mxu1 %v810_v25  ;;  %1299 = vmatpush.msrb.mxu2 %v890_v26  ;;  %v421_v24 = vld [vmem:[#allocation4 + $0x268] sm:$0xff] }
  0xc9   :  { %1318 = vmatpush.msrb.mxu3 %v975_v27  ;;  %1260 = vmatpush.msrb.mxu0 %v725_v29  ;;  %v501_v25 = vld [vmem:[#allocation4 + $0x4e8] sm:$0xff]  ;;  %v416_v29 = vld [vmem:[#allocation4 + $0x240] sm:$0xff] }
  0xca   :  { %1280 = vmatpush.msrb.mxu1 %v805_v30  ;;  %1300 = vmatpush.msrb.mxu2 %v885_v31  ;;  %v581_v26 = vld [vmem:[#allocation4 + $0x768] sm:$0xff]  ;;  %v496_v30 = vld [vmem:[#allocation4 + $0x4c0] sm:$0xff] }
  0xcb   :  { %1319 = vmatpush.msrb.mxu3 %v970_v32  ;;  %1261 = vmatpush.msrb.mxu0 %v720_v33  ;;  %v905_v27 = vld [vmem:[#allocation4 + $0x1188] sm:$0xff]  ;;  %v576_v31 = vld [vmem:[#allocation4 + $0x740] sm:$0xff]  ;;  %v411_v32 = vld [vmem:[#allocation4 + $0x218] sm:$0xff] }
  0xcc   :  { %1281 = vmatpush.msrb.mxu1 %v800_v34  ;;  %1301 = vmatpush.msrb.mxu2 %v880_v35  ;;  %v491_v33 = vld [vmem:[#allocation4 + $0x498] sm:$0xff]  ;;  %v406_v35 = vld [vmem:[#allocation4 + $0x1f0] sm:$0xff] }
  0xcd   :  { %1320 = vmatpush.msrb.mxu3 %v965_v36  ;;  %1262 = vmatpush.msrb.mxu0 %v715_v37  ;;  %v571_v34 = vld [vmem:[#allocation4 + $0x718] sm:$0xff]  ;;  %v401_v37 = vld [vmem:[#allocation4 + $0x1c8] sm:$0xff] }
  0xce   :  { %1282 = vmatpush.msrb.mxu1 %v795_v38  ;;  %1302 = vmatpush.msrb.mxu2 %v875_v39  ;;  %v651_v36 = vld [vmem:[#allocation4 + $0x998] sm:$0xff]  ;;  %v481_v38 = vld [vmem:[#allocation4 + $0x448] sm:$0xff] }
  0xcf   :  { %1321 = vmatpush.msrb.mxu3 %v960_v40  ;;  %1263 = vmatpush.msrb.mxu0 %v710_v41  ;;  %v561_v39 = vld [vmem:[#allocation4 + $0x6c8] sm:$0xff]  ;;  %v646_v40 = vld [vmem:[#allocation4 + $0x970] sm:$0xff]  ;;  %v396_v41 = vld [vmem:[#allocation4 + $0x1a0] sm:$0xff] }
  0xd0   :  { %1283 = vmatpush.msrb.mxu1 %v790_v42  ;;  %1303 = vmatpush.msrb.mxu2 %v870_v43  ;;  %v476_v42 = vld [vmem:[#allocation4 + $0x420] sm:$0xff] }
  0xd1   :  { %1322 = vmatpush.msrb.mxu3 %v955_v44  ;;  %1264 = vmatpush.msrb.mxu0 %v705_v45  ;;  %v556_v43 = vld [vmem:[#allocation4 + $0x6a0] sm:$0xff]  ;;  %v641_v44 = vld [vmem:[#allocation4 + $0x948] sm:$0xff]  ;;  %v471_v45 = vld [vmem:[#allocation4 + $0x3f8] sm:$0xff] }
  0xd2   :  { %1284 = vmatpush.msrb.mxu1 %v785_v46  ;;  %1304 = vmatpush.msrb.mxu2 %v865_v47  ;;  %v551_v46 = vld [vmem:[#allocation4 + $0x678] sm:$0xff]  ;;  %v636_v47 = vld [vmem:[#allocation4 + $0x920] sm:$0xff] }
  0xd3   :  { %1323 = vmatpush.msrb.mxu3 %v950_v48  ;;  %1265 = vmatpush.msrb.mxu0 %v700_v49  ;;  %v546_v48 = vld [vmem:[#allocation4 + $0x650] sm:$0xff]  ;;  %v631_v49 = vld [vmem:[#allocation4 + $0x8f8] sm:$0xff] }
  0xd4   :  { %1285 = vmatpush.msrb.mxu1 %v780_v50  ;;  %1305 = vmatpush.msrb.mxu2 %v860_v51  ;;  %v381_v50 = vld [vmem:[#allocation4 + $0x128] sm:$0xff] }
  0xd5   :  { %1324 = vmatpush.msrb.mxu3 %v945_v52  ;;  %1266 = vmatpush.msrb.mxu0 %v695_v53  ;;  %v461_v51 = vld [vmem:[#allocation4 + $0x3a8] sm:$0xff]  ;;  %v626_v52 = vld [vmem:[#allocation4 + $0x8d0] sm:$0xff]  ;;  %v376_v53 = vld [vmem:[#allocation4 + $0x100] sm:$0xff] }
  0xd6   :  { %1286 = vmatpush.msrb.mxu1 %v775_v54  ;;  %1306 = vmatpush.msrb.mxu2 %v855_v55  ;;  %v456_v54 = vld [vmem:[#allocation4 + $0x380] sm:$0xff] }
  0xd7   :  { %1325 = vmatpush.msrb.mxu3 %v940_v56  ;;  %1267 = vmatpush.msrb.mxu0 %v690_v57  ;;  %v536_v55 = vld [vmem:[#allocation4 + $0x600] sm:$0xff]  ;;  %v621_v56 = vld [vmem:[#allocation4 + $0x8a8] sm:$0xff]  ;;  %v371_v57 = vld [vmem:[#allocation4 + $0xd8] sm:$0xff] }
  0xd8   :  { %1287 = vmatpush.msrb.mxu1 %v770_v58  ;;  %1307 = vmatpush.msrb.mxu2 %v850_v59  ;;  %v451_v58 = vld [vmem:[#allocation4 + $0x358] sm:$0xff] }
  0xd9   :  { %1326 = vmatpush.msrb.mxu3 %v935_v60  ;;  %1268 = vmatpush.msrb.mxu0 %v685_v62  ;;  %v531_v59 = vld [vmem:[#allocation4 + $0x5d8] sm:$0xff]  ;;  %v616_v60 = vld [vmem:[#allocation4 + $0x880] sm:$0xff]  ;;  %v366_v62 = vld [vmem:[#allocation4 + $0xb0] sm:$0xff] }
  0xda   :  { %1288 = vmatpush.msrb.mxu1 %v765_v63  ;;  %1308 = vmatpush.msrb.mxu2 %v845_v0  ;;  %v446_v63 = vld [vmem:[#allocation4 + $0x330] sm:$0xff] }
  0xdb   :  { %1327 = vmatpush.msrb.mxu3 %v930_v1  ;;  %1269 = vmatpush.msrb.mxu0 %v680_v5  ;;  %v526_v0 = vld [vmem:[#allocation4 + $0x5b0] sm:$0xff]  ;;  %v611_v1 = vld [vmem:[#allocation4 + $0x858] sm:$0xff]  ;;  %v361_v5 = vld [vmem:[#allocation4 + $0x88] sm:$0xff] }
  0xdc   :  { %1289 = vmatpush.msrb.mxu1 %v760_v6  ;;  %1309 = vmatpush.msrb.mxu2 %v840_v7  ;;  %v441_v6 = vld [vmem:[#allocation4 + $0x308] sm:$0xff] }
  0xdd   :  { %1328 = vmatpush.msrb.mxu3 %v925_v8  ;;  %1270 = vmatpush.msrb.mxu0 %v675_v9  ;;  %v521_v7 = vld [vmem:[#allocation4 + $0x588] sm:$0xff]  ;;  %v606_v8 = vld [vmem:[#allocation4 + $0x830] sm:$0xff]  ;;  %v356_v9 = vld [vmem:[#allocation4 + $0x60] sm:$0xff] }
  0xde   :  { %1290 = vmatpush.msrb.mxu1 %v755_v10  ;;  %1310 = vmatpush.msrb.mxu2 %v835_v11  ;;  %v436_v10 = vld [vmem:[#allocation4 + $0x2e0] sm:$0xff] }
  0xdf   :  { %1329 = vmatpush.msrb.mxu3 %v920_v12  ;;  %1271 = vmatpush.msrb.mxu0 %v670_v13  ;;  %v516_v11 = vld [vmem:[#allocation4 + $0x560] sm:$0xff]  ;;  %v601_v12 = vld [vmem:[#allocation4 + $0x808] sm:$0xff]  ;;  %v351_v13 = vld [vmem:[#allocation4 + $0x38] sm:$0xff] }
  0xe0   :  { %1291 = vmatpush.msrb.mxu1 %v750_v14  ;;  %1311 = vmatpush.msrb.mxu2 %v830_v15  ;;  %v431_v14 = vld [vmem:[#allocation4 + $0x2b8] sm:$0xff] }
  0xe1   :  { %1330 = vmatpush.msrb.mxu3 %v915_v16  ;;  %1233 = vmatmul.f32.vlgmr.msra.gmra.mxu2 %v5895_v61  ;;  %v661_v61 = vld [vmem:[#allocation4 + $0x9e8] sm:$0xff]  ;;  %v511_v15 = vld [vmem:[#allocation4 + $0x538] sm:$0xff]  ;;  %v596_v16 = vld [vmem:[#allocation4 + $0x7e0] sm:$0xff] }
  0xe2   :  { %1272 = vmatpush.msrb.mxu0 %v665_v18  ;;  %1292 = vmatpush.msrb.mxu1 %v745_v19  ;;  %v346_v18 = vld [vmem:[#allocation4 + $0x10] sm:$0xff] }
  0xe3   :  { %1312 = vmatpush.msrb.mxu2 %v825_v20  ;;  %1331 = vmatpush.msrb.mxu3 %v910_v22  ;;  %v426_v19 = vld [vmem:[#allocation4 + $0x290] sm:$0xff]  ;;  %v591_v22 = vld [vmem:[#allocation4 + $0x7b8] sm:$0xff] }
  0xe4   :  { %1193 = vmatmul.f32.vlgmr.msra.gmra.mxu0 %v5897_v2  ;;  %1213 = vmatmul.f32.vlgmr.msra.gmra.mxu1 %v5900_v3  ;;  %v656_v2 = vld [vmem:[#allocation4 + $0x9c0] sm:$0xff]  ;;  %v486_v3 = vld [vmem:[#allocation4 + $0x470] sm:$0xff] }
  0xe5   :  { %1253 = vmatmul.f32.vlgmr.msra.gmra.mxu3 %v5902_v4  ;;  %1337 = vmatpush.msra.mxu0 %v421_v24  ;;  %v566_v4 = vld [vmem:[#allocation4 + $0x6f0] sm:$0xff]  ;;  %v741_v24 = vld [vmem:[#allocation4 + $0xc68] sm:$0xff] }
  0xe6   :  { %1357 = vmatpush.msra.mxu1 %v501_v25  ;;  %1377 = vmatpush.msra.mxu2 %v581_v26  ;;  %v506_v20 = vld [vmem:[#allocation4 + $0x510] sm:$0xff]  ;;  %v821_v25 = vld [vmem:[#allocation4 + $0xee8] sm:$0xff] }
  0xe7   :  { %1332 = vmatpush.msrb.mxu3 %v905_v27  ;;  %1338 = vmatpush.msra.mxu0 %v416_v29  ;;  %v901_v26 = vld [vmem:[#allocation4 + $0x1168] sm:$0xff]  ;;  %v586_v27 = vld [vmem:[#allocation4 + $0x790] sm:$0xff]  ;;  %v736_v29 = vld [vmem:[#allocation4 + $0xc40] sm:$0xff] }
  0xe8   :  { %1358 = vmatpush.msra.mxu1 %v496_v30  ;;  %1378 = vmatpush.msra.mxu2 %v576_v31  ;;  %v816_v30 = vld [vmem:[#allocation4 + $0xec0] sm:$0xff] }
  0xe9   :  { %1397 = vmatpush.msra.mxu3 %v661_v61  ;;  %1339 = vmatpush.msra.mxu0 %v411_v32  ;;  %v896_v31 = vld [vmem:[#allocation4 + $0x1140] sm:$0xff]  ;;  %v981_v61 = vld [vmem:[#allocation4 + $0x13e8] sm:$0xff]  ;;  %v731_v32 = vld [vmem:[#allocation4 + $0xc18] sm:$0xff] }
  0xea   :  { %1359 = vmatpush.msra.mxu1 %v491_v33  ;;  %1379 = vmatpush.msra.mxu2 %v571_v34  ;;  %v811_v33 = vld [vmem:[#allocation4 + $0xe98] sm:$0xff] }
  0xeb   :  { %1398 = vmatpush.msra.mxu3 %v656_v2  ;;  %1313 = vmatmul.f32.vlgmr.msrb.gmra.mxu2 %v5907_v17  ;;  %v391_v17 = vld [vmem:[#allocation4 + $0x178] sm:$0xff]  ;;  %v976_v2 = vld [vmem:[#allocation4 + $0x13c0] sm:$0xff] }
  0xec   :  { %1340 = vmatpush.msra.mxu0 %v406_v35  ;;  %1360 = vmatpush.msra.mxu1 %v486_v3  ;;  %v891_v34 = vld [vmem:[#allocation4 + $0x1118] sm:$0xff]  ;;  %v726_v35 = vld [vmem:[#allocation4 + $0xbf0] sm:$0xff] }
  0xed   :  { %1380 = vmatpush.msra.mxu2 %v566_v4  ;;  %1399 = vmatpush.msra.mxu3 %v651_v36  ;;  %v806_v3 = vld [vmem:[#allocation4 + $0xe70] sm:$0xff]  ;;  %v971_v36 = vld [vmem:[#allocation4 + $0x1398] sm:$0xff] }
  0xee   :  { %1273 = vmatmul.f32.vlgmr.msrb.gmra.mxu0 %v5909_v21  ;;  %1333 = vmatmul.f32.vlgmr.msrb.gmra.mxu3 %v5912_v23  ;;  %v386_v21 = vld [vmem:[#allocation4 + $0x150] sm:$0xff] }
  0xef   :  { %1341 = vmatpush.msra.mxu0 %v401_v37  ;;  %1361 = vmatpush.msra.mxu1 %v481_v38  ;;  %v466_v23 = vld [vmem:[#allocation4 + $0x3d0] sm:$0xff]  ;;  %v721_v37 = vld [vmem:[#allocation4 + $0xbc8] sm:$0xff] }
  0xf0   :  { %1381 = vmatpush.msra.mxu2 %v561_v39  ;;  %1400 = vmatpush.msra.mxu3 %v646_v40  ;;  %v886_v4 = vld [vmem:[#allocation4 + $0x10f0] sm:$0xff]  ;;  %v801_v38 = vld [vmem:[#allocation4 + $0xe48] sm:$0xff] }
  0xf1   :  { %1293 = vmatmul.f32.vlgmr.msrb.gmra.mxu1 %v5915_v28  ;;  %1342 = vmatpush.msra.mxu0 %v396_v41  ;;  %v541_v28 = vld [vmem:[#allocation4 + $0x628] sm:$0xff]  ;;  %v966_v40 = vld [vmem:[#allocation4 + $0x1370] sm:$0xff]  ;;  %v716_v41 = vld [vmem:[#allocation4 + $0xba0] sm:$0xff] }
  0xf2   :  { %1362 = vmatpush.msra.mxu1 %v476_v42  ;;  %1382 = vmatpush.msra.mxu2 %v556_v43  ;;  %v881_v39 = vld [vmem:[#allocation4 + $0x10c8] sm:$0xff]  ;;  %v796_v42 = vld [vmem:[#allocation4 + $0xe20] sm:$0xff] }
  0xf3   :  { %1401 = vmatpush.msra.mxu3 %v641_v44  ;;  %1343 = vmatpush.msra.mxu0 %v391_v17  ;;  %v876_v43 = vld [vmem:[#allocation4 + $0x10a0] sm:$0xff]  ;;  %v961_v44 = vld [vmem:[#allocation4 + $0x1348] sm:$0xff]  ;;  %v711_v17 = vld [vmem:[#allocation4 + $0xb78] sm:$0xff] }
  0xf4   :  { %1363 = vmatpush.msra.mxu1 %v471_v45  ;;  %1383 = vmatpush.msra.mxu2 %v551_v46  ;;  %v791_v45 = vld [vmem:[#allocation4 + $0xdf8] sm:$0xff] }
  0xf5   :  { %1402 = vmatpush.msra.mxu3 %v636_v47  ;;  %1344 = vmatpush.msra.mxu0 %v386_v21  ;;  %v871_v46 = vld [vmem:[#allocation4 + $0x1078] sm:$0xff]  ;;  %v956_v47 = vld [vmem:[#allocation4 + $0x1320] sm:$0xff]  ;;  %v706_v21 = vld [vmem:[#allocation4 + $0xb50] sm:$0xff] }
  0xf6   :  { %1364 = vmatpush.msra.mxu1 %v466_v23  ;;  %1384 = vmatpush.msra.mxu2 %v546_v48  ;;  %v786_v23 = vld [vmem:[#allocation4 + $0xdd0] sm:$0xff] }
  0xf7   :  { %1403 = vmatpush.msra.mxu3 %v631_v49  ;;  %1345 = vmatpush.msra.mxu0 %v381_v50  ;;  %v866_v48 = vld [vmem:[#allocation4 + $0x1050] sm:$0xff]  ;;  %v951_v49 = vld [vmem:[#allocation4 + $0x12f8] sm:$0xff]  ;;  %v701_v50 = vld [vmem:[#allocation4 + $0xb28] sm:$0xff] }
  0xf8   :  { %1365 = vmatpush.msra.mxu1 %v461_v51  ;;  %1385 = vmatpush.msra.mxu2 %v541_v28  ;;  %v781_v51 = vld [vmem:[#allocation4 + $0xda8] sm:$0xff] }
  0xf9   :  { %1404 = vmatpush.msra.mxu3 %v626_v52  ;;  %1346 = vmatpush.msra.mxu0 %v376_v53  ;;  %v861_v28 = vld [vmem:[#allocation4 + $0x1028] sm:$0xff]  ;;  %v946_v52 = vld [vmem:[#allocation4 + $0x12d0] sm:$0xff]  ;;  %v696_v53 = vld [vmem:[#allocation4 + $0xb00] sm:$0xff] }
  0xfa   :  { %1366 = vmatpush.msra.mxu1 %v456_v54  ;;  %1386 = vmatpush.msra.mxu2 %v536_v55  ;;  %v776_v54 = vld [vmem:[#allocation4 + $0xd80] sm:$0xff] }
  0xfb   :  { %1405 = vmatpush.msra.mxu3 %v621_v56  ;;  %1347 = vmatpush.msra.mxu0 %v371_v57  ;;  %v856_v55 = vld [vmem:[#allocation4 + $0x1000] sm:$0xff]  ;;  %v941_v56 = vld [vmem:[#allocation4 + $0x12a8] sm:$0xff]  ;;  %v691_v57 = vld [vmem:[#allocation4 + $0xad8] sm:$0xff] }
  0xfc   :  { %1367 = vmatpush.msra.mxu1 %v451_v58  ;;  %1387 = vmatpush.msra.mxu2 %v531_v59  ;;  %v771_v58 = vld [vmem:[#allocation4 + $0xd58] sm:$0xff] }
  0xfd   :  { %1406 = vmatpush.msra.mxu3 %v616_v60  ;;  %1348 = vmatpush.msra.mxu0 %v366_v62  ;;  %v851_v59 = vld [vmem:[#allocation4 + $0xfd8] sm:$0xff]  ;;  %v936_v60 = vld [vmem:[#allocation4 + $0x1280] sm:$0xff]  ;;  %v686_v62 = vld [vmem:[#allocation4 + $0xab0] sm:$0xff] }
  0xfe   :  { %1368 = vmatpush.msra.mxu1 %v446_v63  ;;  %1388 = vmatpush.msra.mxu2 %v526_v0  ;;  %v766_v63 = vld [vmem:[#allocation4 + $0xd30] sm:$0xff] }
  0xff   :  { %1407 = vmatpush.msra.mxu3 %v611_v1  ;;  %1349 = vmatpush.msra.mxu0 %v361_v5  ;;  %v846_v0 = vld [vmem:[#allocation4 + $0xfb0] sm:$0xff]  ;;  %v931_v1 = vld [vmem:[#allocation4 + $0x1258] sm:$0xff]  ;;  %v681_v5 = vld [vmem:[#allocation4 + $0xa88] sm:$0xff] }
 0x100   :  { %1369 = vmatpush.msra.mxu1 %v441_v6  ;;  %1389 = vmatpush.msra.mxu2 %v521_v7  ;;  %v761_v6 = vld [vmem:[#allocation4 + $0xd08] sm:$0xff] }
 0x101   :  { %1408 = vmatpush.msra.mxu3 %v606_v8  ;;  %1350 = vmatpush.msra.mxu0 %v356_v9  ;;  %v841_v7 = vld [vmem:[#allocation4 + $0xf88] sm:$0xff]  ;;  %v926_v8 = vld [vmem:[#allocation4 + $0x1230] sm:$0xff]  ;;  %v676_v9 = vld [vmem:[#allocation4 + $0xa60] sm:$0xff] }
 0x102   :  { %1370 = vmatpush.msra.mxu1 %v436_v10  ;;  %1390 = vmatpush.msra.mxu2 %v516_v11  ;;  %v756_v10 = vld [vmem:[#allocation4 + $0xce0] sm:$0xff] }
 0x103   :  { %1409 = vmatpush.msra.mxu3 %v601_v12  ;;  %1351 = vmatpush.msra.mxu0 %v351_v13  ;;  %v836_v11 = vld [vmem:[#allocation4 + $0xf60] sm:$0xff]  ;;  %v921_v12 = vld [vmem:[#allocation4 + $0x1208] sm:$0xff]  ;;  %v671_v13 = vld [vmem:[#allocation4 + $0xa38] sm:$0xff] }
 0x104   :  { %1371 = vmatpush.msra.mxu1 %v431_v14  ;;  %1391 = vmatpush.msra.mxu2 %v511_v15  ;;  %v751_v14 = vld [vmem:[#allocation4 + $0xcb8] sm:$0xff] }
 0x105   :  { %1410 = vmatpush.msra.mxu3 %v596_v16  ;;  %1352 = vmatpush.msra.mxu0 %v346_v18  ;;  %v831_v15 = vld [vmem:[#allocation4 + $0xf38] sm:$0xff]  ;;  %v916_v16 = vld [vmem:[#allocation4 + $0x11e0] sm:$0xff]  ;;  %v666_v18 = vld [vmem:[#allocation4 + $0xa10] sm:$0xff] }
 0x106   :  { %1372 = vmatpush.msra.mxu1 %v426_v19  ;;  %1392 = vmatpush.msra.mxu2 %v506_v20  ;;  %v746_v19 = vld [vmem:[#allocation4 + $0xc90] sm:$0xff] }
 0x107   :  { %1411 = vmatpush.msra.mxu3 %v591_v22  ;;  %1417 = vmatpush.msrb.mxu0 %v741_v24  ;;  %v826_v20 = vld [vmem:[#allocation4 + $0xf10] sm:$0xff]  ;;  %v911_v22 = vld [vmem:[#allocation4 + $0x11b8] sm:$0xff]  ;;  %v5927_v24 = vld.sshfl [vmem:[#allocation1 + $0x10] sm:$0xff pattern:$0x73625140] }
 0x108   :  { %1437 = vmatpush.msrb.mxu1 %v821_v25  ;;  %1457 = vmatpush.msrb.mxu2 %v901_v26  ;;  %v422_v25 = vld [vmem:[#allocation4 + $0x270] sm:$0xff] }
 0x109   :  { %1412 = vmatpush.msra.mxu3 %v586_v27  ;;  %1418 = vmatpush.msrb.mxu0 %v736_v29  ;;  %v502_v26 = vld [vmem:[#allocation4 + $0x4f0] sm:$0xff] }
 0x10a   :  { %1438 = vmatpush.msrb.mxu1 %v816_v30  ;;  %1458 = vmatpush.msrb.mxu2 %v896_v31  ;;  %v5930_v27 = vld.sshfl [vmem:[#allocation1] sm:$0xff pattern:$0x73625140]  ;;  %v5933_v31 = vld.sshfl [vmem:[#allocation1 + $0x8] sm:$0xff pattern:$0x73625140] }
 0x10b   :  { %1477 = vmatpush.msrb.mxu3 %v981_v61  ;;  %1419 = vmatpush.msrb.mxu0 %v731_v32  ;;  %v582_v29 = vld [vmem:[#allocation4 + $0x770] sm:$0xff]  ;;  %v417_v32 = vld [vmem:[#allocation4 + $0x248] sm:$0xff] }
 0x10c   :  { %1439 = vmatpush.msrb.mxu1 %v811_v33  ;;  %1459 = vmatpush.msrb.mxu2 %v891_v34  ;;  %v906_v30 = vld [vmem:[#allocation4 + $0x1190] sm:$0xff]  ;;  %v497_v33 = vld [vmem:[#allocation4 + $0x4c8] sm:$0xff] }
 0x10d   :  { %1478 = vmatpush.msrb.mxu3 %v976_v2  ;;  %1420 = vmatpush.msrb.mxu0 %v726_v35  ;;  %v5936_v61 = vld.sshfl [vmem:[#allocation1 + $0x18] sm:$0xff pattern:$0x73625140]  ;;  %v412_v35 = vld [vmem:[#allocation4 + $0x220] sm:$0xff] }
 0x10e   :  { %1440 = vmatpush.msrb.mxu1 %v806_v3  ;;  %1460 = vmatpush.msrb.mxu2 %v886_v4  ;;  %v577_v34 = vld [vmem:[#allocation4 + $0x748] sm:$0xff]  ;;  %v662_v2 = vld [vmem:[#allocation4 + $0x9f0] sm:$0xff]  ;;  %v492_v3 = vld [vmem:[#allocation4 + $0x4a0] sm:$0xff] }
 0x10f   :  { %1479 = vmatpush.msrb.mxu3 %v971_v36  ;;  %1421 = vmatpush.msrb.mxu0 %v721_v37  ;;  %v572_v4 = vld [vmem:[#allocation4 + $0x720] sm:$0xff]  ;;  %v657_v36 = vld [vmem:[#allocation4 + $0x9c8] sm:$0xff]  ;;  %v407_v37 = vld [vmem:[#allocation4 + $0x1f8] sm:$0xff] }
 0x110   :  { %1441 = vmatpush.msrb.mxu1 %v801_v38  ;;  %1461 = vmatpush.msrb.mxu2 %v881_v39  ;;  %v487_v38 = vld [vmem:[#allocation4 + $0x478] sm:$0xff] }
 0x111   :  { %1480 = vmatpush.msrb.mxu3 %v966_v40  ;;  %1422 = vmatpush.msrb.mxu0 %v716_v41  ;;  %v567_v39 = vld [vmem:[#allocation4 + $0x6f8] sm:$0xff]  ;;  %v652_v40 = vld [vmem:[#allocation4 + $0x9a0] sm:$0xff] }
 0x112   :  { %1442 = vmatpush.msrb.mxu1 %v796_v42  ;;  %1462 = vmatpush.msrb.mxu2 %v876_v43  ;;  %v5939_v41 = vld.sshfl [vmem:[#allocation1 + $0x30] sm:$0xff pattern:$0x73625140]  ;;  %v402_v42 = vld [vmem:[#allocation4 + $0x1d0] sm:$0xff] }
 0x113   :  { %1481 = vmatpush.msrb.mxu3 %v961_v44  ;;  %1423 = vmatpush.msrb.mxu0 %v711_v17  ;;  %v482_v43 = vld [vmem:[#allocation4 + $0x450] sm:$0xff] }
 0x114   :  { %1443 = vmatpush.msrb.mxu1 %v791_v45  ;;  %1463 = vmatpush.msrb.mxu2 %v871_v46  ;;  %v562_v44 = vld [vmem:[#allocation4 + $0x6d0] sm:$0xff]  ;;  %v647_v45 = vld [vmem:[#allocation4 + $0x978] sm:$0xff] }
 0x115   :  { %1482 = vmatpush.msrb.mxu3 %v956_v47  ;;  %1424 = vmatpush.msrb.mxu0 %v706_v21  ;;  %v5942_v17 = vld.sshfl [vmem:[#allocation1 + $0x20] sm:$0xff pattern:$0x73625140]  ;;  %v5945_v46 = vld.sshfl [vmem:[#allocation1 + $0x38] sm:$0xff pattern:$0x73625140] }
 0x116   :  { %1444 = vmatpush.msrb.mxu1 %v786_v23  ;;  %1464 = vmatpush.msrb.mxu2 %v866_v48  ;;  %v397_v47 = vld [vmem:[#allocation4 + $0x1a8] sm:$0xff]  ;;  %v642_v48 = vld [vmem:[#allocation4 + $0x950] sm:$0xff] }
 0x117   :  { %1483 = vmatpush.msrb.mxu3 %v951_v49  ;;  %1425 = vmatpush.msrb.mxu0 %v701_v50  ;;  %v477_v21 = vld [vmem:[#allocation4 + $0x428] sm:$0xff]  ;;  %v5948_v49 = vld.sshfl [vmem:[#allocation1 + $0x28] sm:$0xff pattern:$0x73625140] }
 0x118   :  { %1445 = vmatpush.msrb.mxu1 %v781_v51  ;;  %1465 = vmatpush.msrb.mxu2 %v861_v28  ;;  %v557_v23 = vld [vmem:[#allocation4 + $0x6a8] sm:$0xff]  ;;  %v392_v50 = vld [vmem:[#allocation4 + $0x180] sm:$0xff] }
 0x119   :  { %1484 = vmatpush.msrb.mxu3 %v946_v52  ;;  %1426 = vmatpush.msrb.mxu0 %v696_v53  ;;  %v472_v51 = vld [vmem:[#allocation4 + $0x400] sm:$0xff]  ;;  %v637_v52 = vld [vmem:[#allocation4 + $0x928] sm:$0xff]  ;;  %v387_v53 = vld [vmem:[#allocation4 + $0x158] sm:$0xff] }
 0x11a   :  { %1446 = vmatpush.msrb.mxu1 %v776_v54  ;;  %1466 = vmatpush.msrb.mxu2 %v856_v55  ;;  %v552_v28 = vld [vmem:[#allocation4 + $0x680] sm:$0xff]  ;;  %v467_v54 = vld [vmem:[#allocation4 + $0x3d8] sm:$0xff] }
 0x11b   :  { %1485 = vmatpush.msrb.mxu3 %v941_v56  ;;  %1427 = vmatpush.msrb.mxu0 %v691_v57  ;;  %v547_v55 = vld [vmem:[#allocation4 + $0x658] sm:$0xff]  ;;  %v632_v56 = vld [vmem:[#allocation4 + $0x900] sm:$0xff]  ;;  %v382_v57 = vld [vmem:[#allocation4 + $0x130] sm:$0xff] }
 0x11c   :  { %1447 = vmatpush.msrb.mxu1 %v771_v58  ;;  %1467 = vmatpush.msrb.mxu2 %v851_v59  ;;  %v462_v58 = vld [vmem:[#allocation4 + $0x3b0] sm:$0xff] }
 0x11d   :  { %1486 = vmatpush.msrb.mxu3 %v936_v60  ;;  %1428 = vmatpush.msrb.mxu0 %v686_v62  ;;  %v542_v59 = vld [vmem:[#allocation4 + $0x630] sm:$0xff]  ;;  %v627_v60 = vld [vmem:[#allocation4 + $0x8d8] sm:$0xff]  ;;  %v377_v62 = vld [vmem:[#allocation4 + $0x108] sm:$0xff] }
 0x11e   :  { %1448 = vmatpush.msrb.mxu1 %v766_v63  ;;  %1468 = vmatpush.msrb.mxu2 %v846_v0  ;;  %v457_v63 = vld [vmem:[#allocation4 + $0x388] sm:$0xff] }
 0x11f   :  { %1487 = vmatpush.msrb.mxu3 %v931_v1  ;;  %1429 = vmatpush.msrb.mxu0 %v681_v5  ;;  %v537_v0 = vld [vmem:[#allocation4 + $0x608] sm:$0xff]  ;;  %v622_v1 = vld [vmem:[#allocation4 + $0x8b0] sm:$0xff]  ;;  %v372_v5 = vld [vmem:[#allocation4 + $0xe0] sm:$0xff] }
 0x120   :  { %1449 = vmatpush.msrb.mxu1 %v761_v6  ;;  %1469 = vmatpush.msrb.mxu2 %v841_v7  ;;  %v452_v6 = vld [vmem:[#allocation4 + $0x360] sm:$0xff] }
 0x121   :  { %1488 = vmatpush.msrb.mxu3 %v926_v8  ;;  %1430 = vmatpush.msrb.mxu0 %v676_v9  ;;  %v532_v7 = vld [vmem:[#allocation4 + $0x5e0] sm:$0xff]  ;;  %v617_v8 = vld [vmem:[#allocation4 + $0x888] sm:$0xff]  ;;  %v367_v9 = vld [vmem:[#allocation4 + $0xb8] sm:$0xff] }
 0x122   :  { %1450 = vmatpush.msrb.mxu1 %v756_v10  ;;  %1470 = vmatpush.msrb.mxu2 %v836_v11  ;;  %v447_v10 = vld [vmem:[#allocation4 + $0x338] sm:$0xff] }
 0x123   :  { %1489 = vmatpush.msrb.mxu3 %v921_v12  ;;  %1431 = vmatpush.msrb.mxu0 %v671_v13  ;;  %v527_v11 = vld [vmem:[#allocation4 + $0x5b8] sm:$0xff]  ;;  %v612_v12 = vld [vmem:[#allocation4 + $0x860] sm:$0xff]  ;;  %v362_v13 = vld [vmem:[#allocation4 + $0x90] sm:$0xff] }
 0x124   :  { %1451 = vmatpush.msrb.mxu1 %v751_v14  ;;  %1471 = vmatpush.msrb.mxu2 %v831_v15  ;;  %v442_v14 = vld [vmem:[#allocation4 + $0x310] sm:$0xff] }
 0x125   :  { %1490 = vmatpush.msrb.mxu3 %v916_v16  ;;  %1393 = vmatmul.f32.vlgmr.msra.gmra.mxu2 %v5927_v24  ;;  %v522_v15 = vld [vmem:[#allocation4 + $0x590] sm:$0xff]  ;;  %v607_v16 = vld [vmem:[#allocation4 + $0x838] sm:$0xff] }
 0x126   :  { %1432 = vmatpush.msrb.mxu0 %v666_v18  ;;  %1452 = vmatpush.msrb.mxu1 %v746_v19  ;;  %v357_v18 = vld [vmem:[#allocation4 + $0x68] sm:$0xff] }
 0x127   :  { %1472 = vmatpush.msrb.mxu2 %v826_v20  ;;  %1491 = vmatpush.msrb.mxu3 %v911_v22  ;;  %v437_v19 = vld [vmem:[#allocation4 + $0x2e8] sm:$0xff]  ;;  %v602_v22 = vld [vmem:[#allocation4 + $0x810] sm:$0xff] }
 0x128   :  { %1353 = vmatmul.f32.vlgmr.msra.gmra.mxu0 %v5930_v27  ;;  %1373 = vmatmul.f32.vlgmr.msra.gmra.mxu1 %v5933_v31  ;;  %v517_v20 = vld [vmem:[#allocation4 + $0x568] sm:$0xff] }
 0x129   :  { %1413 = vmatmul.f32.vlgmr.msra.gmra.mxu3 %v5936_v61  ;;  %1497 = vmatpush.msra.mxu0 %v422_v25  ;;  %v352_v25 = vld [vmem:[#allocation4 + $0x40] sm:$0xff] }
 0x12a   :  { %1517 = vmatpush.msra.mxu1 %v502_v26  ;;  %1537 = vmatpush.msra.mxu2 %v582_v29  ;;  %v432_v26 = vld [vmem:[#allocation4 + $0x2c0] sm:$0xff] }
 0x12b   :  { %1492 = vmatpush.msrb.mxu3 %v906_v30  ;;  %1498 = vmatpush.msra.mxu0 %v417_v32  ;;  %v512_v29 = vld [vmem:[#allocation4 + $0x540] sm:$0xff]  ;;  %v597_v30 = vld [vmem:[#allocation4 + $0x7e8] sm:$0xff]  ;;  %v347_v32 = vld [vmem:[#allocation4 + $0x18] sm:$0xff] }
 0x12c   :  { %1518 = vmatpush.msra.mxu1 %v497_v33  ;;  %1538 = vmatpush.msra.mxu2 %v577_v34  ;;  %v427_v33 = vld [vmem:[#allocation4 + $0x298] sm:$0xff] }
 0x12d   :  { %1557 = vmatpush.msra.mxu3 %v662_v2  ;;  %1499 = vmatpush.msra.mxu0 %v412_v35  ;;  %v507_v34 = vld [vmem:[#allocation4 + $0x518] sm:$0xff]  ;;  %v592_v2 = vld [vmem:[#allocation4 + $0x7c0] sm:$0xff]  ;;  %v742_v35 = vld [vmem:[#allocation4 + $0xc70] sm:$0xff] }
 0x12e   :  { %1519 = vmatpush.msra.mxu1 %v492_v3  ;;  %1539 = vmatpush.msra.mxu2 %v572_v4  ;;  %v822_v3 = vld [vmem:[#allocation4 + $0xef0] sm:$0xff] }
 0x12f   :  { %1558 = vmatpush.msra.mxu3 %v657_v36  ;;  %1473 = vmatmul.f32.vlgmr.msrb.gmra.mxu2 %v5939_v41  ;;  %v902_v4 = vld [vmem:[#allocation4 + $0x1170] sm:$0xff]  ;;  %v587_v36 = vld [vmem:[#allocation4 + $0x798] sm:$0xff] }
 0x130   :  { %1500 = vmatpush.msra.mxu0 %v407_v37  ;;  %1520 = vmatpush.msra.mxu1 %v487_v38  ;;  %v737_v37 = vld [vmem:[#allocation4 + $0xc48] sm:$0xff] }
 0x131   :  { %1540 = vmatpush.msra.mxu2 %v567_v39  ;;  %1559 = vmatpush.msra.mxu3 %v652_v40  ;;  %v817_v38 = vld [vmem:[#allocation4 + $0xec8] sm:$0xff]  ;;  %v982_v40 = vld [vmem:[#allocation4 + $0x13f0] sm:$0xff] }
 0x132   :  { %1433 = vmatmul.f32.vlgmr.msrb.gmra.mxu0 %v5942_v17  ;;  %1493 = vmatmul.f32.vlgmr.msrb.gmra.mxu3 %v5945_v46  ;;  %v897_v39 = vld [vmem:[#allocation4 + $0x1148] sm:$0xff] }
 0x133   :  { %1501 = vmatpush.msra.mxu0 %v402_v42  ;;  %1521 = vmatpush.msra.mxu1 %v482_v43  ;;  %v732_v42 = vld [vmem:[#allocation4 + $0xc20] sm:$0xff] }
 0x134   :  { %1541 = vmatpush.msra.mxu2 %v562_v44  ;;  %1560 = vmatpush.msra.mxu3 %v647_v45  ;;  %v812_v43 = vld [vmem:[#allocation4 + $0xea0] sm:$0xff]  ;;  %v977_v45 = vld [vmem:[#allocation4 + $0x13c8] sm:$0xff] }
 0x135   :  { %1453 = vmatmul.f32.vlgmr.msrb.gmra.mxu1 %v5948_v49  ;;  %1502 = vmatpush.msra.mxu0 %v397_v47  ;;  %v892_v44 = vld [vmem:[#allocation4 + $0x1120] sm:$0xff]  ;;  %v727_v47 = vld [vmem:[#allocation4 + $0xbf8] sm:$0xff] }
 0x136   :  { %1522 = vmatpush.msra.mxu1 %v477_v21  ;;  %1542 = vmatpush.msra.mxu2 %v557_v23  ;;  %v807_v21 = vld [vmem:[#allocation4 + $0xe78] sm:$0xff] }
 0x137   :  { %1561 = vmatpush.msra.mxu3 %v642_v48  ;;  %1503 = vmatpush.msra.mxu0 %v392_v50  ;;  %v887_v23 = vld [vmem:[#allocation4 + $0x10f8] sm:$0xff]  ;;  %v972_v48 = vld [vmem:[#allocation4 + $0x13a0] sm:$0xff]  ;;  %v722_v50 = vld [vmem:[#allocation4 + $0xbd0] sm:$0xff] }
 0x138   :  { %1523 = vmatpush.msra.mxu1 %v472_v51  ;;  %1543 = vmatpush.msra.mxu2 %v552_v28  ;;  %v802_v51 = vld [vmem:[#allocation4 + $0xe50] sm:$0xff] }
 0x139   :  { %1562 = vmatpush.msra.mxu3 %v637_v52  ;;  %1504 = vmatpush.msra.mxu0 %v387_v53  ;;  %v882_v28 = vld [vmem:[#allocation4 + $0x10d0] sm:$0xff]  ;;  %v967_v52 = vld [vmem:[#allocation4 + $0x1378] sm:$0xff]  ;;  %v717_v53 = vld [vmem:[#allocation4 + $0xba8] sm:$0xff] }
 0x13a   :  { %1524 = vmatpush.msra.mxu1 %v467_v54  ;;  %1544 = vmatpush.msra.mxu2 %v547_v55  ;;  %v797_v54 = vld [vmem:[#allocation4 + $0xe28] sm:$0xff] }
 0x13b   :  { %1563 = vmatpush.msra.mxu3 %v632_v56  ;;  %1505 = vmatpush.msra.mxu0 %v382_v57  ;;  %v877_v55 = vld [vmem:[#allocation4 + $0x10a8] sm:$0xff]  ;;  %v962_v56 = vld [vmem:[#allocation4 + $0x1350] sm:$0xff]  ;;  %v712_v57 = vld [vmem:[#allocation4 + $0xb80] sm:$0xff] }
 0x13c   :  { %1525 = vmatpush.msra.mxu1 %v462_v58  ;;  %1545 = vmatpush.msra.mxu2 %v542_v59  ;;  %v792_v58 = vld [vmem:[#allocation4 + $0xe00] sm:$0xff] }
 0x13d   :  { %1564 = vmatpush.msra.mxu3 %v627_v60  ;;  %1506 = vmatpush.msra.mxu0 %v377_v62  ;;  %v872_v59 = vld [vmem:[#allocation4 + $0x1080] sm:$0xff]  ;;  %v957_v60 = vld [vmem:[#allocation4 + $0x1328] sm:$0xff]  ;;  %v707_v62 = vld [vmem:[#allocation4 + $0xb58] sm:$0xff] }
 0x13e   :  { %1526 = vmatpush.msra.mxu1 %v457_v63  ;;  %1546 = vmatpush.msra.mxu2 %v537_v0  ;;  %v787_v63 = vld [vmem:[#allocation4 + $0xdd8] sm:$0xff] }
 0x13f   :  { %1565 = vmatpush.msra.mxu3 %v622_v1  ;;  %1507 = vmatpush.msra.mxu0 %v372_v5  ;;  %v867_v0 = vld [vmem:[#allocation4 + $0x1058] sm:$0xff]  ;;  %v952_v1 = vld [vmem:[#allocation4 + $0x1300] sm:$0xff]  ;;  %v702_v5 = vld [vmem:[#allocation4 + $0xb30] sm:$0xff] }
 0x140   :  { %1527 = vmatpush.msra.mxu1 %v452_v6  ;;  %1547 = vmatpush.msra.mxu2 %v532_v7  ;;  %v782_v6 = vld [vmem:[#allocation4 + $0xdb0] sm:$0xff] }
 0x141   :  { %1566 = vmatpush.msra.mxu3 %v617_v8  ;;  %1508 = vmatpush.msra.mxu0 %v367_v9  ;;  %v862_v7 = vld [vmem:[#allocation4 + $0x1030] sm:$0xff]  ;;  %v947_v8 = vld [vmem:[#allocation4 + $0x12d8] sm:$0xff]  ;;  %v697_v9 = vld [vmem:[#allocation4 + $0xb08] sm:$0xff] }
 0x142   :  { %1528 = vmatpush.msra.mxu1 %v447_v10  ;;  %1548 = vmatpush.msra.mxu2 %v527_v11  ;;  %v777_v10 = vld [vmem:[#allocation4 + $0xd88] sm:$0xff] }
 0x143   :  { %1567 = vmatpush.msra.mxu3 %v612_v12  ;;  %1509 = vmatpush.msra.mxu0 %v362_v13  ;;  %v857_v11 = vld [vmem:[#allocation4 + $0x1008] sm:$0xff]  ;;  %v942_v12 = vld [vmem:[#allocation4 + $0x12b0] sm:$0xff]  ;;  %v692_v13 = vld [vmem:[#allocation4 + $0xae0] sm:$0xff] }
 0x144   :  { %1529 = vmatpush.msra.mxu1 %v442_v14  ;;  %1549 = vmatpush.msra.mxu2 %v522_v15  ;;  %v772_v14 = vld [vmem:[#allocation4 + $0xd60] sm:$0xff] }
 0x145   :  { %1568 = vmatpush.msra.mxu3 %v607_v16  ;;  %1510 = vmatpush.msra.mxu0 %v357_v18  ;;  %v852_v15 = vld [vmem:[#allocation4 + $0xfe0] sm:$0xff]  ;;  %v937_v16 = vld [vmem:[#allocation4 + $0x1288] sm:$0xff]  ;;  %v687_v18 = vld [vmem:[#allocation4 + $0xab8] sm:$0xff] }
 0x146   :  { %1530 = vmatpush.msra.mxu1 %v437_v19  ;;  %1550 = vmatpush.msra.mxu2 %v517_v20  ;;  %v767_v19 = vld [vmem:[#allocation4 + $0xd38] sm:$0xff] }
 0x147   :  { %1569 = vmatpush.msra.mxu3 %v602_v22  ;;  %1511 = vmatpush.msra.mxu0 %v352_v25  ;;  %v847_v20 = vld [vmem:[#allocation4 + $0xfb8] sm:$0xff]  ;;  %v932_v22 = vld [vmem:[#allocation4 + $0x1260] sm:$0xff]  ;;  %v682_v25 = vld [vmem:[#allocation4 + $0xa90] sm:$0xff] }
 0x148   :  { %1531 = vmatpush.msra.mxu1 %v432_v26  ;;  %1551 = vmatpush.msra.mxu2 %v512_v29  ;;  %v762_v26 = vld [vmem:[#allocation4 + $0xd10] sm:$0xff] }
 0x149   :  { %1570 = vmatpush.msra.mxu3 %v597_v30  ;;  %1512 = vmatpush.msra.mxu0 %v347_v32  ;;  %v842_v29 = vld [vmem:[#allocation4 + $0xf90] sm:$0xff]  ;;  %v927_v30 = vld [vmem:[#allocation4 + $0x1238] sm:$0xff]  ;;  %v677_v32 = vld [vmem:[#allocation4 + $0xa68] sm:$0xff] }
 0x14a   :  { %1532 = vmatpush.msra.mxu1 %v427_v33  ;;  %1552 = vmatpush.msra.mxu2 %v507_v34  ;;  %v757_v33 = vld [vmem:[#allocation4 + $0xce8] sm:$0xff] }
 0x14b   :  { %1571 = vmatpush.msra.mxu3 %v592_v2  ;;  %1577 = vmatpush.msrb.mxu0 %v742_v35  ;;  %v837_v34 = vld [vmem:[#allocation4 + $0xf68] sm:$0xff]  ;;  %v922_v2 = vld [vmem:[#allocation4 + $0x1210] sm:$0xff]  ;;  %v672_v35 = vld [vmem:[#allocation4 + $0xa40] sm:$0xff] }
 0x14c   :  { %1597 = vmatpush.msrb.mxu1 %v822_v3  ;;  %1617 = vmatpush.msrb.mxu2 %v902_v4  ;;  %v752_v3 = vld [vmem:[#allocation4 + $0xcc0] sm:$0xff] }
 0x14d   :  { %1572 = vmatpush.msra.mxu3 %v587_v36  ;;  %1578 = vmatpush.msrb.mxu0 %v737_v37  ;;  %v832_v4 = vld [vmem:[#allocation4 + $0xf40] sm:$0xff]  ;;  %v917_v36 = vld [vmem:[#allocation4 + $0x11e8] sm:$0xff]  ;;  %v747_v37 = vld [vmem:[#allocation4 + $0xc98] sm:$0xff] }
 0x14e   :  { %1598 = vmatpush.msrb.mxu1 %v817_v38  ;;  %1618 = vmatpush.msrb.mxu2 %v897_v39  ;;  %v827_v38 = vld [vmem:[#allocation4 + $0xf18] sm:$0xff]  ;;  %v912_v39 = vld [vmem:[#allocation4 + $0x11c0] sm:$0xff] }
 0x14f   :  { %1637 = vmatpush.msrb.mxu3 %v982_v40  ;;  %1579 = vmatpush.msrb.mxu0 %v732_v42  ;;  %v583_v40 = vld [vmem:[#allocation4 + $0x778] sm:$0xff] }
 0x150   :  { %1599 = vmatpush.msrb.mxu1 %v812_v43  ;;  %1619 = vmatpush.msrb.mxu2 %v892_v44  ;;  %v907_v42 = vld [vmem:[#allocation4 + $0x1198] sm:$0xff]  ;;  %v498_v43 = vld [vmem:[#allocation4 + $0x4d0] sm:$0xff] }
 0x151   :  { %1638 = vmatpush.msrb.mxu3 %v977_v45  ;;  %1580 = vmatpush.msrb.mxu0 %v727_v47  ;;  %v578_v44 = vld [vmem:[#allocation4 + $0x750] sm:$0xff]  ;;  %v663_v45 = vld [vmem:[#allocation4 + $0x9f8] sm:$0xff]  ;;  %v413_v47 = vld [vmem:[#allocation4 + $0x228] sm:$0xff] }
 0x152   :  { %1600 = vmatpush.msrb.mxu1 %v807_v21  ;;  %1620 = vmatpush.msrb.mxu2 %v887_v23  ;;  %v493_v21 = vld [vmem:[#allocation4 + $0x4a8] sm:$0xff] }
 0x153   :  { %1639 = vmatpush.msrb.mxu3 %v972_v48  ;;  %1581 = vmatpush.msrb.mxu0 %v722_v50  ;;  %v573_v23 = vld [vmem:[#allocation4 + $0x728] sm:$0xff]  ;;  %v658_v48 = vld [vmem:[#allocation4 + $0x9d0] sm:$0xff]  ;;  %v488_v50 = vld [vmem:[#allocation4 + $0x480] sm:$0xff] }
 0x154   :  { %1601 = vmatpush.msrb.mxu1 %v802_v51  ;;  %1621 = vmatpush.msrb.mxu2 %v882_v28  ;;  %v568_v51 = vld [vmem:[#allocation4 + $0x700] sm:$0xff]  ;;  %v653_v28 = vld [vmem:[#allocation4 + $0x9a8] sm:$0xff] }
 0x155   :  { %1640 = vmatpush.msrb.mxu3 %v967_v52  ;;  %1582 = vmatpush.msrb.mxu0 %v717_v53  ;;  %v563_v52 = vld [vmem:[#allocation4 + $0x6d8] sm:$0xff]  ;;  %v648_v53 = vld [vmem:[#allocation4 + $0x980] sm:$0xff] }
 0x156   :  { %1602 = vmatpush.msrb.mxu1 %v797_v54  ;;  %1622 = vmatpush.msrb.mxu2 %v877_v55  ;;  %v398_v54 = vld [vmem:[#allocation4 + $0x1b0] sm:$0xff] }
 0x157   :  { %1641 = vmatpush.msrb.mxu3 %v962_v56  ;;  %1583 = vmatpush.msrb.mxu0 %v712_v57  ;;  %v478_v55 = vld [vmem:[#allocation4 + $0x430] sm:$0xff]  ;;  %v643_v56 = vld [vmem:[#allocation4 + $0x958] sm:$0xff]  ;;  %v393_v57 = vld [vmem:[#allocation4 + $0x188] sm:$0xff] }
 0x158   :  { %1603 = vmatpush.msrb.mxu1 %v792_v58  ;;  %1623 = vmatpush.msrb.mxu2 %v872_v59  ;;  %v473_v58 = vld [vmem:[#allocation4 + $0x408] sm:$0xff] }
 0x159   :  { %1642 = vmatpush.msrb.mxu3 %v957_v60  ;;  %1584 = vmatpush.msrb.mxu0 %v707_v62  ;;  %v553_v59 = vld [vmem:[#allocation4 + $0x688] sm:$0xff]  ;;  %v638_v60 = vld [vmem:[#allocation4 + $0x930] sm:$0xff]  ;;  %v388_v62 = vld [vmem:[#allocation4 + $0x160] sm:$0xff] }
 0x15a   :  { %1604 = vmatpush.msrb.mxu1 %v787_v63  ;;  %1624 = vmatpush.msrb.mxu2 %v867_v0  ;;  %v468_v63 = vld [vmem:[#allocation4 + $0x3e0] sm:$0xff] }
 0x15b   :  { %1643 = vmatpush.msrb.mxu3 %v952_v1  ;;  %1585 = vmatpush.msrb.mxu0 %v702_v5  ;;  %v548_v0 = vld [vmem:[#allocation4 + $0x660] sm:$0xff]  ;;  %v633_v1 = vld [vmem:[#allocation4 + $0x908] sm:$0xff]  ;;  %v383_v5 = vld [vmem:[#allocation4 + $0x138] sm:$0xff] }
 0x15c   :  { %1605 = vmatpush.msrb.mxu1 %v782_v6  ;;  %1625 = vmatpush.msrb.mxu2 %v862_v7  ;;  %v463_v6 = vld [vmem:[#allocation4 + $0x3b8] sm:$0xff] }
 0x15d   :  { %1644 = vmatpush.msrb.mxu3 %v947_v8  ;;  %1586 = vmatpush.msrb.mxu0 %v697_v9  ;;  %v543_v7 = vld [vmem:[#allocation4 + $0x638] sm:$0xff]  ;;  %v628_v8 = vld [vmem:[#allocation4 + $0x8e0] sm:$0xff]  ;;  %v378_v9 = vld [vmem:[#allocation4 + $0x110] sm:$0xff] }
 0x15e   :  { %1606 = vmatpush.msrb.mxu1 %v777_v10  ;;  %1626 = vmatpush.msrb.mxu2 %v857_v11  ;;  %v458_v10 = vld [vmem:[#allocation4 + $0x390] sm:$0xff] }
 0x15f   :  { %1645 = vmatpush.msrb.mxu3 %v942_v12  ;;  %1587 = vmatpush.msrb.mxu0 %v692_v13  ;;  %v538_v11 = vld [vmem:[#allocation4 + $0x610] sm:$0xff]  ;;  %v623_v12 = vld [vmem:[#allocation4 + $0x8b8] sm:$0xff]  ;;  %v373_v13 = vld [vmem:[#allocation4 + $0xe8] sm:$0xff] }
 0x160   :  { %1607 = vmatpush.msrb.mxu1 %v772_v14  ;;  %1627 = vmatpush.msrb.mxu2 %v852_v15  ;;  %v453_v14 = vld [vmem:[#allocation4 + $0x368] sm:$0xff] }
 0x161   :  { %1646 = vmatpush.msrb.mxu3 %v937_v16  ;;  %1588 = vmatpush.msrb.mxu0 %v687_v18  ;;  %v533_v15 = vld [vmem:[#allocation4 + $0x5e8] sm:$0xff]  ;;  %v618_v16 = vld [vmem:[#allocation4 + $0x890] sm:$0xff]  ;;  %v368_v18 = vld [vmem:[#allocation4 + $0xc0] sm:$0xff] }
 0x162   :  { %1608 = vmatpush.msrb.mxu1 %v767_v19  ;;  %1628 = vmatpush.msrb.mxu2 %v847_v20  ;;  %v448_v19 = vld [vmem:[#allocation4 + $0x340] sm:$0xff] }
 0x163   :  { %1647 = vmatpush.msrb.mxu3 %v932_v22  ;;  %1553 = vmatmul.f32.vlgmr.msra.gmra.mxu2 %v5927_v24  ;;  %v667_v24 = vld [vmem:[#allocation4 + $0xa18] sm:$0xff]  ;;  %v528_v20 = vld [vmem:[#allocation4 + $0x5c0] sm:$0xff]  ;;  %v613_v22 = vld [vmem:[#allocation4 + $0x868] sm:$0xff] }
 0x164   :  { %1589 = vmatpush.msrb.mxu0 %v682_v25  ;;  %1609 = vmatpush.msrb.mxu1 %v762_v26  ;;  %v363_v25 = vld [vmem:[#allocation4 + $0x98] sm:$0xff] }
 0x165   :  { %1629 = vmatpush.msrb.mxu2 %v842_v29  ;;  %1648 = vmatpush.msrb.mxu3 %v927_v30  ;;  %v443_v26 = vld [vmem:[#allocation4 + $0x318] sm:$0xff]  ;;  %v608_v30 = vld [vmem:[#allocation4 + $0x840] sm:$0xff] }
 0x166   :  { %1513 = vmatmul.f32.vlgmr.msra.gmra.mxu0 %v5930_v27  ;;  %1573 = vmatmul.f32.vlgmr.msra.gmra.mxu3 %v5936_v61  ;;  %v423_v27 = vld [vmem:[#allocation4 + $0x278] sm:$0xff] }
 0x167   :  { %1590 = vmatpush.msrb.mxu0 %v677_v32  ;;  %1610 = vmatpush.msrb.mxu1 %v757_v33  ;;  %v503_v61 = vld [vmem:[#allocation4 + $0x4f8] sm:$0xff]  ;;  %v358_v32 = vld [vmem:[#allocation4 + $0x70] sm:$0xff] }
 0x168   :  { %1630 = vmatpush.msrb.mxu2 %v837_v34  ;;  %1649 = vmatpush.msrb.mxu3 %v922_v2  ;;  %v523_v29 = vld [vmem:[#allocation4 + $0x598] sm:$0xff]  ;;  %v438_v33 = vld [vmem:[#allocation4 + $0x2f0] sm:$0xff]  ;;  %v5959_v34 = vpop.f32.mrf.mxu0 }
 0x169   :  { %1533 = vmatmul.f32.vlgmr.msra.gmra.mxu1 %v5933_v31  ;;  %1591 = vmatpush.msrb.mxu0 %v672_v35  ;;  %v418_v31 = vld [vmem:[#allocation4 + $0x250] sm:$0xff]  ;;  %v603_v35 = vld [vmem:[#allocation4 + $0x818] sm:$0xff] }
 0x16a   :  { %1611 = vmatpush.msrb.mxu1 %v752_v3  ;;  %1631 = vmatpush.msrb.mxu2 %v832_v4  ;;  %v518_v2 = vld [vmem:[#allocation4 + $0x570] sm:$0xff]  ;;  %v353_v3 = vld [vmem:[#allocation4 + $0x48] sm:$0xff] }
 0x16b   :  { %1650 = vmatpush.msrb.mxu3 %v917_v36  ;;  %1592 = vmatpush.msrb.mxu0 %v667_v24  ;;  %v433_v4 = vld [vmem:[#allocation4 + $0x2c8] sm:$0xff]  ;;  %v598_v24 = vld [vmem:[#allocation4 + $0x7f0] sm:$0xff] }
 0x16c   :  { %1612 = vmatpush.msrb.mxu1 %v747_v37  ;;  %1632 = vmatpush.msrb.mxu2 %v827_v38  ;;  %v513_v36 = vld [vmem:[#allocation4 + $0x548] sm:$0xff]  ;;  %v348_v37 = vld [vmem:[#allocation4 + $0x20] sm:$0xff] }
 0x16d   :  { %1651 = vmatpush.msrb.mxu3 %v912_v39  ;;  %1633 = vmatmul.f32.vlgmr.msrb.gmra.mxu2 %v5939_v41  ;;  %v408_v41 = vld [vmem:[#allocation4 + $0x200] sm:$0xff]  ;;  %v5961_v39 = vpop.f32.mrf.mxu1 }
 0x16e   :  { %1657 = vmatpush.msra.mxu0 %v423_v27  ;;  %1677 = vmatpush.msra.mxu1 %v503_v61  ;;  %v428_v38 = vld [vmem:[#allocation4 + $0x2a0] sm:$0xff]  ;;  %v593_v61 = vld [vmem:[#allocation4 + $0x7c8] sm:$0xff] }
 0x16f   :  { %1697 = vmatpush.msra.mxu2 %v583_v40  ;;  %1652 = vmatpush.msrb.mxu3 %v907_v42  ;;  %v508_v27 = vld [vmem:[#allocation4 + $0x520] sm:$0xff]  ;;  %v743_v40 = vld [vmem:[#allocation4 + $0xc78] sm:$0xff] }
 0x170   :  { %1593 = vmatmul.f32.vlgmr.msrb.gmra.mxu0 %v5942_v17  ;;  %1653 = vmatmul.f32.vlgmr.msrb.gmra.mxu3 %v5945_v46  ;;  %v403_v17 = vld [vmem:[#allocation4 + $0x1d8] sm:$0xff] }
 0x171   :  { %1658 = vmatpush.msra.mxu0 %v418_v31  ;;  %1678 = vmatpush.msra.mxu1 %v498_v43  ;;  %v483_v46 = vld [vmem:[#allocation4 + $0x458] sm:$0xff]  ;;  %v588_v43 = vld [vmem:[#allocation4 + $0x7a0] sm:$0xff] }
 0x172   :  { %1698 = vmatpush.msra.mxu2 %v578_v44  ;;  %1717 = vmatpush.msra.mxu3 %v663_v45  ;;  %v823_v42 = vld [vmem:[#allocation4 + $0xef8] sm:$0xff]  ;;  %v738_v44 = vld [vmem:[#allocation4 + $0xc50] sm:$0xff] }
 0x173   :  { %1613 = vmatmul.f32.vlgmr.msrb.gmra.mxu1 %v5948_v49  ;;  %1659 = vmatpush.msra.mxu0 %v413_v47  ;;  %v558_v49 = vld [vmem:[#allocation4 + $0x6b0] sm:$0xff]  ;;  %v903_v31 = vld [vmem:[#allocation4 + $0x1178] sm:$0xff]  ;;  %v5963_v47 = vpop.f32.mrf.mxu2 }
 0x174   :  { %1679 = vmatpush.msra.mxu1 %v493_v21  ;;  %1699 = vmatpush.msra.mxu2 %v573_v23  ;;  %v818_v45 = vld [vmem:[#allocation4 + $0xed0] sm:$0xff]  ;;  %v983_v23 = vld [vmem:[#allocation4 + $0x13f8] sm:$0xff] }
 0x175   :  { %1718 = vmatpush.msra.mxu3 %v658_v48  ;;  %1660 = vmatpush.msra.mxu0 %v408_v41  ;;  %v898_v21 = vld [vmem:[#allocation4 + $0x1150] sm:$0xff]  ;;  %v733_v48 = vld [vmem:[#allocation4 + $0xc28] sm:$0xff] }
 0x176   :  { %1680 = vmatpush.msra.mxu1 %v488_v50  ;;  %1700 = vmatpush.msra.mxu2 %v568_v51  ;;  %v813_v41 = vld [vmem:[#allocation4 + $0xea8] sm:$0xff]  ;;  %v5965_v50 = vpop.f32.mrf.mxu0 }
 0x177   :  { %1719 = vmatpush.msra.mxu3 %v653_v28  ;;  %1661 = vmatpush.msra.mxu0 %v403_v17  ;;  %v893_v51 = vld [vmem:[#allocation4 + $0x1128] sm:$0xff]  ;;  %v978_v28 = vld [vmem:[#allocation4 + $0x13d0] sm:$0xff]  ;;  %v728_v17 = vld [vmem:[#allocation4 + $0xc00] sm:$0xff] }
 0x178   :  { %1681 = vmatpush.msra.mxu1 %v483_v46  ;;  %1701 = vmatpush.msra.mxu2 %v563_v52  ;;  %v808_v46 = vld [vmem:[#allocation4 + $0xe80] sm:$0xff]  ;;  %v5967_v52 = vpop.f32.mrf.mxu3 }
 0x179   :  { %1720 = vmatpush.msra.mxu3 %v648_v53  ;;  %1662 = vmatpush.msra.mxu0 %v398_v54  ;;  %v888_v53 = vld [vmem:[#allocation4 + $0x1100] sm:$0xff]  ;;  %v973_v54 = vld [vmem:[#allocation4 + $0x13a8] sm:$0xff] }
 0x17a   :  { %1682 = vmatpush.msra.mxu1 %v478_v55  ;;  %1702 = vmatpush.msra.mxu2 %v558_v49  ;;  %v723_v55 = vld [vmem:[#allocation4 + $0xbd8] sm:$0xff] }
 0x17b   :  { %1721 = vmatpush.msra.mxu3 %v643_v56  ;;  %1663 = vmatpush.msra.mxu0 %v393_v57  ;;  %v803_v49 = vld [vmem:[#allocation4 + $0xe58] sm:$0xff]  ;;  %v5969_v56 = vpop.f32.mrf.mxu1 }
 0x17c   :  { %1683 = vmatpush.msra.mxu1 %v473_v58  ;;  %1703 = vmatpush.msra.mxu2 %v553_v59  ;;  %v883_v57 = vld [vmem:[#allocation4 + $0x10d8] sm:$0xff]  ;;  %v968_v58 = vld [vmem:[#allocation4 + $0x1380] sm:$0xff]  ;;  %v718_v59 = vld [vmem:[#allocation4 + $0xbb0] sm:$0xff] }
 0x17d   :  { %1722 = vmatpush.msra.mxu3 %v638_v60  ;;  %1664 = vmatpush.msra.mxu0 %v388_v62  ;;  %v798_v60 = vld [vmem:[#allocation4 + $0xe30] sm:$0xff] }
 0x17e   :  { %1684 = vmatpush.msra.mxu1 %v468_v63  ;;  %1704 = vmatpush.msra.mxu2 %v548_v0  ;;  %v878_v62 = vld [vmem:[#allocation4 + $0x10b0] sm:$0xff]  ;;  %v963_v63 = vld [vmem:[#allocation4 + $0x1358] sm:$0xff]  ;;  %v713_v0 = vld [vmem:[#allocation4 + $0xb88] sm:$0xff] }
 0x17f   :  { %1723 = vmatpush.msra.mxu3 %v633_v1  ;;  %1665 = vmatpush.msra.mxu0 %v383_v5  ;;  %v793_v1 = vld [vmem:[#allocation4 + $0xe08] sm:$0xff]  ;;  %v5971_v5 = vpop.f32.mrf.mxu2 }
 0x180   :  { %1685 = vmatpush.msra.mxu1 %v463_v6  ;;  %1705 = vmatpush.msra.mxu2 %v543_v7  ;;  %v5973_v6 = vpop.f32.mrf.mxu0  ;;  %v873_v7 = vld [vmem:[#allocation4 + $0x1088] sm:$0xff] }
 0x181   :  { %1724 = vmatpush.msra.mxu3 %v628_v8  ;;  %1666 = vmatpush.msra.mxu0 %v378_v9  ;;  %v958_v8 = vld [vmem:[#allocation4 + $0x1330] sm:$0xff]  ;;  %v708_v9 = vld [vmem:[#allocation4 + $0xb60] sm:$0xff] }
 0x182   :  { %1686 = vmatpush.msra.mxu1 %v458_v10  ;;  %1706 = vmatpush.msra.mxu2 %v538_v11  ;;  %v788_v10 = vld [vmem:[#allocation4 + $0xde0] sm:$0xff] }
 0x183   :  { %1725 = vmatpush.msra.mxu3 %v623_v12  ;;  %1667 = vmatpush.msra.mxu0 %v373_v13  ;;  %v868_v11 = vld [vmem:[#allocation4 + $0x1060] sm:$0xff]  ;;  %v953_v12 = vld [vmem:[#allocation4 + $0x1308] sm:$0xff]  ;;  %v703_v13 = vld [vmem:[#allocation4 + $0xb38] sm:$0xff] }
 0x184   :  { %1687 = vmatpush.msra.mxu1 %v453_v14  ;;  %1707 = vmatpush.msra.mxu2 %v533_v15  ;;  %v783_v14 = vld [vmem:[#allocation4 + $0xdb8] sm:$0xff]  ;;  %v5975_v15 = vpop.f32.mrf.mxu3 }
 0x185   :  { %1726 = vmatpush.msra.mxu3 %v618_v16  ;;  %1668 = vmatpush.msra.mxu0 %v368_v18  ;;  %v5977_v16 = vpop.f32.mrf.mxu1  ;;  %v863_v18 = vld [vmem:[#allocation4 + $0x1038] sm:$0xff] }
 0x186   :  { %1688 = vmatpush.msra.mxu1 %v448_v19  ;;  %1708 = vmatpush.msra.mxu2 %v528_v20  ;;  %v948_v19 = vld [vmem:[#allocation4 + $0x12e0] sm:$0xff]  ;;  %v698_v20 = vld [vmem:[#allocation4 + $0xb10] sm:$0xff] }
 0x187   :  { %1727 = vmatpush.msra.mxu3 %v613_v22  ;;  %1669 = vmatpush.msra.mxu0 %v363_v25  ;;  %v778_v22 = vld [vmem:[#allocation4 + $0xd90] sm:$0xff] }
 0x188   :  { %1689 = vmatpush.msra.mxu1 %v443_v26  ;;  %1709 = vmatpush.msra.mxu2 %v523_v29  ;;  %v858_v25 = vld [vmem:[#allocation4 + $0x1010] sm:$0xff]  ;;  %v943_v26 = vld [vmem:[#allocation4 + $0x12b8] sm:$0xff]  ;;  %v693_v29 = vld [vmem:[#allocation4 + $0xae8] sm:$0xff] }
 0x189   :  { %1728 = vmatpush.msra.mxu3 %v608_v30  ;;  %1670 = vmatpush.msra.mxu0 %v358_v32  ;;  %v773_v30 = vld [vmem:[#allocation4 + $0xd68] sm:$0xff]  ;;  %v5979_v32 = vpop.f32.mrf.mxu2 }
 0x18a   :  { %1690 = vmatpush.msra.mxu1 %v438_v33  ;;  %1710 = vmatpush.msra.mxu2 %v518_v2  ;;  %v853_v33 = vld [vmem:[#allocation4 + $0xfe8] sm:$0xff]  ;;  %v938_v2 = vld [vmem:[#allocation4 + $0x1290] sm:$0xff] }
 0x18b   :  { %1729 = vmatpush.msra.mxu3 %v603_v35  ;;  %1671 = vmatpush.msra.mxu0 %v353_v3  ;;  %v688_v35 = vld [vmem:[#allocation4 + $0xac0] sm:$0xff] }
 0x18c   :  { %1691 = vmatpush.msra.mxu1 %v433_v4  ;;  %1711 = vmatpush.msra.mxu2 %v513_v36  ;;  %v768_v3 = vld [vmem:[#allocation4 + $0xd40] sm:$0xff]  ;;  %v5981_v4 = vpop.f32.mrf.mxu0 }
 0x18d   :  { %1730 = vmatpush.msra.mxu3 %v598_v24  ;;  %1672 = vmatpush.msra.mxu0 %v348_v37  ;;  %v848_v36 = vld [vmem:[#allocation4 + $0xfc0] sm:$0xff]  ;;  %v933_v24 = vld [vmem:[#allocation4 + $0x1268] sm:$0xff]  ;;  %v683_v37 = vld [vmem:[#allocation4 + $0xa98] sm:$0xff] }
 0x18e   :  { %1692 = vmatpush.msra.mxu1 %v428_v38  ;;  %1712 = vmatpush.msra.mxu2 %v508_v27  ;;  %v5983_v38 = vpop.f32.mrf.mxu3  ;;  %v763_v27 = vld [vmem:[#allocation4 + $0xd18] sm:$0xff] }
 0x18f   :  { %1731 = vmatpush.msra.mxu3 %v593_v61  ;;  %1737 = vmatpush.msrb.mxu0 %v743_v40  ;;  %v843_v61 = vld [vmem:[#allocation4 + $0xf98] sm:$0xff]  ;;  %v5985_v40 = vld [vmem:[#allocation6] ss:$4 sm:$0x1f] }
 0x190   :  { %1757 = vmatpush.msrb.mxu1 %v823_v42  ;;  %1777 = vmatpush.msrb.mxu2 %v903_v31  ;;  %v928_v42 = vld [vmem:[#allocation4 + $0x1240] sm:$0xff]  ;;  %v5987_v31 = vpop.f32.mrf.mxu1 }
 0x191   :  { %1732 = vmatpush.msra.mxu3 %v588_v43  ;;  %1738 = vmatpush.msrb.mxu0 %v738_v44  ;;  %v5188_v43 = vld.sshfl [vmem:[#allocation1 + $0x10] sm:$0xff pattern:$0x73625140]  ;;  %v678_v44 = vld [vmem:[#allocation4 + $0xa70] sm:$0xff] }
 0x192   :  { %1758 = vmatpush.msrb.mxu1 %v818_v45  ;;  %1778 = vmatpush.msrb.mxu2 %v898_v21  ;;  %v758_v45 = vld [vmem:[#allocation4 + $0xcf0] sm:$0xff] }
 0x193   :  { %1797 = vmatpush.msrb.mxu3 %v983_v23  ;;  %1739 = vmatpush.msrb.mxu0 %v733_v48  ;;  %v838_v21 = vld [vmem:[#allocation4 + $0xf70] sm:$0xff]  ;;  %v986_v23 = vperm.slane %v5985_v40, 0  ;;  %v987_v48 = vperm.slane %v5985_v40, 1 }
 0x194   :  { %1759 = vmatpush.msrb.mxu1 %v813_v41  ;;  %1779 = vmatpush.msrb.mxu2 %v893_v51  ;;  %v5189_v41 = vld.sshfl [vmem:[#allocation1] sm:$0xff pattern:$0x73625140] }
 0x195   :  { %1798 = vmatpush.msrb.mxu3 %v978_v28  ;;  %1740 = vmatpush.msrb.mxu0 %v728_v17  ;;  %v923_v51 = vld [vmem:[#allocation4 + $0x1218] sm:$0xff]  ;;  %v5190_v28 = vld.sshfl [vmem:[#allocation1 + $0x18] sm:$0xff pattern:$0x73625140] }
 0x196   :  { %1760 = vmatpush.msrb.mxu1 %v808_v46  ;;  %1780 = vmatpush.msrb.mxu2 %v888_v53  ;;  %v673_v17 = vld [vmem:[#allocation4 + $0xa48] sm:$0xff]  ;;  %v988_v53 = vperm.slane %v5985_v40, 2 }
 0x197   :  { %1799 = vmatpush.msrb.mxu3 %v973_v54  ;;  %1741 = vmatpush.msrb.mxu0 %v723_v55  ;;  %v753_v46 = vld [vmem:[#allocation4 + $0xcc8] sm:$0xff]  ;;  %v5992_v54 = vpop.f32.mrf.mxu2 }
 0x198   :  { %1761 = vmatpush.msrb.mxu1 %v803_v49  ;;  %1781 = vmatpush.msrb.mxu2 %v883_v57  ;;  %v833_v55 = vld [vmem:[#allocation4 + $0xf48] sm:$0xff]  ;;  %v918_v49 = vld [vmem:[#allocation4 + $0x11f0] sm:$0xff] }
 0x199   :  { %1800 = vmatpush.msrb.mxu3 %v968_v58  ;;  %1742 = vmatpush.msrb.mxu0 %v718_v59  ;;  %v5191_v58 = vld.sshfl [vmem:[#allocation1 + $0x8] sm:$0xff pattern:$0x73625140] }
 0x19a   :  { %1762 = vmatpush.msrb.mxu1 %v798_v60  ;;  %1782 = vmatpush.msrb.mxu2 %v878_v62  ;;  %v668_v59 = vld [vmem:[#allocation4 + $0xa20] sm:$0xff]  ;;  %v1035_v62 = vadd.f32 %v5959_v34, %v986_v23 }
 0x19b   :  { %1801 = vmatpush.msrb.mxu3 %v963_v63  ;;  %1743 = vmatpush.msrb.mxu0 %v713_v0  ;;  %v748_v60 = vld [vmem:[#allocation4 + $0xca0] sm:$0xff]  ;;  %v1195_v63 = vadd.f32 %v5973_v6, %v987_v48 }
 0x19c   :  { %1763 = vmatpush.msrb.mxu1 %v793_v1  ;;  %1783 = vmatpush.msrb.mxu2 %v873_v7  ;;  %v828_v0 = vld [vmem:[#allocation4 + $0xf20] sm:$0xff]  ;;  %v913_v1 = vld [vmem:[#allocation4 + $0x11c8] sm:$0xff] }
 0x19d   :  { %1802 = vmatpush.msrb.mxu3 %v958_v8  ;;  %1744 = vmatpush.msrb.mxu0 %v708_v9  ;;  %v5996_v7 = vld [vmem:[#allocation7 + $0x78] sm:$0xff]  ;;  %v5998_v9 = vpop.f32.mrf.mxu3  ;;  %v908_v6 = vld [vmem:[#allocation4 + $0x11a0] sm:$0xff] }
 0x19e   :  { %1764 = vmatpush.msrb.mxu1 %v788_v10  ;;  %1784 = vmatpush.msrb.mxu2 %v868_v11  ;;  %v6000_v10 = vld [vmem:[#allocation7 + $0xf8] sm:$0xff]  ;;  %v6053_v23 = vld [vmem:[#allocation7 + $0x1e8] sm:$0xff] }
 0x19f   :  { %1803 = vmatpush.msrb.mxu3 %v953_v12  ;;  %1745 = vmatpush.msrb.mxu0 %v703_v13  ;;  %v6002_v11 = vld [vmem:[#allocation7 + $0x178] sm:$0xff]  ;;  %v1055_v12 = vadd.f32 %v5961_v39, %v1035_v62  ;;  %v1215_v13 = vadd.f32 %v5977_v16, %v1195_v63  ;;  %v6015_v39 = vld [vmem:[#allocation7 + $0x68] sm:$0xff]  ;;  %v6091_v62 = vld [vmem:[#allocation7 + $0x1d0] sm:$0xff] }
 0x1a0   :  { %1765 = vmatpush.msrb.mxu1 %v783_v14  ;;  %1785 = vmatpush.msrb.mxu2 %v863_v18  ;;  %v5192_v14 = vld.sshfl [vmem:[#allocation1 + $0x30] sm:$0xff pattern:$0x73625140]  ;;  %7026 = vst [vmem:[#allocation42_spill] sm:$0xff] %v6091_v62 }
 0x1a1   :  { %1804 = vmatpush.msrb.mxu3 %v948_v19  ;;  %1746 = vmatpush.msrb.mxu0 %v698_v20  ;;  %v6007_v18 = vld [vmem:[#allocation7 + $0x70] sm:$0xff]  ;;  %v6094_v63 = vld [vmem:[#allocation7 + $0xb8] sm:$0xff] }
 0x1a2   :  { %1766 = vmatpush.msrb.mxu1 %v778_v22  ;;  %1786 = vmatpush.msrb.mxu2 %v858_v25  ;;  %v6011_v19 = vld [vmem:[#allocation7 + $0xf0] sm:$0xff]  ;;  %v5193_v25 = vld.sshfl [vmem:[#allocation1 + $0x20] sm:$0xff pattern:$0x73625140] }
 0x1a3   :  { %1805 = vmatpush.msrb.mxu3 %v943_v26  ;;  %1747 = vmatpush.msrb.mxu0 %v693_v29  ;;  %v6013_v20 = vld [vmem:[#allocation7 + $0x170] sm:$0xff]  ;;  %v5194_v26 = vld.sshfl [vmem:[#allocation1 + $0x38] sm:$0xff pattern:$0x73625140]  ;;  %v6018_v29 = vld [vmem:[#allocation7 + $0xe8] sm:$0xff] }
 0x1a4   :  { %1767 = vmatpush.msrb.mxu1 %v773_v30  ;;  %1787 = vmatpush.msrb.mxu2 %v853_v33  ;;  %v6020_v30 = vld [vmem:[#allocation7 + $0x168] sm:$0xff]  ;;  %v1075_v33 = vadd.f32 %v5963_v47, %v1055_v12  ;;  %v6106_v12 = vld [vmem:[#allocation7 + $0xb0] sm:$0xff] }
 0x1a5   :  { %1806 = vmatpush.msrb.mxu3 %v938_v2  ;;  %1748 = vmatpush.msrb.mxu0 %v688_v35  ;;  %v1354_v57 = vpop.f32.mrf.mxu0  ;;  %v1374_v34 = vpop.f32.mrf.mxu1  ;;  %v1235_v2 = vadd.f32 %v5979_v32, %v1215_v13  ;;  %v6026_v35 = vld [vmem:[#allocation7 + $0x60] sm:$0xff]  ;;  %v6037_v32 = vld [vmem:[#allocation7 + $0x58] sm:$0xff]  ;;  %v6108_v13 = vld [vmem:[#allocation7 + $0x130] sm:$0xff] }
 0x1a6   :  { %1768 = vmatpush.msrb.mxu1 %v768_v3  ;;  %1788 = vmatpush.msrb.mxu2 %v848_v36  ;;  %v1355_v8 = vadd.f32 %v1354_v57, %v988_v53  ;;  %v6028_v3 = vld [vmem:[#allocation7 + $0x1f8] sm:$0xff]  ;;  %v5195_v36 = vld.sshfl [vmem:[#allocation1 + $0x28] sm:$0xff pattern:$0x73625140]  ;;  %7028 = vst [vmem:[#allocation44_spill] sm:$0xff] %v6108_v13 }
 0x1a7   :  { %1807 = vmatpush.msrb.mxu3 %v933_v24  ;;  %1713 = vmatmul.f32.vlgmr.msra.gmra.mxu2 %v5188_v43  ;;  %v6044_v43 = vld [vmem:[#allocation7 + $0x158] sm:$0xff] }
 0x1a8   :  { %1749 = vmatpush.msrb.mxu0 %v683_v37  ;;  %1769 = vmatpush.msrb.mxu1 %v763_v27  ;;  %v1375_v22 = vadd.f32 %v1374_v34, %v1355_v8  ;;  %v1394_v16 = vpop.f32.mrf.mxu2  ;;  %v6031_v37 = vld [vmem:[#allocation7 + $0xe0] sm:$0xff]  ;;  %v6079_v57 = vld [vmem:[#allocation7 + $0x1d8] sm:$0xff]  ;;  %v6103_v34 = vld [vmem:[#allocation7 + $0x30] sm:$0xff] }
 0x1a9   :  { %1789 = vmatpush.msrb.mxu2 %v843_v61  ;;  %1808 = vmatpush.msrb.mxu3 %v928_v42  ;;  %v6033_v27 = vld [vmem:[#allocation7 + $0x160] sm:$0xff]  ;;  %v6039_v61 = vld [vmem:[#allocation7 + $0x1f0] sm:$0xff]  ;;  %v6042_v42 = vld [vmem:[#allocation7 + $0xd8] sm:$0xff] }
 0x1aa   :  { %1673 = vmatmul.f32.vlgmr.msra.gmra.mxu0 %v5189_v41  ;;  %1733 = vmatmul.f32.vlgmr.msra.gmra.mxu3 %v5190_v28  ;;  %v1395_v24 = vadd.f32 %v1394_v16, %v1375_v22  ;;  %v6056_v41 = vld [vmem:[#allocation7 + $0xd0] sm:$0xff]  ;;  %v6065_v28 = vld [vmem:[#allocation7 + $0x1e0] sm:$0xff]  ;;  %v6118_v22 = vld [vmem:[#allocation7 + $0xa8] sm:$0xff] }
 0x1ab   :  { %1750 = vmatpush.msrb.mxu0 %v678_v44  ;;  %1770 = vmatpush.msrb.mxu1 %v758_v45  ;;  %v1095_v44 = vadd.f32 %v5967_v52, %v1075_v33  ;;  %v1255_v45 = vadd.f32 %v5983_v38, %v1235_v2  ;;  %v6063_v38 = vld [vmem:[#allocation7 + $0x48] sm:$0xff]  ;;  %v6127_v33 = vld [vmem:[#allocation7 + $0x20] sm:$0xff] }
 0x1ac   :  { %1790 = vmatpush.msrb.mxu2 %v838_v21  ;;  %1809 = vmatpush.msrb.mxu3 %v923_v51  ;;  %v1414_v47 = vpop.f32.mrf.mxu3  ;;  %v6051_v21 = vld [vmem:[#allocation7 + $0x50] sm:$0xff] }
 0x1ad   :  { %1693 = vmatmul.f32.vlgmr.msra.gmra.mxu1 %v5191_v58  ;;  %1751 = vmatpush.msrb.mxu0 %v673_v17  ;;  %v1415_v48 = vadd.f32 %v1414_v47, %v1395_v24  ;;  %v6058_v51 = vld [vmem:[#allocation7 + $0x150] sm:$0xff]  ;;  %v6068_v17 = vld [vmem:[#allocation7 + $0xc8] sm:$0xff]  ;;  %v1115_v53 = vadd.f32 %v5965_v50, %v1095_v44  ;;  %v6132_v24 = vld [vmem:[#allocation7 + $0x120] sm:$0xff] }
 0x1ae   :  { %1771 = vmatpush.msrb.mxu1 %v753_v46  ;;  %1791 = vmatpush.msrb.mxu2 %v833_v55  ;;  %v6070_v46 = vld [vmem:[#allocation7 + $0x148] sm:$0xff]  ;;  %v1275_v55 = vadd.f32 %v5981_v4, %v1255_v45  ;;  %v6089_v4 = vld [vmem:[#allocation7 + $0x38] sm:$0xff]  ;;  %7031 = vst [vmem:[#allocation47_spill] sm:$0xff] %v6132_v24  ;;  %v6134_v47 = vld [vmem:[#allocation7 + $0x1c0] sm:$0xff] }
 0x1af   :  { %1810 = vmatpush.msrb.mxu3 %v918_v49  ;;  %1752 = vmatpush.msrb.mxu0 %v668_v59  ;;  %v1434_v52 = vpop.f32.mrf.mxu0  ;;  %v6077_v49 = vld [vmem:[#allocation7 + $0x40] sm:$0xff]  ;;  %7032 = vst [vmem:[#allocation48_spill] sm:$0xff] %v6134_v47  ;;  %v6143_v45 = vld [vmem:[#allocation7 + $0x118] sm:$0xff] }
 0x1b0   :  { %1772 = vmatpush.msrb.mxu1 %v748_v60  ;;  %1792 = vmatpush.msrb.mxu2 %v828_v0  ;;  %v1435_v58 = vadd.f32 %v1434_v52, %v1415_v48  ;;  %v6082_v59 = vld [vmem:[#allocation7 + $0xc0] sm:$0xff]  ;;  %v6096_v0 = vld [vmem:[#allocation7 + $0x138] sm:$0xff]  ;;  %v1295_v8 = vadd.f32 %v5987_v31, %v1275_v55  ;;  %v6115_v31 = vld [vmem:[#allocation7 + $0x1c8] sm:$0xff]  ;;  %7033 = vst [vmem:[#allocation49_spill] sm:$0xff] %v6143_v45 }
 0x1b1   :  { %1811 = vmatpush.msrb.mxu3 %v913_v1  ;;  %1793 = vmatmul.f32.vlgmr.msrb.gmra.mxu2 %v5192_v14  ;;  %v6084_v60 = vld [vmem:[#allocation7 + $0x140] sm:$0xff]  ;;  %7027 = vst [vmem:[#allocation43_spill] sm:$0xff] %v6096_v0  ;;  %v1135_v1 = vadd.f32 %v5969_v56, %v1115_v53  ;;  %v6113_v56 = vld [vmem:[#allocation7 + $0x28] sm:$0xff]  ;;  %v6146_v48 = vld [vmem:[#allocation7 + $0x1b8] sm:$0xff] }
 0x1b2   :  { %1913 = vmatpush.msra.mxu0 %v5996_v7  ;;  %1933 = vmatpush.msra.mxu1 %v6000_v10  ;;  %7025 = vst [vmem:[#allocation41_spill] sm:$0xff] %v6084_v60  ;;  %v1454_v50 = vpop.f32.mrf.mxu1  ;;  %v1474_v14 = vpop.f32.mrf.mxu2  ;;  %v6152_v55 = vld [vmem:[#allocation7 + $0x10] sm:$0xff] }
 0x1b3   :  { %1953 = vmatpush.msra.mxu2 %v6002_v11  ;;  %1812 = vmatpush.msrb.mxu3 %v908_v6  ;;  %v1455_v6 = vadd.f32 %v1454_v50, %v1435_v58  ;;  %7029 = vst [vmem:[#allocation45_spill] sm:$0xff] %v6115_v31  ;;  %v1155_v16 = vadd.f32 %v5971_v5, %v1135_v1  ;;  %v6138_v5 = vld [vmem:[#allocation7 + $0x18] sm:$0xff]  ;;  %v6155_v50 = vld [vmem:[#allocation7 + $0x90] sm:$0xff] }
 0x1b4   :  { %1753 = vmatmul.f32.vlgmr.msrb.gmra.mxu0 %v5193_v25  ;;  %1813 = vmatmul.f32.vlgmr.msrb.gmra.mxu3 %v5194_v26  ;;  %v6120_v25 = vld [vmem:[#allocation7 + $0x128] sm:$0xff]  ;;  %v1315_v26 = vadd.f32 %v5992_v54, %v1295_v8  ;;  %v6141_v54 = vld [vmem:[#allocation7 + $0x98] sm:$0xff]  ;;  %7034 = vst [vmem:[#allocation50_spill] sm:$0xff] %v6146_v48  ;;  %v6157_v1 = vld [vmem:[#allocation7 + $0x110] sm:$0xff] }
 0x1b5   :  { %1914 = vmatpush.msra.mxu0 %v6007_v18  ;;  %1934 = vmatpush.msra.mxu1 %v6011_v19  ;;  %7030 = vst [vmem:[#allocation46_spill] sm:$0xff] %v6120_v25  ;;  %v1475_v2 = vadd.f32 %v1474_v14, %v1455_v6  ;;  %v1494_v44 = vpop.f32.mrf.mxu3  ;;  %v1175_v52 = vadd.f32 %v5975_v15, %v1155_v16  ;;  %v6160_v8 = vld [vmem:[#allocation7 + $0x1b0] sm:$0xff]  ;;  %v6164_v15 = vld [vmem:[#allocation7 + $0x8] sm:$0xff] }
 0x1b6   :  { %1954 = vmatpush.msra.mxu2 %v6013_v20  ;;  %1773 = vmatmul.f32.vlgmr.msrb.gmra.mxu1 %v5195_v36  ;;  %v6130_v36 = vld [vmem:[#allocation7 + $0xa0] sm:$0xff]  ;;  %v1335_v53 = vadd.f32 %v5998_v9, %v1315_v26  ;;  %7035 = vst [vmem:[#allocation51_spill] sm:$0xff] %v6157_v1  ;;  %v6167_v9 = vld [vmem:[#allocation7 + $0x88] sm:$0xff] }
 0x1b7   :  { %1915 = vmatpush.msra.mxu0 %v6015_v39  ;;  %1935 = vmatpush.msra.mxu1 %v6018_v29  ;;  %v1495_v58 = vadd.f32 %v1494_v44, %v1475_v2  ;;  %7036 = vst [vmem:[#allocation52_spill] sm:$0xff] %v6160_v8  ;;  %v6169_v6 = vld [vmem:[#allocation7 + $0x108] sm:$0xff]  ;;  %v1822_v14 = vmul.f32 0.1, %v1175_v52  ;;  %v6174_v26 = vld [vmem:[#allocation7] sm:$0xff]  ;;  %vm1817_vm0 = vcmp.ge.f32.partialorder %v1175_v52, 0.0 }
 0x1b8   :  { %1955 = vmatpush.msra.mxu2 %v6020_v30  ;;  %1973 = vmatpush.msra.mxu3 %v6028_v3  ;;  %7037 = vst [vmem:[#allocation53_spill] sm:$0xff] %v6169_v6  ;;  %v1823_v16 = vmul.f32 0.1, %v1335_v53  ;;  %v6176_v2 = vld [vmem:[#allocation7 + $0x1a8] sm:$0xff]  ;;  %vm1818_vm1 = vcmp.ge.f32.partialorder %v1335_v53, 0.0 }
 0x1b9   :  { %1916 = vmatpush.msra.mxu0 %v6026_v35  ;;  %1936 = vmatpush.msra.mxu1 %v6031_v37  ;;  %7038 = vst [vmem:[#allocation54_spill] sm:$0xff] %v6176_v2  ;;  %v1824_v44 = vmul.f32 0.1, %v1495_v58  ;;  %vm1819_vm2 = vcmp.ge.f32.partialorder %v1495_v58, 0.0 }
 0x1ba   :  { %1956 = vmatpush.msra.mxu2 %v6033_v27  ;;  %1974 = vmatpush.msra.mxu3 %v6039_v61 }
 0x1bb   :  { %1917 = vmatpush.msra.mxu0 %v6037_v32  ;;  %1937 = vmatpush.msra.mxu1 %v6042_v42 }
 0x1bc   :  { %1957 = vmatpush.msra.mxu2 %v6044_v43  ;;  %1975 = vmatpush.msra.mxu3 %v6053_v23 }
 0x1bd   :  { %1918 = vmatpush.msra.mxu0 %v6051_v21  ;;  %1938 = vmatpush.msra.mxu1 %v6056_v41 }
 0x1be   :  { %1958 = vmatpush.msra.mxu2 %v6058_v51  ;;  %1976 = vmatpush.msra.mxu3 %v6065_v28 }
 0x1bf   :  { %1919 = vmatpush.msra.mxu0 %v6063_v38  ;;  %1939 = vmatpush.msra.mxu1 %v6068_v17 }
 0x1c0   :  { %1959 = vmatpush.msra.mxu2 %v6070_v46  ;;  %1977 = vmatpush.msra.mxu3 %v6079_v57 }
 0x1c1   :  { %1920 = vmatpush.msra.mxu0 %v6077_v49  ;;  %1940 = vmatpush.msra.mxu1 %v6082_v59 }
 0x1c2   :  { %1960 = vmatpush.msra.mxu2 %v6084_v60  ;;  %1978 = vmatpush.msra.mxu3 %v6091_v62 }
 0x1c3   :  { %1921 = vmatpush.msra.mxu0 %v6089_v4  ;;  %1941 = vmatpush.msra.mxu1 %v6094_v63 }
 0x1c4   :  { %1961 = vmatpush.msra.mxu2 %v6096_v0  ;;  %1979 = vmatpush.msra.mxu3 %v6115_v31 }
 0x1c5   :  { %1922 = vmatpush.msra.mxu0 %v6103_v34  ;;  %1942 = vmatpush.msra.mxu1 %v6106_v12 }
 0x1c6   :  { %1962 = vmatpush.msra.mxu2 %v6108_v13  ;;  %1980 = vmatpush.msra.mxu3 %v6134_v47 }
 0x1c7   :  { %1923 = vmatpush.msra.mxu0 %v6113_v56  ;;  %1943 = vmatpush.msra.mxu1 %v6118_v22 }
 0x1c8   :  { %1963 = vmatpush.msra.mxu2 %v6120_v25  ;;  %1981 = vmatpush.msra.mxu3 %v6146_v48  ;;  %v6193_v25 = vsel %vm1818_vm1, %v1335_v53, %v1823_v16  ;;  %v6204_v48 = vld [vmem:[#allocation7 + $0x190] sm:$0xff]  ;;  %v6209_v53 = vld [vmem:[#allocation7 + $0x180] sm:$0xff] }
 0x1c9   :  { %1924 = vmatpush.msra.mxu0 %v6127_v33  ;;  %1944 = vmatpush.msra.mxu1 %v6130_v36  ;;  %7042 = vst [vmem:[#allocation58_spill] sm:$0xff] %v6193_v25 }
 0x1ca   :  { %1964 = vmatpush.msra.mxu2 %v6132_v24  ;;  %1982 = vmatpush.msra.mxu3 %v6160_v8  ;;  %v6181_v24 = vld [vmem:[#allocation7 + $0x100] sm:$0xff]  ;;  %v6191_v8 = vsel %vm1817_vm0, %v1175_v52, %v1822_v14  ;;  %7045 = vst [vmem:[#allocation61_spill] sm:$0xff] %v6204_v48  ;;  %v6206_v52 = vld [vmem:[#allocation7 + $0x188] sm:$0xff] }
 0x1cb   :  { %1925 = vmatpush.msra.mxu0 %v6138_v5  ;;  %1945 = vmatpush.msra.mxu1 %v6141_v54  ;;  %7039 = vst [vmem:[#allocation55_spill] sm:$0xff] %v6181_v24 }
 0x1cc   :  { %1965 = vmatpush.msra.mxu2 %v6143_v45  ;;  %v6179_v45 = vld [vmem:[#allocation7 + $0x80] sm:$0xff]  ;;  %1983 = vmatpush.msra.mxu3 %v6176_v2  ;;  %7041 = vst [vmem:[#allocation57_spill] sm:$0xff] %v6191_v8  ;;  %v6197_v2 = vsel %vm1819_vm2, %v1495_v58, %v1824_v44  ;;  %v989_v58 = vperm.slane %v5985_v40, 3 }
 0x1cd   :  { %1926 = vmatpush.msra.mxu0 %v6152_v55  ;;  %1946 = vmatpush.msra.mxu1 %v6155_v50  ;;  %7043 = vst [vmem:[#allocation59_spill] sm:$0xff] %v6197_v2 }
 0x1ce   :  { %1966 = vmatpush.msra.mxu2 %v6157_v1  ;;  %v6187_v1 = vld [vmem:[#allocation7 + $0x1a0] sm:$0xff]  ;;  %7046 = vst [vmem:[#allocation62_spill] sm:$0xff] %v6206_v52 }
 0x1cf   :  { %1927 = vmatpush.msra.mxu0 %v6164_v15  ;;  %1947 = vmatpush.msra.mxu1 %v6167_v9  ;;  %7040 = vst [vmem:[#allocation56_spill] sm:$0xff] %v6187_v1 }
 0x1d0   :  { %1967 = vmatpush.msra.mxu2 %v6169_v6  ;;  %v6199_v6 = vld [vmem:[#allocation7 + $0x198] sm:$0xff]  ;;  %1984 = vmatpush.msra.mxu3 %v6187_v1  ;;  %7047 = vst [vmem:[#allocation63_spill] sm:$0xff] %v6209_v53 }
 0x1d1   :  { %1928 = vmatpush.msra.mxu0 %v6174_v26  ;;  %1948 = vmatpush.msra.mxu1 %v6179_v45  ;;  %7044 = vst [vmem:[#allocation60_spill] sm:$0xff] %v6199_v6 }
 0x1d2   :  { %1968 = vmatpush.msra.mxu2 %v6181_v24  ;;  %1929 = vmatmul.f32.vlgmr.msra.gmra.mxu0 %v6191_v8 }
 0x1d3   :  { %1949 = vmatmul.f32.vlgmr.msra.gmra.mxu1 %v6193_v25  ;;  %1969 = vmatmul.f32.vlgmr.msra.gmra.mxu2 %v6197_v2 }
 0x1d4   :  { %1985 = vmatpush.msra.mxu3 %v6199_v6 }
 0x1d6   :  { %1986 = vmatpush.msra.mxu3 %v6204_v48 }
 0x1d8   :  { %1987 = vmatpush.msra.mxu3 %v6206_v52 }
 0x1da   :  { %1988 = vmatpush.msra.mxu3 %v6209_v53 }
 0x1e3   :  { %v1514_v14 = vpop.f32.mrf.mxu0 }
 0x1e4   :  { %v1515_v16 = vadd.f32 %v1514_v14, %v989_v58  ;;  %v6217_v58 = vld [vmem:[#allocation7 + $0x238] sm:$0xff] }
 0x1e5   :  { %2001 = vmatpush.msrb.mxu0 %v6217_v58 }
 0x1e6   :  { %v1534_v44 = vpop.f32.mrf.mxu1  ;;  %v1554_v25 = vpop.f32.mrf.mxu2 }
 0x1e7   :  { %v1535_v2 = vadd.f32 %v1534_v44, %v1515_v16 }
 0x1e9   :  { %v1555_v8 = vadd.f32 %v1554_v25, %v1535_v2  ;;  %v1574_v24 = vpop.f32.mrf.mxu3  ;;  %v6220_v25 = vld [vmem:[#allocation7 + $0x230] sm:$0xff] }
 0x1ea   :  { %2002 = vmatpush.msrb.mxu0 %v6220_v25 }
 0x1eb   :  { %v1575_v6 = vadd.f32 %v1574_v24, %v1555_v8  ;;  %v6223_v24 = vld [vmem:[#allocation7 + $0x228] sm:$0xff] }
 0x1ec   :  { %2003 = vmatpush.msrb.mxu0 %v6223_v24 }
 0x1ed   :  { %v1594_v1 = vpop.f32.mrf.mxu0 }
 0x1ee   :  { %v1595_v13 = vadd.f32 %v1594_v1, %v1575_v6 }
 0x1f0   :  { %v1614_v47 = vpop.f32.mrf.mxu1  ;;  %v1634_v0 = vpop.f32.mrf.mxu2 }
 0x1f1   :  { %v1615_v48 = vadd.f32 %v1614_v47, %v1595_v13  ;;  %v6235_v13 = vld [vmem:[#allocation7 + $0x208] sm:$0xff]  ;;  %v990_v47 = vperm.slane %v5985_v40, 4 }
 0x1f3   :  { %v1635_v31 = vadd.f32 %v1634_v0, %v1615_v48  ;;  %v1654_v60 = vpop.f32.mrf.mxu3  ;;  %v6226_v0 = vld [vmem:[#allocation7 + $0x220] sm:$0xff] }
 0x1f4   :  { %2004 = vmatpush.msrb.mxu0 %v6226_v0 }
 0x1f5   :  { %v1655_v52 = vadd.f32 %v1654_v60, %v1635_v31  ;;  %v6229_v60 = vld [vmem:[#allocation7 + $0x218] sm:$0xff]  ;;  %v6238_v31 = vld [vmem:[#allocation7 + $0x200] sm:$0xff] }
 0x1f6   :  { %2005 = vmatpush.msrb.mxu0 %v6229_v60 }
 0x1f7   :  { %v1825_v62 = vmul.f32 0.1, %v1655_v52  ;;  %vm1820_vm3 = vcmp.ge.f32.partialorder %v1655_v52, 0.0 }
 0x1f9   :  { %v6214_v53 = vsel %vm1820_vm3, %v1655_v52, %v1825_v62  ;;  %v6232_v62 = vld [vmem:[#allocation7 + $0x210] sm:$0xff] }
 0x1fa   :  { %1989 = vmatmul.f32.vlgmr.msra.gmra.mxu3 %v6214_v53  ;;  %2006 = vmatpush.msrb.mxu0 %v6232_v62 }
 0x1fc   :  { %2007 = vmatpush.msrb.mxu0 %v6235_v13 }
 0x1fe   :  { %2008 = vmatpush.msrb.mxu0 %v6238_v31 }
 0x200   :  { %2151 = vmatpush.msra.mxu0 %v6000_v10 }
 0x202   :  { %2152 = vmatpush.msra.mxu0 %v6011_v19 }
 0x204   :  { %2153 = vmatpush.msra.mxu0 %v6018_v29 }
 0x206   :  { %2154 = vmatpush.msra.mxu0 %v6031_v37 }
 0x208   :  { %2155 = vmatpush.msra.mxu0 %v6042_v42 }
 0x20a   :  { %2156 = vmatpush.msra.mxu0 %v6056_v41 }
 0x20c   :  { %2157 = vmatpush.msra.mxu0 %v6068_v17 }
 0x20e   :  { %2158 = vmatpush.msra.mxu0 %v6082_v59 }
 0x210   :  { %2159 = vmatpush.msra.mxu0 %v6094_v63 }
 0x212   :  { %2160 = vmatpush.msra.mxu0 %v6106_v12  ;;  %v1904_v12 = vld [vmem:[#allocation9] sm:$0xff] }
 0x213   :  { %2033 = vmatpush.msrb.mxu1 %v1904_v12 }
 0x214   :  { %2161 = vmatpush.msra.mxu0 %v6118_v22  ;;  %v6262_v22 = vld [vmem:[#allocation9 + $0x8] sm:$0xff] }
 0x215   :  { %2053 = vmatpush.msrb.mxu2 %v6262_v22 }
 0x216   :  { %2162 = vmatpush.msra.mxu0 %v6130_v36  ;;  %v6264_v36 = vld [vmem:[#allocation9 + $0x10] sm:$0xff] }
 0x217   :  { %2073 = vmatpush.msrb.mxu3 %v6264_v36 }
 0x218   :  { %2163 = vmatpush.msra.mxu0 %v6141_v54  ;;  %v6268_v54 = vld [vmem:[#allocation9 + $0x18] sm:$0xff] }
 0x219   :  { %2131 = vmatpush.msra.mxu3 %v5996_v7  ;;  %2093 = vmatpush.msra.mxu1 %v6268_v54 }
 0x21a   :  { %2164 = vmatpush.msra.mxu0 %v6155_v50  ;;  %v6270_v50 = vld [vmem:[#allocation9 + $0x20] sm:$0xff] }
 0x21b   :  { %2113 = vmatpush.msra.mxu2 %v6270_v50  ;;  %2132 = vmatpush.msra.mxu3 %v6007_v18 }
 0x21c   :  { %2165 = vmatpush.msra.mxu0 %v6167_v9 }
 0x21d   :  { %2133 = vmatpush.msra.mxu3 %v6015_v39 }
 0x21e   :  { %2166 = vmatpush.msra.mxu0 %v6179_v45 }
 0x21f   :  { %2134 = vmatpush.msra.mxu3 %v6026_v35 }
 0x221   :  { %2135 = vmatpush.msra.mxu3 %v6037_v32 }
 0x223   :  { %2136 = vmatpush.msra.mxu3 %v6051_v21 }
 0x225   :  { %2137 = vmatpush.msra.mxu3 %v6063_v38 }
 0x227   :  { %v1674_v48 = vpop.f32.mrf.mxu0  ;;  %2138 = vmatpush.msra.mxu3 %v6077_v49 }
 0x228   :  { %v1675_v1 = vadd.f32 %v1674_v48, %v990_v47 }
 0x229   :  { %2139 = vmatpush.msra.mxu3 %v6089_v4  ;;  %v7060_v4 = vld [vmem:[#allocation56_spill] sm:$0xff] }
 0x22a   :  { %v1694_v8 = vpop.f32.mrf.mxu1  ;;  %v1714_v2 = vpop.f32.mrf.mxu2 }
 0x22b   :  { %v1695_v6 = vadd.f32 %v1694_v8, %v1675_v1  ;;  %2140 = vmatpush.msra.mxu3 %v6103_v34  ;;  %v7061_v34 = vld [vmem:[#allocation51_spill] sm:$0xff] }
 0x22d   :  { %v1715_v10 = vadd.f32 %v1714_v2, %v1695_v6  ;;  %v1734_v52 = vpop.f32.mrf.mxu3  ;;  %2141 = vmatpush.msra.mxu3 %v6113_v56  ;;  %v7062_v56 = vld [vmem:[#allocation60_spill] sm:$0xff] }
 0x22f   :  { %v1735_v40 = vadd.f32 %v1734_v52, %v1715_v10  ;;  %2142 = vmatpush.msra.mxu3 %v6127_v33  ;;  %v7063_v33 = vld [vmem:[#allocation53_spill] sm:$0xff] }
 0x231   :  { %v1754_v19 = vpop.f32.mrf.mxu0  ;;  %2143 = vmatpush.msra.mxu3 %v6138_v5  ;;  %v7064_v5 = vld [vmem:[#allocation61_spill] sm:$0xff] }
 0x232   :  { %v1755_v29 = vadd.f32 %v1754_v19, %v1735_v40  ;;  %v2441_v40 = vld [vmem:[#allocation10 + $0x78] sm:$0xff]  ;;  %v2440_v19 = vld [vmem:[#allocation10 + $0x70] sm:$0xff] }
 0x233   :  { %v1774_v37 = vpop.f32.mrf.mxu1  ;;  %2144 = vmatpush.msra.mxu3 %v6152_v55  ;;  %v7065_v55 = vld [vmem:[#allocation55_spill] sm:$0xff] }
 0x234   :  { %v1775_v42 = vadd.f32 %v1774_v37, %v1755_v29  ;;  %v1794_v41 = vpop.f32.mrf.mxu2  ;;  %v2457_v29 = vld [vmem:[#allocation10 + $0xf8] sm:$0xff]  ;;  %v2439_v37 = vld [vmem:[#allocation10 + $0x68] sm:$0xff] }
 0x235   :  { %2145 = vmatpush.msra.mxu3 %v6164_v15  ;;  %v7066_v15 = vld [vmem:[#allocation62_spill] sm:$0xff] }
 0x236   :  { %v1795_v14 = vadd.f32 %v1794_v41, %v1775_v42  ;;  %v2456_v42 = vld [vmem:[#allocation10 + $0xf0] sm:$0xff]  ;;  %v2438_v41 = vld [vmem:[#allocation10 + $0x60] sm:$0xff] }
 0x237   :  { %v1814_v17 = vpop.f32.mrf.mxu3  ;;  %2146 = vmatpush.msra.mxu3 %v6174_v26  ;;  %v7067_v26 = vld [vmem:[#allocation63_spill] sm:$0xff] }
 0x238   :  { %v1815_v16 = vadd.f32 %v1814_v17, %v1795_v14  ;;  %v2437_v14 = vld [vmem:[#allocation10 + $0x58] sm:$0xff]  ;;  %v2436_v17 = vld [vmem:[#allocation10 + $0x50] sm:$0xff] }
 0x23a   :  { %vm1821_vm4 = vcmp.ge.f32.partialorder %v1815_v16, 0.0  ;;  %v1826_v59 = vmul.f32 0.1, %v1815_v16 }
 0x23c   :  { %v6257_v63 = vsel %vm1821_vm4, %v1815_v16, %v1826_v59 }
 0x23d   :  { %5071 = vmatmul.msk.f32.vlgmr.msrb.gmra.mxu0 %vm1909_vm5, %v6257_v63 }
 0x23e   :  { %2250 = vmatpush.msrb.mxu0 %v1904_v12 }
 0x24f   :  { %v1930_v7 = vpop.f32.mrf.mxu0 }
 0x250   :  { %v1950_v45 = vpop.f32.mrf.mxu1 }
 0x251   :  { %v1951_v18 = vadd.f32 %v1950_v45, %v1930_v7 }
 0x256   :  { %v1970_v9 = vpop.f32.mrf.mxu2 }
 0x257   :  { %v1971_v35 = vadd.f32 %v1970_v9, %v1951_v18  ;;  %v2455_v9 = vld [vmem:[#allocation10 + $0xe8] sm:$0xff] }
 0x258   :  { %v2435_v18 = vld [vmem:[#allocation10 + $0x48] sm:$0xff] }
 0x27d   :  { %v1990_v39 = vpop.f32.mrf.mxu3 }
 0x27e   :  { %v1991_v32 = vadd.f32 %v1990_v39, %v1971_v35  ;;  %v2454_v39 = vld [vmem:[#allocation10 + $0xe0] sm:$0xff]  ;;  %v2473_v35 = vld [vmem:[#allocation10 + $0x178] sm:$0xff] }
 0x2ba   :  { %v2010_v21 = vpop.f32.mrf.mxu0 }
 0x2bb   :  { %v2011_v38 = vadd.f32 %v2010_v21, %v1991_v32  ;;  %v2434_v32 = vld [vmem:[#allocation10 + $0x40] sm:$0xff]  ;;  %v2453_v21 = vld [vmem:[#allocation10 + $0xd8] sm:$0xff] }
 0x2bd   :  { %v2013_v49 = vmul.f32 0.013888889, %v2011_v38  ;;  %v2472_v38 = vld [vmem:[#allocation10 + $0x170] sm:$0xff] }
 0x2bf   :  { %5072 = vmatmul.msk.f32.vlgmr.msrb.gmra.mxu1 %vm2014_vm6, %v2013_v49  ;;  %5073 = vmatmul.msk.f32.vlgmr.msrb.gmra.mxu2 %vm2014_vm6, %v2013_v49 }
 0x2c0   :  { %5074 = vmatmul.msk.f32.vlgmr.msrb.gmra.mxu3 %vm2014_vm6, %v2013_v49  ;;  %2171 = vmatpush.msrb.mxu1 %v6002_v11  ;;  %v7048_v11 = vld [vmem:[#allocation42_spill] sm:$0xff] }
 0x2c1   :  { %2191 = vmatpush.msrb.mxu2 %v6028_v3  ;;  %2219 = vmatpush.msrb.mxu3 %v6217_v58  ;;  %v7051_v3 = vld [vmem:[#allocation43_spill] sm:$0xff]  ;;  %v7068_v58 = vld [vmem:[#allocation57_spill] sm:$0xff] }
 0x2c2   :  { %2172 = vmatpush.msrb.mxu1 %v6013_v20  ;;  %v7049_v20 = vld [vmem:[#allocation41_spill] sm:$0xff] }
 0x2c3   :  { %2192 = vmatpush.msrb.mxu2 %v6039_v61  ;;  %2220 = vmatpush.msrb.mxu3 %v6220_v25  ;;  %v7053_v61 = vld [vmem:[#allocation44_spill] sm:$0xff] }
 0x2c4   :  { %2173 = vmatpush.msrb.mxu1 %v6020_v30  ;;  %v7050_v30 = vld [vmem:[#allocation45_spill] sm:$0xff] }
 0x2c5   :  { %2193 = vmatpush.msrb.mxu2 %v6053_v23  ;;  %2221 = vmatpush.msrb.mxu3 %v6223_v24  ;;  %v7055_v23 = vld [vmem:[#allocation46_spill] sm:$0xff] }
 0x2c6   :  { %2174 = vmatpush.msrb.mxu1 %v6033_v27  ;;  %v7052_v27 = vld [vmem:[#allocation48_spill] sm:$0xff] }
 0x2c7   :  { %5075 = vmatmul.msk.f32.vlgmr.msra.gmra.mxu1 %vm2014_vm6, %v2013_v49  ;;  %5076 = vmatmul.msk.f32.vlgmr.msra.gmra.mxu2 %vm2014_vm6, %v2013_v49  ;;  %v2489_v49 = vld [vmem:[#allocation10 + $0x1f8] sm:$0xff] }
 0x2c8   :  { %2175 = vmatpush.msrb.mxu1 %v6044_v43  ;;  %2194 = vmatpush.msrb.mxu2 %v6065_v28  ;;  %v7054_v43 = vld [vmem:[#allocation50_spill] sm:$0xff]  ;;  %v7057_v28 = vld [vmem:[#allocation47_spill] sm:$0xff] }
 0x2c9   :  { %2222 = vmatpush.msrb.mxu3 %v6226_v0 }
 0x2ca   :  { %2176 = vmatpush.msrb.mxu1 %v6058_v51  ;;  %2195 = vmatpush.msrb.mxu2 %v6079_v57  ;;  %v7056_v51 = vld [vmem:[#allocation52_spill] sm:$0xff]  ;;  %v7059_v57 = vld [vmem:[#allocation49_spill] sm:$0xff] }
 0x2cb   :  { %2223 = vmatpush.msrb.mxu3 %v6229_v60  ;;  %v7069_v60 = vld [vmem:[#allocation58_spill] sm:$0xff] }
 0x2cc   :  { %2177 = vmatpush.msrb.mxu1 %v6070_v46  ;;  %2196 = vmatpush.msrb.mxu2 %v7048_v11  ;;  %v7058_v46 = vld [vmem:[#allocation54_spill] sm:$0xff] }
 0x2cd   :  { %2224 = vmatpush.msrb.mxu3 %v6232_v62  ;;  %v2433_v11 = vld [vmem:[#allocation10 + $0x38] sm:$0xff] }
 0x2ce   :  { %2178 = vmatpush.msrb.mxu1 %v7049_v20  ;;  %2197 = vmatpush.msrb.mxu2 %v7050_v30  ;;  %v2452_v20 = vld [vmem:[#allocation10 + $0xd0] sm:$0xff]  ;;  %v2471_v30 = vld [vmem:[#allocation10 + $0x168] sm:$0xff] }
 0x2cf   :  { %2225 = vmatpush.msrb.mxu3 %v6235_v13 }
 0x2d0   :  { %2179 = vmatpush.msrb.mxu1 %v7051_v3  ;;  %2198 = vmatpush.msrb.mxu2 %v7052_v27  ;;  %v2488_v3 = vld [vmem:[#allocation10 + $0x1f0] sm:$0xff] }
 0x2d1   :  { %2226 = vmatpush.msrb.mxu3 %v6238_v31  ;;  %v7070_v31 = vld [vmem:[#allocation59_spill] sm:$0xff]  ;;  %v2432_v27 = vld [vmem:[#allocation10 + $0x30] sm:$0xff] }
 0x2d2   :  { %2180 = vmatpush.msrb.mxu1 %v7053_v61  ;;  %2199 = vmatpush.msrb.mxu2 %v7054_v43  ;;  %v2451_v61 = vld [vmem:[#allocation10 + $0xc8] sm:$0xff]  ;;  %v2470_v43 = vld [vmem:[#allocation10 + $0x160] sm:$0xff] }
 0x2d4   :  { %2181 = vmatpush.msrb.mxu1 %v7055_v23  ;;  %2200 = vmatpush.msrb.mxu2 %v7056_v51  ;;  %v2487_v23 = vld [vmem:[#allocation10 + $0x1e8] sm:$0xff] }
 0x2d5   :  { %v2431_v51 = vld [vmem:[#allocation10 + $0x28] sm:$0xff] }
 0x2d6   :  { %2182 = vmatpush.msrb.mxu1 %v7057_v28  ;;  %2201 = vmatpush.msrb.mxu2 %v7058_v46  ;;  %v2450_v28 = vld [vmem:[#allocation10 + $0xc0] sm:$0xff]  ;;  %v2469_v46 = vld [vmem:[#allocation10 + $0x158] sm:$0xff] }
 0x2d8   :  { %2183 = vmatpush.msrb.mxu1 %v7059_v57  ;;  %2202 = vmatpush.msrb.mxu2 %v7060_v4  ;;  %v2486_v57 = vld [vmem:[#allocation10 + $0x1e0] sm:$0xff] }
 0x2d9   :  { %v2430_v4 = vld [vmem:[#allocation10 + $0x20] sm:$0xff] }
 0x2da   :  { %2184 = vmatpush.msrb.mxu1 %v7061_v34  ;;  %2203 = vmatpush.msrb.mxu2 %v7062_v56  ;;  %v2449_v34 = vld [vmem:[#allocation10 + $0xb8] sm:$0xff]  ;;  %v2468_v56 = vld [vmem:[#allocation10 + $0x150] sm:$0xff] }
 0x2dc   :  { %2185 = vmatpush.msrb.mxu1 %v7063_v33  ;;  %2204 = vmatpush.msrb.mxu2 %v7064_v5  ;;  %v2485_v33 = vld [vmem:[#allocation10 + $0x1d8] sm:$0xff] }
 0x2dd   :  { %v2429_v5 = vld [vmem:[#allocation10 + $0x18] sm:$0xff] }
 0x2de   :  { %2186 = vmatpush.msrb.mxu1 %v7065_v55  ;;  %2205 = vmatpush.msrb.mxu2 %v7066_v15  ;;  %v2448_v55 = vld [vmem:[#allocation10 + $0xb0] sm:$0xff]  ;;  %v2467_v15 = vld [vmem:[#allocation10 + $0x148] sm:$0xff] }
 0x2e0   :  { %2270 = vmatpush.msra.mxu1 %v6262_v22  ;;  %2206 = vmatpush.msrb.mxu2 %v7067_v26  ;;  %v2484_v26 = vld [vmem:[#allocation10 + $0x1d0] sm:$0xff] }
 0x2e2   :  { %2290 = vmatpush.msra.mxu2 %v6264_v36 }
 0x33c   :  { %v2035_v44 = vpop.f32.mrf.mxu1 }
 0x33d   :  { %v6338_v25 = vsub.f32 %v7068_v58, %v2035_v44  ;;  %v2428_v44 = vld [vmem:[#allocation10 + $0x10] sm:$0xff]  ;;  %v2447_v58 = vld [vmem:[#allocation10 + $0xa8] sm:$0xff] }
 0x33f   :  { %v2123_v24 = vmul.f32 %v6338_v25, %v6338_v25 }
 0x341   :  { %2147 = vmatmul.f32.vlgmr.msra.gmra.mxu3 %v2123_v24  ;;  %v2466_v24 = vld [vmem:[#allocation10 + $0x140] sm:$0xff] }
 0x342   :  { %v2055_v0 = vpop.f32.mrf.mxu2  ;;  %2523 = vmatpush.msra.mxu3 %v2457_v29  ;;  %v2480_v29 = vld [vmem:[#allocation10 + $0x1b0] sm:$0xff] }
 0x343   :  { %v6343_v62 = vsub.f32 %v7069_v60, %v2055_v0  ;;  %v2075_v13 = vpop.f32.mrf.mxu3  ;;  %v2483_v0 = vld [vmem:[#allocation10 + $0x1c8] sm:$0xff] }
 0x344   :  { %v6346_v47 = vsub.f32 %v7070_v31, %v2075_v13  ;;  %v2095_v48 = vpop.f32.mrf.mxu1  ;;  %2524 = vmatpush.msra.mxu3 %v2456_v42  ;;  %v2427_v60 = vld [vmem:[#allocation10 + $0x8] sm:$0xff]  ;;  %v2446_v13 = vld [vmem:[#allocation10 + $0xa0] sm:$0xff]  ;;  %v2465_v31 = vld [vmem:[#allocation10 + $0x138] sm:$0xff] }
 0x345   :  { %v2124_v1 = vmul.f32 %v6343_v62, %v6343_v62  ;;  %v6351_v8 = vsub.f32 %v6214_v53, %v2095_v48  ;;  %v2482_v48 = vld [vmem:[#allocation10 + $0x1c0] sm:$0xff]  ;;  %v2443_v42 = vld [vmem:[#allocation10 + $0x88] sm:$0xff] }
 0x346   :  { %v2125_v6 = vmul.f32 %v6346_v47, %v6346_v47  ;;  %2525 = vmatpush.msra.mxu3 %v2455_v9 }
 0x347   :  { %v2126_v2 = vmul.f32 %v6351_v8, %v6351_v8  ;;  %2167 = vmatmul.f32.vlgmr.msra.gmra.mxu0 %v2124_v1  ;;  %v2426_v1 = vld [vmem:[#allocation10] sm:$0xff] }
 0x348   :  { %2187 = vmatmul.f32.vlgmr.msrb.gmra.mxu1 %v2125_v6  ;;  %2310 = vmatpush.msra.mxu0 %v6268_v54  ;;  %v2445_v6 = vld [vmem:[#allocation10 + $0x98] sm:$0xff] }
 0x349   :  { %2207 = vmatmul.f32.vlgmr.msrb.gmra.mxu2 %v2126_v2  ;;  %2330 = vmatpush.msrb.mxu1 %v6270_v50  ;;  %v2464_v2 = vld [vmem:[#allocation10 + $0x130] sm:$0xff] }
 0x34a   :  { %v2115_v10 = vpop.f32.mrf.mxu2  ;;  %2503 = vmatpush.msrb.mxu2 %v2441_v40  ;;  %2526 = vmatpush.msra.mxu3 %v2454_v39  ;;  %v2444_v40 = vld [vmem:[#allocation10 + $0x90] sm:$0xff]  ;;  %v2458_v39 = vld [vmem:[#allocation10 + $0x100] sm:$0xff] }
 0x34b   :  { %v6360_v52 = vsub.f32 %v6257_v63, %v2115_v10  ;;  %v2481_v10 = vld [vmem:[#allocation10 + $0x1b8] sm:$0xff] }
 0x34c   :  { %2504 = vmatpush.msrb.mxu2 %v2440_v19  ;;  %2527 = vmatpush.msra.mxu3 %v2453_v21  ;;  %v2463_v19 = vld [vmem:[#allocation10 + $0x128] sm:$0xff] }
 0x34d   :  { %v2127_v53 = vmul.f32 %v6360_v52, %v6360_v52 }
 0x34e   :  { %2505 = vmatpush.msrb.mxu2 %v2439_v37  ;;  %2528 = vmatpush.msra.mxu3 %v2452_v20  ;;  %v2496_v37 = vld [vmem:[#allocation10 + $0x230] sm:$0xff]  ;;  %v2621_v20 = vld [vmem:[#allocation13 + $0x78] sm:$0xff] }
 0x34f   :  { %5077 = vmatmul.msk.f32.vlgmr.msrb.gmra.mxu3 %vm1909_vm5, %v2127_v53  ;;  %v2497_v53 = vld [vmem:[#allocation10 + $0x238] sm:$0xff] }
 0x350   :  { %2506 = vmatpush.msrb.mxu2 %v2438_v41  ;;  %2529 = vmatpush.msra.mxu3 %v2451_v61  ;;  %v2462_v41 = vld [vmem:[#allocation10 + $0x120] sm:$0xff] }
 0x352   :  { %2507 = vmatpush.msrb.mxu2 %v2437_v14  ;;  %2530 = vmatpush.msra.mxu3 %v2450_v28  ;;  %v2479_v14 = vld [vmem:[#allocation10 + $0x1a8] sm:$0xff] }
 0x354   :  { %2508 = vmatpush.msrb.mxu2 %v2436_v17  ;;  %2531 = vmatpush.msra.mxu3 %v2449_v34  ;;  %v2495_v17 = vld [vmem:[#allocation10 + $0x228] sm:$0xff] }
 0x356   :  { %2509 = vmatpush.msrb.mxu2 %v2435_v18  ;;  %2532 = vmatpush.msra.mxu3 %v2448_v55 }
 0x358   :  { %2510 = vmatpush.msrb.mxu2 %v2434_v32  ;;  %2533 = vmatpush.msra.mxu3 %v2447_v58  ;;  %v2491_v32 = vld [vmem:[#allocation10 + $0x208] sm:$0xff] }
 0x359   :  { %v6387_v58 = vld [vmem:[#allocation6 + $0x1] ss:$4 sm:$0x1f] }
 0x35a   :  { %2511 = vmatpush.msrb.mxu2 %v2433_v11  ;;  %2534 = vmatpush.msra.mxu3 %v2446_v13  ;;  %v2490_v11 = vld [vmem:[#allocation10 + $0x200] sm:$0xff] }
 0x35c   :  { %2512 = vmatpush.msrb.mxu2 %v2432_v27  ;;  %2535 = vmatpush.msra.mxu3 %v2445_v6  ;;  %v2619_v27 = vld [vmem:[#allocation13 + $0x68] sm:$0xff]  ;;  %v2614_v6 = vld [vmem:[#allocation13 + $0x40] sm:$0xff] }
 0x35e   :  { %2513 = vmatpush.msrb.mxu2 %v2431_v51  ;;  %2536 = vmatpush.msra.mxu3 %v2444_v40  ;;  %v2393_v40 = vperm.slane %v6387_v58, 0 }
 0x360   :  { %2514 = vmatpush.msrb.mxu2 %v2430_v4  ;;  %2537 = vmatpush.msra.mxu3 %v2443_v42  ;;  %v2613_v42 = vld [vmem:[#allocation13 + $0x38] sm:$0xff] }
 0x362   :  { %2515 = vmatpush.msrb.mxu2 %v2429_v5 }
 0x364   :  { %2516 = vmatpush.msrb.mxu2 %v2428_v44 }
 0x366   :  { %2517 = vmatpush.msrb.mxu2 %v2427_v60 }
 0x368   :  { %2518 = vmatpush.msrb.mxu2 %v2426_v1  ;;  %v6395_v1 = vld [vmem:[#allocation6 + $0x2] ss:$4 sm:$0x1f] }
 0x3c4   :  { %v2148_v16 = vpop.f32.mrf.mxu3  ;;  %v2168_v59 = vpop.f32.mrf.mxu0 }
 0x3c5   :  { %v2169_v63 = vadd.f32 %v2168_v59, %v2148_v16  ;;  %v2188_v12 = vpop.f32.mrf.mxu1  ;;  %v2442_v16 = vld [vmem:[#allocation10 + $0x80] sm:$0xff]  ;;  %v2461_v59 = vld [vmem:[#allocation10 + $0x118] sm:$0xff] }
 0x3c6   :  { %2538 = vmatpush.msra.mxu3 %v2442_v16  ;;  %v2394_v16 = vperm.slane %v6387_v58, 1 }
 0x3c7   :  { %v2189_v36 = vadd.f32 %v2188_v12, %v2169_v63  ;;  %v2478_v63 = vld [vmem:[#allocation10 + $0x1a0] sm:$0xff] }
 0x3c8   :  { %v2494_v12 = vld [vmem:[#allocation10 + $0x220] sm:$0xff]  ;;  %2623 = vmatpush.msrb.mxu3 %v2621_v20 }
 0x3cc   :  { %v2208_v22 = vpop.f32.mrf.mxu2 }
 0x3cd   :  { %v2209_v54 = vadd.f32 %v2208_v22, %v2189_v36  ;;  %v2460_v22 = vld [vmem:[#allocation10 + $0x110] sm:$0xff]  ;;  %v2477_v36 = vld [vmem:[#allocation10 + $0x198] sm:$0xff] }
 0x3d2   :  { %v2228_v50 = vpop.f32.mrf.mxu3 }
 0x3d3   :  { %v2229_v7 = vadd.f32 %v2228_v50, %v2209_v54  ;;  %v2493_v54 = vld [vmem:[#allocation10 + $0x218] sm:$0xff]  ;;  %v2459_v50 = vld [vmem:[#allocation10 + $0x108] sm:$0xff] }
 0x3d5   :  { %v2231_v45 = vmul.f32 0.013888889, %v2229_v7  ;;  %v2476_v7 = vld [vmem:[#allocation10 + $0x190] sm:$0xff] }
 0x3d7   :  { %5078 = vmatmul.msk.f32.vlgmr.msrb.gmra.mxu0 %vm2014_vm6, %v2231_v45  ;;  %5079 = vmatmul.msk.f32.vlgmr.msra.gmra.mxu1 %vm2014_vm6, %v2231_v45 }
 0x3d8   :  { %5080 = vmatmul.msk.f32.vlgmr.msra.gmra.mxu2 %vm2014_vm6, %v2231_v45  ;;  %2543 = vmatpush.msrb.mxu0 %v2473_v35  ;;  %v2475_v35 = vld [vmem:[#allocation10 + $0x188] sm:$0xff] }
 0x3d9   :  { %2563 = vmatpush.msra.mxu1 %v2489_v49  ;;  %2591 = vmatpush.msra.mxu2 %v2497_v53  ;;  %v2474_v49 = vld [vmem:[#allocation10 + $0x180] sm:$0xff] }
 0x3da   :  { %2544 = vmatpush.msrb.mxu0 %v2472_v38 }
 0x3db   :  { %2564 = vmatpush.msra.mxu1 %v2488_v3  ;;  %2592 = vmatpush.msra.mxu2 %v2496_v37 }
 0x3dc   :  { %2545 = vmatpush.msrb.mxu0 %v2471_v30  ;;  %v2620_v30 = vld [vmem:[#allocation13 + $0x70] sm:$0xff] }
 0x3dd   :  { %2565 = vmatpush.msra.mxu1 %v2487_v23  ;;  %2593 = vmatpush.msra.mxu2 %v2495_v17  ;;  %v2411_v17 = vperm.slane %v6395_v1, 0 }
 0x3de   :  { %2546 = vmatpush.msrb.mxu0 %v2470_v43  ;;  %2624 = vmatpush.msrb.mxu3 %v2620_v30 }
 0x3df   :  { %5081 = vmatmul.msk.f32.vlgmr.msra.gmra.mxu0 %vm2014_vm6, %v2231_v45  ;;  %5082 = vmatmul.msk.f32.vlgmr.msrb.gmra.mxu1 %vm2014_vm6, %v2231_v45  ;;  %v2492_v45 = vld [vmem:[#allocation10 + $0x210] sm:$0xff] }
 0x3e0   :  { %2547 = vmatpush.msrb.mxu0 %v2469_v46  ;;  %2566 = vmatpush.msra.mxu1 %v2486_v57  ;;  %v2618_v57 = vld [vmem:[#allocation13 + $0x60] sm:$0xff] }
 0x3e1   :  { %2594 = vmatpush.msra.mxu2 %v2494_v12  ;;  %2625 = vmatpush.msrb.mxu3 %v2619_v27 }
 0x3e2   :  { %2548 = vmatpush.msrb.mxu0 %v2468_v56  ;;  %2567 = vmatpush.msra.mxu1 %v2485_v33  ;;  %v2617_v33 = vld [vmem:[#allocation13 + $0x58] sm:$0xff] }
 0x3e3   :  { %2595 = vmatpush.msra.mxu2 %v2493_v54  ;;  %2626 = vmatpush.msrb.mxu3 %v2618_v57 }
 0x3e4   :  { %2549 = vmatpush.msrb.mxu0 %v2467_v15  ;;  %2568 = vmatpush.msra.mxu1 %v2484_v26  ;;  %v2616_v15 = vld [vmem:[#allocation13 + $0x50] sm:$0xff] }
 0x3e5   :  { %2596 = vmatpush.msra.mxu2 %v2492_v45  ;;  %2627 = vmatpush.msrb.mxu3 %v2617_v33 }
 0x3e6   :  { %2550 = vmatpush.msrb.mxu0 %v2466_v24  ;;  %2569 = vmatpush.msra.mxu1 %v2483_v0  ;;  %v2615_v24 = vld [vmem:[#allocation13 + $0x48] sm:$0xff] }
 0x3e7   :  { %2597 = vmatpush.msra.mxu2 %v2491_v32  ;;  %2628 = vmatpush.msrb.mxu3 %v2616_v15 }
 0x3e8   :  { %2551 = vmatpush.msrb.mxu0 %v2465_v31  ;;  %2570 = vmatpush.msra.mxu1 %v2482_v48 }
 0x3e9   :  { %2598 = vmatpush.msra.mxu2 %v2490_v11  ;;  %2629 = vmatpush.msrb.mxu3 %v2615_v24 }
 0x3ea   :  { %2552 = vmatpush.msrb.mxu0 %v2464_v2  ;;  %2571 = vmatpush.msra.mxu1 %v2481_v10 }
 0x3eb   :  { %2630 = vmatpush.msrb.mxu3 %v2614_v6 }
 0x3ec   :  { %2553 = vmatpush.msrb.mxu0 %v2463_v19  ;;  %2572 = vmatpush.msra.mxu1 %v2480_v29 }
 0x3ed   :  { %2631 = vmatpush.msrb.mxu3 %v2613_v42 }
 0x3ee   :  { %2554 = vmatpush.msrb.mxu0 %v2462_v41  ;;  %2573 = vmatpush.msra.mxu1 %v2479_v14 }
 0x3f0   :  { %2555 = vmatpush.msrb.mxu0 %v2461_v59  ;;  %2574 = vmatpush.msra.mxu1 %v2478_v63 }
 0x3f2   :  { %2556 = vmatpush.msrb.mxu0 %v2460_v22  ;;  %2575 = vmatpush.msra.mxu1 %v2477_v36 }
 0x3f4   :  { %2557 = vmatpush.msrb.mxu0 %v2459_v50  ;;  %2576 = vmatpush.msra.mxu1 %v2476_v7  ;;  %v2412_v50 = vperm.slane %v6395_v1, 1 }
 0x3f6   :  { %2558 = vmatpush.msrb.mxu0 %v2458_v39  ;;  %2577 = vmatpush.msra.mxu1 %v2475_v35 }
 0x3f8   :  { %2578 = vmatpush.msra.mxu1 %v2474_v49 }
 0x3fa   :  { %2669 = vmatpush.msrb.mxu1 %v2621_v20  ;;  %v2396_v20 = vperm.slane %v6387_v58, 3 }
 0x3fc   :  { %2670 = vmatpush.msrb.mxu1 %v2620_v30 }
 0x3fe   :  { %2671 = vmatpush.msrb.mxu1 %v2619_v27  ;;  %v2397_v27 = vperm.slane %v6387_v58, 4 }
 0x400   :  { %2672 = vmatpush.msrb.mxu1 %v2618_v57  ;;  %v2415_v57 = vperm.slane %v6395_v1, 4 }
 0x402   :  { %2673 = vmatpush.msrb.mxu1 %v2617_v33 }
 0x404   :  { %2674 = vmatpush.msrb.mxu1 %v2616_v15  ;;  %v2608_v15 = vld [vmem:[#allocation13 + $0x10] sm:$0xff] }
 0x406   :  { %2675 = vmatpush.msrb.mxu1 %v2615_v24 }
 0x408   :  { %2676 = vmatpush.msrb.mxu1 %v2614_v6 }
 0x40a   :  { %2677 = vmatpush.msrb.mxu1 %v2613_v42 }
 0x454   :  { %v2252_v9 = vpop.f32.mrf.mxu0  ;;  %v2272_v18 = vpop.f32.mrf.mxu1 }
 0x455   :  { %v6370_v21 = vadd.f32 1e-05, %v2252_v9  ;;  %v6372_v38 = vadd.f32 1e-05, %v2272_v18 }
 0x457   :  { %5140 = vrsqrt.f32 %v6370_v21  ;;  %vm2341_vm9 = vweird.f32 %v6370_v21  ;;  %vm2351_vm11 = vweird.f32 %v6372_v38 }
 0x458   :  { %5142 = vrsqrt.f32 %v6372_v38 }
 0x45b   :  { %v2292_v3 = vpop.f32.mrf.mxu2 }
 0x45c   :  { %v6376_v61 = vadd.f32 1e-05, %v2292_v3  ;;  %v2312_v43 = vpop.f32.mrf.mxu0  ;;  %v2332_v23 = vpop.f32.mrf.mxu1 }
 0x45d   :  { %v5141_v51 = vpop.eup %5140  ;;  %v6378_v28 = vadd.f32 1e-05, %v2312_v43  ;;  %v6380_v46 = vadd.f32 1e-05, %v2332_v23 }
 0x45e   :  { %v5143_v4 = vpop.eup %5142  ;;  %v2336_v34 = vmul.f32 %v5141_v51, %v6370_v21  ;;  %5144 = vrsqrt.f32 %v6376_v61  ;;  %vm2342_vm7 = vweird.f32 %v5141_v51  ;;  %vm2361_vm14 = vweird.f32 %v6376_v61 }
 0x45f   :  { %v2346_v56 = vmul.f32 %v5143_v4, %v6372_v38  ;;  %5146 = vrsqrt.f32 %v6378_v28  ;;  %vm2352_vm8 = vweird.f32 %v5143_v4  ;;  %vm2343_vm10 = vmor %vm2341_vm9, %vm2342_vm7  ;;  %vm2371_vm2 = vweird.f32 %v6378_v28 }
 0x460   :  { %v2337_v5 = vmul.f32 %v5141_v51, %v2336_v34  ;;  %5148 = vrsqrt.f32 %v6380_v46  ;;  %vm2353_vm12 = vmor %vm2351_vm11, %vm2352_vm8  ;;  %v2395_v38 = vperm.slane %v6387_v58, 2  ;;  %vm2381_vm4 = vweird.f32 %v6380_v46  ;;  %v5135_v58 = vld [vmem:[#allocation12] ss:$0 sm:$0xff] }
 0x461   :  { %v2347_v55 = vmul.f32 %v5143_v4, %v2346_v56 }
 0x462   :  { %v2338_v26 = vmul.f32 0.5, %v2337_v5  ;;  %v2612_v5 = vld [vmem:[#allocation13 + $0x30] sm:$0xff] }
 0x463   :  { %v2348_v44 = vmul.f32 0.5, %v2347_v55  ;;  %2632 = vmatpush.msrb.mxu3 %v2612_v5  ;;  %2678 = vmatpush.msrb.mxu1 %v2612_v5  ;;  %v2610_v55 = vld [vmem:[#allocation13 + $0x20] sm:$0xff] }
 0x464   :  { %v6389_v0 = vpop.eup %5144  ;;  %v2339_v60 = vsub.f32 1.5, %v2338_v26  ;;  %v2607_v26 = vld [vmem:[#allocation13 + $0x8] sm:$0xff] }
 0x465   :  { %v6391_v13 = vpop.eup %5146  ;;  %v2349_v31 = vsub.f32 1.5, %v2348_v44  ;;  %v2356_v48 = vmul.f32 %v6389_v0, %v6376_v61  ;;  %vm2362_vm13 = vweird.f32 %v6389_v0  ;;  %v2413_v61 = vperm.slane %v6395_v1, 2  ;;  %v2606_v44 = vld [vmem:[#allocation13] sm:$0xff] }
 0x466   :  { %v5149_v2 = vpop.eup %5148  ;;  %v2340_v10 = vmul.f32 %v5141_v51, %v2339_v60  ;;  %v2366_v53 = vmul.f32 %v6391_v13, %v6378_v28  ;;  %vm2372_vm15 = vweird.f32 %v6391_v13  ;;  %vm2363_vm1 = vmor %vm2361_vm14, %vm2362_vm13  ;;  %vm2798_vm13 = vcmask 261120  }
 0x467   :  { %v2350_v19 = vmul.f32 %v5143_v4, %v2349_v31  ;;  %v2357_v29 = vmul.f32 %v6389_v0, %v2356_v48  ;;  %v2376_v37 = vmul.f32 %v5149_v2, %v6380_v46  ;;  %vm2382_vm0 = vweird.f32 %v5149_v2  ;;  %vm2373_vm3 = vmor %vm2371_vm2, %vm2372_vm15 }
 0x468   :  { %v2344_v41 = vsel %vm2343_vm10, %v5141_v51, %v2340_v10  ;;  %v2367_v14 = vmul.f32 %v6391_v13, %v2366_v53  ;;  %vm2383_vm7 = vmor %vm2381_vm4, %vm2382_vm0  ;;  %v2414_v51 = vperm.slane %v6395_v1, 3 }
 0x469   :  { %v2385_v59 = vmul.f32 %v2344_v41, %v6338_v25  ;;  %v2354_v63 = vsel %vm2353_vm12, %v5143_v4, %v2350_v19  ;;  %v2358_v12 = vmul.f32 0.5, %v2357_v29  ;;  %v2377_v22 = vmul.f32 %v5149_v2, %v2376_v37  ;;  %v2622_v19 = vld [vmem:[#allocation15] sm:$0xff] }
 0x46a   :  { %v2386_v36 = vmul.f32 %v2354_v63, %v6343_v62  ;;  %v2368_v54 = vmul.f32 0.5, %v2367_v14  ;;  %2662 = vmatpush.msra.mxu0 %v2622_v19  ;;  %vm2780_vm12 = vcmask 254976  }
 0x46b   :  { %v2359_v7 = vsub.f32 1.5, %v2358_v12  ;;  %v2378_v45 = vmul.f32 0.5, %v2377_v22  ;;  %v2403_v9 = vmul.f32 %v2393_v40, %v2385_v59  ;;  %v2743_v12 = vld [vmem:[#allocation16 + $0x68] sm:$0xff]  ;;  %v2742_v22 = vld [vmem:[#allocation16 + $0x60] sm:$0xff] }
 0x46c   :  { %v2369_v18 = vsub.f32 1.5, %v2368_v54  ;;  %v2404_v25 = vmul.f32 %v2394_v16, %v2386_v36  ;;  %v2744_v16 = vld [vmem:[#allocation16 + $0x70] sm:$0xff]  ;;  %v2741_v36 = vld [vmem:[#allocation16 + $0x58] sm:$0xff] }
 0x46d   :  { %v2360_v39 = vmul.f32 %v6389_v0, %v2359_v7  ;;  %v2379_v35 = vsub.f32 1.5, %v2378_v45  ;;  %v2421_v62 = vadd.f32 %v2411_v17, %v2403_v9  ;;  %v2745_v17 = vld [vmem:[#allocation16 + $0x78] sm:$0xff]  ;;  %v2740_v54 = vld [vmem:[#allocation16 + $0x50] sm:$0xff]  ;;  %v2738_v7 = vld [vmem:[#allocation16 + $0x40] sm:$0xff] }
 0x46e   :  { %v2370_v32 = vmul.f32 %v6391_v13, %v2369_v18  ;;  %v2422_v21 = vadd.f32 %v2412_v50, %v2404_v25  ;;  %v2739_v50 = vld [vmem:[#allocation16 + $0x48] sm:$0xff]  ;;  %v2737_v45 = vld [vmem:[#allocation16 + $0x38] sm:$0xff]  ;;  %v2736_v9 = vld [vmem:[#allocation16 + $0x30] sm:$0xff] }
 0x46f   :  { %v2364_v49 = vsel %vm2363_vm1, %v6389_v0, %v2360_v39  ;;  %v2380_v11 = vmul.f32 %v5149_v2, %v2379_v35  ;;  %2519 = vmatmul.f32.vlgmr.msrb.gmra.mxu2 %v2421_v62  ;;  %v2735_v18 = vld [vmem:[#allocation16 + $0x28] sm:$0xff]  ;;  %v2734_v25 = vld [vmem:[#allocation16 + $0x20] sm:$0xff]  ;;  %v2733_v39 = vld [vmem:[#allocation16 + $0x18] sm:$0xff] }
 0x470   :  { %v2387_v30 = vmul.f32 %v2364_v49, %v6346_v47  ;;  %v2374_v3 = vsel %vm2373_vm3, %v6391_v13, %v2370_v32  ;;  %2539 = vmatmul.f32.vlgmr.msra.gmra.mxu3 %v2422_v21  ;;  %2750 = vmatpush.msrb.mxu2 %v2745_v17  ;;  %v2732_v35 = vld [vmem:[#allocation16 + $0x10] sm:$0xff]  ;;  %v2731_v62 = vld [vmem:[#allocation16 + $0x8] sm:$0xff]  ;;  %v2730_v32 = vld [vmem:[#allocation16] sm:$0xff] }
 0x471   :  { %v2388_v43 = vmul.f32 %v2374_v3, %v6351_v8  ;;  %v2384_v23 = vsel %vm2383_vm7, %v5149_v2, %v2380_v11  ;;  %v2611_v8 = vld [vmem:[#allocation13 + $0x28] sm:$0xff] }
 0x472   :  { %v2389_v28 = vmul.f32 %v2384_v23, %v6360_v52  ;;  %v2405_v46 = vmul.f32 %v2395_v38, %v2387_v30  ;;  %2633 = vmatpush.msrb.mxu3 %v2611_v8  ;;  %2679 = vmatpush.msrb.mxu1 %v2611_v8  ;;  %v2609_v52 = vld [vmem:[#allocation13 + $0x18] sm:$0xff]  ;;  %v2862_v17 = vld [vmem:[#allocation22 + $0x140] sm:$0xff] }
 0x473   :  { %v2406_v47 = vmul.f32 %v2396_v20, %v2388_v43  ;;  %2751 = vmatpush.msrb.mxu2 %v2744_v16  ;;  %v2873_v16 = vld [vmem:[#allocation22 + $0x198] sm:$0xff] }
 0x474   :  { %v2407_v4 = vmul.f32 %v2397_v27, %v2389_v28  ;;  %v2423_v34 = vadd.f32 %v2413_v61, %v2405_v46  ;;  %2634 = vmatpush.msrb.mxu3 %v2610_v55  ;;  %2680 = vmatpush.msrb.mxu1 %v2610_v55  ;;  %v5136_v61 = vld [vmem:[#allocation12 + $0x1] ss:$0 sm:$0xff]  ;;  %v2791_v55 = vld [vmem:[#allocation19 + $0x8] sm:$0xff] }
 0x475   :  { %v2424_v56 = vadd.f32 %v2414_v51, %v2406_v47  ;;  %2752 = vmatpush.msrb.mxu2 %v2743_v12  ;;  %v5137_v51 = vld [vmem:[#allocation12 + $0x2] ss:$0 sm:$0xff]  ;;  %v2857_v12 = vld [vmem:[#allocation22 + $0x118] sm:$0xff] }
 0x476   :  { %2559 = vmatmul.f32.vlgmr.msrb.gmra.mxu0 %v2423_v34  ;;  %v2425_v33 = vadd.f32 %v2415_v57, %v2407_v4  ;;  %2635 = vmatpush.msrb.mxu3 %v2609_v52  ;;  %v2793_v57 = vld [vmem:[#allocation19 + $0x18] sm:$0xff]  ;;  %v2792_v47 = vld [vmem:[#allocation19 + $0x10] sm:$0xff] }
 0x477   :  { %2579 = vmatmul.f32.vlgmr.msra.gmra.mxu1 %v2424_v56  ;;  %2708 = vmatpush.msrb.mxu0 %v2622_v19  ;;  %v5138_v4 = vld [vmem:[#allocation18] ss:$0 sm:$0xff]  ;;  %v2884_v19 = vld [vmem:[#allocation22 + $0x1f0] sm:$0xff] }
 0x478   :  { %5083 = vmatmul.msk.f32.vlgmr.msra.gmra.mxu2 %vm1909_vm5, %v2425_v33  ;;  %2681 = vmatpush.msrb.mxu1 %v2609_v52  ;;  %v2790_v52 = vld [vmem:[#allocation19] sm:$0xff] }
 0x479   :  { %2636 = vmatpush.msrb.mxu3 %v2608_v15  ;;  %2753 = vmatpush.msrb.mxu2 %v2742_v22  ;;  %v2868_v22 = vld [vmem:[#allocation22 + $0x170] sm:$0xff] }
 0x47a   :  { %2682 = vmatpush.msrb.mxu1 %v2608_v15  ;;  %v2897_v15 = vld [vmem:[#allocation22 + $0x258] sm:$0xff] }
 0x47b   :  { %2637 = vmatpush.msrb.mxu3 %v2607_v26  ;;  %2754 = vmatpush.msrb.mxu2 %v2741_v36  ;;  %v2869_v36 = vld [vmem:[#allocation22 + $0x178] sm:$0xff] }
 0x47c   :  { %2683 = vmatpush.msrb.mxu1 %v2607_v26  ;;  %v2892_v26 = vld [vmem:[#allocation22 + $0x230] sm:$0xff] }
 0x47d   :  { %2638 = vmatpush.msrb.mxu3 %v2606_v44  ;;  %2755 = vmatpush.msrb.mxu2 %v2740_v54  ;;  %v2870_v54 = vld [vmem:[#allocation22 + $0x180] sm:$0xff] }
 0x47e   :  { %2684 = vmatpush.msrb.mxu1 %v2606_v44  ;;  %v2887_v44 = vld [vmem:[#allocation22 + $0x208] sm:$0xff] }
 0x47f   :  { %2756 = vmatpush.msrb.mxu2 %v2739_v50  ;;  %v2852_v50 = vld [vmem:[#allocation22 + $0xf0] sm:$0xff] }
 0x481   :  { %2757 = vmatpush.msrb.mxu2 %v2738_v7  ;;  %v2863_v7 = vld [vmem:[#allocation22 + $0x148] sm:$0xff] }
 0x483   :  { %2758 = vmatpush.msrb.mxu2 %v2737_v45  ;;  %v2864_v45 = vld [vmem:[#allocation22 + $0x150] sm:$0xff] }
 0x485   :  { %2759 = vmatpush.msrb.mxu2 %v2736_v9  ;;  %v2865_v9 = vld [vmem:[#allocation22 + $0x158] sm:$0xff] }
 0x487   :  { %2760 = vmatpush.msrb.mxu2 %v2735_v18  ;;  %v2847_v18 = vld [vmem:[#allocation22 + $0xc8] sm:$0xff] }
 0x489   :  { %2761 = vmatpush.msrb.mxu2 %v2734_v25  ;;  %v2858_v25 = vld [vmem:[#allocation22 + $0x120] sm:$0xff] }
 0x48b   :  { %2762 = vmatpush.msrb.mxu2 %v2733_v39  ;;  %v2859_v39 = vld [vmem:[#allocation22 + $0x128] sm:$0xff] }
 0x48d   :  { %2763 = vmatpush.msrb.mxu2 %v2732_v35  ;;  %v2860_v35 = vld [vmem:[#allocation22 + $0x130] sm:$0xff] }
 0x48f   :  { %2764 = vmatpush.msrb.mxu2 %v2731_v62  ;;  %v2842_v62 = vld [vmem:[#allocation22 + $0xa0] sm:$0xff] }
 0x491   :  { %2765 = vmatpush.msrb.mxu2 %v2730_v32  ;;  %v2853_v32 = vld [vmem:[#allocation22 + $0xf8] sm:$0xff] }
 0x4f2   :  { %v2520_v24 = vpop.f32.mrf.mxu2 }
 0x4f3   :  { %v2521_v0 = vadd.f32 %v5135_v58, %v2520_v24  ;;  %v2540_v60 = vpop.f32.mrf.mxu3  ;;  %v2560_v31 = vpop.f32.mrf.mxu0  ;;  %v2882_v58 = vld [vmem:[#allocation22 + $0x1e0] sm:$0xff] }
 0x4f4   :  { %v2580_v1 = vpop.f32.mrf.mxu1  ;;  %v2898_v24 = vld [vmem:[#allocation22 + $0x260] sm:$0xff] }
 0x4f5   :  { %v2541_v13 = vadd.f32 %v2540_v60, %v2521_v0  ;;  %v2899_v0 = vld [vmem:[#allocation22 + $0x268] sm:$0xff]  ;;  %v2900_v60 = vld [vmem:[#allocation22 + $0x270] sm:$0xff]  ;;  %2934 = vmatpush.msra.mxu3 %v2898_v24 }
 0x4f6   :  { %2954 = vmatpush.msra.mxu1 %v2899_v0  ;;  %2974 = vmatpush.msra.mxu2 %v2900_v60  ;;  %v2876_v24 = vld [vmem:[#allocation22 + $0x1b0] sm:$0xff]  ;;  %v2871_v0 = vld [vmem:[#allocation22 + $0x188] sm:$0xff]  ;;  %v2866_v60 = vld [vmem:[#allocation22 + $0x160] sm:$0xff] }
 0x4f7   :  { %v2561_v48 = vadd.f32 %v2560_v31, %v2541_v13  ;;  %v2893_v13 = vld [vmem:[#allocation22 + $0x238] sm:$0xff]  ;;  %v2894_v31 = vld [vmem:[#allocation22 + $0x240] sm:$0xff] }
 0x4f8   :  { %2935 = vmatpush.msra.mxu3 %v2893_v13  ;;  %2955 = vmatpush.msra.mxu1 %v2894_v31  ;;  %v2861_v13 = vld [vmem:[#allocation22 + $0x138] sm:$0xff]  ;;  %v2856_v31 = vld [vmem:[#allocation22 + $0x110] sm:$0xff] }
 0x4f9   :  { %v2581_v6 = vadd.f32 %v2580_v1, %v2561_v48  ;;  %v2877_v48 = vld [vmem:[#allocation22 + $0x1b8] sm:$0xff]  ;;  %v2895_v1 = vld [vmem:[#allocation22 + $0x248] sm:$0xff] }
 0x4fa   :  { %2975 = vmatpush.msra.mxu2 %v2895_v1  ;;  %v2829_v1 = vld [vmem:[#allocation22 + $0x38] sm:$0xff] }
 0x4fb   :  { %v2600_v2 = vpop.f32.mrf.mxu2 }
 0x4fc   :  { %v2601_v10 = vadd.f32 %v2600_v2, %v2581_v6  ;;  %v2888_v6 = vld [vmem:[#allocation22 + $0x210] sm:$0xff]  ;;  %v2889_v2 = vld [vmem:[#allocation22 + $0x218] sm:$0xff] }
 0x4fd   :  { %2936 = vmatpush.msra.mxu3 %v2888_v6  ;;  %2956 = vmatpush.msra.mxu1 %v2889_v2  ;;  %v2830_v6 = vld [vmem:[#allocation22 + $0x40] sm:$0xff]  ;;  %v2851_v2 = vld [vmem:[#allocation22 + $0xe8] sm:$0xff] }
 0x4fe   :  { %vm2603_vm8 = vcmp.ge.f32.partialorder %v2601_v10, 0.0  ;;  %v2604_v53 = vmul.f32 0.1, %v2601_v10 }
 0x4ff   :  { %2957 = vmatpush.msra.mxu1 %v2884_v19  ;;  %v2846_v19 = vld [vmem:[#allocation22 + $0xc0] sm:$0xff] }
 0x500   :  { %v2605_v40 = vsel %vm2603_vm8, %v2601_v10, %v2604_v53  ;;  %v2890_v10 = vld [vmem:[#allocation22 + $0x220] sm:$0xff]  ;;  %v2872_v53 = vld [vmem:[#allocation22 + $0x190] sm:$0xff] }
 0x501   :  { %2639 = vmatmul.f32.vlgmr.msrb.gmra.mxu3 %v2605_v40  ;;  %2976 = vmatpush.msra.mxu2 %v2890_v10  ;;  %v2823_v10 = vld [vmem:[#allocation22 + $0x8] sm:$0xff] }
 0x584   :  { %v2640_v29 = vpop.f32.mrf.mxu3 }
 0x585   :  { %v2643_v37 = vmul.f32 0.0625, %v2640_v29  ;;  %v2885_v29 = vld [vmem:[#allocation22 + $0x1f8] sm:$0xff] }
 0x586   :  { %2977 = vmatpush.msra.mxu2 %v2885_v29  ;;  %v2841_v29 = vld [vmem:[#allocation22 + $0x98] sm:$0xff] }
 0x587   :  { %5084 = vmatmul.msk.f32.vlgmr.msra.gmra.mxu0 %vm2014_vm6, %v2643_v37  ;;  %v2867_v37 = vld [vmem:[#allocation22 + $0x168] sm:$0xff] }
 0x588   :  { %2814 = vmatpush.msra.mxu0 %v2793_v57  ;;  %v2845_v57 = vld [vmem:[#allocation22 + $0xb8] sm:$0xff] }
 0x58a   :  { %2815 = vmatpush.msra.mxu0 %v2792_v47  ;;  %v2838_v47 = vld [vmem:[#allocation22 + $0x80] sm:$0xff] }
 0x58c   :  { %2816 = vmatpush.msra.mxu0 %v2791_v55  ;;  %v2835_v55 = vld [vmem:[#allocation22 + $0x68] sm:$0xff] }
 0x58e   :  { %2817 = vmatpush.msra.mxu0 %v2790_v52 }
 0x604   :  { %v2664_v42 = vpop.f32.mrf.mxu0 }
 0x605   :  { %v2667_v41 = vsub.f32 %v2605_v40, %v2664_v42  ;;  %v2883_v40 = vld [vmem:[#allocation22 + $0x1e8] sm:$0xff]  ;;  %v2878_v42 = vld [vmem:[#allocation22 + $0x1c0] sm:$0xff] }
 0x606   :  { %2937 = vmatpush.msra.mxu3 %v2883_v40  ;;  %v2825_v40 = vld [vmem:[#allocation22 + $0x18] sm:$0xff] }
 0x607   :  { %v2668_v14 = vmul.f32 %v2667_v41, %v2667_v41 }
 0x608   :  { %2938 = vmatpush.msra.mxu3 %v2878_v42  ;;  %v2831_v42 = vld [vmem:[#allocation22 + $0x48] sm:$0xff] }
 0x609   :  { %2685 = vmatmul.f32.vlgmr.msrb.gmra.mxu1 %v2668_v14  ;;  %v2880_v14 = vld [vmem:[#allocation22 + $0x1d0] sm:$0xff] }
 0x60a   :  { %2978 = vmatpush.msra.mxu2 %v2880_v14  ;;  %2939 = vmatpush.msra.mxu3 %v2873_v16  ;;  %v6452_v14 = vld [vmem:[#allocation25 + $0x78] sm:$0xff] }
 0x60b   :  { %v6457_v16 = vld [vmem:[#allocation25 + $0x178] sm:$0xff] }
 0x60c   :  { %2940 = vmatpush.msra.mxu3 %v2868_v22  ;;  %v6467_v22 = vld [vmem:[#allocation25 + $0xf8] sm:$0xff] }
 0x60e   :  { %2941 = vmatpush.msra.mxu3 %v2863_v7  ;;  %v6478_v7 = vld [vmem:[#allocation25 + $0x58] sm:$0xff] }
 0x610   :  { %2942 = vmatpush.msra.mxu3 %v2858_v25  ;;  %v6489_v25 = vld [vmem:[#allocation25 + $0x50] sm:$0xff] }
 0x612   :  { %2943 = vmatpush.msra.mxu3 %v2853_v32  ;;  %v6503_v32 = vld [vmem:[#allocation25 + $0x148] sm:$0xff] }
 0x686   :  { %v2686_v59 = vpop.f32.mrf.mxu1 }
 0x687   :  { %v2689_v63 = vmul.f32 0.0625, %v2686_v59  ;;  %v2874_v59 = vld [vmem:[#allocation22 + $0x1a0] sm:$0xff] }
 0x689   :  { %5085 = vmatmul.msk.f32.vlgmr.msrb.gmra.mxu0 %vm2014_vm6, %v2689_v63  ;;  %v2875_v63 = vld [vmem:[#allocation22 + $0x1a8] sm:$0xff] }
 0x68a   :  { %2914 = vmatpush.msrb.mxu0 %v2897_v15  ;;  %2979 = vmatpush.msra.mxu2 %v2875_v63  ;;  %v2896_v15 = vld [vmem:[#allocation22 + $0x250] sm:$0xff]  ;;  %v6462_v63 = vld [vmem:[#allocation25 + $0x170] sm:$0xff] }
 0x68c   :  { %2915 = vmatpush.msrb.mxu0 %v2892_v26  ;;  %2980 = vmatpush.msra.mxu2 %v2870_v54  ;;  %v2891_v26 = vld [vmem:[#allocation22 + $0x228] sm:$0xff] }
 0x68d   :  { %v6473_v54 = vld [vmem:[#allocation25 + $0xf0] sm:$0xff] }
 0x68e   :  { %2916 = vmatpush.msrb.mxu0 %v2887_v44  ;;  %2981 = vmatpush.msra.mxu2 %v2865_v9  ;;  %v2886_v44 = vld [vmem:[#allocation22 + $0x200] sm:$0xff]  ;;  %v6485_v9 = vld [vmem:[#allocation25 + $0x158] sm:$0xff] }
 0x690   :  { %2917 = vmatpush.msrb.mxu0 %v2882_v58  ;;  %2982 = vmatpush.msra.mxu2 %v2860_v35  ;;  %v2881_v58 = vld [vmem:[#allocation22 + $0x1d8] sm:$0xff]  ;;  %v6496_v35 = vld [vmem:[#allocation25 + $0xd8] sm:$0xff] }
 0x692   :  { %2918 = vmatpush.msrb.mxu0 %v2877_v48  ;;  %v2828_v48 = vld [vmem:[#allocation22 + $0x30] sm:$0xff] }
 0x694   :  { %2919 = vmatpush.msrb.mxu0 %v2872_v53  ;;  %v2824_v53 = vld [vmem:[#allocation22 + $0x10] sm:$0xff] }
 0x696   :  { %2920 = vmatpush.msrb.mxu0 %v2867_v37  ;;  %v2836_v37 = vld [vmem:[#allocation22 + $0x70] sm:$0xff] }
 0x698   :  { %2921 = vmatpush.msrb.mxu0 %v2862_v17  ;;  %v6454_v17 = vld [vmem:[#allocation25 + $0x70] sm:$0xff] }
 0x69a   :  { %2922 = vmatpush.msrb.mxu0 %v2857_v12  ;;  %v6465_v12 = vld [vmem:[#allocation25 + $0x168] sm:$0xff] }
 0x69c   :  { %2923 = vmatpush.msrb.mxu0 %v2852_v50  ;;  %v6476_v50 = vld [vmem:[#allocation25 + $0x160] sm:$0xff] }
 0x69e   :  { %2924 = vmatpush.msrb.mxu0 %v2847_v18  ;;  %v6487_v18 = vld [vmem:[#allocation25 + $0xe0] sm:$0xff] }
 0x6a0   :  { %2925 = vmatpush.msrb.mxu0 %v2842_v62  ;;  %v6498_v62 = vld [vmem:[#allocation25 + $0x48] sm:$0xff] }
 0x706   :  { %v2710_v21 = vpop.f32.mrf.mxu0 }
 0x707   :  { %v2711_v38 = vadd.f32 1e-05, %v2710_v21  ;;  %v2770_v21 = vld [vmem:[#allocation2] sm:$0x3] }
 0x709   :  { %5150 = vrsqrt.f32 %v2711_v38  ;;  %vm2719_vm10 = vweird.f32 %v2711_v38 }
 0x70f   :  { %v5151_v49 = vpop.eup %5150 }
 0x710   :  { %v2714_v11 = vmul.f32 %v5151_v49, %v2711_v38  ;;  %vm2720_vm9 = vweird.f32 %v5151_v49  ;;  %v2854_v38 = vld [vmem:[#allocation22 + $0x100] sm:$0xff] }
 0x711   :  { %vm2721_vm11 = vmor %vm2719_vm10, %vm2720_vm9 }
 0x712   :  { %v2715_v20 = vmul.f32 %v5151_v49, %v2714_v11  ;;  %v2837_v11 = vld [vmem:[#allocation22 + $0x78] sm:$0xff] }
 0x713   :  { %2926 = vmatpush.msrb.mxu0 %v2837_v11  ;;  %v6514_v11 = vld [vmem:[#allocation25 + $0xc8] sm:$0xff] }
 0x714   :  { %v2716_v30 = vmul.f32 0.5, %v2715_v20  ;;  %v2848_v20 = vld [vmem:[#allocation22 + $0xd0] sm:$0xff] }
 0x715   :  { %2944 = vmatpush.msra.mxu3 %v2848_v20  ;;  %v6516_v20 = vld [vmem:[#allocation25 + $0x38] sm:$0xff] }
 0x716   :  { %v2717_v3 = vsub.f32 1.5, %v2716_v30 }
 0x718   :  { %v2718_v27 = vmul.f32 %v5151_v49, %v2717_v3  ;;  %v2849_v3 = vld [vmem:[#allocation22 + $0xd8] sm:$0xff] }
 0x71a   :  { %v2722_v43 = vsel %vm2721_vm11, %v5151_v49, %v2718_v27  ;;  %v2855_v49 = vld [vmem:[#allocation22 + $0x108] sm:$0xff]  ;;  %v2850_v27 = vld [vmem:[#allocation22 + $0xe0] sm:$0xff] }
 0x71b   :  { %v2723_v23 = vmul.f32 %v2722_v43, %v2667_v41  ;;  %v2879_v41 = vld [vmem:[#allocation22 + $0x1c8] sm:$0xff]  ;;  %v2832_v43 = vld [vmem:[#allocation22 + $0x50] sm:$0xff]  ;;  %2983 = vmatpush.msra.mxu2 %v2855_v49 }
 0x71c   :  { %2958 = vmatpush.msra.mxu1 %v2879_v41  ;;  %2927 = vmatpush.msrb.mxu0 %v2832_v43  ;;  %v2826_v41 = vld [vmem:[#allocation22 + $0x20] sm:$0xff]  ;;  %v6512_v49 = vld [vmem:[#allocation25 + $0x140] sm:$0xff]  ;;  %v6532_v43 = vld [vmem:[#allocation25 + $0xb8] sm:$0xff] }
 0x71d   :  { %v2726_v28 = vmul.f32 %v5136_v61, %v2723_v23  ;;  %v2843_v23 = vld [vmem:[#allocation22 + $0xa8] sm:$0xff]  ;;  %2984 = vmatpush.msra.mxu2 %v2850_v27 }
 0x71e   :  { %2959 = vmatpush.msra.mxu1 %v2874_v59  ;;  %2945 = vmatpush.msra.mxu3 %v2843_v23  ;;  %v6459_v59 = vld [vmem:[#allocation25 + $0x68] sm:$0xff]  ;;  %v6525_v27 = vld [vmem:[#allocation25 + $0x30] sm:$0xff] }
 0x71f   :  { %v2729_v46 = vadd.f32 %v5137_v51, %v2726_v28  ;;  %v2844_v51 = vld [vmem:[#allocation22 + $0xb0] sm:$0xff]  ;;  %2985 = vmatpush.msra.mxu2 %v2845_v57  ;;  %v5139_v23 = vld [vmem:[#allocation21] ss:$0 sm:$0xff] }
 0x720   :  { %2960 = vmatpush.msra.mxu1 %v2869_v36  ;;  %2946 = vmatpush.msra.mxu3 %v2838_v47  ;;  %v6469_v36 = vld [vmem:[#allocation25 + $0x60] sm:$0xff] }
 0x721   :  { %2766 = vmatmul.f32.vlgmr.msrb.gmra.mxu2 %v2729_v46  ;;  %v2827_v46 = vld [vmem:[#allocation22 + $0x28] sm:$0xff]  ;;  %v6543_v57 = vld [vmem:[#allocation25 + $0x20] sm:$0xff] }
 0x722   :  { %2961 = vmatpush.msra.mxu1 %v2864_v45  ;;  %2928 = vmatpush.msrb.mxu0 %v2827_v46  ;;  %v6482_v45 = vld [vmem:[#allocation25 + $0xe8] sm:$0xff]  ;;  %v6541_v46 = vld [vmem:[#allocation25 + $0xb0] sm:$0xff] }
 0x724   :  { %2962 = vmatpush.msra.mxu1 %v2859_v39  ;;  %v6494_v39 = vld [vmem:[#allocation25 + $0x150] sm:$0xff] }
 0x726   :  { %2963 = vmatpush.msra.mxu1 %v2854_v38  ;;  %v6507_v38 = vld [vmem:[#allocation25 + $0x40] sm:$0xff] }
 0x728   :  { %2964 = vmatpush.msra.mxu1 %v2849_v3  ;;  %v6523_v3 = vld [vmem:[#allocation25 + $0xc0] sm:$0xff] }
 0x72a   :  { %2965 = vmatpush.msra.mxu1 %v2844_v51  ;;  %v6534_v51 = vld [vmem:[#allocation25 + $0x28] sm:$0xff] }
 0x7a4   :  { %v2767_v34 = vpop.f32.mrf.mxu2 }
 0x7a5   :  { %v6434_v56 = vadd.f32 %v5138_v4, %v2767_v34  ;;  %v2839_v4 = vld [vmem:[#allocation22 + $0x88] sm:$0xff]  ;;  %v2822_v34 = vld [vmem:[#allocation22] sm:$0xff] }
 0x7a6   :  { %2966 = vmatpush.msra.mxu1 %v2839_v4  ;;  %2929 = vmatpush.msrb.mxu0 %v2822_v34  ;;  %v6550_v34 = vld [vmem:[#allocation25 + $0x1f8] sm:$0xff] }
 0x7a7   :  { %v2771_v33 = vmul.f32 0.5, %v6434_v56  ;;  %2781 = vst.msk [vmem:[%s6973_s21] sm:$0x3] %vm2780_vm12, %v6434_v56 }
 0x7a9   :  { %v2772_v5 = vmul.f32 1.442695, %v2771_v33  ;;  %v2840_v33 = vld [vmem:[#allocation22 + $0x90] sm:$0xff] }
 0x7aa   :  { %2986 = vmatpush.msra.mxu2 %v2840_v33  ;;  %v6553_v33 = vld [vmem:[#allocation25 + $0x18] sm:$0xff] }
 0x7ab   :  { %5152 = vpow2.f32 %v2772_v5  ;;  %v2901_v5 = vld [vmem:[#allocation22 + $0x278] sm:$0xff] }
 0x7ac   :  { %2987 = vmatpush.msra.mxu2 %v2835_v55  ;;  %v6563_v55 = vld [vmem:[#allocation25 + $0x118] sm:$0xff] }
 0x7ae   :  { %2988 = vmatpush.msra.mxu2 %v2830_v6  ;;  %v6604_v6 = vld [vmem:[#allocation25 + $0x110] sm:$0xff] }
 0x7b0   :  { %2989 = vmatpush.msra.mxu2 %v2825_v40  ;;  %v6616_v40 = vld [vmem:[#allocation25 + $0x108] sm:$0xff] }
 0x7b1   :  { %v5153_v8 = vpop.eup %5152 }
 0x7b2   :  { %2775 = vrot.lane.b32.xlu0 %v5153_v8, %s5697_s7  ;;  %v2834_v8 = vld [vmem:[#allocation22 + $0x60] sm:$0xff]  ;;  %3149 = vmatpush.msrb.mxu2 %v6457_v16 }
 0x7b3   :  { %2967 = vmatpush.msra.mxu1 %v2834_v8  ;;  %v6559_v8 = vld [vmem:[#allocation25 + $0x10] sm:$0xff] }
 0x7b4   :  { %3150 = vmatpush.msrb.mxu2 %v6462_v63 }
 0x7b5   :  { %2968 = vmatpush.msra.mxu1 %v2829_v1  ;;  %v6602_v1 = vld [vmem:[#allocation25 + $0xa8] sm:$0xff] }
 0x7b6   :  { %3151 = vmatpush.msrb.mxu2 %v6465_v12 }
 0x7b7   :  { %2969 = vmatpush.msra.mxu1 %v2824_v53  ;;  %v6614_v53 = vld [vmem:[#allocation25 + $0xa0] sm:$0xff] }
 0x7b8   :  { %3152 = vmatpush.msrb.mxu2 %v6476_v50 }
 0x7b9   :  { %3129 = vmatpush.msrb.mxu1 %v6467_v22 }
 0x7ba   :  { %2783 = vrot.lane.b32.xlu0 %v6434_v56, %s5697_s7  ;;  %3153 = vmatpush.msrb.mxu2 %v6485_v9 }
 0x7bb   :  { %3130 = vmatpush.msrb.mxu1 %v6473_v54 }
 0x7bc   :  { %3154 = vmatpush.msrb.mxu2 %v6494_v39 }
 0x7bd   :  { %3131 = vmatpush.msrb.mxu1 %v6482_v45 }
 0x7be   :  { %3155 = vmatpush.msrb.mxu2 %v6503_v32 }
 0x7bf   :  { %3132 = vmatpush.msrb.mxu1 %v6487_v18 }
 0x7c0   :  { %3156 = vmatpush.msrb.mxu2 %v6512_v49 }
 0x7c1   :  { %3133 = vmatpush.msrb.mxu1 %v6496_v35 }
 0x824   :  { %v2776_v30 = vpop.permute.xlu0 %2775 }
 0x825   :  { %v2778_v61 = vmul.f32 %v2776_v30, %v2770_v21  ;;  %v6505_v21 = vld [vmem:[#allocation25 + $0xd0] sm:$0xff]  ;;  %v6521_v30 = vld [vmem:[#allocation25 + $0x138] sm:$0xff] }
 0x826   :  { %3134 = vmatpush.msrb.mxu1 %v6505_v21  ;;  %3157 = vmatpush.msrb.mxu2 %v6521_v30 }
 0x827   :  { %v2779_v28 = vadd.f32 %v2778_v61, %v6434_v56  ;;  %v2833_v56 = vld [vmem:[#allocation22 + $0x58] sm:$0xff]  ;;  %v6530_v61 = vld [vmem:[#allocation25 + $0x130] sm:$0xff] }
 0x828   :  { %2947 = vmatpush.msra.mxu3 %v2833_v56  ;;  %3135 = vmatpush.msrb.mxu1 %v6514_v11  ;;  %v6557_v56 = vld [vmem:[#allocation25 + $0x1f0] sm:$0xff] }
 0x829   :  { %5088 = vmatmul.msk.f32.vlgmr.msra.gmra.mxu0 %vm2798_vm13, %v2779_v28  ;;  %5087 = vst.msk [vmem:[%s6973_s21 + $0x4] sm:$0x3] %vm2780_vm12, %v2779_v28  ;;  %v6539_v28 = vld [vmem:[#allocation25 + $0x128] sm:$0xff]  ;;  %3158 = vmatpush.msrb.mxu2 %v6530_v61 }
 0x82a   :  { %2994 = vmatpush.msra.mxu0 %v2901_v5  ;;  %2948 = vmatpush.msra.mxu3 %v2828_v48  ;;  %v6555_v5 = vld [vmem:[#allocation25 + $0x120] sm:$0xff]  ;;  %v6598_v48 = vld [vmem:[#allocation25 + $0x1b0] sm:$0xff] }
 0x82b   :  { %3136 = vmatpush.msrb.mxu1 %v6523_v3  ;;  %3159 = vmatpush.msrb.mxu2 %v6539_v28  ;;  %7076 = vst [vmem:[#allocation44_spill] sm:$0xff] %v6598_v48 }
 0x82c   :  { %v2784_v52 = vpop.permute.xlu0 %2783  ;;  %2995 = vmatpush.msra.mxu0 %v2896_v15  ;;  %2949 = vmatpush.msra.mxu3 %v2823_v10  ;;  %v6567_v15 = vld [vmem:[#allocation25 + $0x8] sm:$0xff]  ;;  %v6610_v10 = vld [vmem:[#allocation25 + $0x230] sm:$0xff] }
 0x82d   :  { %5086 = vst.msk [vmem:[%s6973_s21 + $0x2] sm:$0x3] %vm2780_vm12, %v2784_v52  ;;  %3137 = vmatpush.msrb.mxu1 %v6532_v43  ;;  %v6565_v52 = vld [vmem:[#allocation25 + $0x1e8] sm:$0xff]  ;;  %3160 = vmatpush.msrb.mxu2 %v6555_v5 }
 0x82e   :  { %2996 = vmatpush.msra.mxu0 %v2891_v26  ;;  %3109 = vmatpush.msrb.mxu3 %v6452_v14  ;;  %v6572_v26 = vld [vmem:[#allocation25] sm:$0xff] }
 0x82f   :  { %3138 = vmatpush.msrb.mxu1 %v6541_v46  ;;  %3161 = vmatpush.msrb.mxu2 %v6563_v55 }
 0x830   :  { %2997 = vmatpush.msra.mxu0 %v2886_v44  ;;  %3110 = vmatpush.msrb.mxu3 %v6454_v17  ;;  %v6576_v44 = vld [vmem:[#allocation25 + $0x1e0] sm:$0xff] }
 0x831   :  { %3139 = vmatpush.msrb.mxu1 %v6602_v1  ;;  %3162 = vmatpush.msrb.mxu2 %v6604_v6 }
 0x832   :  { %2998 = vmatpush.msra.mxu0 %v2881_v58  ;;  %3111 = vmatpush.msrb.mxu3 %v6459_v59  ;;  %v6579_v58 = vld [vmem:[#allocation25 + $0x238] sm:$0xff] }
 0x833   :  { %3140 = vmatpush.msrb.mxu1 %v6614_v53  ;;  %3163 = vmatpush.msrb.mxu2 %v6616_v40 }
 0x834   :  { %2999 = vmatpush.msra.mxu0 %v2876_v24  ;;  %3112 = vmatpush.msrb.mxu3 %v6469_v36  ;;  %v6581_v24 = vld [vmem:[#allocation25 + $0x1d8] sm:$0xff] }
 0x835   :  { %7071 = vst [vmem:[#allocation42_spill] sm:$0xff] %v6581_v24 }
 0x836   :  { %3000 = vmatpush.msra.mxu0 %v2871_v0  ;;  %3113 = vmatpush.msrb.mxu3 %v6478_v7  ;;  %v6586_v0 = vld [vmem:[#allocation25 + $0x1d0] sm:$0xff] }
 0x837   :  { %7072 = vst [vmem:[#allocation41_spill] sm:$0xff] %v6586_v0 }
 0x838   :  { %3001 = vmatpush.msra.mxu0 %v2866_v60  ;;  %3114 = vmatpush.msrb.mxu3 %v6489_v25  ;;  %v6589_v60 = vld [vmem:[#allocation25 + $0x1c8] sm:$0xff] }
 0x839   :  { %7073 = vst [vmem:[#allocation45_spill] sm:$0xff] %v6589_v60 }
 0x83a   :  { %3002 = vmatpush.msra.mxu0 %v2861_v13  ;;  %3115 = vmatpush.msrb.mxu3 %v6498_v62  ;;  %v6592_v13 = vld [vmem:[#allocation25 + $0x1c0] sm:$0xff] }
 0x83b   :  { %7074 = vst [vmem:[#allocation43_spill] sm:$0xff] %v6592_v13 }
 0x83c   :  { %3003 = vmatpush.msra.mxu0 %v2856_v31  ;;  %3116 = vmatpush.msrb.mxu3 %v6507_v38  ;;  %v6595_v31 = vld [vmem:[#allocation25 + $0x1b8] sm:$0xff] }
 0x83d   :  { %7075 = vst [vmem:[#allocation48_spill] sm:$0xff] %v6595_v31 }
 0x83e   :  { %3004 = vmatpush.msra.mxu0 %v2851_v2  ;;  %3117 = vmatpush.msrb.mxu3 %v6516_v20  ;;  %v6606_v2 = vld [vmem:[#allocation25 + $0x1a8] sm:$0xff] }
 0x83f   :  { %7077 = vst [vmem:[#allocation50_spill] sm:$0xff] %v6606_v2 }
 0x840   :  { %3005 = vmatpush.msra.mxu0 %v2846_v19  ;;  %3118 = vmatpush.msrb.mxu3 %v6525_v27  ;;  %v6618_v19 = vld [vmem:[#allocation25 + $0x1a0] sm:$0xff] }
 0x841   :  { %7078 = vst [vmem:[#allocation46_spill] sm:$0xff] %v6618_v19 }
 0x842   :  { %3006 = vmatpush.msra.mxu0 %v2841_v29  ;;  %3119 = vmatpush.msrb.mxu3 %v6534_v51  ;;  %v6622_v29 = vld [vmem:[#allocation25 + $0x228] sm:$0xff] }
 0x844   :  { %3007 = vmatpush.msra.mxu0 %v2836_v37  ;;  %3120 = vmatpush.msrb.mxu3 %v6543_v57  ;;  %v6624_v37 = vld [vmem:[#allocation25 + $0x98] sm:$0xff] }
 0x845   :  { %3141 = vmatpush.msrb.mxu1 %v6624_v37 }
 0x846   :  { %3008 = vmatpush.msra.mxu0 %v2831_v42  ;;  %3121 = vmatpush.msrb.mxu3 %v6553_v33  ;;  %v6626_v42 = vld [vmem:[#allocation25 + $0x100] sm:$0xff] }
 0x847   :  { %3164 = vmatpush.msrb.mxu2 %v6626_v42 }
 0x848   :  { %3009 = vmatpush.msra.mxu0 %v2826_v41  ;;  %3122 = vmatpush.msrb.mxu3 %v6559_v8  ;;  %v6630_v41 = vld [vmem:[#allocation25 + $0x198] sm:$0xff] }
 0x849   :  { %7079 = vst [vmem:[#allocation52_spill] sm:$0xff] %v6630_v41 }
 0x84a   :  { %3123 = vmatpush.msrb.mxu3 %v6567_v15 }
 0x84c   :  { %3124 = vmatpush.msrb.mxu3 %v6572_v26 }
 0x8a6   :  { %v2819_v47 = vpop.f32.mrf.mxu0 }
 0x8a7   :  { %v2820_v4 = vadd.f32 %v5139_v23, %v2819_v47  ;;  %v6632_v23 = vld [vmem:[#allocation25 + $0x220] sm:$0xff]  ;;  %v6638_v47 = vld [vmem:[#allocation25 + $0x90] sm:$0xff] }
 0x8a8   :  { %3142 = vmatpush.msrb.mxu1 %v6638_v47 }
 0x8a9   :  { %2930 = vmatmul.f32.vlgmr.msrb.gmra.mxu0 %v2820_v4  ;;  %2950 = vmatmul.f32.vlgmr.msra.gmra.mxu3 %v2820_v4 }
 0x8aa   :  { %2970 = vmatmul.f32.vlgmr.msra.gmra.mxu1 %v2820_v4  ;;  %2990 = vmatmul.f32.vlgmr.msra.gmra.mxu2 %v2820_v4 }
 0x8ab   :  { %3169 = vmatpush.msrb.mxu0 %v6550_v34  ;;  %3197 = vmatpush.msra.mxu3 %v6579_v58 }
 0x8ad   :  { %3170 = vmatpush.msrb.mxu0 %v6557_v56  ;;  %3198 = vmatpush.msra.mxu3 %v6610_v10 }
 0x8af   :  { %3171 = vmatpush.msrb.mxu0 %v6565_v52  ;;  %3199 = vmatpush.msra.mxu3 %v6622_v29 }
 0x8b1   :  { %3010 = vmatmul.f32.vlgmr.msra.gmra.mxu0 %v2820_v4  ;;  %3200 = vmatpush.msra.mxu3 %v6632_v23  ;;  %v6640_v4 = vld [vmem:[#allocation25 + $0x190] sm:$0xff] }
 0x8b2   :  { %3172 = vmatpush.msrb.mxu0 %v6576_v44  ;;  %7080 = vst [vmem:[#allocation47_spill] sm:$0xff] %v6640_v4 }
 0x8b4   :  { %3173 = vmatpush.msrb.mxu0 %v6581_v24 }
 0x8b6   :  { %3174 = vmatpush.msrb.mxu0 %v6586_v0 }
 0x8b8   :  { %3175 = vmatpush.msrb.mxu0 %v6589_v60  ;;  %v6660_v60 = vld [vmem:[#allocation25 + $0x208] sm:$0xff] }
 0x8ba   :  { %3176 = vmatpush.msrb.mxu0 %v6592_v13  ;;  %v6658_v13 = vld [vmem:[#allocation25 + $0x180] sm:$0xff] }
 0x8bb   :  { %7082 = vst [vmem:[#allocation49_spill] sm:$0xff] %v6658_v13 }
 0x8bc   :  { %3177 = vmatpush.msrb.mxu0 %v6595_v31  ;;  %v6651_v31 = vld [vmem:[#allocation25 + $0x210] sm:$0xff] }
 0x8be   :  { %3178 = vmatpush.msrb.mxu0 %v6598_v48  ;;  %v6649_v48 = vld [vmem:[#allocation25 + $0x188] sm:$0xff] }
 0x8bf   :  { %7081 = vst [vmem:[#allocation54_spill] sm:$0xff] %v6649_v48 }
 0x8c0   :  { %3179 = vmatpush.msrb.mxu0 %v6606_v2  ;;  %v6642_v2 = vld [vmem:[#allocation25 + $0x218] sm:$0xff] }
 0x8c1   :  { %3201 = vmatpush.msra.mxu3 %v6642_v2 }
 0x8c2   :  { %3180 = vmatpush.msrb.mxu0 %v6618_v19  ;;  %v6647_v19 = vld [vmem:[#allocation25 + $0x88] sm:$0xff] }
 0x8c3   :  { %3143 = vmatpush.msrb.mxu1 %v6647_v19  ;;  %3202 = vmatpush.msra.mxu3 %v6651_v31 }
 0x8c4   :  { %3181 = vmatpush.msrb.mxu0 %v6630_v41  ;;  %v6656_v41 = vld [vmem:[#allocation25 + $0x80] sm:$0xff] }
 0x8c5   :  { %3144 = vmatpush.msrb.mxu1 %v6656_v41  ;;  %3203 = vmatpush.msra.mxu3 %v6660_v60 }
 0x8c6   :  { %3182 = vmatpush.msrb.mxu0 %v6640_v4  ;;  %v6665_v4 = vld [vmem:[#allocation25 + $0x200] sm:$0xff] }
 0x8c7   :  { %7083 = vst [vmem:[#allocation56_spill] sm:$0xff] %v6665_v4  ;;  %3204 = vmatpush.msra.mxu3 %v6665_v4 }
 0x8c8   :  { %3183 = vmatpush.msrb.mxu0 %v6649_v48  ;;  %v2902_v48 = vld [vmem:[#allocation24] ss:$4 sm:$0x1f] }
 0x8c9   :  { %v2906_v0 = vperm.slane %v2902_v48, 2  ;;  %v2908_v4 = vperm.slane %v2902_v48, 4 }
 0x8ca   :  { %3184 = vmatpush.msrb.mxu0 %v6658_v13  ;;  %v2904_v13 = vperm.slane %v2902_v48, 0 }
 0x8cc   :  { %3366 = vmatpush.msra.mxu0 %v6457_v16 }
 0x8ce   :  { %3367 = vmatpush.msra.mxu0 %v6462_v63 }
 0x8d0   :  { %3368 = vmatpush.msra.mxu0 %v6465_v12 }
 0x8d2   :  { %3369 = vmatpush.msra.mxu0 %v6476_v50 }
 0x8d4   :  { %3370 = vmatpush.msra.mxu0 %v6485_v9  ;;  %v2905_v9 = vperm.slane %v2902_v48, 1 }
 0x8d6   :  { %3371 = vmatpush.msra.mxu0 %v6494_v39 }
 0x8d8   :  { %3372 = vmatpush.msra.mxu0 %v6503_v32  ;;  %v2907_v32 = vperm.slane %v2902_v48, 3 }
 0x8da   :  { %3373 = vmatpush.msra.mxu0 %v6512_v49 }
 0x8dc   :  { %3374 = vmatpush.msra.mxu0 %v6521_v30 }
 0x8de   :  { %3375 = vmatpush.msra.mxu0 %v6530_v61 }
 0x8e0   :  { %3376 = vmatpush.msra.mxu0 %v6539_v28 }
 0x8e2   :  { %3377 = vmatpush.msra.mxu0 %v6555_v5 }
 0x8e4   :  { %3378 = vmatpush.msra.mxu0 %v6563_v55 }
 0x8e6   :  { %3379 = vmatpush.msra.mxu0 %v6604_v6  ;;  %v3101_v6 = vld [vmem:[#allocation27] sm:$0xff] }
 0x8e7   :  { %3228 = vmatpush.msra.mxu1 %v3101_v6 }
 0x8e8   :  { %3380 = vmatpush.msra.mxu0 %v6616_v40  ;;  %v6702_v40 = vld [vmem:[#allocation27 + $0x18] sm:$0xff] }
 0x8ea   :  { %3381 = vmatpush.msra.mxu0 %v6626_v42  ;;  %v3102_v42 = vld [vmem:[#allocation27 + $0x8] sm:$0xff] }
 0x926   :  { %v2931_v16 = vpop.f32.mrf.mxu0 }
 0x927   :  { %v2932_v63 = vadd.f32 %v2931_v16, %v2904_v13  ;;  %v2971_v12 = vpop.f32.mrf.mxu1 }
 0x928   :  { %v2972_v24 = vadd.f32 %v2971_v12, %v2906_v0 }
 0x929   :  { %vm3014_vm14 = vcmp.ge.f32.partialorder %v2932_v63, 0.0  ;;  %v3019_v50 = vmul.f32 0.1, %v2932_v63 }
 0x92a   :  { %vm3016_vm15 = vcmp.ge.f32.partialorder %v2972_v24, 0.0  ;;  %v3021_v39 = vmul.f32 0.1, %v2972_v24 }
 0x92b   :  { %v6680_v49 = vsel %vm3014_vm14, %v2932_v63, %v3019_v50 }
 0x92c   :  { %v2951_v30 = vpop.f32.mrf.mxu3  ;;  %3125 = vmatmul.f32.vlgmr.msrb.gmra.mxu3 %v6680_v49  ;;  %v6683_v61 = vsel %vm3016_vm15, %v2972_v24, %v3021_v39  ;;  %v3829_v39 = vld [vmem:[#allocation28 + $0x680] sm:$0xff] }
 0x92d   :  { %v2952_v0 = vadd.f32 %v2951_v30, %v2905_v9  ;;  %v2991_v28 = vpop.f32.mrf.mxu2  ;;  %3165 = vmatmul.f32.vlgmr.msrb.gmra.mxu2 %v6683_v61  ;;  %3288 = vmatpush.msrb.mxu3 %v6702_v40  ;;  %v3837_v9 = vld [vmem:[#allocation28 + $0x6c0] sm:$0xff] }
 0x92e   :  { %v2992_v13 = vadd.f32 %v2991_v28, %v2907_v32  ;;  %v3011_v16 = vpop.f32.mrf.mxu0  ;;  %v3821_v32 = vld [vmem:[#allocation28 + $0x640] sm:$0xff] }
 0x92f   :  { %vm3015_vm0 = vcmp.ge.f32.partialorder %v2952_v0, 0.0  ;;  %v3020_v5 = vmul.f32 0.1, %v2952_v0  ;;  %v3012_v63 = vadd.f32 %v3011_v16, %v2908_v4  ;;  %v6700_v4 = vld [vmem:[#allocation27 + $0x10] sm:$0xff] }
 0x930   :  { %vm3017_vm1 = vcmp.ge.f32.partialorder %v2992_v13, 0.0  ;;  %v3022_v48 = vmul.f32 0.1, %v2992_v13  ;;  %3268 = vmatpush.msra.mxu2 %v6700_v4 }
 0x931   :  { %vm3018_vm2 = vcmp.ge.f32.partialorder %v3012_v63, 0.0  ;;  %v3023_v24 = vmul.f32 0.1, %v3012_v63  ;;  %v6689_v12 = vsel %vm3015_vm0, %v2952_v0, %v3020_v5  ;;  %v3813_v0 = vld [vmem:[#allocation28 + $0x600] sm:$0xff] }
 0x932   :  { %3145 = vmatmul.f32.vlgmr.msrb.gmra.mxu1 %v6689_v12  ;;  %v6692_v55 = vsel %vm3017_vm1, %v2992_v13, %v3022_v48  ;;  %3326 = vmatpush.msrb.mxu2 %v6452_v14  ;;  %v3741_v13 = vld [vmem:[#allocation28 + $0x3c0] sm:$0xff] }
 0x933   :  { %v6695_v50 = vsel %vm3018_vm2, %v3012_v63, %v3023_v24  ;;  %3185 = vmatmul.f32.vlgmr.msrb.gmra.mxu0 %v6692_v55  ;;  %3248 = vmatpush.msrb.mxu1 %v3102_v42  ;;  %v3805_v5 = vld [vmem:[#allocation28 + $0x5c0] sm:$0xff] }
 0x934   :  { %5089 = vmatmul.msk.f32.vlgmr.msra.gmra.mxu3 %vm1909_vm5, %v6695_v50  ;;  %3327 = vmatpush.msrb.mxu2 %v6454_v17  ;;  %v3733_v63 = vld [vmem:[#allocation28 + $0x380] sm:$0xff] }
 0x935   :  { %3346 = vmatpush.msra.mxu3 %v6467_v22  ;;  %3465 = vmatpush.msrb.mxu0 %v3102_v42  ;;  %v3797_v48 = vld [vmem:[#allocation28 + $0x580] sm:$0xff] }
 0x936   :  { %3328 = vmatpush.msrb.mxu2 %v6459_v59  ;;  %v3781_v42 = vld [vmem:[#allocation28 + $0x500] sm:$0xff] }
 0x937   :  { %3347 = vmatpush.msra.mxu3 %v6473_v54 }
 0x938   :  { %3329 = vmatpush.msrb.mxu2 %v6469_v36 }
 0x939   :  { %3348 = vmatpush.msra.mxu3 %v6482_v45 }
 0x93a   :  { %3330 = vmatpush.msrb.mxu2 %v6478_v7 }
 0x93b   :  { %3349 = vmatpush.msra.mxu3 %v6487_v18 }
 0x93c   :  { %3331 = vmatpush.msrb.mxu2 %v6489_v25 }
 0x93d   :  { %3350 = vmatpush.msra.mxu3 %v6496_v35  ;;  %v3105_v35 = vld [vmem:[#allocation27 + $0x20] sm:$0xff] }
 0x93e   :  { %3332 = vmatpush.msrb.mxu2 %v6498_v62  ;;  %v7084_v62 = vld [vmem:[#allocation56_spill] sm:$0xff] }
 0x93f   :  { %3351 = vmatpush.msra.mxu3 %v6505_v21  ;;  %v7085_v21 = vld [vmem:[#allocation42_spill] sm:$0xff] }
 0x940   :  { %3333 = vmatpush.msrb.mxu2 %v6507_v38  ;;  %v7086_v38 = vld [vmem:[#allocation41_spill] sm:$0xff] }
 0x941   :  { %3352 = vmatpush.msra.mxu3 %v6514_v11  ;;  %v7087_v11 = vld [vmem:[#allocation45_spill] sm:$0xff] }
 0x942   :  { %3334 = vmatpush.msrb.mxu2 %v6516_v20  ;;  %v7088_v20 = vld [vmem:[#allocation43_spill] sm:$0xff] }
 0x943   :  { %3353 = vmatpush.msra.mxu3 %v6523_v3  ;;  %v7089_v3 = vld [vmem:[#allocation48_spill] sm:$0xff] }
 0x944   :  { %3335 = vmatpush.msrb.mxu2 %v6525_v27  ;;  %v7090_v27 = vld [vmem:[#allocation44_spill] sm:$0xff] }
 0x945   :  { %3354 = vmatpush.msra.mxu3 %v6532_v43  ;;  %v7091_v43 = vld [vmem:[#allocation50_spill] sm:$0xff] }
 0x946   :  { %3336 = vmatpush.msrb.mxu2 %v6534_v51  ;;  %v7092_v51 = vld [vmem:[#allocation46_spill] sm:$0xff] }
 0x947   :  { %3355 = vmatpush.msra.mxu3 %v6541_v46  ;;  %v7093_v46 = vld [vmem:[#allocation52_spill] sm:$0xff] }
 0x948   :  { %3337 = vmatpush.msrb.mxu2 %v6543_v57  ;;  %v7094_v57 = vld [vmem:[#allocation47_spill] sm:$0xff] }
 0x949   :  { %3356 = vmatpush.msra.mxu3 %v6602_v1 }
 0x94a   :  { %3338 = vmatpush.msrb.mxu2 %v6553_v33  ;;  %v7096_v33 = vld [vmem:[#allocation49_spill] sm:$0xff] }
 0x94b   :  { %3357 = vmatpush.msra.mxu3 %v6614_v53 }
 0x94c   :  { %3339 = vmatpush.msrb.mxu2 %v6559_v8 }
 0x94d   :  { %3358 = vmatpush.msra.mxu3 %v6624_v37  ;;  %v3869_v37 = vld [vmem:[#allocation28 + $0x7c0] sm:$0xff] }
 0x94e   :  { %3340 = vmatpush.msrb.mxu2 %v6567_v15 }
 0x94f   :  { %3359 = vmatpush.msra.mxu3 %v6638_v47  ;;  %v3845_v47 = vld [vmem:[#allocation28 + $0x700] sm:$0xff] }
 0x950   :  { %3341 = vmatpush.msrb.mxu2 %v6572_v26 }
 0x951   :  { %3360 = vmatpush.msra.mxu3 %v6647_v19 }
 0x953   :  { %3361 = vmatpush.msra.mxu3 %v6656_v41  ;;  %v3861_v41 = vld [vmem:[#allocation28 + $0x780] sm:$0xff] }
 0x9af   :  { %v3126_v14 = vpop.f32.mrf.mxu3  ;;  %v3146_v17 = vpop.f32.mrf.mxu1 }
 0x9b0   :  { %v3147_v59 = vadd.f32 %v3146_v17, %v3126_v14  ;;  %v3166_v22 = vpop.f32.mrf.mxu2  ;;  %v3186_v54 = vpop.f32.mrf.mxu0  ;;  %v3709_v14 = vld [vmem:[#allocation28 + $0x2c0] sm:$0xff] }
 0x9b2   :  { %v3167_v36 = vadd.f32 %v3166_v22, %v3147_v59  ;;  %v3997_v59 = vld [vmem:[#allocation28 + $0xbc0] sm:$0xff] }
 0x9b3   :  { %v4125_v22 = vld [vmem:[#allocation28 + $0xfc0] sm:$0xff] }
 0x9b4   :  { %v3187_v7 = vadd.f32 %v3186_v54, %v3167_v36  ;;  %v3773_v36 = vld [vmem:[#allocation28 + $0x4c0] sm:$0xff] }
 0x9b5   :  { %v3989_v54 = vld [vmem:[#allocation28 + $0xb80] sm:$0xff] }
 0x9b7   :  { %v3206_v45 = vpop.f32.mrf.mxu3 }
 0x9b8   :  { %v3207_v18 = vadd.f32 %v3206_v45, %v3187_v7  ;;  %v3701_v7 = vld [vmem:[#allocation28 + $0x280] sm:$0xff] }
 0x9b9   :  { %v4117_v45 = vld [vmem:[#allocation28 + $0xf80] sm:$0xff] }
 0x9ba   :  { %v3209_v25 = vmul.f32 0.013888889, %v3207_v18  ;;  %v3765_v18 = vld [vmem:[#allocation28 + $0x480] sm:$0xff] }
 0x9bc   :  { %5090 = vmatmul.msk.f32.vlgmr.msra.gmra.mxu1 %vm2014_vm6, %v3209_v25  ;;  %5092 = vmatmul.msk.f32.vlgmr.msra.gmra.mxu2 %vm2014_vm6, %v3209_v25 }
 0x9bd   :  { %5093 = vmatmul.msk.f32.vlgmr.msrb.gmra.mxu3 %vm2014_vm6, %v3209_v25  ;;  %3308 = vmatpush.msra.mxu1 %v3105_v35 }
 0x9be   :  { %3414 = vmatpush.msra.mxu2 %v6579_v58  ;;  %3445 = vmatpush.msrb.mxu3 %v3101_v6 }
 0x9c0   :  { %3415 = vmatpush.msra.mxu2 %v6610_v10 }
 0x9c2   :  { %3416 = vmatpush.msra.mxu2 %v6622_v29 }
 0x9c4   :  { %5091 = vmatmul.msk.f32.vlgmr.msrb.gmra.mxu1 %vm2014_vm6, %v3209_v25  ;;  %3417 = vmatpush.msra.mxu2 %v6632_v23  ;;  %v3853_v23 = vld [vmem:[#allocation28 + $0x740] sm:$0xff] }
 0x9c5   :  { %3386 = vmatpush.msrb.mxu1 %v6550_v34  ;;  %v7095_v34 = vld [vmem:[#allocation54_spill] sm:$0xff] }
 0x9c6   :  { %3418 = vmatpush.msra.mxu2 %v6642_v2 }
 0x9c7   :  { %3387 = vmatpush.msrb.mxu1 %v6557_v56 }
 0x9c8   :  { %3419 = vmatpush.msra.mxu2 %v6651_v31 }
 0x9c9   :  { %3388 = vmatpush.msrb.mxu1 %v6565_v52 }
 0x9ca   :  { %3420 = vmatpush.msra.mxu2 %v6660_v60 }
 0x9cb   :  { %3389 = vmatpush.msrb.mxu1 %v6576_v44 }
 0x9cc   :  { %5094 = vmatmul.msk.f32.vlgmr.msra.gmra.mxu1 %vm2014_vm6, %v3209_v25  ;;  %3421 = vmatpush.msra.mxu2 %v7084_v62  ;;  %v3981_v25 = vld [vmem:[#allocation28 + $0xb40] sm:$0xff] }
 0x9cd   :  { %3390 = vmatpush.msrb.mxu1 %v7085_v21  ;;  %v4109_v62 = vld [vmem:[#allocation28 + $0xf40] sm:$0xff] }
 0x9ce   :  { %v3757_v21 = vld [vmem:[#allocation28 + $0x440] sm:$0xff] }
 0x9cf   :  { %3391 = vmatpush.msrb.mxu1 %v7086_v38  ;;  %v3973_v38 = vld [vmem:[#allocation28 + $0xb00] sm:$0xff] }
 0x9d1   :  { %3392 = vmatpush.msrb.mxu1 %v7087_v11  ;;  %v3965_v11 = vld [vmem:[#allocation28 + $0xac0] sm:$0xff] }
 0x9d3   :  { %3393 = vmatpush.msrb.mxu1 %v7088_v20  ;;  %v4101_v20 = vld [vmem:[#allocation28 + $0xf00] sm:$0xff] }
 0x9d5   :  { %3394 = vmatpush.msrb.mxu1 %v7089_v3  ;;  %v3749_v3 = vld [vmem:[#allocation28 + $0x400] sm:$0xff] }
 0x9d7   :  { %3395 = vmatpush.msrb.mxu1 %v7090_v27  ;;  %v3957_v27 = vld [vmem:[#allocation28 + $0xa80] sm:$0xff] }
 0x9d9   :  { %3396 = vmatpush.msrb.mxu1 %v7091_v43  ;;  %v4093_v43 = vld [vmem:[#allocation28 + $0xec0] sm:$0xff] }
 0x9db   :  { %3397 = vmatpush.msrb.mxu1 %v7092_v51  ;;  %v3742_v51 = vld [vmem:[#allocation28 + $0x3c8] sm:$0xff] }
 0x9dd   :  { %3398 = vmatpush.msrb.mxu1 %v7093_v46  ;;  %v3949_v46 = vld [vmem:[#allocation28 + $0xa40] sm:$0xff] }
 0x9df   :  { %3399 = vmatpush.msrb.mxu1 %v7094_v57  ;;  %v4085_v57 = vld [vmem:[#allocation28 + $0xe80] sm:$0xff] }
 0x9e1   :  { %3400 = vmatpush.msrb.mxu1 %v7095_v34  ;;  %v3734_v34 = vld [vmem:[#allocation28 + $0x388] sm:$0xff] }
 0x9e3   :  { %3401 = vmatpush.msrb.mxu1 %v7096_v33  ;;  %v3941_v33 = vld [vmem:[#allocation28 + $0xa00] sm:$0xff] }
 0x9e5   :  { %3485 = vmatpush.msra.mxu1 %v6700_v4  ;;  %v3717_v4 = vld [vmem:[#allocation28 + $0x300] sm:$0xff] }
 0xa39   :  { %v3230_v56 = vpop.f32.mrf.mxu1 }
 0xa3a   :  { %v6769_v8 = vsub.f32 %v6680_v49, %v3230_v56  ;;  %v4077_v56 = vld [vmem:[#allocation28 + $0xe40] sm:$0xff] }
 0xa3c   :  { %v3318_v52 = vmul.f32 %v6769_v8, %v6769_v8 }
 0xa3e   :  { %3342 = vmatmul.f32.vlgmr.msrb.gmra.mxu2 %v3318_v52  ;;  %v3933_v52 = vld [vmem:[#allocation28 + $0x9c0] sm:$0xff] }
 0xa3f   :  { %v3270_v15 = vpop.f32.mrf.mxu2  ;;  %4238 = vmatpush.msrb.mxu2 %v3869_v37  ;;  %v3893_v37 = vld [vmem:[#allocation28 + $0x880] sm:$0xff] }
 0xa40   :  { %v6774_v26 = vsub.f32 %v6683_v61, %v3270_v15  ;;  %v3290_v44 = vpop.f32.mrf.mxu3  ;;  %v4069_v15 = vld [vmem:[#allocation28 + $0xe00] sm:$0xff] }
 0xa41   :  { %v6777_v58 = vsub.f32 %v6692_v55, %v3290_v44  ;;  %v3250_v60 = vpop.f32.mrf.mxu1  ;;  %4239 = vmatpush.msrb.mxu2 %v3861_v41  ;;  %v3925_v44 = vld [vmem:[#allocation28 + $0x980] sm:$0xff] }
 0xa42   :  { %v3320_v31 = vmul.f32 %v6774_v26, %v6774_v26  ;;  %v6782_v1 = vsub.f32 %v6689_v12, %v3250_v60  ;;  %v3725_v12 = vld [vmem:[#allocation28 + $0x340] sm:$0xff] }
 0xa43   :  { %v3321_v2 = vmul.f32 %v6777_v58, %v6777_v58  ;;  %4240 = vmatpush.msrb.mxu2 %v3853_v23  ;;  %v4061_v60 = vld [vmem:[#allocation28 + $0xdc0] sm:$0xff] }
 0xa44   :  { %v3319_v10 = vmul.f32 %v6782_v1, %v6782_v1  ;;  %3382 = vmatmul.f32.vlgmr.msra.gmra.mxu0 %v3320_v31  ;;  %v3917_v31 = vld [vmem:[#allocation28 + $0x940] sm:$0xff] }
 0xa45   :  { %3402 = vmatmul.f32.vlgmr.msrb.gmra.mxu1 %v3321_v2  ;;  %3525 = vmatpush.msra.mxu0 %v3105_v35  ;;  %v3693_v35 = vld [vmem:[#allocation28 + $0x240] sm:$0xff] }
 0xa46   :  { %3362 = vmatmul.f32.vlgmr.msra.gmra.mxu3 %v3319_v10  ;;  %4241 = vmatpush.msrb.mxu2 %v3845_v47  ;;  %v4053_v2 = vld [vmem:[#allocation28 + $0xd80] sm:$0xff]  ;;  %v3870_v47 = vld [vmem:[#allocation28 + $0x7c8] sm:$0xff] }
 0xa47   :  { %3505 = vmatpush.msra.mxu3 %v6702_v40  ;;  %4218 = vmatpush.msrb.mxu1 %v3741_v13  ;;  %v3909_v10 = vld [vmem:[#allocation28 + $0x900] sm:$0xff] }
 0xa48   :  { %4242 = vmatpush.msrb.mxu2 %v3837_v9  ;;  %v3885_v41 = vld [vmem:[#allocation28 + $0x840] sm:$0xff]  ;;  %v3862_v9 = vld [vmem:[#allocation28 + $0x788] sm:$0xff] }
 0xa49   :  { %v3310_v53 = vpop.f32.mrf.mxu1  ;;  %4219 = vmatpush.msrb.mxu1 %v3733_v63  ;;  %v3877_v23 = vld [vmem:[#allocation28 + $0x800] sm:$0xff] }
 0xa4a   :  { %v6790_v19 = vsub.f32 %v6695_v50, %v3310_v53  ;;  %4243 = vmatpush.msrb.mxu2 %v3829_v39  ;;  %v3789_v50 = vld [vmem:[#allocation28 + $0x540] sm:$0xff]  ;;  %v3726_v39 = vld [vmem:[#allocation28 + $0x348] sm:$0xff] }
 0xa4b   :  { %4220 = vmatpush.msrb.mxu1 %v3725_v12  ;;  %v4045_v53 = vld [vmem:[#allocation28 + $0xd40] sm:$0xff]  ;;  %v3830_v12 = vld [vmem:[#allocation28 + $0x688] sm:$0xff] }
 0xa4c   :  { %v3322_v29 = vmul.f32 %v6790_v19, %v6790_v19  ;;  %4244 = vmatpush.msrb.mxu2 %v3821_v32  ;;  %v3854_v32 = vld [vmem:[#allocation28 + $0x748] sm:$0xff]  ;;  %v4029_v13 = vld [vmem:[#allocation28 + $0xcc0] sm:$0xff] }
 0xa4d   :  { %4221 = vmatpush.msrb.mxu1 %v3717_v4  ;;  %v3669_v63 = vld [vmem:[#allocation28 + $0x180] sm:$0xff]  ;;  %v3822_v4 = vld [vmem:[#allocation28 + $0x648] sm:$0xff] }
 0xa4e   :  { %5095 = vmatmul.msk.f32.vlgmr.msra.gmra.mxu2 %vm1909_vm5, %v3322_v29  ;;  %v3901_v29 = vld [vmem:[#allocation28 + $0x8c0] sm:$0xff] }
 0xa4f   :  { %4245 = vmatpush.msrb.mxu2 %v3813_v0  ;;  %4222 = vmatpush.msrb.mxu1 %v3709_v14  ;;  %v3846_v0 = vld [vmem:[#allocation28 + $0x708] sm:$0xff] }
 0xa50   :  { %v3686_v14 = vld [vmem:[#allocation28 + $0x208] sm:$0xff] }
 0xa51   :  { %4246 = vmatpush.msrb.mxu2 %v3805_v5  ;;  %4223 = vmatpush.msrb.mxu1 %v3701_v7  ;;  %v3838_v5 = vld [vmem:[#allocation28 + $0x6c8] sm:$0xff] }
 0xa52   :  { %v3990_v7 = vld [vmem:[#allocation28 + $0xb88] sm:$0xff] }
 0xa53   :  { %4247 = vmatpush.msrb.mxu2 %v3797_v48  ;;  %4224 = vmatpush.msrb.mxu1 %v3693_v35  ;;  %v4021_v48 = vld [vmem:[#allocation28 + $0xc80] sm:$0xff]  ;;  %v3982_v35 = vld [vmem:[#allocation28 + $0xb48] sm:$0xff] }
 0xa55   :  { %4248 = vmatpush.msrb.mxu2 %v3789_v50  ;;  %v4013_v50 = vld [vmem:[#allocation28 + $0xc40] sm:$0xff] }
 0xa57   :  { %4249 = vmatpush.msrb.mxu2 %v3781_v42  ;;  %v4005_v42 = vld [vmem:[#allocation28 + $0xc00] sm:$0xff] }
 0xa59   :  { %4250 = vmatpush.msrb.mxu2 %v3773_v36  ;;  %v3678_v36 = vld [vmem:[#allocation28 + $0x1c8] sm:$0xff] }
 0xa5b   :  { %4251 = vmatpush.msrb.mxu2 %v3765_v18  ;;  %v3670_v18 = vld [vmem:[#allocation28 + $0x188] sm:$0xff] }
 0xa5d   :  { %4252 = vmatpush.msrb.mxu2 %v3757_v21  ;;  %v3662_v21 = vld [vmem:[#allocation28 + $0x148] sm:$0xff] }
 0xa5f   :  { %4253 = vmatpush.msrb.mxu2 %v3749_v3  ;;  %v4189_v3 = vld [vmem:[#allocation28 + $0x11c0] sm:$0xff] }
 0xa61   :  { %4318 = vmatpush.msra.mxu2 %v3742_v51  ;;  %v3966_v51 = vld [vmem:[#allocation28 + $0xac8] sm:$0xff] }
 0xa63   :  { %4319 = vmatpush.msra.mxu2 %v3734_v34  ;;  %v3774_v34 = vld [vmem:[#allocation28 + $0x4c8] sm:$0xff] }
 0xa65   :  { %4320 = vmatpush.msra.mxu2 %v3726_v39  ;;  %v3918_v39 = vld [vmem:[#allocation28 + $0x948] sm:$0xff] }
 0xac1   :  { %v3343_v49 = vpop.f32.mrf.mxu2  ;;  %v3383_v28 = vpop.f32.mrf.mxu0 }
 0xac2   :  { %v3403_v24 = vpop.f32.mrf.mxu1 }
 0xac9   :  { %v3363_v30 = vpop.f32.mrf.mxu3 }
 0xaca   :  { %v3364_v61 = vadd.f32 %v3363_v30, %v3343_v49  ;;  %v3685_v49 = vld [vmem:[#allocation28 + $0x200] sm:$0xff] }
 0xacb   :  { %v4037_v30 = vld [vmem:[#allocation28 + $0xd00] sm:$0xff]  ;;  %4225 = vmatpush.msrb.mxu1 %v3685_v49 }
 0xacc   :  { %v3384_v16 = vadd.f32 %v3383_v28, %v3364_v61  ;;  %v3718_v61 = vld [vmem:[#allocation28 + $0x308] sm:$0xff]  ;;  %v3677_v28 = vld [vmem:[#allocation28 + $0x1c0] sm:$0xff] }
 0xacd   :  { %4321 = vmatpush.msra.mxu2 %v3718_v61  ;;  %4226 = vmatpush.msrb.mxu1 %v3677_v28  ;;  %v4133_v61 = vld [vmem:[#allocation28 + $0x1000] sm:$0xff] }
 0xace   :  { %v3404_v55 = vadd.f32 %v3403_v24, %v3384_v16  ;;  %v3710_v16 = vld [vmem:[#allocation28 + $0x2c8] sm:$0xff] }
 0xacf   :  { %4322 = vmatpush.msra.mxu2 %v3710_v16  ;;  %4227 = vmatpush.msrb.mxu1 %v3669_v63  ;;  %v3702_v24 = vld [vmem:[#allocation28 + $0x288] sm:$0xff] }
 0xad0   :  { %v3894_v16 = vld [vmem:[#allocation28 + $0x888] sm:$0xff] }
 0xad1   :  { %v3423_v6 = vpop.f32.mrf.mxu2  ;;  %4323 = vmatpush.msra.mxu2 %v3702_v24 }
 0xad2   :  { %v3424_v40 = vadd.f32 %v3423_v6, %v3404_v55  ;;  %v3661_v55 = vld [vmem:[#allocation28 + $0x140] sm:$0xff]  ;;  %v3694_v6 = vld [vmem:[#allocation28 + $0x248] sm:$0xff] }
 0xad3   :  { %4228 = vmatpush.msrb.mxu1 %v3661_v55  ;;  %4324 = vmatpush.msra.mxu2 %v3694_v6 }
 0xad4   :  { %v3426_v17 = vmul.f32 0.013888889, %v3424_v40  ;;  %v3653_v40 = vld [vmem:[#allocation28 + $0x100] sm:$0xff] }
 0xad5   :  { %4229 = vmatpush.msrb.mxu1 %v3653_v40  ;;  %4325 = vmatpush.msra.mxu2 %v3686_v14 }
 0xad6   :  { %5096 = vmatmul.msk.f32.vlgmr.msrb.gmra.mxu3 %vm2014_vm6, %v3426_v17  ;;  %5097 = vmatmul.msk.f32.vlgmr.msrb.gmra.mxu0 %vm2014_vm6, %v3426_v17 }
 0xad7   :  { %5098 = vmatmul.msk.f32.vlgmr.msra.gmra.mxu1 %vm2014_vm6, %v3426_v17  ;;  %4258 = vmatpush.msrb.mxu3 %v3997_v59  ;;  %v3998_v59 = vld [vmem:[#allocation28 + $0xbc8] sm:$0xff] }
 0xad8   :  { %4278 = vmatpush.msrb.mxu0 %v4125_v22  ;;  %v3645_v22 = vld [vmem:[#allocation28 + $0xc0] sm:$0xff]  ;;  %4326 = vmatpush.msra.mxu2 %v3678_v36 }
 0xad9   :  { %4259 = vmatpush.msrb.mxu3 %v3989_v54  ;;  %4230 = vmatpush.msrb.mxu1 %v3645_v22  ;;  %v3806_v54 = vld [vmem:[#allocation28 + $0x5c8] sm:$0xff] }
 0xada   :  { %4279 = vmatpush.msrb.mxu0 %v4117_v45  ;;  %v3637_v45 = vld [vmem:[#allocation28 + $0x80] sm:$0xff]  ;;  %4327 = vmatpush.msra.mxu2 %v3670_v18 }
 0xadb   :  { %4260 = vmatpush.msrb.mxu3 %v3981_v25  ;;  %4231 = vmatpush.msrb.mxu1 %v3637_v45  ;;  %v3798_v25 = vld [vmem:[#allocation28 + $0x588] sm:$0xff] }
 0xadc   :  { %4280 = vmatpush.msrb.mxu0 %v4109_v62  ;;  %v3629_v62 = vld [vmem:[#allocation28 + $0x40] sm:$0xff]  ;;  %4328 = vmatpush.msra.mxu2 %v3662_v21 }
 0xadd   :  { %4261 = vmatpush.msrb.mxu3 %v3973_v38  ;;  %4232 = vmatpush.msrb.mxu1 %v3629_v62  ;;  %v3790_v38 = vld [vmem:[#allocation28 + $0x548] sm:$0xff] }
 0xade   :  { %5099 = vmatmul.msk.f32.vlgmr.msra.gmra.mxu3 %vm2014_vm6, %v3426_v17  ;;  %5100 = vmatmul.msk.f32.vlgmr.msra.gmra.mxu0 %vm2014_vm6, %v3426_v17  ;;  %v3814_v17 = vld [vmem:[#allocation28 + $0x608] sm:$0xff] }
 0xadf   :  { %4262 = vmatpush.msrb.mxu3 %v3965_v11  ;;  %4281 = vmatpush.msrb.mxu0 %v4101_v20  ;;  %v3974_v11 = vld [vmem:[#allocation28 + $0xb08] sm:$0xff]  ;;  %v3621_v20 = vld [vmem:[#allocation28] sm:$0xff] }
 0xae0   :  { %4233 = vmatpush.msrb.mxu1 %v3621_v20  ;;  %v6805_v45 = vld [vmem:[#allocation24 + $0x1] ss:$4 sm:$0x1f]  ;;  %v6810_v21 = vld [vmem:[#allocation24 + $0x2] ss:$4 sm:$0x1f] }
 0xae1   :  { %4263 = vmatpush.msrb.mxu3 %v3957_v27  ;;  %4282 = vmatpush.msrb.mxu0 %v4093_v43  ;;  %v3654_v27 = vld [vmem:[#allocation28 + $0x108] sm:$0xff]  ;;  %v3589_v20 = vperm.slane %v6805_v45, 1 }
 0xae2   :  { %v3782_v43 = vld [vmem:[#allocation28 + $0x508] sm:$0xff]  ;;  %4306 = vmatpush.msra.mxu1 %v4189_v3  ;;  %4329 = vmatpush.msra.mxu2 %v3654_v27 }
 0xae3   :  { %4264 = vmatpush.msrb.mxu3 %v3949_v46  ;;  %4283 = vmatpush.msrb.mxu0 %v4085_v57  ;;  %v4181_v46 = vld [vmem:[#allocation28 + $0x1180] sm:$0xff]  ;;  %v3646_v57 = vld [vmem:[#allocation28 + $0xc8] sm:$0xff] }
 0xae4   :  { %4307 = vmatpush.msra.mxu1 %v4181_v46  ;;  %4330 = vmatpush.msra.mxu2 %v3646_v57 }
 0xae5   :  { %4265 = vmatpush.msrb.mxu3 %v3941_v33  ;;  %4284 = vmatpush.msrb.mxu0 %v4077_v56  ;;  %v3958_v33 = vld [vmem:[#allocation28 + $0xa88] sm:$0xff]  ;;  %v4173_v56 = vld [vmem:[#allocation28 + $0x1140] sm:$0xff] }
 0xae6   :  { %4308 = vmatpush.msra.mxu1 %v4173_v56  ;;  %v3608_v56 = vperm.slane %v6810_v21, 2 }
 0xae7   :  { %4266 = vmatpush.msrb.mxu3 %v3933_v52  ;;  %4285 = vmatpush.msrb.mxu0 %v4069_v15  ;;  %v3638_v52 = vld [vmem:[#allocation28 + $0x88] sm:$0xff] }
 0xae8   :  { %v3766_v15 = vld [vmem:[#allocation28 + $0x488] sm:$0xff]  ;;  %4331 = vmatpush.msra.mxu2 %v3638_v52 }
 0xae9   :  { %4267 = vmatpush.msrb.mxu3 %v3925_v44  ;;  %4286 = vmatpush.msrb.mxu0 %v4061_v60  ;;  %v3950_v44 = vld [vmem:[#allocation28 + $0xa48] sm:$0xff]  ;;  %v4165_v60 = vld [vmem:[#allocation28 + $0x1100] sm:$0xff] }
 0xaea   :  { %4309 = vmatpush.msra.mxu1 %v4165_v60 }
 0xaeb   :  { %4268 = vmatpush.msrb.mxu3 %v3917_v31  ;;  %4287 = vmatpush.msrb.mxu0 %v4053_v2  ;;  %v3630_v31 = vld [vmem:[#allocation28 + $0x48] sm:$0xff] }
 0xaec   :  { %v3758_v2 = vld [vmem:[#allocation28 + $0x448] sm:$0xff]  ;;  %4332 = vmatpush.msra.mxu2 %v3630_v31 }
 0xaed   :  { %4269 = vmatpush.msrb.mxu3 %v3909_v10  ;;  %4288 = vmatpush.msrb.mxu0 %v4045_v53  ;;  %v3942_v10 = vld [vmem:[#allocation28 + $0xa08] sm:$0xff]  ;;  %v4157_v53 = vld [vmem:[#allocation28 + $0x10c0] sm:$0xff] }
 0xaee   :  { %4310 = vmatpush.msra.mxu1 %v4157_v53 }
 0xaef   :  { %4270 = vmatpush.msrb.mxu3 %v3901_v29  ;;  %4289 = vmatpush.msrb.mxu0 %v4037_v30  ;;  %v3622_v29 = vld [vmem:[#allocation28 + $0x8] sm:$0xff] }
 0xaf0   :  { %4333 = vmatpush.msra.mxu2 %v3622_v29 }
 0xaf1   :  { %4271 = vmatpush.msrb.mxu3 %v3893_v37  ;;  %4290 = vmatpush.msrb.mxu0 %v4029_v13  ;;  %v3750_v37 = vld [vmem:[#allocation28 + $0x408] sm:$0xff] }
 0xaf2   :  { %v3902_v13 = vld [vmem:[#allocation28 + $0x8c8] sm:$0xff] }
 0xaf3   :  { %4272 = vmatpush.msrb.mxu3 %v3885_v41  ;;  %4291 = vmatpush.msrb.mxu0 %v4021_v48  ;;  %v3934_v41 = vld [vmem:[#allocation28 + $0x9c8] sm:$0xff] }
 0xaf4   :  { %v3886_v48 = vld [vmem:[#allocation28 + $0x848] sm:$0xff] }
 0xaf5   :  { %4273 = vmatpush.msrb.mxu3 %v3877_v23  ;;  %4292 = vmatpush.msrb.mxu0 %v4013_v50  ;;  %v4149_v23 = vld [vmem:[#allocation28 + $0x1080] sm:$0xff]  ;;  %v3878_v50 = vld [vmem:[#allocation28 + $0x808] sm:$0xff] }
 0xaf6   :  { %4311 = vmatpush.msra.mxu1 %v4149_v23 }
 0xaf7   :  { %4338 = vmatpush.msra.mxu3 %v3870_v47  ;;  %4293 = vmatpush.msrb.mxu0 %v4005_v42  ;;  %v3926_v47 = vld [vmem:[#allocation28 + $0x988] sm:$0xff] }
 0xaf9   :  { %4339 = vmatpush.msra.mxu3 %v3862_v9  ;;  %4358 = vmatpush.msra.mxu0 %v3998_v59  ;;  %v4141_v9 = vld [vmem:[#allocation28 + $0x1040] sm:$0xff] }
 0xafa   :  { %4312 = vmatpush.msra.mxu1 %v4141_v9 }
 0xafb   :  { %4340 = vmatpush.msra.mxu3 %v3854_v32  ;;  %4359 = vmatpush.msra.mxu0 %v3990_v7 }
 0xafc   :  { %4313 = vmatpush.msra.mxu1 %v4133_v61  ;;  %v4038_v61 = vld [vmem:[#allocation28 + $0xd08] sm:$0xff] }
 0xafd   :  { %4341 = vmatpush.msra.mxu3 %v3846_v0  ;;  %4360 = vmatpush.msra.mxu0 %v3982_v35  ;;  %v3910_v0 = vld [vmem:[#allocation28 + $0x908] sm:$0xff] }
 0xaff   :  { %4342 = vmatpush.msra.mxu3 %v3838_v5  ;;  %4361 = vmatpush.msra.mxu0 %v3974_v11 }
 0xb01   :  { %4343 = vmatpush.msra.mxu3 %v3830_v12  ;;  %4362 = vmatpush.msra.mxu0 %v3966_v51 }
 0xb03   :  { %4344 = vmatpush.msra.mxu3 %v3822_v4  ;;  %4363 = vmatpush.msra.mxu0 %v3958_v33 }
 0xb05   :  { %4345 = vmatpush.msra.mxu3 %v3814_v17  ;;  %4364 = vmatpush.msra.mxu0 %v3950_v44 }
 0xb07   :  { %4346 = vmatpush.msra.mxu3 %v3806_v54  ;;  %4365 = vmatpush.msra.mxu0 %v3942_v10 }
 0xb09   :  { %4347 = vmatpush.msra.mxu3 %v3798_v25  ;;  %4366 = vmatpush.msra.mxu0 %v3934_v41  ;;  %v4190_v41 = vld [vmem:[#allocation28 + $0x11c8] sm:$0xff] }
 0xb0b   :  { %4348 = vmatpush.msra.mxu3 %v3790_v38  ;;  %4367 = vmatpush.msra.mxu0 %v3926_v47 }
 0xb0d   :  { %4349 = vmatpush.msra.mxu3 %v3782_v43  ;;  %4368 = vmatpush.msra.mxu0 %v3918_v39  ;;  %v3590_v43 = vperm.slane %v6805_v45, 2  ;;  %v3743_v39 = vld [vmem:[#allocation28 + $0x3d0] sm:$0xff] }
 0xb0f   :  { %4350 = vmatpush.msra.mxu3 %v3774_v34  ;;  %4369 = vmatpush.msra.mxu0 %v3910_v0  ;;  %v3607_v34 = vperm.slane %v6810_v21, 1 }
 0xb11   :  { %4351 = vmatpush.msra.mxu3 %v3766_v15  ;;  %4370 = vmatpush.msra.mxu0 %v3902_v13 }
 0xb13   :  { %4352 = vmatpush.msra.mxu3 %v3758_v2  ;;  %4371 = vmatpush.msra.mxu0 %v3894_v16  ;;  %v4174_v16 = vld [vmem:[#allocation28 + $0x1148] sm:$0xff] }
 0xb15   :  { %4353 = vmatpush.msra.mxu3 %v3750_v37  ;;  %4372 = vmatpush.msra.mxu0 %v3886_v48 }
 0xb17   :  { %4373 = vmatpush.msra.mxu0 %v3878_v50  ;;  %v3592_v50 = vperm.slane %v6805_v45, 4 }
 0xb53   :  { %v3467_v32 = vpop.f32.mrf.mxu0 }
 0xb54   :  { %v3468_v49 = vadd.f32 1e-05, %v3467_v32  ;;  %v3487_v30 = vpop.f32.mrf.mxu1 }
 0xb55   :  { %v3488_v28 = vadd.f32 1e-05, %v3487_v30  ;;  %v4182_v30 = vld [vmem:[#allocation28 + $0x1188] sm:$0xff] }
 0xb56   :  { %5154 = vrsqrt.f32 %v3468_v49  ;;  %vm3546_vm4 = vweird.f32 %v3468_v49 }
 0xb57   :  { %5156 = vrsqrt.f32 %v3488_v28  ;;  %vm3556_vm8 = vweird.f32 %v3488_v28 }
 0xb59   :  { %v3447_v5 = vpop.f32.mrf.mxu3 }
 0xb5a   :  { %v3448_v63 = vadd.f32 1e-05, %v3447_v5 }
 0xb5b   :  { %v3527_v24 = vpop.f32.mrf.mxu0 }
 0xb5c   :  { %v5155_v12 = vpop.eup %5154  ;;  %5158 = vrsqrt.f32 %v3448_v63  ;;  %v6800_v55 = vadd.f32 1e-05, %v3527_v24  ;;  %vm3536_vm11 = vweird.f32 %v3448_v63  ;;  %v4126_v24 = vld [vmem:[#allocation28 + $0xfc8] sm:$0xff] }
 0xb5d   :  { %v5157_v6 = vpop.eup %5156  ;;  %v3541_v4 = vmul.f32 %v5155_v12, %v3468_v49  ;;  %vm3547_vm6 = vweird.f32 %v5155_v12  ;;  %v3606_v49 = vperm.slane %v6810_v21, 0 }
 0xb5e   :  { %v3551_v40 = vmul.f32 %v5157_v6, %v3488_v28  ;;  %5160 = vrsqrt.f32 %v6800_v55  ;;  %vm3557_vm3 = vweird.f32 %v5157_v6  ;;  %vm3548_vm7 = vmor %vm3546_vm4, %vm3547_vm6  ;;  %vm3576_vm14 = vweird.f32 %v6800_v55  ;;  %v3735_v28 = vld [vmem:[#allocation28 + $0x390] sm:$0xff] }
 0xb5f   :  { %v3542_v42 = vmul.f32 %v5155_v12, %v3541_v4  ;;  %vm3558_vm9 = vmor %vm3556_vm8, %vm3557_vm3  ;;  %v3719_v4 = vld [vmem:[#allocation28 + $0x310] sm:$0xff]  ;;  %vm5040_vm6 = vcmask 1041408   ;;  %vm5042_vm3 = vcmask 1045508   ;;  %vm5044_vm4 = vcmask 1043456  }
 0xb60   :  { %v3552_v14 = vmul.f32 %v5157_v6, %v3551_v40  ;;  %v3591_v40 = vperm.slane %v6805_v45, 3 }
 0xb61   :  { %v3543_v17 = vmul.f32 0.5, %v3542_v42  ;;  %v3507_v59 = vpop.f32.mrf.mxu3  ;;  %v4118_v42 = vld [vmem:[#allocation28 + $0xf88] sm:$0xff] }
 0xb62   :  { %v5159_v22 = vpop.eup %5158  ;;  %v3553_v36 = vmul.f32 0.5, %v3552_v14  ;;  %v6803_v54 = vadd.f32 1e-05, %v3507_v59  ;;  %v3711_v59 = vld [vmem:[#allocation28 + $0x2d0] sm:$0xff] }
 0xb63   :  { %v3544_v7 = vsub.f32 1.5, %v3543_v17  ;;  %v3531_v18 = vmul.f32 %v5159_v22, %v3448_v63  ;;  %vm3537_vm10 = vweird.f32 %v5159_v22  ;;  %v3727_v63 = vld [vmem:[#allocation28 + $0x350] sm:$0xff]  ;;  %v4158_v17 = vld [vmem:[#allocation28 + $0x10c8] sm:$0xff] }
 0xb64   :  { %v6807_v25 = vpop.eup %5160  ;;  %v3554_v35 = vsub.f32 1.5, %v3553_v36  ;;  %5162 = vrsqrt.f32 %v6803_v54  ;;  %vm3538_vm12 = vmor %vm3536_vm11, %vm3537_vm10  ;;  %vm3566_vm1 = vweird.f32 %v6803_v54  ;;  %v4110_v36 = vld [vmem:[#allocation28 + $0xf48] sm:$0xff] }
 0xb65   :  { %v3545_v62 = vmul.f32 %v5155_v12, %v3544_v7  ;;  %v3532_v38 = vmul.f32 %v5159_v22, %v3531_v18  ;;  %v3571_v11 = vmul.f32 %v6807_v25, %v6800_v55  ;;  %vm3577_vm13 = vweird.f32 %v6807_v25  ;;  %v3703_v18 = vld [vmem:[#allocation28 + $0x290] sm:$0xff] }
 0xb66   :  { %v3555_v3 = vmul.f32 %v5157_v6, %v3554_v35  ;;  %vm6833_vm15 = vmor %vm3576_vm14, %vm3577_vm13  ;;  %v3610_v7 = vperm.slane %v6810_v21, 4  ;;  %v4102_v35 = vld [vmem:[#allocation28 + $0xf08] sm:$0xff] }
 0xb67   :  { %v3549_v27 = vsel %vm3548_vm7, %v5155_v12, %v3545_v62  ;;  %v3533_v51 = vmul.f32 0.5, %v3532_v38  ;;  %v3572_v46 = vmul.f32 %v6807_v25, %v3571_v11  ;;  %v4166_v12 = vld [vmem:[#allocation28 + $0x1108] sm:$0xff]  ;;  %v3695_v62 = vld [vmem:[#allocation28 + $0x250] sm:$0xff] }
 0xb68   :  { %v3581_v57 = vmul.f32 %v3549_v27, %v6782_v1  ;;  %v3559_v33 = vsel %vm3558_vm9, %v5157_v6, %v3555_v3  ;;  %v3588_v1 = vperm.slane %v6805_v45, 0  ;;  %v4150_v45 = vld [vmem:[#allocation28 + $0x1088] sm:$0xff]  ;;  %v3687_v3 = vld [vmem:[#allocation28 + $0x210] sm:$0xff] }
 0xb69   :  { %v3582_v52 = vmul.f32 %v3559_v33, %v6774_v26  ;;  %v3534_v15 = vsub.f32 1.5, %v3533_v51  ;;  %v3573_v44 = vmul.f32 0.5, %v3572_v46  ;;  %v3871_v27 = vld [vmem:[#allocation28 + $0x7d0] sm:$0xff]  ;;  %v4086_v51 = vld [vmem:[#allocation28 + $0xe88] sm:$0xff] }
 0xb6a   :  { %v5163_v60 = vpop.eup %5162  ;;  %v3599_v31 = vmul.f32 %v3589_v20, %v3581_v57  ;;  %v4134_v20 = vld [vmem:[#allocation28 + $0x1008] sm:$0xff]  ;;  %v3679_v46 = vld [vmem:[#allocation28 + $0x1d0] sm:$0xff] }
 0xb6b   :  { %v3600_v2 = vmul.f32 %v3590_v43, %v3582_v52  ;;  %v3535_v10 = vmul.f32 %v5159_v22, %v3534_v15  ;;  %v3574_v53 = vsub.f32 1.5, %v3573_v44  ;;  %v3561_v29 = vmul.f32 %v5163_v60, %v6803_v54  ;;  %v4127_v43 = vld [vmem:[#allocation28 + $0xfd0] sm:$0xff]  ;;  %v4078_v33 = vld [vmem:[#allocation28 + $0xe48] sm:$0xff] }
 0xb6c   :  { %v6822_v37 = vadd.f32 %v3607_v34, %v3599_v31  ;;  %vm3567_vm0 = vweird.f32 %v5163_v60  ;;  %v3863_v57 = vld [vmem:[#allocation28 + $0x790] sm:$0xff]  ;;  %v4070_v44 = vld [vmem:[#allocation28 + $0xe08] sm:$0xff] }
 0xb6d   :  { %v6826_v26 = vadd.f32 %v3608_v56, %v3600_v2  ;;  %v3539_v23 = vsel %vm3538_vm12, %v5159_v22, %v3535_v10  ;;  %v3575_v47 = vmul.f32 %v6807_v25, %v3574_v53  ;;  %v3562_v9 = vmul.f32 %v5163_v60, %v3561_v29  ;;  %vm3568_vm2 = vmor %vm3566_vm1, %vm3567_vm0  ;;  %v4119_v34 = vld [vmem:[#allocation28 + $0xf90] sm:$0xff]  ;;  %v4062_v10 = vld [vmem:[#allocation28 + $0xdc8] sm:$0xff] }
 0xb6e   :  { %v3580_v32 = vmul.f32 %v3539_v23, %v6769_v8  ;;  %4254 = vmatmul.f32.vlgmr.msrb.gmra.mxu2 %v6822_v37  ;;  %v3609_v22 = vperm.slane %v6810_v21, 3  ;;  %v4094_v21 = vld [vmem:[#allocation28 + $0xec8] sm:$0xff]  ;;  %v3671_v56 = vld [vmem:[#allocation28 + $0x190] sm:$0xff] }
 0xb6f   :  { %v3563_v0 = vmul.f32 0.5, %v3562_v9  ;;  %4274 = vmatmul.f32.vlgmr.msrb.gmra.mxu3 %v6826_v26  ;;  %4406 = vmatpush.msrb.mxu2 %v4190_v41  ;;  %v3579_v8 = vsel %vm6833_vm15, %v6807_v25, %v3575_v47  ;;  %v3855_v52 = vld [vmem:[#allocation28 + $0x750] sm:$0xff]  ;;  %v4054_v41 = vld [vmem:[#allocation28 + $0xd88] sm:$0xff] }
 0xb70   :  { %v3598_v13 = vmul.f32 %v3588_v1, %v3580_v32  ;;  %4418 = vmatpush.msrb.mxu3 %v3743_v39  ;;  %v3584_v55 = vmul.f32 %v3579_v8, %v6790_v19  ;;  %v4111_v15 = vld [vmem:[#allocation28 + $0xf50] sm:$0xff]  ;;  %v4046_v39 = vld [vmem:[#allocation28 + $0xd48] sm:$0xff] }
 0xb71   :  { %v3564_v5 = vsub.f32 1.5, %v3563_v0  ;;  %4407 = vmatpush.msrb.mxu2 %v4182_v30  ;;  %v3847_v31 = vld [vmem:[#allocation28 + $0x710] sm:$0xff]  ;;  %v4030_v8 = vld [vmem:[#allocation28 + $0xcc8] sm:$0xff] }
 0xb72   :  { %v6841_v48 = vadd.f32 %v3606_v49, %v3598_v13  ;;  %4419 = vmatpush.msrb.mxu3 %v3735_v28  ;;  %v3602_v54 = vmul.f32 %v3592_v50, %v3584_v55  ;;  %v4103_v2 = vld [vmem:[#allocation28 + $0xf10] sm:$0xff] }
 0xb73   :  { %v3565_v6 = vmul.f32 %v5163_v60, %v3564_v5  ;;  %4408 = vmatpush.msrb.mxu2 %v4174_v16  ;;  %v3655_v53 = vld [vmem:[#allocation28 + $0x110] sm:$0xff] }
 0xb74   :  { %4420 = vmatpush.msrb.mxu3 %v3727_v63  ;;  %4234 = vmatmul.f32.vlgmr.msrb.gmra.mxu1 %v6841_v48  ;;  %v6855_v11 = vadd.f32 %v3610_v7, %v3602_v54  ;;  %v3839_v29 = vld [vmem:[#allocation28 + $0x6d0] sm:$0xff] }
 0xb75   :  { %v3569_v14 = vsel %vm3568_vm2, %v5163_v60, %v3565_v6  ;;  %4378 = vmatpush.msrb.mxu1 %v4126_v24  ;;  %4409 = vmatpush.msrb.mxu2 %v4166_v12  ;;  %v3663_v60 = vld [vmem:[#allocation28 + $0x150] sm:$0xff]  ;;  %v4022_v12 = vld [vmem:[#allocation28 + $0xc88] sm:$0xff] }
 0xb76   :  { %v3583_v19 = vmul.f32 %v3569_v14, %v6777_v58  ;;  %4421 = vmatpush.msrb.mxu3 %v3719_v4  ;;  %4334 = vmatmul.f32.vlgmr.msra.gmra.mxu2 %v6841_v48  ;;  %v4142_v58 = vld [vmem:[#allocation28 + $0x1048] sm:$0xff]  ;;  %v4095_v1 = vld [vmem:[#allocation28 + $0xed0] sm:$0xff] }
 0xb77   :  { %4354 = vmatmul.f32.vlgmr.msra.gmra.mxu3 %v6822_v37  ;;  %4379 = vmatpush.msrb.mxu1 %v4118_v42  ;;  %v3647_v23 = vld [vmem:[#allocation28 + $0xd0] sm:$0xff]  ;;  %v4014_v4 = vld [vmem:[#allocation28 + $0xc48] sm:$0xff] }
 0xb78   :  { %v3601_v25 = vmul.f32 %v3591_v40, %v3583_v19  ;;  %4410 = vmatpush.msrb.mxu2 %v4158_v17  ;;  %4422 = vmatpush.msrb.mxu3 %v3711_v59  ;;  %v3831_v47 = vld [vmem:[#allocation28 + $0x690] sm:$0xff]  ;;  %v4006_v17 = vld [vmem:[#allocation28 + $0xc08] sm:$0xff] }
 0xb79   :  { %4380 = vmatpush.msrb.mxu1 %v4110_v36  ;;  %v4087_v9 = vld [vmem:[#allocation28 + $0xe90] sm:$0xff] }
 0xb7a   :  { %v6853_v38 = vadd.f32 %v3609_v22, %v3601_v25  ;;  %4411 = vmatpush.msrb.mxu2 %v4150_v45  ;;  %4423 = vmatpush.msrb.mxu3 %v3703_v18  ;;  %v3639_v32 = vld [vmem:[#allocation28 + $0x90] sm:$0xff] }
 0xb7b   :  { %4381 = vmatpush.msrb.mxu1 %v4102_v35  ;;  %v3823_v49 = vld [vmem:[#allocation28 + $0x650] sm:$0xff] }
 0xb7c   :  { %4412 = vmatpush.msrb.mxu2 %v4142_v58  ;;  %4424 = vmatpush.msrb.mxu3 %v3695_v62  ;;  %v4079_v30 = vld [vmem:[#allocation28 + $0xe50] sm:$0xff] }
 0xb7d   :  { %4294 = vmatmul.f32.vlgmr.msrb.gmra.mxu0 %v6853_v38  ;;  %5101 = vmatmul.msk.f32.vlgmr.msra.gmra.mxu1 %vm1909_vm5, %v6855_v11  ;;  %v3631_v0 = vld [vmem:[#allocation28 + $0x50] sm:$0xff] }
 0xb7e   :  { %4382 = vmatpush.msrb.mxu1 %v4094_v21  ;;  %4413 = vmatpush.msrb.mxu2 %v4134_v20  ;;  %v3815_v28 = vld [vmem:[#allocation28 + $0x610] sm:$0xff] }
 0xb7f   :  { %4425 = vmatpush.msrb.mxu3 %v3687_v3  ;;  %4438 = vmatpush.msrb.mxu0 %v3871_v27  ;;  %v4071_v13 = vld [vmem:[#allocation28 + $0xe10] sm:$0xff] }
 0xb80   :  { %4478 = vmatpush.msra.mxu2 %v4127_v43  ;;  %4383 = vmatpush.msrb.mxu1 %v4086_v51  ;;  %v3623_v16 = vld [vmem:[#allocation28 + $0x10] sm:$0xff] }
 0xb81   :  { %5102 = vmatmul.msk.f32.vlgmr.msrb.gmra.mxu2 %vm1909_vm5, %v6855_v11  ;;  %4426 = vmatpush.msrb.mxu3 %v3679_v46  ;;  %v3807_v5 = vld [vmem:[#allocation28 + $0x5d0] sm:$0xff] }
 0xb82   :  { %4439 = vmatpush.msrb.mxu0 %v3863_v57  ;;  %4479 = vmatpush.msra.mxu2 %v4119_v34  ;;  %v4063_v63 = vld [vmem:[#allocation28 + $0xdd0] sm:$0xff]  ;;  %v3744_v34 = vld [vmem:[#allocation28 + $0x3d8] sm:$0xff] }
 0xb83   :  { %4384 = vmatpush.msrb.mxu1 %v4078_v33  ;;  %4427 = vmatpush.msrb.mxu3 %v3671_v56  ;;  %v4191_v24 = vld [vmem:[#allocation28 + $0x11d0] sm:$0xff]  ;;  %v4000_v33 = vld [vmem:[#allocation28 + $0xbd8] sm:$0xff] }
 0xb84   :  { %4440 = vmatpush.msrb.mxu0 %v3855_v52  ;;  %4480 = vmatpush.msra.mxu2 %v4111_v15  ;;  %v3799_v55 = vld [vmem:[#allocation28 + $0x590] sm:$0xff]  ;;  %v4128_v56 = vld [vmem:[#allocation28 + $0xfd8] sm:$0xff] }
 0xb85   :  { %4385 = vmatpush.msrb.mxu1 %v4070_v44  ;;  %4428 = vmatpush.msrb.mxu3 %v3663_v60  ;;  %v4055_v50 = vld [vmem:[#allocation28 + $0xd90] sm:$0xff]  ;;  %v3736_v15 = vld [vmem:[#allocation28 + $0x398] sm:$0xff] }
 0xb86   :  { %4441 = vmatpush.msrb.mxu0 %v3847_v31  ;;  %4481 = vmatpush.msra.mxu2 %v4103_v2  ;;  %v4183_v6 = vld [vmem:[#allocation28 + $0x1190] sm:$0xff]  ;;  %v3992_v44 = vld [vmem:[#allocation28 + $0xb98] sm:$0xff] }
 0xb87   :  { %4374 = vmatmul.f32.vlgmr.msra.gmra.mxu0 %v6826_v26  ;;  %4386 = vmatpush.msrb.mxu1 %v4062_v10  ;;  %v3791_v40 = vld [vmem:[#allocation28 + $0x550] sm:$0xff]  ;;  %v4120_v60 = vld [vmem:[#allocation28 + $0xf98] sm:$0xff] }
 0xb88   :  { %4429 = vmatpush.msrb.mxu3 %v3655_v53  ;;  %4442 = vmatpush.msrb.mxu0 %v3839_v29  ;;  %v4047_v42 = vld [vmem:[#allocation28 + $0xd50] sm:$0xff]  ;;  %v3728_v2 = vld [vmem:[#allocation28 + $0x358] sm:$0xff] }
 0xb89   :  { %4482 = vmatpush.msra.mxu2 %v4095_v1  ;;  %4387 = vmatpush.msrb.mxu1 %v4054_v41  ;;  %v4175_v14 = vld [vmem:[#allocation28 + $0x1150] sm:$0xff]  ;;  %v3984_v10 = vld [vmem:[#allocation28 + $0xb58] sm:$0xff] }
 0xb8a   :  { %4430 = vmatpush.msrb.mxu3 %v3647_v23  ;;  %4443 = vmatpush.msrb.mxu0 %v3831_v47  ;;  %v3783_v59 = vld [vmem:[#allocation28 + $0x510] sm:$0xff]  ;;  %v4112_v53 = vld [vmem:[#allocation28 + $0xf58] sm:$0xff] }
 0xb8b   :  { %4483 = vmatpush.msra.mxu2 %v4087_v9  ;;  %4388 = vmatpush.msrb.mxu1 %v4046_v39  ;;  %v3999_v19 = vld [vmem:[#allocation28 + $0xbd0] sm:$0xff]  ;;  %v3720_v1 = vld [vmem:[#allocation28 + $0x318] sm:$0xff] }
 0xb8c   :  { %4431 = vmatpush.msrb.mxu3 %v3639_v32  ;;  %4444 = vmatpush.msrb.mxu0 %v3823_v49  ;;  %v4039_v22 = vld [vmem:[#allocation28 + $0xd10] sm:$0xff]  ;;  %v3976_v41 = vld [vmem:[#allocation28 + $0xb18] sm:$0xff] }
 0xb8d   :  { %4484 = vmatpush.msra.mxu2 %v4079_v30  ;;  %4389 = vmatpush.msrb.mxu1 %v4038_v61  ;;  %v4167_v36 = vld [vmem:[#allocation28 + $0x1110] sm:$0xff]  ;;  %v4104_v23 = vld [vmem:[#allocation28 + $0xf18] sm:$0xff] }
 0xb8e   :  { %4432 = vmatpush.msrb.mxu3 %v3631_v0  ;;  %4445 = vmatpush.msrb.mxu0 %v3815_v28  ;;  %v3775_v54 = vld [vmem:[#allocation28 + $0x4d0] sm:$0xff]  ;;  %v3712_v9 = vld [vmem:[#allocation28 + $0x2d8] sm:$0xff] }
 0xb8f   :  { %4485 = vmatpush.msra.mxu2 %v4071_v13  ;;  %4390 = vmatpush.msrb.mxu1 %v4030_v8  ;;  %v3991_v7 = vld [vmem:[#allocation28 + $0xb90] sm:$0xff]  ;;  %v3968_v39 = vld [vmem:[#allocation28 + $0xad8] sm:$0xff] }
 0xb90   :  { %4433 = vmatpush.msrb.mxu3 %v3623_v16  ;;  %4446 = vmatpush.msrb.mxu0 %v3807_v5  ;;  %v4031_v45 = vld [vmem:[#allocation28 + $0xcd0] sm:$0xff]  ;;  %v4096_v32 = vld [vmem:[#allocation28 + $0xed8] sm:$0xff] }
 0xb91   :  { %4434 = vmatmul.f32.vlgmr.msrb.gmra.mxu3 %v6841_v48  ;;  %4486 = vmatpush.msra.mxu2 %v4063_v63  ;;  %v4159_v18 = vld [vmem:[#allocation28 + $0x10d0] sm:$0xff]  ;;  %v3704_v30 = vld [vmem:[#allocation28 + $0x298] sm:$0xff] }
 0xb92   :  { %4506 = vmatpush.msra.mxu3 %v4191_v24  ;;  %4391 = vmatpush.msrb.mxu1 %v4022_v12  ;;  %v3767_v25 = vld [vmem:[#allocation28 + $0x490] sm:$0xff]  ;;  %v3960_v61 = vld [vmem:[#allocation28 + $0xa98] sm:$0xff] }
 0xb93   :  { %4447 = vmatpush.msrb.mxu0 %v3799_v55  ;;  %4487 = vmatpush.msra.mxu2 %v4055_v50  ;;  %v3983_v35 = vld [vmem:[#allocation28 + $0xb50] sm:$0xff]  ;;  %v4088_v0 = vld [vmem:[#allocation28 + $0xe98] sm:$0xff] }
 0xb94   :  { %4507 = vmatpush.msra.mxu3 %v4183_v6  ;;  %4392 = vmatpush.msrb.mxu1 %v4014_v4  ;;  %v4023_v58 = vld [vmem:[#allocation28 + $0xc90] sm:$0xff]  ;;  %v3696_v13 = vld [vmem:[#allocation28 + $0x258] sm:$0xff] }
 0xb95   :  { %4448 = vmatpush.msrb.mxu0 %v3791_v40  ;;  %4488 = vmatpush.msra.mxu2 %v4047_v42  ;;  %v4151_v62 = vld [vmem:[#allocation28 + $0x1090] sm:$0xff]  ;;  %v3952_v8 = vld [vmem:[#allocation28 + $0xa58] sm:$0xff] }
 0xb96   :  { %4508 = vmatpush.msra.mxu3 %v4175_v14  ;;  %4393 = vmatpush.msrb.mxu1 %v4006_v17  ;;  %v3759_v21 = vld [vmem:[#allocation28 + $0x450] sm:$0xff]  ;;  %v4080_v16 = vld [vmem:[#allocation28 + $0xe58] sm:$0xff] }
 0xb97   :  { %4449 = vmatpush.msrb.mxu0 %v3783_v59  ;;  %4394 = vmatmul.f32.vlgmr.msrb.gmra.mxu1 %v6853_v38  ;;  %v3975_v20 = vld [vmem:[#allocation28 + $0xb10] sm:$0xff]  ;;  %v3688_v63 = vld [vmem:[#allocation28 + $0x218] sm:$0xff] }
 0xb98   :  { %4458 = vmatpush.msra.mxu1 %v3999_v19  ;;  %4489 = vmatpush.msra.mxu2 %v4039_v22  ;;  %v4015_v3 = vld [vmem:[#allocation28 + $0xc50] sm:$0xff]  ;;  %v3944_v24 = vld [vmem:[#allocation28 + $0xa18] sm:$0xff] }
 0xb99   :  { %4509 = vmatpush.msra.mxu3 %v4167_v36  ;;  %4450 = vmatpush.msrb.mxu0 %v3775_v54  ;;  %v4143_v27 = vld [vmem:[#allocation28 + $0x1050] sm:$0xff]  ;;  %v4072_v12 = vld [vmem:[#allocation28 + $0xe18] sm:$0xff] }
 0xb9a   :  { %4459 = vmatpush.msra.mxu1 %v3991_v7  ;;  %4490 = vmatpush.msra.mxu2 %v4031_v45  ;;  %v3751_v43 = vld [vmem:[#allocation28 + $0x410] sm:$0xff]  ;;  %v3680_v50 = vld [vmem:[#allocation28 + $0x1d8] sm:$0xff] }
 0xb9b   :  { %4510 = vmatpush.msra.mxu3 %v4159_v18  ;;  %4451 = vmatpush.msrb.mxu0 %v3767_v25  ;;  %v3967_v51 = vld [vmem:[#allocation28 + $0xad0] sm:$0xff]  ;;  %v3936_v6 = vld [vmem:[#allocation28 + $0x9d8] sm:$0xff] }
 0xb9c   :  { %4460 = vmatpush.msra.mxu1 %v3983_v35  ;;  %4491 = vmatpush.msra.mxu2 %v4023_v58  ;;  %v4007_v46 = vld [vmem:[#allocation28 + $0xc10] sm:$0xff]  ;;  %v4064_v4 = vld [vmem:[#allocation28 + $0xdd8] sm:$0xff] }
 0xb9d   :  { %4511 = vmatpush.msra.mxu3 %v4151_v62  ;;  %4452 = vmatpush.msrb.mxu0 %v3759_v21  ;;  %v4135_v57 = vld [vmem:[#allocation28 + $0x1010] sm:$0xff]  ;;  %v3672_v42 = vld [vmem:[#allocation28 + $0x198] sm:$0xff] }
 0xb9e   :  { %4461 = vmatpush.msra.mxu1 %v3975_v20  ;;  %4492 = vmatpush.msra.mxu2 %v4015_v3  ;;  %v3959_v52 = vld [vmem:[#allocation28 + $0xa90] sm:$0xff]  ;;  %v3928_v14 = vld [vmem:[#allocation28 + $0x998] sm:$0xff] }
 0xb9f   :  { %4512 = vmatpush.msra.mxu3 %v4143_v27  ;;  %4453 = vmatpush.msrb.mxu0 %v3751_v43  ;;  %v3951_v31 = vld [vmem:[#allocation28 + $0xa50] sm:$0xff]  ;;  %v4056_v17 = vld [vmem:[#allocation28 + $0xd98] sm:$0xff] }
 0xba0   :  { %4454 = vmatmul.f32.vlgmr.msrb.gmra.mxu0 %v6822_v37  ;;  %4462 = vmatpush.msra.mxu1 %v3967_v51  ;;  %v3943_v29 = vld [vmem:[#allocation28 + $0xa10] sm:$0xff]  ;;  %v3664_v19 = vld [vmem:[#allocation28 + $0x158] sm:$0xff] }
 0xba1   :  { %4493 = vmatpush.msra.mxu2 %v4007_v46  ;;  %4513 = vmatpush.msra.mxu3 %v4135_v57  ;;  %v3935_v47 = vld [vmem:[#allocation28 + $0x9d0] sm:$0xff]  ;;  %v3920_v22 = vld [vmem:[#allocation28 + $0x958] sm:$0xff] }
 0xba2   :  { %4518 = vmatpush.msra.mxu0 %v3744_v34  ;;  %4494 = vmatmul.f32.vlgmr.msra.gmra.mxu2 %v6853_v38  ;;  %v3927_v49 = vld [vmem:[#allocation28 + $0x990] sm:$0xff]  ;;  %v4048_v36 = vld [vmem:[#allocation28 + $0xd58] sm:$0xff] }
 0xba3   :  { %5103 = vmatmul.msk.f32.vlgmr.msra.gmra.mxu3 %vm1909_vm5, %v6855_v11  ;;  %4558 = vmatpush.msrb.mxu2 %v4000_v33  ;;  %v3919_v28 = vld [vmem:[#allocation28 + $0x950] sm:$0xff]  ;;  %v3656_v7 = vld [vmem:[#allocation28 + $0x118] sm:$0xff] }
 0xba4   :  { %4578 = vmatpush.msrb.mxu3 %v4128_v56  ;;  %4463 = vmatpush.msra.mxu1 %v3959_v52  ;;  %v3911_v5 = vld [vmem:[#allocation28 + $0x910] sm:$0xff]  ;;  %v3872_v45 = vld [vmem:[#allocation28 + $0x7d8] sm:$0xff] }
 0xba5   :  { %4519 = vmatpush.msra.mxu0 %v3736_v15  ;;  %4559 = vmatpush.msrb.mxu2 %v3992_v44  ;;  %v3903_v55 = vld [vmem:[#allocation28 + $0x8d0] sm:$0xff]  ;;  %v3912_v18 = vld [vmem:[#allocation28 + $0x918] sm:$0xff] }
 0xba6   :  { %4579 = vmatpush.msrb.mxu3 %v4120_v60  ;;  %4464 = vmatpush.msra.mxu1 %v3951_v31  ;;  %v3895_v40 = vld [vmem:[#allocation28 + $0x890] sm:$0xff]  ;;  %v4040_v25 = vld [vmem:[#allocation28 + $0xd18] sm:$0xff]  ;;  %v3873_v60 = vld [vmem:[#allocation28 + $0x7e0] sm:$0xff] }
 0xba7   :  { %4520 = vmatpush.msra.mxu0 %v3728_v2  ;;  %4560 = vmatpush.msrb.mxu2 %v3984_v10  ;;  %v3887_v59 = vld [vmem:[#allocation28 + $0x850] sm:$0xff]  ;;  %v3648_v35 = vld [vmem:[#allocation28 + $0xd8] sm:$0xff]  ;;  %v4001_v31 = vld [vmem:[#allocation28 + $0xbe0] sm:$0xff] }
 0xba8   :  { %4580 = vmatpush.msrb.mxu3 %v4112_v53  ;;  %4465 = vmatpush.msra.mxu1 %v3943_v29  ;;  %v3879_v54 = vld [vmem:[#allocation28 + $0x810] sm:$0xff]  ;;  %v3864_v58 = vld [vmem:[#allocation28 + $0x798] sm:$0xff]  ;;  %v3865_v53 = vld [vmem:[#allocation28 + $0x7a0] sm:$0xff] }
 0xba9   :  { %4521 = vmatpush.msra.mxu0 %v3720_v1  ;;  %4561 = vmatpush.msrb.mxu2 %v3976_v41  ;;  %v3904_v62 = vld [vmem:[#allocation28 + $0x8d8] sm:$0xff]  ;;  %v3993_v29 = vld [vmem:[#allocation28 + $0xba0] sm:$0xff] }
 0xbaa   :  { %4581 = vmatpush.msrb.mxu3 %v4104_v23  ;;  %4466 = vmatpush.msra.mxu1 %v3935_v47  ;;  %v4032_v21 = vld [vmem:[#allocation28 + $0xcd8] sm:$0xff]  ;;  %v3857_v23 = vld [vmem:[#allocation28 + $0x760] sm:$0xff] }
 0xbab   :  { %4522 = vmatpush.msra.mxu0 %v3712_v9  ;;  %4562 = vmatpush.msrb.mxu2 %v3968_v39  ;;  %v3640_v20 = vld [vmem:[#allocation28 + $0x98] sm:$0xff]  ;;  %v3985_v47 = vld [vmem:[#allocation28 + $0xb60] sm:$0xff] }
 0xbac   :  { %4582 = vmatpush.msrb.mxu3 %v4096_v32  ;;  %4467 = vmatpush.msra.mxu1 %v3927_v49  ;;  %v3856_v3 = vld [vmem:[#allocation28 + $0x758] sm:$0xff]  ;;  %v3849_v32 = vld [vmem:[#allocation28 + $0x720] sm:$0xff] }
 0xbad   :  { %4523 = vmatpush.msra.mxu0 %v3704_v30  ;;  %4563 = vmatpush.msrb.mxu2 %v3960_v61  ;;  %v3896_v27 = vld [vmem:[#allocation28 + $0x898] sm:$0xff]  ;;  %v3977_v49 = vld [vmem:[#allocation28 + $0xb20] sm:$0xff] }
 0xbae   :  { %4583 = vmatpush.msrb.mxu3 %v4088_v0  ;;  %4468 = vmatpush.msra.mxu1 %v3919_v28  ;;  %v4024_v43 = vld [vmem:[#allocation28 + $0xc98] sm:$0xff]  ;;  %v3841_v0 = vld [vmem:[#allocation28 + $0x6e0] sm:$0xff] }
 0xbaf   :  { %4524 = vmatpush.msra.mxu0 %v3696_v13  ;;  %4564 = vmatpush.msrb.mxu2 %v3952_v8  ;;  %v3632_v51 = vld [vmem:[#allocation28 + $0x58] sm:$0xff]  ;;  %v3969_v28 = vld [vmem:[#allocation28 + $0xae0] sm:$0xff] }
 0xbb0   :  { %4584 = vmatpush.msrb.mxu3 %v4080_v16  ;;  %4469 = vmatpush.msra.mxu1 %v3911_v5  ;;  %v3848_v46 = vld [vmem:[#allocation28 + $0x718] sm:$0xff]  ;;  %v3833_v16 = vld [vmem:[#allocation28 + $0x6a0] sm:$0xff] }
 0xbb1   :  { %4525 = vmatpush.msra.mxu0 %v3688_v63  ;;  %4565 = vmatpush.msrb.mxu2 %v3944_v24  ;;  %v3888_v57 = vld [vmem:[#allocation28 + $0x858] sm:$0xff]  ;;  %v3961_v5 = vld [vmem:[#allocation28 + $0xaa0] sm:$0xff] }
 0xbb2   :  { %4585 = vmatpush.msrb.mxu3 %v4072_v12  ;;  %4470 = vmatpush.msra.mxu1 %v3903_v55  ;;  %v4016_v34 = vld [vmem:[#allocation28 + $0xc58] sm:$0xff]  ;;  %v3825_v12 = vld [vmem:[#allocation28 + $0x660] sm:$0xff] }
 0xbb3   :  { %4526 = vmatpush.msra.mxu0 %v3680_v50  ;;  %4566 = vmatpush.msrb.mxu2 %v3936_v6  ;;  %v3624_v33 = vld [vmem:[#allocation28 + $0x18] sm:$0xff]  ;;  %v3953_v55 = vld [vmem:[#allocation28 + $0xa60] sm:$0xff] }
 0xbb4   :  { %4586 = vmatpush.msrb.mxu3 %v4064_v4  ;;  %4471 = vmatpush.msra.mxu1 %v3895_v40  ;;  %v3840_v56 = vld [vmem:[#allocation28 + $0x6d8] sm:$0xff]  ;;  %v3817_v4 = vld [vmem:[#allocation28 + $0x620] sm:$0xff] }
 0xbb5   :  { %4527 = vmatpush.msra.mxu0 %v3672_v42  ;;  %4567 = vmatpush.msrb.mxu2 %v3928_v14  ;;  %v3880_v52 = vld [vmem:[#allocation28 + $0x818] sm:$0xff]  ;;  %v3945_v40 = vld [vmem:[#allocation28 + $0xa20] sm:$0xff] }
 0xbb6   :  { %4587 = vmatpush.msrb.mxu3 %v4056_v17  ;;  %4472 = vmatpush.msra.mxu1 %v3887_v59  ;;  %v4008_v15 = vld [vmem:[#allocation28 + $0xc18] sm:$0xff]  ;;  %v4129_v42 = vld [vmem:[#allocation28 + $0xfe0] sm:$0xff] }
 0xbb7   :  { %4528 = vmatpush.msra.mxu0 %v3664_v19  ;;  %4568 = vmatpush.msrb.mxu2 %v3920_v22  ;;  %v4192_v44 = vld [vmem:[#allocation28 + $0x11d8] sm:$0xff]  ;;  %v3809_v17 = vld [vmem:[#allocation28 + $0x5e0] sm:$0xff] }
 0xbb8   :  { %4588 = vmatpush.msrb.mxu3 %v4048_v36  ;;  %4473 = vmatpush.msra.mxu1 %v3879_v54  ;;  %v3832_v2 = vld [vmem:[#allocation28 + $0x698] sm:$0xff]  ;;  %v3937_v59 = vld [vmem:[#allocation28 + $0x9e0] sm:$0xff] }
 0xbb9   :  { %4529 = vmatpush.msra.mxu0 %v3656_v7  ;;  %4474 = vmatmul.f32.vlgmr.msra.gmra.mxu1 %v6826_v26  ;;  %v4184_v10 = vld [vmem:[#allocation28 + $0x1198] sm:$0xff]  ;;  %v4121_v19 = vld [vmem:[#allocation28 + $0xfa0] sm:$0xff] }
 0xbba   :  { %4538 = vmatpush.msrb.mxu1 %v3872_v45  ;;  %4569 = vmatpush.msrb.mxu2 %v3912_v18  ;;  %v3824_v1 = vld [vmem:[#allocation28 + $0x658] sm:$0xff]  ;;  %v3801_v36 = vld [vmem:[#allocation28 + $0x5a0] sm:$0xff] }
 0xbbb   :  { %4589 = vmatpush.msrb.mxu3 %v4040_v25  ;;  %4530 = vmatpush.msra.mxu0 %v3648_v35  ;;  %v4176_v41 = vld [vmem:[#allocation28 + $0x1158] sm:$0xff]  ;;  %v3929_v54 = vld [vmem:[#allocation28 + $0x9a0] sm:$0xff] }
 0xbbc   :  { %4539 = vmatpush.msrb.mxu1 %v3864_v58  ;;  %4570 = vmatpush.msrb.mxu2 %v3904_v62  ;;  %v3816_v9 = vld [vmem:[#allocation28 + $0x618] sm:$0xff]  ;;  %v4113_v7 = vld [vmem:[#allocation28 + $0xf60] sm:$0xff] }
 0xbbd   :  { %4590 = vmatpush.msrb.mxu3 %v4032_v21  ;;  %4531 = vmatpush.msra.mxu0 %v3640_v20  ;;  %v4168_v39 = vld [vmem:[#allocation28 + $0x1118] sm:$0xff]  ;;  %v3793_v18 = vld [vmem:[#allocation28 + $0x560] sm:$0xff] }
 0xbbe   :  { %4540 = vmatpush.msrb.mxu1 %v3856_v3  ;;  %4571 = vmatpush.msrb.mxu2 %v3896_v27  ;;  %v3808_v30 = vld [vmem:[#allocation28 + $0x5d8] sm:$0xff]  ;;  %v3921_v25 = vld [vmem:[#allocation28 + $0x960] sm:$0xff] }
 0xbbf   :  { %4591 = vmatpush.msrb.mxu3 %v4024_v43  ;;  %4532 = vmatpush.msra.mxu0 %v3632_v51  ;;  %v4160_v61 = vld [vmem:[#allocation28 + $0x10d8] sm:$0xff]  ;;  %v4105_v35 = vld [vmem:[#allocation28 + $0xf20] sm:$0xff] }
 0xbc0   :  { %4541 = vmatpush.msrb.mxu1 %v3848_v46  ;;  %4572 = vmatpush.msrb.mxu2 %v3888_v57  ;;  %v3800_v13 = vld [vmem:[#allocation28 + $0x598] sm:$0xff]  ;;  %v3785_v62 = vld [vmem:[#allocation28 + $0x520] sm:$0xff] }
 0xbc1   :  { %4592 = vmatpush.msrb.mxu3 %v4016_v34  ;;  %4533 = vmatpush.msra.mxu0 %v3624_v33  ;;  %v4152_v8 = vld [vmem:[#allocation28 + $0x1098] sm:$0xff]  ;;  %v3745_v21 = vld [vmem:[#allocation28 + $0x3e0] sm:$0xff] }
 0xbc2   :  { %4534 = vmatmul.f32.vlgmr.msra.gmra.mxu0 %v6841_v48  ;;  %4542 = vmatpush.msrb.mxu1 %v3840_v56  ;;  %v3792_v63 = vld [vmem:[#allocation28 + $0x558] sm:$0xff]  ;;  %v3913_v20 = vld [vmem:[#allocation28 + $0x920] sm:$0xff] }
 0xbc3   :  { %4573 = vmatpush.msrb.mxu2 %v3880_v52  ;;  %4593 = vmatpush.msrb.mxu3 %v4008_v15  ;;  %v4144_v24 = vld [vmem:[#allocation28 + $0x1058] sm:$0xff]  ;;  %v4097_v3 = vld [vmem:[#allocation28 + $0xee0] sm:$0xff] }
 0xbc4   :  { %4606 = vmatpush.msrb.mxu0 %v4192_v44  ;;  %4574 = vmatmul.f32.vlgmr.msrb.gmra.mxu2 %v6826_v26  ;;  %v3784_v50 = vld [vmem:[#allocation28 + $0x518] sm:$0xff]  ;;  %v3777_v27 = vld [vmem:[#allocation28 + $0x4e0] sm:$0xff] }
 0xbc5   :  { %4594 = vmatmul.f32.vlgmr.msrb.gmra.mxu3 %v6853_v38  ;;  %4638 = vmatpush.msra.mxu2 %v3873_v60  ;;  %v4136_v6 = vld [vmem:[#allocation28 + $0x1018] sm:$0xff]  ;;  %v3737_v43 = vld [vmem:[#allocation28 + $0x3a0] sm:$0xff] }
 0xbc6   :  { %4658 = vmatpush.msra.mxu3 %v4001_v31  ;;  %4543 = vmatpush.msrb.mxu1 %v3832_v2  ;;  %v3776_v14 = vld [vmem:[#allocation28 + $0x4d8] sm:$0xff]  ;;  %v3905_v51 = vld [vmem:[#allocation28 + $0x8e0] sm:$0xff] }
 0xbc7   :  { %4607 = vmatpush.msrb.mxu0 %v4184_v10  ;;  %4639 = vmatpush.msra.mxu2 %v3865_v53  ;;  %v3768_v22 = vld [vmem:[#allocation28 + $0x498] sm:$0xff]  ;;  %v4089_v46 = vld [vmem:[#allocation28 + $0xea0] sm:$0xff] }
 0xbc8   :  { %4659 = vmatpush.msra.mxu3 %v3993_v29  ;;  %4544 = vmatpush.msrb.mxu1 %v3824_v1  ;;  %v3760_v45 = vld [vmem:[#allocation28 + $0x458] sm:$0xff]  ;;  %v3769_v57 = vld [vmem:[#allocation28 + $0x4a0] sm:$0xff]  ;;  %v3746_v29 = vld [vmem:[#allocation28 + $0x3e8] sm:$0xff] }
 0xbc9   :  { %4608 = vmatpush.msrb.mxu0 %v4176_v41  ;;  %4640 = vmatpush.msra.mxu2 %v3857_v23  ;;  %v3752_v58 = vld [vmem:[#allocation28 + $0x418] sm:$0xff]  ;;  %v3729_v34 = vld [vmem:[#allocation28 + $0x360] sm:$0xff]  ;;  %v3874_v1 = vld [vmem:[#allocation28 + $0x7e8] sm:$0xff] }
 0xbca   :  { %4660 = vmatpush.msra.mxu3 %v3985_v47  ;;  %4545 = vmatpush.msrb.mxu1 %v3816_v9  ;;  %v3897_v33 = vld [vmem:[#allocation28 + $0x8a0] sm:$0xff]  ;;  %v3738_v47 = vld [vmem:[#allocation28 + $0x3a8] sm:$0xff] }
 0xbcb   :  { %4609 = vmatpush.msrb.mxu0 %v4168_v39  ;;  %4641 = vmatpush.msra.mxu2 %v3849_v32  ;;  %v4081_v56 = vld [vmem:[#allocation28 + $0xe60] sm:$0xff]  ;;  %v3866_v9 = vld [vmem:[#allocation28 + $0x7a8] sm:$0xff] }
 0xbcc   :  { %4661 = vmatpush.msra.mxu3 %v3977_v49  ;;  %4546 = vmatpush.msrb.mxu1 %v3808_v30  ;;  %v3761_v52 = vld [vmem:[#allocation28 + $0x460] sm:$0xff]  ;;  %v3730_v49 = vld [vmem:[#allocation28 + $0x368] sm:$0xff] }
 0xbcd   :  { %4610 = vmatpush.msrb.mxu0 %v4160_v61  ;;  %4642 = vmatpush.msra.mxu2 %v3841_v0  ;;  %v3721_v15 = vld [vmem:[#allocation28 + $0x320] sm:$0xff]  ;;  %v3858_v30 = vld [vmem:[#allocation28 + $0x768] sm:$0xff] }
 0xbce   :  { %4662 = vmatpush.msra.mxu3 %v3969_v28  ;;  %4547 = vmatpush.msrb.mxu1 %v3800_v13  ;;  %v3889_v44 = vld [vmem:[#allocation28 + $0x860] sm:$0xff]  ;;  %v3722_v28 = vld [vmem:[#allocation28 + $0x328] sm:$0xff] }
 0xbcf   :  { %4611 = vmatpush.msrb.mxu0 %v4152_v8  ;;  %4643 = vmatpush.msra.mxu2 %v3833_v16  ;;  %v4073_v60 = vld [vmem:[#allocation28 + $0xe20] sm:$0xff]  ;;  %v3850_v13 = vld [vmem:[#allocation28 + $0x728] sm:$0xff] }
 0xbd0   :  { %4663 = vmatpush.msra.mxu3 %v3961_v5  ;;  %4548 = vmatpush.msrb.mxu1 %v3792_v63  ;;  %v3753_v31 = vld [vmem:[#allocation28 + $0x420] sm:$0xff]  ;;  %v3714_v5 = vld [vmem:[#allocation28 + $0x2e8] sm:$0xff] }
 0xbd1   :  { %4612 = vmatpush.msrb.mxu0 %v4144_v24  ;;  %4644 = vmatpush.msra.mxu2 %v3825_v12  ;;  %v3713_v2 = vld [vmem:[#allocation28 + $0x2e0] sm:$0xff]  ;;  %v3842_v63 = vld [vmem:[#allocation28 + $0x6e8] sm:$0xff] }
 0xbd2   :  { %4664 = vmatpush.msra.mxu3 %v3953_v55  ;;  %4549 = vmatpush.msrb.mxu1 %v3784_v50  ;;  %v3881_v10 = vld [vmem:[#allocation28 + $0x820] sm:$0xff]  ;;  %v3706_v55 = vld [vmem:[#allocation28 + $0x2a8] sm:$0xff] }
 0xbd3   :  { %4613 = vmatpush.msrb.mxu0 %v4136_v6  ;;  %4645 = vmatpush.msra.mxu2 %v3817_v4  ;;  %v4065_v53 = vld [vmem:[#allocation28 + $0xde0] sm:$0xff]  ;;  %v3834_v50 = vld [vmem:[#allocation28 + $0x6a8] sm:$0xff] }
 0xbd4   :  { %5104 = vmatmul.msk.f32.vlgmr.msrb.gmra.mxu0 %vm1909_vm5, %v6855_v11  ;;  %4665 = vmatpush.msra.mxu3 %v3945_v40  ;;  %v3705_v41 = vld [vmem:[#allocation28 + $0x2a0] sm:$0xff]  ;;  %v3698_v40 = vld [vmem:[#allocation28 + $0x268] sm:$0xff] }
 0xbd5   :  { %4678 = vmatpush.msra.mxu0 %v4129_v42  ;;  %4550 = vmatpush.msrb.mxu1 %v3776_v14  ;;  %v4057_v23 = vld [vmem:[#allocation28 + $0xda0] sm:$0xff]  ;;  %v3826_v42 = vld [vmem:[#allocation28 + $0x668] sm:$0xff] }
 0xbd6   :  { %4646 = vmatpush.msra.mxu2 %v3809_v17  ;;  %4666 = vmatpush.msra.mxu3 %v3937_v59  ;;  %v3697_v39 = vld [vmem:[#allocation28 + $0x260] sm:$0xff]  ;;  %v3690_v59 = vld [vmem:[#allocation28 + $0x228] sm:$0xff] }
 0xbd7   :  { %4679 = vmatpush.msra.mxu0 %v4121_v19  ;;  %4551 = vmatpush.msrb.mxu1 %v3768_v22  ;;  %v4049_v32 = vld [vmem:[#allocation28 + $0xd60] sm:$0xff]  ;;  %v3818_v19 = vld [vmem:[#allocation28 + $0x628] sm:$0xff] }
 0xbd8   :  { %4647 = vmatpush.msra.mxu2 %v3801_v36  ;;  %4667 = vmatpush.msra.mxu3 %v3929_v54  ;;  %v3689_v61 = vld [vmem:[#allocation28 + $0x220] sm:$0xff]  ;;  %v4002_v22 = vld [vmem:[#allocation28 + $0xbe8] sm:$0xff] }
 0xbd9   :  { %4680 = vmatpush.msra.mxu0 %v4113_v7  ;;  %4552 = vmatpush.msrb.mxu1 %v3760_v45  ;;  %v4041_v0 = vld [vmem:[#allocation28 + $0xd20] sm:$0xff]  ;;  %v3682_v54 = vld [vmem:[#allocation28 + $0x1e8] sm:$0xff] }
 0xbda   :  { %4648 = vmatpush.msra.mxu2 %v3793_v18  ;;  %4668 = vmatpush.msra.mxu3 %v3921_v25  ;;  %v3681_v8 = vld [vmem:[#allocation28 + $0x1e0] sm:$0xff]  ;;  %v3810_v7 = vld [vmem:[#allocation28 + $0x5e8] sm:$0xff] }
 0xbdb   :  { %4681 = vmatpush.msra.mxu0 %v4105_v35  ;;  %4553 = vmatpush.msrb.mxu1 %v3752_v58  ;;  %v4033_v16 = vld [vmem:[#allocation28 + $0xce0] sm:$0xff]  ;;  %v3994_v45 = vld [vmem:[#allocation28 + $0xba8] sm:$0xff] }
 0xbdc   :  { %4554 = vmatmul.f32.vlgmr.msrb.gmra.mxu1 %v6822_v37  ;;  %4649 = vmatpush.msra.mxu2 %v3785_v62  ;;  %v3673_v24 = vld [vmem:[#allocation28 + $0x1a0] sm:$0xff]  ;;  %v3674_v25 = vld [vmem:[#allocation28 + $0x1a8] sm:$0xff] }
 0xbdd   :  { %4618 = vmatpush.msra.mxu1 %v3745_v21  ;;  %4669 = vmatpush.msra.mxu3 %v3913_v20  ;;  %v4025_v12 = vld [vmem:[#allocation28 + $0xca0] sm:$0xff]  ;;  %v3802_v35 = vld [vmem:[#allocation28 + $0x5a8] sm:$0xff] }
 0xbde   :  { %4682 = vmatpush.msra.mxu0 %v4097_v3  ;;  %4650 = vmatpush.msra.mxu2 %v3777_v27  ;;  %v3665_v6 = vld [vmem:[#allocation28 + $0x160] sm:$0xff]  ;;  %v3986_v58 = vld [vmem:[#allocation28 + $0xb68] sm:$0xff] }
 0xbdf   :  { %4619 = vmatpush.msra.mxu1 %v3737_v43  ;;  %4670 = vmatpush.msra.mxu3 %v3905_v51  ;;  %v4017_v4 = vld [vmem:[#allocation28 + $0xc60] sm:$0xff]  ;;  %v3666_v21 = vld [vmem:[#allocation28 + $0x168] sm:$0xff] }
 0xbe0   :  { %4683 = vmatpush.msra.mxu0 %v4089_v46  ;;  %4651 = vmatpush.msra.mxu2 %v3769_v57  ;;  %v3657_v14 = vld [vmem:[#allocation28 + $0x120] sm:$0xff]  ;;  %v3794_v20 = vld [vmem:[#allocation28 + $0x568] sm:$0xff] }
 0xbe1   :  { %4620 = vmatpush.msra.mxu1 %v3729_v34  ;;  %4671 = vmatpush.msra.mxu3 %v3897_v33  ;;  %v4009_v17 = vld [vmem:[#allocation28 + $0xc20] sm:$0xff]  ;;  %v3978_v3 = vld [vmem:[#allocation28 + $0xb28] sm:$0xff] }
 0xbe2   :  { %4684 = vmatpush.msra.mxu0 %v4081_v56  ;;  %4652 = vmatpush.msra.mxu2 %v3761_v52  ;;  %v3649_v36 = vld [vmem:[#allocation28 + $0xe0] sm:$0xff]  ;;  %v3658_v43 = vld [vmem:[#allocation28 + $0x128] sm:$0xff] }
 0xbe3   :  { %4621 = vmatpush.msra.mxu1 %v3721_v15  ;;  %4672 = vmatpush.msra.mxu3 %v3889_v44  ;;  %v3641_v18 = vld [vmem:[#allocation28 + $0xa0] sm:$0xff]  ;;  %v3786_v46 = vld [vmem:[#allocation28 + $0x528] sm:$0xff] }
 0xbe4   :  { %4685 = vmatpush.msra.mxu0 %v4073_v60  ;;  %4653 = vmatpush.msra.mxu2 %v3753_v31  ;;  %v3633_v62 = vld [vmem:[#allocation28 + $0x60] sm:$0xff]  ;;  %v3970_v57 = vld [vmem:[#allocation28 + $0xae8] sm:$0xff] }
 0xbe5   :  { %4622 = vmatpush.msra.mxu1 %v3713_v2  ;;  %4673 = vmatpush.msra.mxu3 %v3881_v10  ;;  %v3625_v27 = vld [vmem:[#allocation28 + $0x20] sm:$0xff]  ;;  %v3650_v34 = vld [vmem:[#allocation28 + $0xe8] sm:$0xff] }
 0xbe6   :  { %4686 = vmatpush.msra.mxu0 %v4065_v53  ;;  %4654 = vmatmul.f32.vlgmr.msra.gmra.mxu2 %v6822_v37  ;;  %v4193_v51 = vld [vmem:[#allocation28 + $0x11e0] sm:$0xff]  ;;  %v3778_v56 = vld [vmem:[#allocation28 + $0x4e8] sm:$0xff] }
 0xbe7   :  { %4674 = vmatmul.f32.vlgmr.msra.gmra.mxu3 %v6826_v26  ;;  %4718 = vmatpush.msrb.mxu2 %v3746_v29  ;;  %v4185_v33 = vld [vmem:[#allocation28 + $0x11a0] sm:$0xff]  ;;  %v3962_v52 = vld [vmem:[#allocation28 + $0xaa8] sm:$0xff] }
 0xbe8   :  { %4738 = vmatpush.msrb.mxu3 %v3874_v1  ;;  %4623 = vmatpush.msra.mxu1 %v3705_v41  ;;  %v3642_v15 = vld [vmem:[#allocation28 + $0xa8] sm:$0xff]  ;;  %v4177_v44 = vld [vmem:[#allocation28 + $0x1160] sm:$0xff] }
 0xbe9   :  { %4687 = vmatpush.msra.mxu0 %v4057_v23  ;;  %4719 = vmatpush.msrb.mxu2 %v3738_v47  ;;  %v3770_v60 = vld [vmem:[#allocation28 + $0x4a8] sm:$0xff]  ;;  %v4169_v10 = vld [vmem:[#allocation28 + $0x1120] sm:$0xff] }
 0xbea   :  { %4739 = vmatpush.msrb.mxu3 %v3866_v9  ;;  %4624 = vmatpush.msra.mxu1 %v3697_v39  ;;  %v3954_v31 = vld [vmem:[#allocation28 + $0xa68] sm:$0xff]  ;;  %v4161_v41 = vld [vmem:[#allocation28 + $0x10e0] sm:$0xff]  ;;  %v3747_v39 = vld [vmem:[#allocation28 + $0x3f0] sm:$0xff] }
 0xbeb   :  { %4688 = vmatpush.msra.mxu0 %v4049_v32  ;;  %4720 = vmatpush.msrb.mxu2 %v3730_v49  ;;  %v3634_v2 = vld [vmem:[#allocation28 + $0x68] sm:$0xff]  ;;  %v4153_v32 = vld [vmem:[#allocation28 + $0x10a0] sm:$0xff] }
 0xbec   :  { %4740 = vmatpush.msrb.mxu3 %v3858_v30  ;;  %4625 = vmatpush.msra.mxu1 %v3689_v61  ;;  %v3762_v53 = vld [vmem:[#allocation28 + $0x468] sm:$0xff]  ;;  %v3739_v61 = vld [vmem:[#allocation28 + $0x3b0] sm:$0xff] }
 0xbed   :  { %4689 = vmatpush.msra.mxu0 %v4041_v0  ;;  %4721 = vmatpush.msrb.mxu2 %v3722_v28  ;;  %v3946_v29 = vld [vmem:[#allocation28 + $0xa28] sm:$0xff]  ;;  %v4145_v0 = vld [vmem:[#allocation28 + $0x1060] sm:$0xff] }
 0xbee   :  { %4741 = vmatpush.msrb.mxu3 %v3850_v13  ;;  %4626 = vmatpush.msra.mxu1 %v3681_v8  ;;  %v3626_v1 = vld [vmem:[#allocation28 + $0x28] sm:$0xff]  ;;  %v3731_v8 = vld [vmem:[#allocation28 + $0x370] sm:$0xff] }
 0xbef   :  { %4690 = vmatpush.msra.mxu0 %v4033_v16  ;;  %4722 = vmatpush.msrb.mxu2 %v3714_v5  ;;  %v3754_v23 = vld [vmem:[#allocation28 + $0x428] sm:$0xff]  ;;  %v4137_v16 = vld [vmem:[#allocation28 + $0x1020] sm:$0xff] }
 0xbf0   :  { %4742 = vmatpush.msrb.mxu3 %v3842_v63  ;;  %4627 = vmatpush.msra.mxu1 %v3673_v24  ;;  %v3938_v47 = vld [vmem:[#allocation28 + $0x9e8] sm:$0xff] }
 0xbf1   :  { %4691 = vmatpush.msra.mxu0 %v4025_v12  ;;  %4723 = vmatpush.msrb.mxu2 %v3706_v55  ;;  %v4194_v9 = vld [vmem:[#allocation28 + $0x11e8] sm:$0xff]  ;;  %v3723_v12 = vld [vmem:[#allocation28 + $0x330] sm:$0xff] }
 0xbf2   :  { %4743 = vmatpush.msrb.mxu3 %v3834_v50  ;;  %4628 = vmatpush.msra.mxu1 %v3665_v6  ;;  %v3930_v49 = vld [vmem:[#allocation28 + $0x9a8] sm:$0xff] }
 0xbf3   :  { %4692 = vmatpush.msra.mxu0 %v4017_v4  ;;  %4724 = vmatpush.msrb.mxu2 %v3698_v40  ;;  %v4186_v30 = vld [vmem:[#allocation28 + $0x11a8] sm:$0xff]  ;;  %v3715_v4 = vld [vmem:[#allocation28 + $0x2f0] sm:$0xff] }
 0xbf4   :  { %4744 = vmatpush.msrb.mxu3 %v3826_v42  ;;  %4629 = vmatpush.msra.mxu1 %v3657_v14  ;;  %v3922_v28 = vld [vmem:[#allocation28 + $0x968] sm:$0xff] }
 0xbf5   :  { %4693 = vmatpush.msra.mxu0 %v4009_v17  ;;  %4725 = vmatpush.msrb.mxu2 %v3690_v59  ;;  %v4178_v13 = vld [vmem:[#allocation28 + $0x1168] sm:$0xff]  ;;  %v3707_v17 = vld [vmem:[#allocation28 + $0x2b0] sm:$0xff] }
 0xbf6   :  { %4694 = vmatmul.f32.vlgmr.msra.gmra.mxu0 %v6853_v38  ;;  %4745 = vmatpush.msrb.mxu3 %v3818_v19  ;;  %v3914_v5 = vld [vmem:[#allocation28 + $0x928] sm:$0xff] }
 0xbf7   :  { %4758 = vmatpush.msrb.mxu0 %v4002_v22  ;;  %4630 = vmatpush.msra.mxu1 %v3649_v36  ;;  %v4130_v63 = vld [vmem:[#allocation28 + $0xfe8] sm:$0xff]  ;;  %v3699_v36 = vld [vmem:[#allocation28 + $0x270] sm:$0xff] }
 0xbf8   :  { %4726 = vmatpush.msrb.mxu2 %v3682_v54  ;;  %4746 = vmatpush.msrb.mxu3 %v3810_v7  ;;  %v4170_v24 = vld [vmem:[#allocation28 + $0x1128] sm:$0xff] }
 0xbf9   :  { %4759 = vmatpush.msrb.mxu0 %v3994_v45  ;;  %4631 = vmatpush.msra.mxu1 %v3641_v18  ;;  %v3906_v55 = vld [vmem:[#allocation28 + $0x8e8] sm:$0xff]  ;;  %v3691_v18 = vld [vmem:[#allocation28 + $0x230] sm:$0xff] }
 0xbfa   :  { %4727 = vmatpush.msrb.mxu2 %v3674_v25  ;;  %4747 = vmatpush.msrb.mxu3 %v3802_v35  ;;  %v4122_v50 = vld [vmem:[#allocation28 + $0xfa8] sm:$0xff]  ;;  %v3875_v25 = vld [vmem:[#allocation28 + $0x7f0] sm:$0xff] }
 0xbfb   :  { %4760 = vmatpush.msrb.mxu0 %v3986_v58  ;;  %4632 = vmatpush.msra.mxu1 %v3633_v62  ;;  %v4162_v6 = vld [vmem:[#allocation28 + $0x10e8] sm:$0xff]  ;;  %v4131_v35 = vld [vmem:[#allocation28 + $0xff0] sm:$0xff] }
 0xbfc   :  { %4728 = vmatpush.msrb.mxu2 %v3666_v21  ;;  %4748 = vmatpush.msrb.mxu3 %v3794_v20  ;;  %v3898_v40 = vld [vmem:[#allocation28 + $0x8a8] sm:$0xff]  ;;  %v3683_v62 = vld [vmem:[#allocation28 + $0x1f0] sm:$0xff] }
 0xbfd   :  { %4761 = vmatpush.msrb.mxu0 %v3978_v3  ;;  %4633 = vmatpush.msra.mxu1 %v3625_v27  ;;  %v4114_v42 = vld [vmem:[#allocation28 + $0xf68] sm:$0xff]  ;;  %v3867_v21 = vld [vmem:[#allocation28 + $0x7b0] sm:$0xff] }
 0xbfe   :  { %4634 = vmatmul.f32.vlgmr.msra.gmra.mxu1 %v6841_v48  ;;  %4729 = vmatpush.msrb.mxu2 %v3658_v43  ;;  %v4154_v14 = vld [vmem:[#allocation28 + $0x10a8] sm:$0xff]  ;;  %v4123_v20 = vld [vmem:[#allocation28 + $0xfb0] sm:$0xff] }
 0xbff   :  { %4706 = vmatpush.msrb.mxu1 %v4193_v51  ;;  %4749 = vmatpush.msrb.mxu3 %v3786_v46  ;;  %v3890_v59 = vld [vmem:[#allocation28 + $0x868] sm:$0xff]  ;;  %v3675_v27 = vld [vmem:[#allocation28 + $0x1b0] sm:$0xff] }
 0xc00   :  { %4762 = vmatpush.msrb.mxu0 %v3970_v57  ;;  %4730 = vmatpush.msrb.mxu2 %v3650_v34  ;;  %v4106_v19 = vld [vmem:[#allocation28 + $0xf28] sm:$0xff]  ;;  %v3859_v43 = vld [vmem:[#allocation28 + $0x770] sm:$0xff] }
 0xc01   :  { %4707 = vmatpush.msrb.mxu1 %v4185_v33  ;;  %4750 = vmatpush.msrb.mxu3 %v3778_v56  ;;  %v4146_v22 = vld [vmem:[#allocation28 + $0x1068] sm:$0xff]  ;;  %v4115_v51 = vld [vmem:[#allocation28 + $0xf70] sm:$0xff] }
 0xc02   :  { %4763 = vmatpush.msrb.mxu0 %v3962_v52  ;;  %4731 = vmatpush.msrb.mxu2 %v3642_v15  ;;  %v3882_v54 = vld [vmem:[#allocation28 + $0x828] sm:$0xff]  ;;  %v3667_v57 = vld [vmem:[#allocation28 + $0x170] sm:$0xff] }
 0xc03   :  { %4708 = vmatpush.msrb.mxu1 %v4177_v44  ;;  %4751 = vmatpush.msrb.mxu3 %v3770_v60  ;;  %v4098_v7 = vld [vmem:[#allocation28 + $0xee8] sm:$0xff]  ;;  %v3851_v34 = vld [vmem:[#allocation28 + $0x730] sm:$0xff] }
 0xc04   :  { %4764 = vmatpush.msrb.mxu0 %v3954_v31  ;;  %4732 = vmatpush.msrb.mxu2 %v3634_v2  ;;  %v4138_v45 = vld [vmem:[#allocation28 + $0x1028] sm:$0xff]  ;;  %v4107_v33 = vld [vmem:[#allocation28 + $0xf30] sm:$0xff] }
 0xc05   :  { %4709 = vmatpush.msrb.mxu1 %v4169_v10  ;;  %4752 = vmatpush.msrb.mxu3 %v3762_v53  ;;  %v4090_v58 = vld [vmem:[#allocation28 + $0xea8] sm:$0xff]  ;;  %v3659_v52 = vld [vmem:[#allocation28 + $0x130] sm:$0xff] }
 0xc06   :  { %4765 = vmatpush.msrb.mxu0 %v3946_v29  ;;  %4733 = vmatpush.msrb.mxu2 %v3626_v1  ;;  %v4082_v3 = vld [vmem:[#allocation28 + $0xe68] sm:$0xff]  ;;  %v3843_v15 = vld [vmem:[#allocation28 + $0x6f0] sm:$0xff] }
 0xc07   :  { %4710 = vmatpush.msrb.mxu1 %v4161_v41  ;;  %4753 = vmatpush.msrb.mxu3 %v3754_v23  ;;  %v4074_v46 = vld [vmem:[#allocation28 + $0xe28] sm:$0xff]  ;;  %v4099_v44 = vld [vmem:[#allocation28 + $0xef0] sm:$0xff] }
 0xc08   :  { %4766 = vmatpush.msrb.mxu0 %v3938_v47  ;;  %4734 = vmatmul.f32.vlgmr.msrb.gmra.mxu2 %v6841_v48  ;;  %v4066_v56 = vld [vmem:[#allocation28 + $0xde8] sm:$0xff]  ;;  %v3651_v31 = vld [vmem:[#allocation28 + $0xf0] sm:$0xff] }
 0xc09   :  { %4754 = vmatmul.f32.vlgmr.msrb.gmra.mxu3 %v6822_v37  ;;  %4806 = vmatpush.msra.mxu2 %v4194_v9  ;;  %v4058_v60 = vld [vmem:[#allocation28 + $0xda8] sm:$0xff]  ;;  %v3835_v2 = vld [vmem:[#allocation28 + $0x6b0] sm:$0xff] }
 0xc0a   :  { %4818 = vmatpush.msra.mxu3 %v3747_v39  ;;  %4711 = vmatpush.msrb.mxu1 %v4153_v32  ;;  %v4091_v10 = vld [vmem:[#allocation28 + $0xeb0] sm:$0xff]  ;;  %v4050_v53 = vld [vmem:[#allocation28 + $0xd68] sm:$0xff] }
 0xc0b   :  { %4767 = vmatpush.msrb.mxu0 %v3930_v49  ;;  %4807 = vmatpush.msra.mxu2 %v4186_v30  ;;  %v3643_v29 = vld [vmem:[#allocation28 + $0xb0] sm:$0xff]  ;;  %v4042_v23 = vld [vmem:[#allocation28 + $0xd28] sm:$0xff] }
 0xc0c   :  { %4819 = vmatpush.msra.mxu3 %v3739_v61  ;;  %4712 = vmatpush.msrb.mxu1 %v4145_v0  ;;  %v3827_v1 = vld [vmem:[#allocation28 + $0x670] sm:$0xff]  ;;  %v4034_v32 = vld [vmem:[#allocation28 + $0xce8] sm:$0xff] }
 0xc0d   :  { %4768 = vmatpush.msrb.mxu0 %v3922_v28  ;;  %4808 = vmatpush.msra.mxu2 %v4178_v13  ;;  %v4083_v41 = vld [vmem:[#allocation28 + $0xe70] sm:$0xff]  ;;  %v4026_v28 = vld [vmem:[#allocation28 + $0xca8] sm:$0xff] }
 0xc0e   :  { %4820 = vmatpush.msra.mxu3 %v3731_v8  ;;  %4713 = vmatpush.msrb.mxu1 %v4137_v16  ;;  %v3635_v47 = vld [vmem:[#allocation28 + $0x70] sm:$0xff] }
 0xc0f   :  { %4769 = vmatpush.msrb.mxu0 %v3914_v5  ;;  %5105 = vmatmul.msk.f32.vlgmr.msrb.gmra.mxu1 %vm1909_vm5, %v6855_v11  ;;  %v3819_v9 = vld [vmem:[#allocation28 + $0x630] sm:$0xff]  ;;  %v4018_v5 = vld [vmem:[#allocation28 + $0xc68] sm:$0xff] }
 0xc10   :  { %4778 = vmatpush.msra.mxu1 %v4130_v63  ;;  %4809 = vmatpush.msra.mxu2 %v4170_v24  ;;  %v4075_v39 = vld [vmem:[#allocation28 + $0xe30] sm:$0xff] }
 0xc11   :  { %4821 = vmatpush.msra.mxu3 %v3723_v12  ;;  %4770 = vmatpush.msrb.mxu0 %v3906_v55  ;;  %v3627_v49 = vld [vmem:[#allocation28 + $0x30] sm:$0xff]  ;;  %v4010_v55 = vld [vmem:[#allocation28 + $0xc28] sm:$0xff] }
 0xc12   :  { %4779 = vmatpush.msra.mxu1 %v4122_v50  ;;  %4810 = vmatpush.msra.mxu2 %v4162_v6  ;;  %v3811_v30 = vld [vmem:[#allocation28 + $0x5f0] sm:$0xff] }
 0xc13   :  { %4822 = vmatpush.msra.mxu3 %v3715_v4  ;;  %4771 = vmatpush.msrb.mxu0 %v3898_v40  ;;  %v4067_v61 = vld [vmem:[#allocation28 + $0xdf0] sm:$0xff] }
 0xc14   :  { %4780 = vmatpush.msra.mxu1 %v4114_v42  ;;  %4811 = vmatpush.msra.mxu2 %v4154_v14  ;;  %v4195_v0 = vld [vmem:[#allocation28 + $0x11f0] sm:$0xff] }
 0xc15   :  { %4823 = vmatpush.msra.mxu3 %v3707_v17  ;;  %4772 = vmatpush.msrb.mxu0 %v3890_v59  ;;  %v3803_v13 = vld [vmem:[#allocation28 + $0x5b0] sm:$0xff] }
 0xc16   :  { %4781 = vmatpush.msra.mxu1 %v4106_v19  ;;  %4812 = vmatpush.msra.mxu2 %v4146_v22  ;;  %v4059_v8 = vld [vmem:[#allocation28 + $0xdb0] sm:$0xff] }
 0xc17   :  { %4824 = vmatpush.msra.mxu3 %v3699_v36  ;;  %4773 = vmatpush.msrb.mxu0 %v3882_v54  ;;  %v4187_v16 = vld [vmem:[#allocation28 + $0x11b0] sm:$0xff] }
 0xc18   :  { %4774 = vmatmul.f32.vlgmr.msrb.gmra.mxu0 %v6826_v26  ;;  %4782 = vmatpush.msra.mxu1 %v4098_v7  ;;  %v3795_v63 = vld [vmem:[#allocation28 + $0x570] sm:$0xff] }
 0xc19   :  { %4813 = vmatpush.msra.mxu2 %v4138_v45  ;;  %4825 = vmatpush.msra.mxu3 %v3691_v18  ;;  %v4051_v24 = vld [vmem:[#allocation28 + $0xd70] sm:$0xff] }
 0xc1a   :  { %4838 = vmatpush.msra.mxu0 %v3875_v25  ;;  %5106 = vmatmul.msk.f32.vlgmr.msra.gmra.mxu2 %vm1909_vm5, %v6855_v11  ;;  %v4179_v12 = vld [vmem:[#allocation28 + $0x1170] sm:$0xff] }
 0xc1b   :  { %4878 = vmatpush.msrb.mxu2 %v4131_v35  ;;  %4783 = vmatpush.msra.mxu1 %v4090_v58  ;;  %v3787_v50 = vld [vmem:[#allocation28 + $0x530] sm:$0xff]  ;;  %v6889_v58 = vpop.f32.mrf.mxu1 }
 0xc1c   :  { %4826 = vmatpush.msra.mxu3 %v3683_v62  ;;  %4839 = vmatpush.msra.mxu0 %v3867_v21  ;;  %v4003_v6 = vld [vmem:[#allocation28 + $0xbf0] sm:$0xff]  ;;  %v6891_v62 = vpop.f32.mrf.mxu2 }
 0xc1d   :  { %4879 = vmatpush.msrb.mxu2 %v4123_v20  ;;  %4784 = vmatpush.msra.mxu1 %v4082_v3  ;;  %v4043_v4 = vld [vmem:[#allocation28 + $0xd30] sm:$0xff] }
 0xc1e   :  { %4827 = vmatpush.msra.mxu3 %v3675_v27  ;;  %4840 = vmatpush.msra.mxu0 %v3859_v43  ;;  %v4171_v40 = vld [vmem:[#allocation28 + $0x1130] sm:$0xff]  ;;  %v3748_v27 = vld [vmem:[#allocation28 + $0x3f8] sm:$0xff] }
 0xc1f   :  { %4880 = vmatpush.msrb.mxu2 %v4115_v51  ;;  %4785 = vmatpush.msra.mxu1 %v4074_v46  ;;  %v3779_v42 = vld [vmem:[#allocation28 + $0x4f0] sm:$0xff]  ;;  %v4004_v43 = vld [vmem:[#allocation28 + $0xbf8] sm:$0xff]  ;;  %v6894_v51 = vpop.f32.mrf.mxu3  ;;  %v6896_v46 = vpop.f32.mrf.mxu0 }
 0xc20   :  { %4828 = vmatpush.msra.mxu3 %v3667_v57  ;;  %4841 = vmatpush.msra.mxu0 %v3851_v34  ;;  %v3995_v14 = vld [vmem:[#allocation28 + $0xbb0] sm:$0xff]  ;;  %v4132_v57 = vld [vmem:[#allocation28 + $0xff8] sm:$0xff] }
 0xc21   :  { %4881 = vmatpush.msrb.mxu2 %v4107_v33  ;;  %4786 = vmatpush.msra.mxu1 %v4066_v56  ;;  %v4035_v17 = vld [vmem:[#allocation28 + $0xcf0] sm:$0xff]  ;;  %v3740_v33 = vld [vmem:[#allocation28 + $0x3b8] sm:$0xff] }
 0xc22   :  { %4829 = vmatpush.msra.mxu3 %v3659_v52  ;;  %4842 = vmatpush.msra.mxu0 %v3843_v15  ;;  %v4163_v59 = vld [vmem:[#allocation28 + $0x10f0] sm:$0xff]  ;;  %v3996_v56 = vld [vmem:[#allocation28 + $0xbb8] sm:$0xff] }
 0xc23   :  { %4882 = vmatpush.msrb.mxu2 %v4099_v44  ;;  %4787 = vmatpush.msra.mxu1 %v4058_v60  ;;  %v3771_v19 = vld [vmem:[#allocation28 + $0x4b0] sm:$0xff]  ;;  %v4124_v52 = vld [vmem:[#allocation28 + $0xfb8] sm:$0xff] }
 0xc24   :  { %4830 = vmatpush.msra.mxu3 %v3651_v31  ;;  %4843 = vmatpush.msra.mxu0 %v3835_v2  ;;  %v3987_v22 = vld [vmem:[#allocation28 + $0xb70] sm:$0xff]  ;;  %v3732_v44 = vld [vmem:[#allocation28 + $0x378] sm:$0xff] }
 0xc25   :  { %4883 = vmatpush.msrb.mxu2 %v4091_v10  ;;  %4788 = vmatpush.msra.mxu1 %v4050_v53  ;;  %v4027_v36 = vld [vmem:[#allocation28 + $0xcb0] sm:$0xff]  ;;  %v3988_v60 = vld [vmem:[#allocation28 + $0xb78] sm:$0xff] }
 0xc26   :  { %4831 = vmatpush.msra.mxu3 %v3643_v29  ;;  %4844 = vmatpush.msra.mxu0 %v3827_v1  ;;  %v4155_v54 = vld [vmem:[#allocation28 + $0x10b0] sm:$0xff]  ;;  %v4116_v31 = vld [vmem:[#allocation28 + $0xf78] sm:$0xff]  ;;  %v6901_v29 = vpop.f32.mrf.mxu1  ;;  %v6903_v1 = vpop.f32.mrf.mxu2 }
 0xc27   :  { %4884 = vmatpush.msrb.mxu2 %v4083_v41  ;;  %4789 = vmatpush.msra.mxu1 %v4042_v23  ;;  %v3763_v7 = vld [vmem:[#allocation28 + $0x470] sm:$0xff]  ;;  %v3724_v10 = vld [vmem:[#allocation28 + $0x338] sm:$0xff] }
 0xc28   :  { %4832 = vmatpush.msra.mxu3 %v3635_v47  ;;  %4845 = vmatpush.msra.mxu0 %v3819_v9  ;;  %v3979_v45 = vld [vmem:[#allocation28 + $0xb30] sm:$0xff]  ;;  %v3980_v53 = vld [vmem:[#allocation28 + $0xb38] sm:$0xff] }
 0xc29   :  { %4885 = vmatpush.msrb.mxu2 %v4075_v39  ;;  %4790 = vmatpush.msra.mxu1 %v4034_v32  ;;  %v4019_v18 = vld [vmem:[#allocation28 + $0xc70] sm:$0xff]  ;;  %v4108_v41 = vld [vmem:[#allocation28 + $0xf38] sm:$0xff] }
 0xc2a   :  { %4833 = vmatpush.msra.mxu3 %v3627_v49  ;;  %4846 = vmatpush.msra.mxu0 %v3811_v30  ;;  %v4147_v25 = vld [vmem:[#allocation28 + $0x1070] sm:$0xff]  ;;  %v3716_v47 = vld [vmem:[#allocation28 + $0x2f8] sm:$0xff] }
 0xc2b   :  { %4834 = vmatmul.f32.vlgmr.msra.gmra.mxu3 %v6841_v48  ;;  %4886 = vmatpush.msrb.mxu2 %v4067_v61  ;;  %v3755_v35 = vld [vmem:[#allocation28 + $0x430] sm:$0xff]  ;;  %v3972_v9 = vld [vmem:[#allocation28 + $0xaf8] sm:$0xff]  ;;  %v6905_v61 = vpop.f32.mrf.mxu3 }
 0xc2c   :  { %4906 = vmatpush.msrb.mxu3 %v4195_v0  ;;  %4791 = vmatpush.msra.mxu1 %v4026_v28  ;;  %v3971_v21 = vld [vmem:[#allocation28 + $0xaf0] sm:$0xff]  ;;  %v4100_v39 = vld [vmem:[#allocation28 + $0xef8] sm:$0xff]  ;;  %v6907_v0 = vpop.f32.mrf.mxu0 }
 0xc2d   :  { %4847 = vmatpush.msra.mxu0 %v3803_v13  ;;  %4887 = vmatpush.msrb.mxu2 %v4059_v8  ;;  %v4011_v20 = vld [vmem:[#allocation28 + $0xc30] sm:$0xff]  ;;  %v3708_v49 = vld [vmem:[#allocation28 + $0x2b8] sm:$0xff] }
 0xc2e   :  { %4907 = vmatpush.msrb.mxu3 %v4187_v16  ;;  %4792 = vmatpush.msra.mxu1 %v4018_v5  ;;  %v4139_v3 = vld [vmem:[#allocation28 + $0x1030] sm:$0xff]  ;;  %v3964_v30 = vld [vmem:[#allocation28 + $0xab8] sm:$0xff] }
 0xc2f   :  { %4848 = vmatpush.msra.mxu0 %v3795_v63  ;;  %4888 = vmatpush.msrb.mxu2 %v4051_v24  ;;  %v3963_v34 = vld [vmem:[#allocation28 + $0xab0] sm:$0xff]  ;;  %v4092_v28 = vld [vmem:[#allocation28 + $0xeb8] sm:$0xff] }
 0xc30   :  { %4908 = vmatpush.msrb.mxu3 %v4179_v12  ;;  %4793 = vmatpush.msra.mxu1 %v4010_v55  ;;  %v3955_v15 = vld [vmem:[#allocation28 + $0xa70] sm:$0xff]  ;;  %v3700_v8 = vld [vmem:[#allocation28 + $0x278] sm:$0xff]  ;;  %v6909_v55 = vld [vmem:[#allocation30] sm:$0xff] }
 0xc31   :  { %4849 = vmatpush.msra.mxu0 %v3787_v50  ;;  %4794 = vmatmul.f32.vlgmr.msra.gmra.mxu1 %v6853_v38  ;;  %v3947_v2 = vld [vmem:[#allocation28 + $0xa30] sm:$0xff]  ;;  %v3956_v16 = vld [vmem:[#allocation28 + $0xa78] sm:$0xff]  ;;  %v6911_v50 = vpop.f32.mrf.mxu1 }
 0xc32   :  { %4858 = vmatpush.msrb.mxu1 %v4003_v6  ;;  %4889 = vmatpush.msrb.mxu2 %v4043_v4  ;;  %v3939_v23 = vld [vmem:[#allocation28 + $0x9f0] sm:$0xff]  ;;  %v4084_v5 = vld [vmem:[#allocation28 + $0xe78] sm:$0xff] }
 0xc33   :  { %4909 = vmatpush.msrb.mxu3 %v4171_v40  ;;  %4850 = vmatpush.msra.mxu0 %v3779_v42  ;;  %v3931_v32 = vld [vmem:[#allocation28 + $0x9b0] sm:$0xff]  ;;  %v3692_v24 = vld [vmem:[#allocation28 + $0x238] sm:$0xff]  ;;  %v4200_v40 = vperm.slane %v6909_v55, 1 }
 0xc34   :  { %4859 = vmatpush.msrb.mxu1 %v3995_v14  ;;  %4890 = vmatpush.msrb.mxu2 %v4035_v17  ;;  %v3923_v13 = vld [vmem:[#allocation28 + $0x970] sm:$0xff]  ;;  %v3948_v12 = vld [vmem:[#allocation28 + $0xa38] sm:$0xff]  ;;  %v6914_v17 = vpop.f32.mrf.mxu2 }
 0xc35   :  { %4910 = vmatpush.msrb.mxu3 %v4163_v59  ;;  %4851 = vmatpush.msra.mxu0 %v3771_v19  ;;  %v3915_v63 = vld [vmem:[#allocation28 + $0x930] sm:$0xff]  ;;  %v4076_v6 = vld [vmem:[#allocation28 + $0xe38] sm:$0xff] }
 0xc36   :  { %4860 = vmatpush.msrb.mxu1 %v3987_v22  ;;  %4891 = vmatpush.msrb.mxu2 %v4027_v36  ;;  %v3907_v4 = vld [vmem:[#allocation28 + $0x8f0] sm:$0xff]  ;;  %v3684_v42 = vld [vmem:[#allocation28 + $0x1f8] sm:$0xff]  ;;  %v4201_v22 = vperm.slane %v6909_v55, 2 }
 0xc37   :  { %4911 = vmatpush.msrb.mxu3 %v4155_v54  ;;  %4852 = vmatpush.msra.mxu0 %v3763_v7  ;;  %v3940_v14 = vld [vmem:[#allocation28 + $0x9f8] sm:$0xff]  ;;  %v3899_v19 = vld [vmem:[#allocation28 + $0x8b0] sm:$0xff]  ;;  %v4435_v7 = vpop.f32.mrf.mxu3 }
 0xc38   :  { %4861 = vmatpush.msrb.mxu1 %v3979_v45  ;;  %4892 = vmatpush.msrb.mxu2 %v4019_v18  ;;  %v4068_v59 = vld [vmem:[#allocation28 + $0xdf8] sm:$0xff]  ;;  %v4455_v45 = vpop.f32.mrf.mxu0 }
 0xc39   :  { %4912 = vmatpush.msrb.mxu3 %v4147_v25  ;;  %4853 = vmatpush.msra.mxu0 %v3755_v35  ;;  %v3676_v36 = vld [vmem:[#allocation28 + $0x1b8] sm:$0xff]  ;;  %v3891_v25 = vld [vmem:[#allocation28 + $0x870] sm:$0xff]  ;;  %v4199_v35 = vperm.slane %v6909_v55, 0 }
 0xc3a   :  { %4854 = vmatmul.f32.vlgmr.msra.gmra.mxu0 %v6822_v37  ;;  %4862 = vmatpush.msrb.mxu1 %v3971_v21  ;;  %v3932_v54 = vld [vmem:[#allocation28 + $0x9b8] sm:$0xff]  ;;  %v4336_v21 = vadd.f32 %v6903_v1, %v4200_v40 }
 0xc3b   :  { %4893 = vmatpush.msrb.mxu2 %v4011_v20  ;;  %4913 = vmatpush.msrb.mxu3 %v4139_v3  ;;  %v4060_v18 = vld [vmem:[#allocation28 + $0xdb8] sm:$0xff] }
 0xc3c   :  { %4918 = vmatpush.msrb.mxu0 %v3748_v27  ;;  %4894 = vmatmul.f32.vlgmr.msrb.gmra.mxu2 %v6853_v38  ;;  %v3668_v20 = vld [vmem:[#allocation28 + $0x178] sm:$0xff] }
 0xc3d   :  { %5107 = vmatmul.msk.f32.vlgmr.msrb.gmra.mxu3 %vm1909_vm5, %v6855_v11  ;;  %4958 = vmatpush.msra.mxu2 %v4004_v43  ;;  %v3924_v3 = vld [vmem:[#allocation28 + $0x978] sm:$0xff]  ;;  %v3883_v43 = vld [vmem:[#allocation28 + $0x830] sm:$0xff] }
 0xc3e   :  { %4978 = vmatpush.msra.mxu3 %v4132_v57  ;;  %4863 = vmatpush.msrb.mxu1 %v3963_v34  ;;  %v4052_v27 = vld [vmem:[#allocation28 + $0xd78] sm:$0xff]  ;;  %v4436_v57 = vadd.f32 %v4435_v7, %v4201_v22 }
 0xc3f   :  { %4919 = vmatpush.msrb.mxu0 %v3740_v33  ;;  %4959 = vmatpush.msra.mxu2 %v3996_v56  ;;  %v3660_v34 = vld [vmem:[#allocation28 + $0x138] sm:$0xff]  ;;  %v4475_v33 = vpop.f32.mrf.mxu1 }
 0xc40   :  { %4979 = vmatpush.msra.mxu3 %v4124_v52  ;;  %4864 = vmatpush.msrb.mxu1 %v3955_v15  ;;  %v3876_v56 = vld [vmem:[#allocation28 + $0x7f8] sm:$0xff]  ;;  %v4236_v15 = vadd.f32 %v6889_v58, %v4199_v35 }
 0xc41   :  { %4920 = vmatpush.msrb.mxu0 %v3732_v44  ;;  %4960 = vmatpush.msra.mxu2 %v3988_v60  ;;  %v3916_v52 = vld [vmem:[#allocation28 + $0x938] sm:$0xff]  ;;  %v4356_v44 = vadd.f32 %v6905_v61, %v4336_v21  ;;  %v4456_v60 = vadd.f32 %v4455_v45, %v4436_v57 }
 0xc42   :  { %4980 = vmatpush.msra.mxu3 %v4116_v31  ;;  %4865 = vmatpush.msrb.mxu1 %v3947_v2  ;;  %v4044_v31 = vld [vmem:[#allocation28 + $0xd38] sm:$0xff]  ;;  %v4256_v61 = vadd.f32 %v6891_v62, %v4236_v15 }
 0xc43   :  { %4921 = vmatpush.msrb.mxu0 %v3724_v10  ;;  %4961 = vmatpush.msra.mxu2 %v3980_v53  ;;  %v3652_v2 = vld [vmem:[#allocation28 + $0xf8] sm:$0xff]  ;;  %v4495_v10 = vpop.f32.mrf.mxu2 }
 0xc44   :  { %4981 = vmatpush.msra.mxu3 %v4108_v41  ;;  %4866 = vmatpush.msrb.mxu1 %v3939_v23  ;;  %v3868_v53 = vld [vmem:[#allocation28 + $0x7b8] sm:$0xff]  ;;  %v4376_v41 = vadd.f32 %v6907_v0, %v4356_v44  ;;  %v4476_v23 = vadd.f32 %v4475_v33, %v4456_v60 }
 0xc45   :  { %4922 = vmatpush.msrb.mxu0 %v3716_v47  ;;  %4962 = vmatpush.msra.mxu2 %v3972_v9  ;;  %v3908_v1 = vld [vmem:[#allocation28 + $0x8f8] sm:$0xff]  ;;  %v4202_v47 = vperm.slane %v6909_v55, 3 }
 0xc46   :  { %4982 = vmatpush.msra.mxu3 %v4100_v39  ;;  %4867 = vmatpush.msrb.mxu1 %v3931_v32  ;;  %v4036_v58 = vld [vmem:[#allocation28 + $0xcf8] sm:$0xff]  ;;  %v4515_v39 = vpop.f32.mrf.mxu3  ;;  %v4535_v32 = vpop.f32.mrf.mxu0 }
 0xc47   :  { %4923 = vmatpush.msrb.mxu0 %v3708_v49  ;;  %4963 = vmatpush.msra.mxu2 %v3964_v30  ;;  %v3644_v9 = vld [vmem:[#allocation28 + $0xb8] sm:$0xff] }
 0xc48   :  { %4983 = vmatpush.msra.mxu3 %v4092_v28  ;;  %4868 = vmatpush.msrb.mxu1 %v3923_v13  ;;  %v3860_v49 = vld [vmem:[#allocation28 + $0x778] sm:$0xff]  ;;  %v4396_v28 = vadd.f32 %v6911_v50, %v4376_v41  ;;  %v4276_v50 = vadd.f32 %v6894_v51, %v4256_v61 }
 0xc49   :  { %4924 = vmatpush.msrb.mxu0 %v3700_v8  ;;  %4964 = vmatpush.msra.mxu2 %v3956_v16  ;;  %v3900_v30 = vld [vmem:[#allocation28 + $0x8b8] sm:$0xff] }
 0xc4a   :  { %4984 = vmatpush.msra.mxu3 %v4084_v5  ;;  %4869 = vmatpush.msrb.mxu1 %v3915_v63  ;;  %v4028_v0 = vld [vmem:[#allocation28 + $0xcb8] sm:$0xff]  ;;  %v4496_v5 = vadd.f32 %v4495_v10, %v4476_v23  ;;  %v4536_v63 = vadd.f32 %v4535_v32, %v4202_v47  ;;  %v4296_v22 = vadd.f32 %v6896_v46, %v4276_v50 }
 0xc4b   :  { %4925 = vmatpush.msrb.mxu0 %v3692_v24  ;;  %4965 = vmatpush.msra.mxu2 %v3948_v12  ;;  %v3636_v13 = vld [vmem:[#allocation28 + $0x78] sm:$0xff] }
 0xc4c   :  { %4985 = vmatpush.msra.mxu3 %v4076_v6  ;;  %4870 = vmatpush.msrb.mxu1 %v3907_v4  ;;  %v3852_v8 = vld [vmem:[#allocation28 + $0x738] sm:$0xff]  ;;  %v4416_v4 = vadd.f32 %v6914_v17, %v4396_v28 }
 0xc4d   :  { %4926 = vmatpush.msrb.mxu0 %v3684_v42  ;;  %4966 = vmatpush.msra.mxu2 %v3940_v14  ;;  %v3892_v16 = vld [vmem:[#allocation28 + $0x878] sm:$0xff] }
 0xc4e   :  { %4986 = vmatpush.msra.mxu3 %v4068_v59  ;;  %4871 = vmatpush.msrb.mxu1 %v3899_v19  ;;  %v4020_v24 = vld [vmem:[#allocation28 + $0xc78] sm:$0xff]  ;;  %v4575_v59 = vpop.f32.mrf.mxu2  ;;  %v4595_v51 = vpop.f32.mrf.mxu3  ;;  %5164 = vtanh.f32 %v4416_v4 }
 0xc4f   :  { %4927 = vmatpush.msrb.mxu0 %v3676_v36  ;;  %4967 = vmatpush.msra.mxu2 %v3932_v54  ;;  %v3628_v12 = vld [vmem:[#allocation28 + $0x38] sm:$0xff]  ;;  %v4516_v36 = vadd.f32 %v4515_v39, %v4496_v5 }
 0xc50   :  { %4987 = vmatpush.msra.mxu3 %v4060_v18  ;;  %4872 = vmatpush.msrb.mxu1 %v3891_v25  ;;  %v3844_v6 = vld [vmem:[#allocation28 + $0x6f8] sm:$0xff] }
 0xc51   :  { %4928 = vmatpush.msrb.mxu0 %v3668_v20  ;;  %4968 = vmatpush.msra.mxu2 %v3924_v3  ;;  %v3884_v40 = vld [vmem:[#allocation28 + $0x838] sm:$0xff]  ;;  %v4615_v25 = vpop.f32.mrf.mxu0  ;;  %5166 = vtanh.f32 %v4516_v36 }
 0xc52   :  { %4988 = vmatpush.msra.mxu3 %v4052_v27  ;;  %4873 = vmatpush.msrb.mxu1 %v3883_v43  ;;  %v4012_v42 = vld [vmem:[#allocation28 + $0xc38] sm:$0xff] }
 0xc53   :  { %4929 = vmatpush.msrb.mxu0 %v3660_v34  ;;  %4874 = vmatmul.f32.vlgmr.msrb.gmra.mxu1 %v6826_v26  ;;  %v4196_v19 = vld [vmem:[#allocation28 + $0x11f8] sm:$0xff] }
 0xc54   :  { %4938 = vmatpush.msra.mxu1 %v3876_v56  ;;  %4969 = vmatpush.msra.mxu2 %v3916_v52  ;;  %v3836_v54 = vld [vmem:[#allocation28 + $0x6b8] sm:$0xff]  ;;  %v5165_v27 = vpop.eup %5164 }
 0xc55   :  { %4989 = vmatpush.msra.mxu3 %v4044_v31  ;;  %4930 = vmatpush.msrb.mxu0 %v3652_v2  ;;  %v4188_v17 = vld [vmem:[#allocation28 + $0x11b8] sm:$0xff]  ;;  %v5034_v34 = vrot.slane %v5165_v27, 6 }
 0xc56   :  { %4939 = vmatpush.msra.mxu1 %v3868_v53  ;;  %4970 = vmatpush.msra.mxu2 %v3908_v1  ;;  %v3828_v45 = vld [vmem:[#allocation28 + $0x678] sm:$0xff] }
 0xc57   :  { %4990 = vmatpush.msra.mxu3 %v4036_v58  ;;  %4931 = vmatpush.msrb.mxu0 %v3644_v9  ;;  %v4180_v46 = vld [vmem:[#allocation28 + $0x1178] sm:$0xff]  ;;  %v5167_v57 = vpop.eup %5166 }
 0xc58   :  { %4940 = vmatpush.msra.mxu1 %v3860_v49  ;;  %4971 = vmatpush.msra.mxu2 %v3900_v30  ;;  %v3820_v35 = vld [vmem:[#allocation28 + $0x638] sm:$0xff]  ;;  %v5035_v15 = vrot.slane %v5167_v57, 4 }
 0xc59   :  { %4991 = vmatpush.msra.mxu3 %v4028_v0  ;;  %4932 = vmatpush.msrb.mxu0 %v3636_v13  ;;  %v4555_v62 = vpop.f32.mrf.mxu1  ;;  %v4172_v20 = vld [vmem:[#allocation28 + $0x1138] sm:$0xff]  ;;  %v4204_v13 = vperm.slane %v6909_v55, 5 }
 0xc5a   :  { %4941 = vmatpush.msra.mxu1 %v3852_v8  ;;  %4972 = vmatpush.msra.mxu2 %v3892_v16  ;;  %v4556_v14 = vadd.f32 %v4555_v62, %v4536_v63  ;;  %v3812_v3 = vld [vmem:[#allocation28 + $0x5f8] sm:$0xff]  ;;  %v4205_v8 = vperm.slane %v6909_v55, 6  ;;  %v4203_v63 = vperm.slane %v6909_v55, 4 }
 0xc5b   :  { %4992 = vmatpush.msra.mxu3 %v4020_v24  ;;  %4933 = vmatpush.msrb.mxu0 %v3628_v12  ;;  %v3804_v43 = vld [vmem:[#allocation28 + $0x5b8] sm:$0xff] }
 0xc5c   :  { %4934 = vmatmul.f32.vlgmr.msrb.gmra.mxu0 %v6841_v48  ;;  %4942 = vmatpush.msra.mxu1 %v3844_v6  ;;  %v4576_v7 = vadd.f32 %v4575_v59, %v4556_v14  ;;  %v4316_v48 = vadd.f32 %v6901_v29, %v4296_v22  ;;  %v3796_v29 = vld [vmem:[#allocation28 + $0x578] sm:$0xff]  ;;  %v4206_v14 = vperm.slane %v6909_v55, 7 }
 0xc5d   :  { %4973 = vmatpush.msra.mxu2 %v3884_v40  ;;  %4993 = vmatpush.msra.mxu3 %v4012_v42  ;;  %v4148_v33 = vld [vmem:[#allocation28 + $0x1078] sm:$0xff] }
 0xc5e   :  { %5006 = vmatpush.msra.mxu0 %v4196_v19  ;;  %4974 = vmatmul.f32.vlgmr.msra.gmra.mxu2 %v6826_v26  ;;  %v4596_v18 = vadd.f32 %v4595_v51, %v4576_v7  ;;  %v4164_v26 = vld [vmem:[#allocation28 + $0x10f8] sm:$0xff] }
 0xc5f   :  { %4994 = vmatmul.f32.vlgmr.msra.gmra.mxu3 %v6853_v38  ;;  %4943 = vmatpush.msra.mxu1 %v3836_v54  ;;  %v4156_v38 = vld [vmem:[#allocation28 + $0x10b8] sm:$0xff] }
 0xc60   :  { %5007 = vmatpush.msra.mxu0 %v4188_v17  ;;  %v4616_v21 = vadd.f32 %v4615_v25, %v4596_v18  ;;  %v3788_v52 = vld [vmem:[#allocation28 + $0x538] sm:$0xff] }
 0xc61   :  { %4944 = vmatpush.msra.mxu1 %v3828_v45  ;;  %v4140_v60 = vld [vmem:[#allocation28 + $0x1038] sm:$0xff] }
 0xc62   :  { %5008 = vmatpush.msra.mxu0 %v4180_v46  ;;  %5168 = vtanh.f32 %v4616_v21  ;;  %v3780_v2 = vld [vmem:[#allocation28 + $0x4f8] sm:$0xff] }
 0xc63   :  { %4945 = vmatpush.msra.mxu1 %v3820_v35  ;;  %5170 = vtanh.f32 %v4316_v48  ;;  %v3772_v41 = vld [vmem:[#allocation28 + $0x4b8] sm:$0xff] }
 0xc64   :  { %5009 = vmatpush.msra.mxu0 %v4172_v20  ;;  %v3764_v23 = vld [vmem:[#allocation28 + $0x478] sm:$0xff] }
 0xc65   :  { %4946 = vmatpush.msra.mxu1 %v3812_v3  ;;  %v3756_v47 = vld [vmem:[#allocation28 + $0x438] sm:$0xff] }
 0xc66   :  { %5010 = vmatpush.msra.mxu0 %v4164_v26 }
 0xc67   :  { %4947 = vmatpush.msra.mxu1 %v3804_v43 }
 0xc68   :  { %v5169_v56 = vpop.eup %5168  ;;  %5011 = vmatpush.msra.mxu0 %v4156_v38 }
 0xc69   :  { %v5036_v44 = vrot.slane %v5169_v56, 2  ;;  %4948 = vmatpush.msra.mxu1 %v3796_v29  ;;  %v5171_v31 = vpop.eup %5170  ;;  %v4655_v9 = vpop.f32.mrf.mxu2 }
 0xc6a   :  { %5012 = vmatpush.msra.mxu0 %v4148_v33  ;;  %v5041_v10 = vsel %vm5040_vm6, %v5171_v31, %v5034_v34  ;;  %v4675_v39 = vpop.f32.mrf.mxu3 }
 0xc6b   :  { %v5043_v53 = vsel %vm5042_vm3, %v5035_v15, %v5036_v44  ;;  %4949 = vmatpush.msra.mxu1 %v3788_v52 }
 0xc6c   :  { %v5045_v1 = vsel %vm5044_vm4, %v5041_v10, %v5043_v53  ;;  %5013 = vmatpush.msra.mxu0 %v4140_v60 }
 0xc6d   :  { %5051 = vst [vmem:[%s6972_s20] sm:$0xff] %v5045_v1  ;;  %5108 = vmatmul.msk.f32.vlgmr.msra.gmra.mxu0 %vm1909_vm5, %v6855_v11  ;;  %4950 = vmatpush.msra.mxu1 %v3780_v2 }
 0xc6f   :  { %4951 = vmatpush.msra.mxu1 %v3772_v41 }
 0xc71   :  { %4952 = vmatpush.msra.mxu1 %v3764_v23 }
 0xc73   :  { %4953 = vmatpush.msra.mxu1 %v3756_v47  ;;  %v4695_v32 = vpop.f32.mrf.mxu0 }
 0xc74   :  { %4954 = vmatmul.f32.vlgmr.msra.gmra.mxu1 %v6822_v37 }
 0xc7b   :  { %v4635_v58 = vpop.f32.mrf.mxu1 }
 0xc7c   :  { %v4636_v6 = vadd.f32 %v4635_v58, %v4203_v63 }
 0xc7e   :  { %v4656_v22 = vadd.f32 %v4655_v9, %v4636_v6 }
 0xc80   :  { %v4676_v17 = vadd.f32 %v4675_v39, %v4656_v22 }
 0xc82   :  { %v4696_v21 = vadd.f32 %v4695_v32, %v4676_v17 }
 0xc8b   :  { %v4735_v30 = vpop.f32.mrf.mxu2 }
 0xc8c   :  { %v4715_v49 = vpop.f32.mrf.mxu1  ;;  %v4755_v61 = vpop.f32.mrf.mxu3  ;;  %v4736_v24 = vadd.f32 %v4735_v30, %v4204_v13 }
 0xc8d   :  { %v4716_v26 = vadd.f32 %v4715_v49, %v4696_v21 }
 0xc8e   :  { %v4756_v62 = vadd.f32 %v4755_v61, %v4736_v24 }
 0xc95   :  { %v4775_v28 = vpop.f32.mrf.mxu0 }
 0xc96   :  { %v4776_v40 = vadd.f32 %v4775_v28, %v4756_v62 }
 0xc9d   :  { %v4815_v11 = vpop.f32.mrf.mxu2 }
 0xcae   :  { %v4795_v0 = vpop.f32.mrf.mxu1  ;;  %v4835_v16 = vpop.f32.mrf.mxu3 }
 0xcaf   :  { %v4836_v37 = vadd.f32 %v4835_v16, %v4205_v8  ;;  %v4796_v36 = vadd.f32 %v4795_v0, %v4776_v40 }
 0xcb1   :  { %v4816_v45 = vadd.f32 %v4815_v11, %v4796_v36 }
 0xcb3   :  { %5172 = vtanh.f32 %v4816_v45 }
 0xcb7   :  { %v4855_v5 = vpop.f32.mrf.mxu0 }
 0xcb8   :  { %v4856_v50 = vadd.f32 %v4855_v5, %v4836_v37 }
 0xcb9   :  { %v5173_v27 = vpop.eup %5172 }
 0xcba   :  { %v5037_v38 = vrot.slane %v5173_v27, 6 }
 0xcbf   :  { %v4895_v4 = vpop.f32.mrf.mxu2 }
 0xcc0   :  { %v4915_v59 = vpop.f32.mrf.mxu3 }
 0xcd0   :  { %v4875_v12 = vpop.f32.mrf.mxu1 }
 0xcd1   :  { %v4876_v42 = vadd.f32 %v4875_v12, %v4856_v50 }
 0xcd3   :  { %v4896_v54 = vadd.f32 %v4895_v4, %v4876_v42 }
 0xcd5   :  { %v4916_v46 = vadd.f32 %v4915_v59, %v4896_v54 }
 0xcd7   :  { %5174 = vtanh.f32 %v4916_v46 }
 0xcd9   :  { %v4935_v19 = vpop.f32.mrf.mxu0 }
 0xcda   :  { %v4936_v7 = vadd.f32 %v4935_v19, %v4206_v14 }
 0xcdd   :  { %v5175_v43 = vpop.eup %5174 }
 0xcde   :  { %v5038_v29 = vrot.slane %v5175_v43, 4 }
 0xce1   :  { %v4975_v25 = vpop.f32.mrf.mxu2 }
 0xce2   :  { %v4995_v35 = vpop.f32.mrf.mxu3 }
 0xcea   :  { %v5015_v3 = vpop.f32.mrf.mxu0 }
 0xcf1   :  { %v4955_v51 = vpop.f32.mrf.mxu1 }
 0xcf2   :  { %v4956_v18 = vadd.f32 %v4955_v51, %v4936_v7 }
 0xcf4   :  { %v4976_v48 = vadd.f32 %v4975_v25, %v4956_v18 }
 0xcf6   :  { %v4996_v20 = vadd.f32 %v4995_v35, %v4976_v48 }
 0xcf8   :  { %v5016_v55 = vadd.f32 %v5015_v3, %v4996_v20 }
 0xcfa   :  { %5176 = vtanh.f32 %v5016_v55 }
 0xcfb   :  { %5178 = vtanh.f32 %v4716_v26 }
 0xd00   :  { %v5177_v57 = vpop.eup %5176 }
 0xd01   :  { %v5039_v34 = vrot.slane %v5177_v57, 2  ;;  %v5179_v33 = vpop.eup %5178 }
 0xd02   :  { %v5046_v56 = vsel %vm5040_vm6, %v5179_v33, %v5037_v38 }
 0xd03   :  { %v5047_v52 = vsel %vm5042_vm3, %v5038_v29, %v5039_v34 }
 0xd04   :  { %v5048_v15 = vsel %vm5044_vm4, %v5046_v56, %v5047_v52 }
 0xd05   :  { %5052 = vst [vmem:[%s6972_s20 + $0x8] sm:$0xff] %v5048_v15 }
 0xd06   :  { %5061 = vsyncpa [#allocation3], 1 }
 0xd07   :  { %5062 = vsyncpa [#allocation5], 1 }
 0xd08   :  { %5063 = vsyncpa [#allocation8], 1 }
 0xd09   :  { %5064 = vsyncpa [#allocation11], 1 }
 0xd0a   :  { %5065 = vsyncpa [#allocation14], 1 }
 0xd0b   :  { %5066 = vsyncpa [#allocation17], 1 }
 0xd0c   :  { %5067 = vsyncpa [#allocation20], 1 }
 0xd0d   :  { %5068 = vsyncpa [#allocation23], 1 }
 0xd0e   :  { %5069 = vsyncpa [#allocation26], 1 }
 0xd0f   :  { %5070 = vsyncpa [#allocation29], 1 }

</bundles_post_ra>
